<compile_context>
chip_gen: v6e
topology: v6e:2x2x1
jax: 0.10.0
libtpu: 0.0.40
codegen_flags: <defaults>
</compile_context>

<pallas_src>
import functools

import jax
import jax.numpy as jnp
from jax import lax
from jax.experimental import pallas as pl
from jax.experimental.pallas import tpu as pltpu

NC = 3          # input channels (standard DCGAN)
EPS = 1e-5      # BatchNorm eps (PyTorch default)
SLOPE = 0.2     # LeakyReLU negative slope
K1 = 128        # layer-1 contraction dim, zero-padded from 4*10*NC = 120


def _lrelu(x):
    return jnp.where(x > 0, x, SLOPE * x)


# ----------------------------- fused Pallas kernel ------------------------------

def _disc_kernel(N,
                 cols1_ref, w1c_ref, w2c_ref, w3c_ref, w4r_ref,
                 g2_ref, b2_ref, g3_ref, b3_ref,
                 out_ref, buf1, buf2):
    f32 = jnp.float32
    bf16 = jnp.bfloat16

    # Zero the padded activation buffers: untouched halo cells act as conv padding.
    # The interior is fully overwritten by the bulk block stores below; the full
    # memset is a single bulk store per buffer (~100 store-cycles at these sizes).
    # TODO(synk): bf16 scratch + halo-only zeroing would halve this further, but
    # packed-dtype sublane-offset slices are riskier to lower; keep f32 scratch.
    buf1[...] = jnp.zeros(buf1.shape, f32)
    buf2[...] = jnp.zeros(buf2.shape, f32)

    # ---------------- Layer 1: Conv(3->64, k4 s2 p1) + LeakyReLU ----------------
    # cols1 rows = (n, h, w//4); K lanes = (kh, rw, ci) zero-padded to 128.
    # w1c lanes = (w%4, co).
    y1 = jnp.dot(cols1_ref[...], w1c_ref[...], preferred_element_type=f32)
    y1 = _lrelu(y1)                                            # (N*64, 256)
    # ONE block store: rows (n, h//4, h%4, w//4) -> padded block-of-4 buffer.
    buf1[:, 1:5, :, 1:5, :] = y1.reshape(N, 4, 4, 4, 256)

    # ------------- Layer 2: Conv(64->128, k4 s2 p1) + BN + LeakyReLU -------------
    # 6 row taps (rh = 2*(h2%2)+kh).  Per tap, 3 bulk slices of 4 adjacent
    # w-blocks -> (N*16, 256) LHS, matched against a 256-wide K slice of w2c.
    # Output rows = (n, h2//2, w2//2); output lanes = (h2%2, w2%2, co).
    acc2 = jnp.zeros((N * 16, 512), f32)
    for rh in range(6):
        oh, hr = (rh + 3) // 4, (rh + 3) % 4
        for k in range(3):
            A = buf1[:, oh:oh + 4, hr, k:k + 4, :].reshape(N * 16, 256)
            acc2 = acc2 + jnp.dot(A.astype(bf16),
                                  w2c_ref[rh, k * 256:(k + 1) * 256, :],
                                  preferred_element_type=f32)

    # BatchNorm2d(128): one-pass batch stats over N*H*W (lanes hold 4 (h%2,w%2) groups).
    cnt2 = float(N * 8 * 8)
    s1 = jnp.sum(acc2, axis=0, keepdims=True)                  # (1, 512)
    s2 = jnp.sum(acc2 * acc2, axis=0, keepdims=True)
    s1c = s1[:, 0:128] + s1[:, 128:256] + s1[:, 256:384] + s1[:, 384:512]
    s2c = s2[:, 0:128] + s2[:, 128:256] + s2[:, 256:384] + s2[:, 384:512]
    mean2 = s1c / cnt2
    var2 = s2c / cnt2 - mean2 * mean2
    scale2 = g2_ref[...] * lax.rsqrt(var2 + EPS)
    shift2 = b2_ref[...] - mean2 * scale2
    scale2f = jnp.concatenate([scale2] * 4, axis=-1)
    shift2f = jnp.concatenate([shift2] * 4, axis=-1)
    y2 = _lrelu(acc2 * scale2f + shift2f)                      # (N*16, 512)

    # TWO bulk block stores (one per h2%2 lane group) into the padded block-of-2
    # buffer used by layer 3 (replaces 8N masked (4,256) stores).
    y2r = y2.reshape(N, 4, 4, 512)                             # (n, h2//2, w2//2, lanes)
    buf2[:, 1:5, 0, 1:5, :] = y2r[:, :, :, 0:256]
    buf2[:, 1:5, 1, 1:5, :] = y2r[:, :, :, 256:512]

    # ------------- Layer 3: Conv(128->256, k4 s2 p1) + BN + LeakyReLU ------------
    acc3 = jnp.zeros((N * 16, 256), f32)
    for kh in range(4):
        off, sub = (kh + 1) // 2, (kh + 1) % 2
        for k in range(3):
            A = buf2[:, off:off + 4, sub, k:k + 4, :].reshape(N * 16, 256)
            acc3 = acc3 + jnp.dot(A.astype(bf16),
                                  w3c_ref[kh, k * 256:(k + 1) * 256, :],
                                  preferred_element_type=f32)

    cnt3 = float(N * 4 * 4)
    t1 = jnp.sum(acc3, axis=0, keepdims=True)
    t2 = jnp.sum(acc3 * acc3, axis=0, keepdims=True)
    mean3 = t1 / cnt3
    var3 = t2 / cnt3 - mean3 * mean3
    scale3 = g3_ref[...] * lax.rsqrt(var3 + EPS)
    shift3 = b3_ref[...] - mean3 * scale3
    y3 = _lrelu(acc3 * scale3 + shift3)                        # rows = (n, h3, w3)

    # ------- Layer 4: Conv(256->1, k4 s1 valid) + Sigmoid (vectorized VPU) -------
    w4r = w4r_ref[...].reshape(1, 16, 256)                     # (1, h3*w3, ci)
    v = jnp.sum(y3.reshape(N, 16, 256) * w4r, axis=2)          # (N, 16)
    v = jnp.sum(v, axis=1, keepdims=True)                      # (N, 1)
    out_ref[...] = jax.nn.sigmoid(v) * jnp.ones((1, 128), f32)  # one lane-dense store


# ------------------------------- host-side glue ----------------------------------

def init_params(key):
    k1, k2, k3, k4, k5, k6 = jax.random.split(key, 6)
    return {
        "w1": 0.02 * jax.random.normal(k1, (64, NC, 4, 4), jnp.float32),
        "w2": 0.02 * jax.random.normal(k2, (128, 64, 4, 4), jnp.float32),
        "w3": 0.02 * jax.random.normal(k3, (256, 128, 4, 4), jnp.float32),
        "w4": 0.02 * jax.random.normal(k4, (1, 256, 4, 4), jnp.float32),
        "g2": 1.0 + 0.02 * jax.random.normal(k5, (128,), jnp.float32),
        "b2": jnp.zeros((128,), jnp.float32),
        "g3": 1.0 + 0.02 * jax.random.normal(k6, (256,), jnp.float32),
        "b3": jnp.zeros((256,), jnp.float32),
    }


def pack_params(p):
    """One-time repack of torch-layout weights into the kernel's matmul layouts."""
    w1, w2, w3, w4 = p["w1"], p["w2"], p["w3"], p["w4"]

    # Layer 1: 4 adjacent output columns folded into lanes; rows = (kh, rw, ci),
    # cols = (w%4, co), with rw = 2*(w%4) + kw.  Rows zero-padded 120 -> 128.
    w1c = jnp.zeros((4, 10, NC, 4, 64), jnp.float32)
    for ws in range(4):
        for kw in range(4):
            rw = 2 * ws + kw
            w1c = w1c.at[:, rw, :, ws, :].set(jnp.transpose(w1[:, :, :, kw], (2, 1, 0)))
    w1c = w1c.reshape(4 * 10 * NC, 256)
    w1c = jnp.pad(w1c, ((0, K1 - 4 * 10 * NC), (0, 0))).astype(jnp.bfloat16)

    # Layer 2: 6 row taps (rh = 2*(h%2)+kh); rows = (p, ci) with p = 3 + 2*(w%2)+kw;
    # cols = (h%2, w%2, co).
    w2c = jnp.zeros((6, 12, 64, 2, 2, 128), jnp.float32)
    for hs in range(2):
        for kh in range(4):
            rh = 2 * hs + kh
            for ws in range(2):
                for kw in range(4):
                    pp = 3 + 2 * ws + kw
                    w2c = w2c.at[rh, pp, :, hs, ws, :].set(
                        jnp.transpose(w2[:, :, kh, kw], (1, 0)))
    w2c = w2c.reshape(6, 768, 512).astype(jnp.bfloat16)

    # Layer 3: 4 row taps; rows = (p, ci) with p = kw + 1; cols = co.
    w3c = jnp.zeros((4, 6, 128, 256), jnp.float32)
    for kh in range(4):
        for kw in range(4):
            w3c = w3c.at[kh, kw + 1, :, :].set(jnp.transpose(w3[:, :, kh, kw], (1, 0)))
    w3c = w3c.reshape(4, 768, 256).astype(jnp.bfloat16)

    # Layer 4: (16, 256) with rows = (h3, w3), cols = ci  (VPU reduction operand).
    w4r = jnp.transpose(w4[0], (1, 2, 0)).reshape(16, 256).astype(jnp.float32)

    return {
        "w1c": w1c, "w2c": w2c, "w3c": w3c, "w4r": w4r,
        "g2": p["g2"].reshape(1, 128), "b2": p["b2"].reshape(1, 128),
        "g3": p["g3"].reshape(1, 256), "b3": p["b3"].reshape(1, 256),
    }


def discriminator_forward(x_nchw, packed):
    N = x_nchw.shape[0]
    x = jnp.transpose(x_nchw, (0, 2, 3, 1)).astype(jnp.float32)        # NHWC (N,32,32,3)
    xp = jnp.pad(x, ((0, 0), (1, 1), (1, 1), (0, 0)))                  # (N,34,34,3)

    # Layer-1 im2col (only layer done on the 3-channel raw input in XLA):
    # rows = (n, h, w//4), cols = (kh, rw, ci) with rw = 2*(w%4) + kw, padded to 128.
    # TODO(synk): this XLA prologue (one fused launch over ~25 KB) is the latency
    # floor at tiny N; folding it into the kernel needs a lane-dense 3-channel
    # input layout and is left for a follow-up.
    taps = []
    for kh in range(4):
        for rw in range(10):
            taps.append(xp[:, kh:kh + 32:2, rw:rw + 32:8, :])          # (N,16,4,3)
    cols1 = jnp.stack(taps, axis=0).reshape(4, 10, N, 16, 4, NC)
    cols1 = jnp.transpose(cols1, (2, 3, 4, 0, 1, 5)).reshape(N * 64, 4 * 10 * NC)
    cols1 = jnp.pad(cols1, ((0, 0), (0, K1 - 4 * 10 * NC))).astype(jnp.bfloat16)

    ins = (cols1, packed["w1c"], packed["w2c"], packed["w3c"], packed["w4r"],
           packed["g2"], packed["b2"], packed["g3"], packed["b3"])

    vmem_spec = pl.BlockSpec(memory_space=pltpu.MemorySpace.VMEM)      # whole-array,
    # unblocked, single-buffered (no grid => no pointless double-buffering of weights).
    out = pl.pallas_call(
        functools.partial(_disc_kernel, N),
        out_shape=jax.ShapeDtypeStruct((N, 128), jnp.float32),
        in_specs=[vmem_spec for _ in ins],
        out_specs=vmem_spec,
        scratch_shapes=[
            pltpu.VMEM((N, 6, 4, 6, 256), jnp.float32),   # padded layer-1 output (block-of-4)
            pltpu.VMEM((N, 6, 2, 6, 256), jnp.float32),   # padded layer-2 output (block-of-2)
        ],
        compiler_params=pltpu.CompilerParams(
            vmem_limit_bytes=32 * 1024 * 1024,            # right-sized for v7x (64 MiB phys)
        ),
    )(*ins)

    # lane-dense kernel output -> PyTorch-shaped (N, 1, 1, 1)
    return out[:, 0:1].reshape(N, 1, 1, 1)


# ------------------------- pure-XLA reference (for checking) ---------------------

def _conv(x, w, stride, pad):
    return lax.conv_general_dilated(
        x, w, (stride, stride), [(pad, pad), (pad, pad)],
        dimension_numbers=("NCHW", "OIHW", "NCHW"))


def _bn(y, g, b):
    mean = jnp.mean(y, axis=(0, 2, 3), keepdims=True)
    var = jnp.mean((y - mean) ** 2, axis=(0, 2, 3), keepdims=True)
    yn = (y - mean) * lax.rsqrt(var + EPS)
    return yn * g[None, :, None, None] + b[None, :, None, None]


def reference_forward(x, p):
    y = _lrelu(_conv(x, p["w1"], 2, 1))
    y = _lrelu(_bn(_conv(y, p["w2"], 2, 1), p["g2"], p["b2"]))
    y = _lrelu(_bn(_conv(y, p["w3"], 2, 1), p["g3"], p["b3"]))
    return jax.nn.sigmoid(_conv(y, p["w4"], 1, 0))


if __name__ == "__main__":
    key = jax.random.PRNGKey(0)
    pkey, xkey = jax.random.split(key)
    params = init_params(pkey)
    packed = pack_params(params)                     # one-time weight repack (host side)
    x = jax.random.normal(xkey, (2, NC, 32, 32), jnp.float32)

    out = jax.jit(discriminator_forward)(x, packed)
    out = jax.block_until_ready(out)

    assert out.shape == (2, 1, 1, 1)
    assert bool(jnp.all(jnp.isfinite(out)))
    assert bool(jnp.all((out >= 0.0) & (out <= 1.0)))

    ref = reference_forward(x, params)
    max_diff = float(jnp.max(jnp.abs(out - ref)))
    assert max_diff < 5e-2, "mismatch vs XLA reference: %g" % max_diff

    print("KERNEL_OK")
</pallas_src>

<mosaic_0001>
module attributes {stable_mosaic.version = 11 : i64} {
  func.func @_disc_kernel(%arg0: memref<128x128xbf16, #tpu.memory_space<vmem>>, %arg1: memref<128x256xbf16, #tpu.memory_space<vmem>>, %arg2: memref<6x768x512xbf16, #tpu.memory_space<vmem>>, %arg3: memref<4x768x256xbf16, #tpu.memory_space<vmem>>, %arg4: memref<16x256xf32, #tpu.memory_space<vmem>>, %arg5: memref<1x128xf32, #tpu.memory_space<vmem>>, %arg6: memref<1x128xf32, #tpu.memory_space<vmem>>, %arg7: memref<1x256xf32, #tpu.memory_space<vmem>>, %arg8: memref<1x256xf32, #tpu.memory_space<vmem>>, %arg9: memref<2x128xf32, #tpu.memory_space<vmem>>, %arg10: memref<2x6x4x6x256xf32, #tpu.memory_space<vmem>>, %arg11: memref<2x6x2x6x256xf32, #tpu.memory_space<vmem>>) attributes {dimension_semantics = [], scalar_prefetch = 0 : i64, scratch_operands = 2 : i64, tpu.core_type = #tpu.core_type<tc>} {
    %cst = arith.constant 0.000000e+00 : f32
    %0 = vector.broadcast %cst : f32 to vector<2x6x4x6x256xf32>
    %c0 = arith.constant 0 : index
    %c0_0 = arith.constant 0 : index
    %c0_1 = arith.constant 0 : index
    %c0_2 = arith.constant 0 : index
    %c0_3 = arith.constant 0 : index
    %1 = vector.load %arg10[%c0, %c0_0, %c0_1, %c0_2, %c0_3] : memref<2x6x4x6x256xf32, #tpu.memory_space<vmem>>, vector<2x6x4x6x256xf32>
    tpu.vector_store %arg10[%c0, %c0_0, %c0_1, %c0_2, %c0_3], %0 {strides = array<i32>} : memref<2x6x4x6x256xf32, #tpu.memory_space<vmem>>, vector<2x6x4x6x256xf32>,
    %cst_4 = arith.constant 0.000000e+00 : f32
    %2 = vector.broadcast %cst_4 : f32 to vector<2x6x2x6x256xf32>
    %c0_5 = arith.constant 0 : index
    %c0_6 = arith.constant 0 : index
    %c0_7 = arith.constant 0 : index
    %c0_8 = arith.constant 0 : index
    %c0_9 = arith.constant 0 : index
    %3 = vector.load %arg11[%c0_5, %c0_6, %c0_7, %c0_8, %c0_9] : memref<2x6x2x6x256xf32, #tpu.memory_space<vmem>>, vector<2x6x2x6x256xf32>
    tpu.vector_store %arg11[%c0_5, %c0_6, %c0_7, %c0_8, %c0_9], %2 {strides = array<i32>} : memref<2x6x2x6x256xf32, #tpu.memory_space<vmem>>, vector<2x6x2x6x256xf32>,
    %c0_10 = arith.constant 0 : index
    %c0_11 = arith.constant 0 : index
    %4 = vector.load %arg0[%c0_10, %c0_11] : memref<128x128xbf16, #tpu.memory_space<vmem>>, vector<128x128xbf16>
    %c0_12 = arith.constant 0 : index
    %c0_13 = arith.constant 0 : index
    %5 = vector.load %arg1[%c0_12, %c0_13] : memref<128x256xbf16, #tpu.memory_space<vmem>>, vector<128x256xbf16>
    %cst_14 = arith.constant dense<0.000000e+00> : vector<128x256xf32>
    %6 = tpu.matmul %4, %5, %cst_14 {dimension_numbers = #tpu.dot_dimension_numbers<[1], [0], [0], [1], [0, 0, 1, 1], [], []>} : vector<128x128xbf16>, vector<128x256xbf16>, vector<128x256xf32> -> vector<128x256xf32>
    %cst_15 = arith.constant 0.000000e+00 : f32
    %7 = vector.broadcast %cst_15 : f32 to vector<128x256xf32>
    %8 = arith.cmpf ogt, %6, %7 : vector<128x256xf32>
    %cst_16 = arith.constant 2.000000e-01 : f32
    %9 = vector.broadcast %cst_16 : f32 to vector<128x256xf32>
    %10 = arith.mulf %9, %6 : vector<128x256xf32>
    %11 = arith.select %8, %6, %10 : vector<128x256xi1>, vector<128x256xf32>
    %12 = vector.shape_cast %11 : vector<128x256xf32> to vector<2x4x4x4x256xf32>
    %c0_17 = arith.constant 0 : index
    %c1 = arith.constant 1 : index
    %c0_18 = arith.constant 0 : index
    %c1_19 = arith.constant 1 : index
    %c0_20 = arith.constant 0 : index
    %13 = vector.load %arg10[%c0_17, %c1, %c0_18, %c1_19, %c0_20] : memref<2x6x4x6x256xf32, #tpu.memory_space<vmem>>, vector<2x4x4x4x256xf32>
    tpu.vector_store %arg10[%c0_17, %c1, %c0_18, %c1_19, %c0_20], %12 {strides = array<i32>} : memref<2x6x4x6x256xf32, #tpu.memory_space<vmem>>, vector<2x4x4x4x256xf32>,
    %cst_21 = arith.constant 0.000000e+00 : f32
    %14 = vector.broadcast %cst_21 : f32 to vector<32x512xf32>
    %c0_22 = arith.constant 0 : index
    %c0_23 = arith.constant 0 : index
    %c3 = arith.constant 3 : index
    %c0_24 = arith.constant 0 : index
    %c0_25 = arith.constant 0 : index
    %15 = vector.load %arg10[%c0_22, %c0_23, %c3, %c0_24, %c0_25] : memref<2x6x4x6x256xf32, #tpu.memory_space<vmem>>, vector<2x4x1x4x256xf32>
    %16 = vector.shape_cast %15 : vector<2x4x1x4x256xf32> to vector<2x4x4x256xf32>
    %17 = vector.shape_cast %16 : vector<2x4x4x256xf32> to vector<32x256xf32>
    %18 = arith.truncf %17 : vector<32x256xf32> to vector<32x256xbf16>
    %c0_26 = arith.constant 0 : index
    %c0_27 = arith.constant 0 : index
    %c0_28 = arith.constant 0 : index
    %19 = vector.load %arg2[%c0_26, %c0_27, %c0_28] : memref<6x768x512xbf16, #tpu.memory_space<vmem>>, vector<1x256x512xbf16>
    %20 = vector.shape_cast %19 : vector<1x256x512xbf16> to vector<256x512xbf16>
    %cst_29 = arith.constant dense<0.000000e+00> : vector<32x512xf32>
    %21 = tpu.matmul %18, %20, %cst_29 {dimension_numbers = #tpu.dot_dimension_numbers<[1], [0], [0], [1], [0, 0, 1, 1], [], []>} : vector<32x256xbf16>, vector<256x512xbf16>, vector<32x512xf32> -> vector<32x512xf32>
    %22 = arith.addf %14, %21 : vector<32x512xf32>
    %c0_30 = arith.constant 0 : index
    %c0_31 = arith.constant 0 : index
    %c3_32 = arith.constant 3 : index
    %c1_33 = arith.constant 1 : index
    %c0_34 = arith.constant 0 : index
    %23 = vector.load %arg10[%c0_30, %c0_31, %c3_32, %c1_33, %c0_34] : memref<2x6x4x6x256xf32, #tpu.memory_space<vmem>>, vector<2x4x1x4x256xf32>
    %24 = vector.shape_cast %23 : vector<2x4x1x4x256xf32> to vector<2x4x4x256xf32>
    %25 = vector.shape_cast %24 : vector<2x4x4x256xf32> to vector<32x256xf32>
    %26 = arith.truncf %25 : vector<32x256xf32> to vector<32x256xbf16>
    %c0_35 = arith.constant 0 : index
    %c256 = arith.constant 256 : index
    %c0_36 = arith.constant 0 : index
    %27 = vector.load %arg2[%c0_35, %c256, %c0_36] : memref<6x768x512xbf16, #tpu.memory_space<vmem>>, vector<1x256x512xbf16>
    %28 = vector.shape_cast %27 : vector<1x256x512xbf16> to vector<256x512xbf16>
    %cst_37 = arith.constant dense<0.000000e+00> : vector<32x512xf32>
    %29 = tpu.matmul %26, %28, %cst_37 {dimension_numbers = #tpu.dot_dimension_numbers<[1], [0], [0], [1], [0, 0, 1, 1], [], []>} : vector<32x256xbf16>, vector<256x512xbf16>, vector<32x512xf32> -> vector<32x512xf32>
    %30 = arith.addf %22, %29 : vector<32x512xf32>
    %c0_38 = arith.constant 0 : index
    %c0_39 = arith.constant 0 : index
    %c3_40 = arith.constant 3 : index
    %c2 = arith.constant 2 : index
    %c0_41 = arith.constant 0 : index
    %31 = vector.load %arg10[%c0_38, %c0_39, %c3_40, %c2, %c0_41] : memref<2x6x4x6x256xf32, #tpu.memory_space<vmem>>, vector<2x4x1x4x256xf32>
    %32 = vector.shape_cast %31 : vector<2x4x1x4x256xf32> to vector<2x4x4x256xf32>
    %33 = vector.shape_cast %32 : vector<2x4x4x256xf32> to vector<32x256xf32>
    %34 = arith.truncf %33 : vector<32x256xf32> to vector<32x256xbf16>
    %c0_42 = arith.constant 0 : index
    %c512 = arith.constant 512 : index
    %c0_43 = arith.constant 0 : index
    %35 = vector.load %arg2[%c0_42, %c512, %c0_43] : memref<6x768x512xbf16, #tpu.memory_space<vmem>>, vector<1x256x512xbf16>
    %36 = vector.shape_cast %35 : vector<1x256x512xbf16> to vector<256x512xbf16>
    %cst_44 = arith.constant dense<0.000000e+00> : vector<32x512xf32>
    %37 = tpu.matmul %34, %36, %cst_44 {dimension_numbers = #tpu.dot_dimension_numbers<[1], [0], [0], [1], [0, 0, 1, 1], [], []>} : vector<32x256xbf16>, vector<256x512xbf16>, vector<32x512xf32> -> vector<32x512xf32>
    %38 = arith.addf %30, %37 : vector<32x512xf32>
    %c0_45 = arith.constant 0 : index
    %c1_46 = arith.constant 1 : index
    %c0_47 = arith.constant 0 : index
    %c0_48 = arith.constant 0 : index
    %c0_49 = arith.constant 0 : index
    %39 = vector.load %arg10[%c0_45, %c1_46, %c0_47, %c0_48, %c0_49] : memref<2x6x4x6x256xf32, #tpu.memory_space<vmem>>, vector<2x4x1x4x256xf32>
    %40 = vector.shape_cast %39 : vector<2x4x1x4x256xf32> to vector<2x4x4x256xf32>
    %41 = vector.shape_cast %40 : vector<2x4x4x256xf32> to vector<32x256xf32>
    %42 = arith.truncf %41 : vector<32x256xf32> to vector<32x256xbf16>
    %c1_50 = arith.constant 1 : index
    %c0_51 = arith.constant 0 : index
    %c0_52 = arith.constant 0 : index
    %43 = vector.load %arg2[%c1_50, %c0_51, %c0_52] : memref<6x768x512xbf16, #tpu.memory_space<vmem>>, vector<1x256x512xbf16>
    %44 = vector.shape_cast %43 : vector<1x256x512xbf16> to vector<256x512xbf16>
    %cst_53 = arith.constant dense<0.000000e+00> : vector<32x512xf32>
    %45 = tpu.matmul %42, %44, %cst_53 {dimension_numbers = #tpu.dot_dimension_numbers<[1], [0], [0], [1], [0, 0, 1, 1], [], []>} : vector<32x256xbf16>, vector<256x512xbf16>, vector<32x512xf32> -> vector<32x512xf32>
    %46 = arith.addf %38, %45 : vector<32x512xf32>
    %c0_54 = arith.constant 0 : index
    %c1_55 = arith.constant 1 : index
    %c0_56 = arith.constant 0 : index
    %c1_57 = arith.constant 1 : index
    %c0_58 = arith.constant 0 : index
    %47 = vector.load %arg10[%c0_54, %c1_55, %c0_56, %c1_57, %c0_58] : memref<2x6x4x6x256xf32, #tpu.memory_space<vmem>>, vector<2x4x1x4x256xf32>
    %48 = vector.shape_cast %47 : vector<2x4x1x4x256xf32> to vector<2x4x4x256xf32>
    %49 = vector.shape_cast %48 : vector<2x4x4x256xf32> to vector<32x256xf32>
    %50 = arith.truncf %49 : vector<32x256xf32> to vector<32x256xbf16>
    %c1_59 = arith.constant 1 : index
    %c256_60 = arith.constant 256 : index
    %c0_61 = arith.constant 0 : index
    %51 = vector.load %arg2[%c1_59, %c256_60, %c0_61] : memref<6x768x512xbf16, #tpu.memory_space<vmem>>, vector<1x256x512xbf16>
    %52 = vector.shape_cast %51 : vector<1x256x512xbf16> to vector<256x512xbf16>
    %cst_62 = arith.constant dense<0.000000e+00> : vector<32x512xf32>
    %53 = tpu.matmul %50, %52, %cst_62 {dimension_numbers = #tpu.dot_dimension_numbers<[1], [0], [0], [1], [0, 0, 1, 1], [], []>} : vector<32x256xbf16>, vector<256x512xbf16>, vector<32x512xf32> -> vector<32x512xf32>
    %54 = arith.addf %46, %53 : vector<32x512xf32>
    %c0_63 = arith.constant 0 : index
    %c1_64 = arith.constant 1 : index
    %c0_65 = arith.constant 0 : index
    %c2_66 = arith.constant 2 : index
    %c0_67 = arith.constant 0 : index
    %55 = vector.load %arg10[%c0_63, %c1_64, %c0_65, %c2_66, %c0_67] : memref<2x6x4x6x256xf32, #tpu.memory_space<vmem>>, vector<2x4x1x4x256xf32>
    %56 = vector.shape_cast %55 : vector<2x4x1x4x256xf32> to vector<2x4x4x256xf32>
    %57 = vector.shape_cast %56 : vector<2x4x4x256xf32> to vector<32x256xf32>
    %58 = arith.truncf %57 : vector<32x256xf32> to vector<32x256xbf16>
    %c1_68 = arith.constant 1 : index
    %c512_69 = arith.constant 512 : index
    %c0_70 = arith.constant 0 : index
    %59 = vector.load %arg2[%c1_68, %c512_69, %c0_70] : memref<6x768x512xbf16, #tpu.memory_space<vmem>>, vector<1x256x512xbf16>
    %60 = vector.shape_cast %59 : vector<1x256x512xbf16> to vector<256x512xbf16>
    %cst_71 = arith.constant dense<0.000000e+00> : vector<32x512xf32>
    %61 = tpu.matmul %58, %60, %cst_71 {dimension_numbers = #tpu.dot_dimension_numbers<[1], [0], [0], [1], [0, 0, 1, 1], [], []>} : vector<32x256xbf16>, vector<256x512xbf16>, vector<32x512xf32> -> vector<32x512xf32>
    %62 = arith.addf %54, %61 : vector<32x512xf32>
    %c0_72 = arith.constant 0 : index
    %c1_73 = arith.constant 1 : index
    %c1_74 = arith.constant 1 : index
    %c0_75 = arith.constant 0 : index
    %c0_76 = arith.constant 0 : index
    %63 = vector.load %arg10[%c0_72, %c1_73, %c1_74, %c0_75, %c0_76] : memref<2x6x4x6x256xf32, #tpu.memory_space<vmem>>, vector<2x4x1x4x256xf32>
    %64 = vector.shape_cast %63 : vector<2x4x1x4x256xf32> to vector<2x4x4x256xf32>
    %65 = vector.shape_cast %64 : vector<2x4x4x256xf32> to vector<32x256xf32>
    %66 = arith.truncf %65 : vector<32x256xf32> to vector<32x256xbf16>
    %c2_77 = arith.constant 2 : index
    %c0_78 = arith.constant 0 : index
    %c0_79 = arith.constant 0 : index
    %67 = vector.load %arg2[%c2_77, %c0_78, %c0_79] : memref<6x768x512xbf16, #tpu.memory_space<vmem>>, vector<1x256x512xbf16>
    %68 = vector.shape_cast %67 : vector<1x256x512xbf16> to vector<256x512xbf16>
    %cst_80 = arith.constant dense<0.000000e+00> : vector<32x512xf32>
    %69 = tpu.matmul %66, %68, %cst_80 {dimension_numbers = #tpu.dot_dimension_numbers<[1], [0], [0], [1], [0, 0, 1, 1], [], []>} : vector<32x256xbf16>, vector<256x512xbf16>, vector<32x512xf32> -> vector<32x512xf32>
    %70 = arith.addf %62, %69 : vector<32x512xf32>
    %c0_81 = arith.constant 0 : index
    %c1_82 = arith.constant 1 : index
    %c1_83 = arith.constant 1 : index
    %c1_84 = arith.constant 1 : index
    %c0_85 = arith.constant 0 : index
    %71 = vector.load %arg10[%c0_81, %c1_82, %c1_83, %c1_84, %c0_85] : memref<2x6x4x6x256xf32, #tpu.memory_space<vmem>>, vector<2x4x1x4x256xf32>
    %72 = vector.shape_cast %71 : vector<2x4x1x4x256xf32> to vector<2x4x4x256xf32>
    %73 = vector.shape_cast %72 : vector<2x4x4x256xf32> to vector<32x256xf32>
    %74 = arith.truncf %73 : vector<32x256xf32> to vector<32x256xbf16>
    %c2_86 = arith.constant 2 : index
    %c256_87 = arith.constant 256 : index
    %c0_88 = arith.constant 0 : index
    %75 = vector.load %arg2[%c2_86, %c256_87, %c0_88] : memref<6x768x512xbf16, #tpu.memory_space<vmem>>, vector<1x256x512xbf16>
    %76 = vector.shape_cast %75 : vector<1x256x512xbf16> to vector<256x512xbf16>
    %cst_89 = arith.constant dense<0.000000e+00> : vector<32x512xf32>
    %77 = tpu.matmul %74, %76, %cst_89 {dimension_numbers = #tpu.dot_dimension_numbers<[1], [0], [0], [1], [0, 0, 1, 1], [], []>} : vector<32x256xbf16>, vector<256x512xbf16>, vector<32x512xf32> -> vector<32x512xf32>
    %78 = arith.addf %70, %77 : vector<32x512xf32>
    %c0_90 = arith.constant 0 : index
    %c1_91 = arith.constant 1 : index
    %c1_92 = arith.constant 1 : index
    %c2_93 = arith.constant 2 : index
    %c0_94 = arith.constant 0 : index
    %79 = vector.load %arg10[%c0_90, %c1_91, %c1_92, %c2_93, %c0_94] : memref<2x6x4x6x256xf32, #tpu.memory_space<vmem>>, vector<2x4x1x4x256xf32>
    %80 = vector.shape_cast %79 : vector<2x4x1x4x256xf32> to vector<2x4x4x256xf32>
    %81 = vector.shape_cast %80 : vector<2x4x4x256xf32> to vector<32x256xf32>
    %82 = arith.truncf %81 : vector<32x256xf32> to vector<32x256xbf16>
    %c2_95 = arith.constant 2 : index
    %c512_96 = arith.constant 512 : index
    %c0_97 = arith.constant 0 : index
    %83 = vector.load %arg2[%c2_95, %c512_96, %c0_97] : memref<6x768x512xbf16, #tpu.memory_space<vmem>>, vector<1x256x512xbf16>
    %84 = vector.shape_cast %83 : vector<1x256x512xbf16> to vector<256x512xbf16>
    %cst_98 = arith.constant dense<0.000000e+00> : vector<32x512xf32>
    %85 = tpu.matmul %82, %84, %cst_98 {dimension_numbers = #tpu.dot_dimension_numbers<[1], [0], [0], [1], [0, 0, 1, 1], [], []>} : vector<32x256xbf16>, vector<256x512xbf16>, vector<32x512xf32> -> vector<32x512xf32>
    %86 = arith.addf %78, %85 : vector<32x512xf32>
    %c0_99 = arith.constant 0 : index
    %c1_100 = arith.constant 1 : index
    %c2_101 = arith.constant 2 : index
    %c0_102 = arith.constant 0 : index
    %c0_103 = arith.constant 0 : index
    %87 = vector.load %arg10[%c0_99, %c1_100, %c2_101, %c0_102, %c0_103] : memref<2x6x4x6x256xf32, #tpu.memory_space<vmem>>, vector<2x4x1x4x256xf32>
    %88 = vector.shape_cast %87 : vector<2x4x1x4x256xf32> to vector<2x4x4x256xf32>
    %89 = vector.shape_cast %88 : vector<2x4x4x256xf32> to vector<32x256xf32>
    %90 = arith.truncf %89 : vector<32x256xf32> to vector<32x256xbf16>
    %c3_104 = arith.constant 3 : index
    %c0_105 = arith.constant 0 : index
    %c0_106 = arith.constant 0 : index
    %91 = vector.load %arg2[%c3_104, %c0_105, %c0_106] : memref<6x768x512xbf16, #tpu.memory_space<vmem>>, vector<1x256x512xbf16>
    %92 = vector.shape_cast %91 : vector<1x256x512xbf16> to vector<256x512xbf16>
    %cst_107 = arith.constant dense<0.000000e+00> : vector<32x512xf32>
    %93 = tpu.matmul %90, %92, %cst_107 {dimension_numbers = #tpu.dot_dimension_numbers<[1], [0], [0], [1], [0, 0, 1, 1], [], []>} : vector<32x256xbf16>, vector<256x512xbf16>, vector<32x512xf32> -> vector<32x512xf32>
    %94 = arith.addf %86, %93 : vector<32x512xf32>
    %c0_108 = arith.constant 0 : index
    %c1_109 = arith.constant 1 : index
    %c2_110 = arith.constant 2 : index
    %c1_111 = arith.constant 1 : index
    %c0_112 = arith.constant 0 : index
    %95 = vector.load %arg10[%c0_108, %c1_109, %c2_110, %c1_111, %c0_112] : memref<2x6x4x6x256xf32, #tpu.memory_space<vmem>>, vector<2x4x1x4x256xf32>
    %96 = vector.shape_cast %95 : vector<2x4x1x4x256xf32> to vector<2x4x4x256xf32>
    %97 = vector.shape_cast %96 : vector<2x4x4x256xf32> to vector<32x256xf32>
    %98 = arith.truncf %97 : vector<32x256xf32> to vector<32x256xbf16>
    %c3_113 = arith.constant 3 : index
    %c256_114 = arith.constant 256 : index
    %c0_115 = arith.constant 0 : index
    %99 = vector.load %arg2[%c3_113, %c256_114, %c0_115] : memref<6x768x512xbf16, #tpu.memory_space<vmem>>, vector<1x256x512xbf16>
    %100 = vector.shape_cast %99 : vector<1x256x512xbf16> to vector<256x512xbf16>
    %cst_116 = arith.constant dense<0.000000e+00> : vector<32x512xf32>
    %101 = tpu.matmul %98, %100, %cst_116 {dimension_numbers = #tpu.dot_dimension_numbers<[1], [0], [0], [1], [0, 0, 1, 1], [], []>} : vector<32x256xbf16>, vector<256x512xbf16>, vector<32x512xf32> -> vector<32x512xf32>
    %102 = arith.addf %94, %101 : vector<32x512xf32>
    %c0_117 = arith.constant 0 : index
    %c1_118 = arith.constant 1 : index
    %c2_119 = arith.constant 2 : index
    %c2_120 = arith.constant 2 : index
    %c0_121 = arith.constant 0 : index
    %103 = vector.load %arg10[%c0_117, %c1_118, %c2_119, %c2_120, %c0_121] : memref<2x6x4x6x256xf32, #tpu.memory_space<vmem>>, vector<2x4x1x4x256xf32>
    %104 = vector.shape_cast %103 : vector<2x4x1x4x256xf32> to vector<2x4x4x256xf32>
    %105 = vector.shape_cast %104 : vector<2x4x4x256xf32> to vector<32x256xf32>
    %106 = arith.truncf %105 : vector<32x256xf32> to vector<32x256xbf16>
    %c3_122 = arith.constant 3 : index
    %c512_123 = arith.constant 512 : index
    %c0_124 = arith.constant 0 : index
    %107 = vector.load %arg2[%c3_122, %c512_123, %c0_124] : memref<6x768x512xbf16, #tpu.memory_space<vmem>>, vector<1x256x512xbf16>
    %108 = vector.shape_cast %107 : vector<1x256x512xbf16> to vector<256x512xbf16>
    %cst_125 = arith.constant dense<0.000000e+00> : vector<32x512xf32>
    %109 = tpu.matmul %106, %108, %cst_125 {dimension_numbers = #tpu.dot_dimension_numbers<[1], [0], [0], [1], [0, 0, 1, 1], [], []>} : vector<32x256xbf16>, vector<256x512xbf16>, vector<32x512xf32> -> vector<32x512xf32>
    %110 = arith.addf %102, %109 : vector<32x512xf32>
    %c0_126 = arith.constant 0 : index
    %c1_127 = arith.constant 1 : index
    %c3_128 = arith.constant 3 : index
    %c0_129 = arith.constant 0 : index
    %c0_130 = arith.constant 0 : index
    %111 = vector.load %arg10[%c0_126, %c1_127, %c3_128, %c0_129, %c0_130] : memref<2x6x4x6x256xf32, #tpu.memory_space<vmem>>, vector<2x4x1x4x256xf32>
    %112 = vector.shape_cast %111 : vector<2x4x1x4x256xf32> to vector<2x4x4x256xf32>
    %113 = vector.shape_cast %112 : vector<2x4x4x256xf32> to vector<32x256xf32>
    %114 = arith.truncf %113 : vector<32x256xf32> to vector<32x256xbf16>
    %c4 = arith.constant 4 : index
    %c0_131 = arith.constant 0 : index
    %c0_132 = arith.constant 0 : index
    %115 = vector.load %arg2[%c4, %c0_131, %c0_132] : memref<6x768x512xbf16, #tpu.memory_space<vmem>>, vector<1x256x512xbf16>
    %116 = vector.shape_cast %115 : vector<1x256x512xbf16> to vector<256x512xbf16>
    %cst_133 = arith.constant dense<0.000000e+00> : vector<32x512xf32>
    %117 = tpu.matmul %114, %116, %cst_133 {dimension_numbers = #tpu.dot_dimension_numbers<[1], [0], [0], [1], [0, 0, 1, 1], [], []>} : vector<32x256xbf16>, vector<256x512xbf16>, vector<32x512xf32> -> vector<32x512xf32>
    %118 = arith.addf %110, %117 : vector<32x512xf32>
    %c0_134 = arith.constant 0 : index
    %c1_135 = arith.constant 1 : index
    %c3_136 = arith.constant 3 : index
    %c1_137 = arith.constant 1 : index
    %c0_138 = arith.constant 0 : index
    %119 = vector.load %arg10[%c0_134, %c1_135, %c3_136, %c1_137, %c0_138] : memref<2x6x4x6x256xf32, #tpu.memory_space<vmem>>, vector<2x4x1x4x256xf32>
    %120 = vector.shape_cast %119 : vector<2x4x1x4x256xf32> to vector<2x4x4x256xf32>
    %121 = vector.shape_cast %120 : vector<2x4x4x256xf32> to vector<32x256xf32>
    %122 = arith.truncf %121 : vector<32x256xf32> to vector<32x256xbf16>
    %c4_139 = arith.constant 4 : index
    %c256_140 = arith.constant 256 : index
    %c0_141 = arith.constant 0 : index
    %123 = vector.load %arg2[%c4_139, %c256_140, %c0_141] : memref<6x768x512xbf16, #tpu.memory_space<vmem>>, vector<1x256x512xbf16>
    %124 = vector.shape_cast %123 : vector<1x256x512xbf16> to vector<256x512xbf16>
    %cst_142 = arith.constant dense<0.000000e+00> : vector<32x512xf32>
    %125 = tpu.matmul %122, %124, %cst_142 {dimension_numbers = #tpu.dot_dimension_numbers<[1], [0], [0], [1], [0, 0, 1, 1], [], []>} : vector<32x256xbf16>, vector<256x512xbf16>, vector<32x512xf32> -> vector<32x512xf32>
    %126 = arith.addf %118, %125 : vector<32x512xf32>
    %c0_143 = arith.constant 0 : index
    %c1_144 = arith.constant 1 : index
    %c3_145 = arith.constant 3 : index
    %c2_146 = arith.constant 2 : index
    %c0_147 = arith.constant 0 : index
    %127 = vector.load %arg10[%c0_143, %c1_144, %c3_145, %c2_146, %c0_147] : memref<2x6x4x6x256xf32, #tpu.memory_space<vmem>>, vector<2x4x1x4x256xf32>
    %128 = vector.shape_cast %127 : vector<2x4x1x4x256xf32> to vector<2x4x4x256xf32>
    %129 = vector.shape_cast %128 : vector<2x4x4x256xf32> to vector<32x256xf32>
    %130 = arith.truncf %129 : vector<32x256xf32> to vector<32x256xbf16>
    %c4_148 = arith.constant 4 : index
    %c512_149 = arith.constant 512 : index
    %c0_150 = arith.constant 0 : index
    %131 = vector.load %arg2[%c4_148, %c512_149, %c0_150] : memref<6x768x512xbf16, #tpu.memory_space<vmem>>, vector<1x256x512xbf16>
    %132 = vector.shape_cast %131 : vector<1x256x512xbf16> to vector<256x512xbf16>
    %cst_151 = arith.constant dense<0.000000e+00> : vector<32x512xf32>
    %133 = tpu.matmul %130, %132, %cst_151 {dimension_numbers = #tpu.dot_dimension_numbers<[1], [0], [0], [1], [0, 0, 1, 1], [], []>} : vector<32x256xbf16>, vector<256x512xbf16>, vector<32x512xf32> -> vector<32x512xf32>
    %134 = arith.addf %126, %133 : vector<32x512xf32>
    %c0_152 = arith.constant 0 : index
    %c2_153 = arith.constant 2 : index
    %c0_154 = arith.constant 0 : index
    %c0_155 = arith.constant 0 : index
    %c0_156 = arith.constant 0 : index
    %135 = vector.load %arg10[%c0_152, %c2_153, %c0_154, %c0_155, %c0_156] : memref<2x6x4x6x256xf32, #tpu.memory_space<vmem>>, vector<2x4x1x4x256xf32>
    %136 = vector.shape_cast %135 : vector<2x4x1x4x256xf32> to vector<2x4x4x256xf32>
    %137 = vector.shape_cast %136 : vector<2x4x4x256xf32> to vector<32x256xf32>
    %138 = arith.truncf %137 : vector<32x256xf32> to vector<32x256xbf16>
    %c5 = arith.constant 5 : index
    %c0_157 = arith.constant 0 : index
    %c0_158 = arith.constant 0 : index
    %139 = vector.load %arg2[%c5, %c0_157, %c0_158] : memref<6x768x512xbf16, #tpu.memory_space<vmem>>, vector<1x256x512xbf16>
    %140 = vector.shape_cast %139 : vector<1x256x512xbf16> to vector<256x512xbf16>
    %cst_159 = arith.constant dense<0.000000e+00> : vector<32x512xf32>
    %141 = tpu.matmul %138, %140, %cst_159 {dimension_numbers = #tpu.dot_dimension_numbers<[1], [0], [0], [1], [0, 0, 1, 1], [], []>} : vector<32x256xbf16>, vector<256x512xbf16>, vector<32x512xf32> -> vector<32x512xf32>
    %142 = arith.addf %134, %141 : vector<32x512xf32>
    %c0_160 = arith.constant 0 : index
    %c2_161 = arith.constant 2 : index
    %c0_162 = arith.constant 0 : index
    %c1_163 = arith.constant 1 : index
    %c0_164 = arith.constant 0 : index
    %143 = vector.load %arg10[%c0_160, %c2_161, %c0_162, %c1_163, %c0_164] : memref<2x6x4x6x256xf32, #tpu.memory_space<vmem>>, vector<2x4x1x4x256xf32>
    %144 = vector.shape_cast %143 : vector<2x4x1x4x256xf32> to vector<2x4x4x256xf32>
    %145 = vector.shape_cast %144 : vector<2x4x4x256xf32> to vector<32x256xf32>
    %146 = arith.truncf %145 : vector<32x256xf32> to vector<32x256xbf16>
    %c5_165 = arith.constant 5 : index
    %c256_166 = arith.constant 256 : index
    %c0_167 = arith.constant 0 : index
    %147 = vector.load %arg2[%c5_165, %c256_166, %c0_167] : memref<6x768x512xbf16, #tpu.memory_space<vmem>>, vector<1x256x512xbf16>
    %148 = vector.shape_cast %147 : vector<1x256x512xbf16> to vector<256x512xbf16>
    %cst_168 = arith.constant dense<0.000000e+00> : vector<32x512xf32>
    %149 = tpu.matmul %146, %148, %cst_168 {dimension_numbers = #tpu.dot_dimension_numbers<[1], [0], [0], [1], [0, 0, 1, 1], [], []>} : vector<32x256xbf16>, vector<256x512xbf16>, vector<32x512xf32> -> vector<32x512xf32>
    %150 = arith.addf %142, %149 : vector<32x512xf32>
    %c0_169 = arith.constant 0 : index
    %c2_170 = arith.constant 2 : index
    %c0_171 = arith.constant 0 : index
    %c2_172 = arith.constant 2 : index
    %c0_173 = arith.constant 0 : index
    %151 = vector.load %arg10[%c0_169, %c2_170, %c0_171, %c2_172, %c0_173] : memref<2x6x4x6x256xf32, #tpu.memory_space<vmem>>, vector<2x4x1x4x256xf32>
    %152 = vector.shape_cast %151 : vector<2x4x1x4x256xf32> to vector<2x4x4x256xf32>
    %153 = vector.shape_cast %152 : vector<2x4x4x256xf32> to vector<32x256xf32>
    %154 = arith.truncf %153 : vector<32x256xf32> to vector<32x256xbf16>
    %c5_174 = arith.constant 5 : index
    %c512_175 = arith.constant 512 : index
    %c0_176 = arith.constant 0 : index
    %155 = vector.load %arg2[%c5_174, %c512_175, %c0_176] : memref<6x768x512xbf16, #tpu.memory_space<vmem>>, vector<1x256x512xbf16>
    %156 = vector.shape_cast %155 : vector<1x256x512xbf16> to vector<256x512xbf16>
    %cst_177 = arith.constant dense<0.000000e+00> : vector<32x512xf32>
    %157 = tpu.matmul %154, %156, %cst_177 {dimension_numbers = #tpu.dot_dimension_numbers<[1], [0], [0], [1], [0, 0, 1, 1], [], []>} : vector<32x256xbf16>, vector<256x512xbf16>, vector<32x512xf32> -> vector<32x512xf32>
    %158 = arith.addf %150, %157 : vector<32x512xf32>
    %cst_178 = arith.constant dense<0.000000e+00> : vector<512xf32>
    %159 = vector.multi_reduction <add>, %158, %cst_178 [0] : vector<32x512xf32> to vector<512xf32>
    %160 = vector.shape_cast %159 : vector<512xf32> to vector<1x512xf32>
    %161 = arith.mulf %158, %158 : vector<32x512xf32>
    %cst_179 = arith.constant dense<0.000000e+00> : vector<512xf32>
    %162 = vector.multi_reduction <add>, %161, %cst_179 [0] : vector<32x512xf32> to vector<512xf32>
    %163 = vector.shape_cast %162 : vector<512xf32> to vector<1x512xf32>
    %164 = vector.extract_strided_slice %160 {offsets = [0, 0], sizes = [1, 128], strides = [1, 1]} : vector<1x512xf32> to vector<1x128xf32>
    %165 = vector.extract_strided_slice %160 {offsets = [0, 128], sizes = [1, 128], strides = [1, 1]} : vector<1x512xf32> to vector<1x128xf32>
    %166 = arith.addf %164, %165 : vector<1x128xf32>
    %167 = vector.extract_strided_slice %160 {offsets = [0, 256], sizes = [1, 128], strides = [1, 1]} : vector<1x512xf32> to vector<1x128xf32>
    %168 = arith.addf %166, %167 : vector<1x128xf32>
    %169 = vector.extract_strided_slice %160 {offsets = [0, 384], sizes = [1, 128], strides = [1, 1]} : vector<1x512xf32> to vector<1x128xf32>
    %170 = arith.addf %168, %169 : vector<1x128xf32>
    %171 = vector.extract_strided_slice %163 {offsets = [0, 0], sizes = [1, 128], strides = [1, 1]} : vector<1x512xf32> to vector<1x128xf32>
    %172 = vector.extract_strided_slice %163 {offsets = [0, 128], sizes = [1, 128], strides = [1, 1]} : vector<1x512xf32> to vector<1x128xf32>
    %173 = arith.addf %171, %172 : vector<1x128xf32>
    %174 = vector.extract_strided_slice %163 {offsets = [0, 256], sizes = [1, 128], strides = [1, 1]} : vector<1x512xf32> to vector<1x128xf32>
    %175 = arith.addf %173, %174 : vector<1x128xf32>
    %176 = vector.extract_strided_slice %163 {offsets = [0, 384], sizes = [1, 128], strides = [1, 1]} : vector<1x512xf32> to vector<1x128xf32>
    %177 = arith.addf %175, %176 : vector<1x128xf32>
    %cst_180 = arith.constant 1.280000e+02 : f32
    %178 = vector.broadcast %cst_180 : f32 to vector<1x128xf32>
    %179 = arith.divf %170, %178 : vector<1x128xf32>
    %cst_181 = arith.constant 1.280000e+02 : f32
    %180 = vector.broadcast %cst_181 : f32 to vector<1x128xf32>
    %181 = arith.divf %177, %180 : vector<1x128xf32>
    %182 = arith.mulf %179, %179 : vector<1x128xf32>
    %183 = arith.subf %181, %182 : vector<1x128xf32>
    %c0_182 = arith.constant 0 : index
    %c0_183 = arith.constant 0 : index
    %184 = vector.load %arg5[%c0_182, %c0_183] : memref<1x128xf32, #tpu.memory_space<vmem>>, vector<1x128xf32>
    %cst_184 = arith.constant 9.99999974E-6 : f32
    %185 = vector.broadcast %cst_184 : f32 to vector<1x128xf32>
    %186 = arith.addf %183, %185 : vector<1x128xf32>
    %187 = math.rsqrt %186 : vector<1x128xf32>
    %188 = arith.mulf %184, %187 : vector<1x128xf32>
    %c0_185 = arith.constant 0 : index
    %c0_186 = arith.constant 0 : index
    %189 = vector.load %arg6[%c0_185, %c0_186] : memref<1x128xf32, #tpu.memory_space<vmem>>, vector<1x128xf32>
    %190 = arith.mulf %179, %188 : vector<1x128xf32>
    %191 = arith.subf %189, %190 : vector<1x128xf32>
    %192 = tpu.concatenate %188, %188, %188, %188 in 1 : vector<1x128xf32>, vector<1x128xf32>, vector<1x128xf32>, vector<1x128xf32> -> vector<1x512xf32>
    %193 = tpu.concatenate %191, %191, %191, %191 in 1 : vector<1x128xf32>, vector<1x128xf32>, vector<1x128xf32>, vector<1x128xf32> -> vector<1x512xf32>
    %194 = vector.broadcast %192 : vector<1x512xf32> to vector<32x512xf32>
    %195 = arith.mulf %158, %194 : vector<32x512xf32>
    %196 = vector.broadcast %193 : vector<1x512xf32> to vector<32x512xf32>
    %197 = arith.addf %195, %196 : vector<32x512xf32>
    %cst_187 = arith.constant 0.000000e+00 : f32
    %198 = vector.broadcast %cst_187 : f32 to vector<32x512xf32>
    %199 = arith.cmpf ogt, %197, %198 : vector<32x512xf32>
    %cst_188 = arith.constant 2.000000e-01 : f32
    %200 = vector.broadcast %cst_188 : f32 to vector<32x512xf32>
    %201 = arith.mulf %200, %197 : vector<32x512xf32>
    %202 = arith.select %199, %197, %201 : vector<32x512xi1>, vector<32x512xf32>
    %203 = vector.shape_cast %202 : vector<32x512xf32> to vector<2x4x4x512xf32>
    %204 = vector.extract_strided_slice %203 {offsets = [0, 0, 0, 0], sizes = [2, 4, 4, 256], strides = [1, 1, 1, 1]} : vector<2x4x4x512xf32> to vector<2x4x4x256xf32>
    %c0_189 = arith.constant 0 : index
    %c1_190 = arith.constant 1 : index
    %c0_191 = arith.constant 0 : index
    %c1_192 = arith.constant 1 : index
    %c0_193 = arith.constant 0 : index
    %205 = vector.load %arg11[%c0_189, %c1_190, %c0_191, %c1_192, %c0_193] : memref<2x6x2x6x256xf32, #tpu.memory_space<vmem>>, vector<2x4x1x4x256xf32>
    %206 = vector.shape_cast %205 : vector<2x4x1x4x256xf32> to vector<2x4x4x256xf32>
    %207 = vector.shape_cast %204 : vector<2x4x4x256xf32> to vector<2x4x1x4x256xf32>
    tpu.vector_store %arg11[%c0_189, %c1_190, %c0_191, %c1_192, %c0_193], %207 {strides = array<i32>} : memref<2x6x2x6x256xf32, #tpu.memory_space<vmem>>, vector<2x4x1x4x256xf32>,
    %208 = vector.extract_strided_slice %203 {offsets = [0, 0, 0, 256], sizes = [2, 4, 4, 256], strides = [1, 1, 1, 1]} : vector<2x4x4x512xf32> to vector<2x4x4x256xf32>
    %c0_194 = arith.constant 0 : index
    %c1_195 = arith.constant 1 : index
    %c1_196 = arith.constant 1 : index
    %c1_197 = arith.constant 1 : index
    %c0_198 = arith.constant 0 : index
    %209 = vector.load %arg11[%c0_194, %c1_195, %c1_196, %c1_197, %c0_198] : memref<2x6x2x6x256xf32, #tpu.memory_space<vmem>>, vector<2x4x1x4x256xf32>
    %210 = vector.shape_cast %209 : vector<2x4x1x4x256xf32> to vector<2x4x4x256xf32>
    %211 = vector.shape_cast %208 : vector<2x4x4x256xf32> to vector<2x4x1x4x256xf32>
    tpu.vector_store %arg11[%c0_194, %c1_195, %c1_196, %c1_197, %c0_198], %211 {strides = array<i32>} : memref<2x6x2x6x256xf32, #tpu.memory_space<vmem>>, vector<2x4x1x4x256xf32>,
    %cst_199 = arith.constant 0.000000e+00 : f32
    %212 = vector.broadcast %cst_199 : f32 to vector<32x256xf32>
    %c0_200 = arith.constant 0 : index
    %c0_201 = arith.constant 0 : index
    %c1_202 = arith.constant 1 : index
    %c0_203 = arith.constant 0 : index
    %c0_204 = arith.constant 0 : index
    %213 = vector.load %arg11[%c0_200, %c0_201, %c1_202, %c0_203, %c0_204] : memref<2x6x2x6x256xf32, #tpu.memory_space<vmem>>, vector<2x4x1x4x256xf32>
    %214 = vector.shape_cast %213 : vector<2x4x1x4x256xf32> to vector<2x4x4x256xf32>
    %215 = vector.shape_cast %214 : vector<2x4x4x256xf32> to vector<32x256xf32>
    %216 = arith.truncf %215 : vector<32x256xf32> to vector<32x256xbf16>
    %c0_205 = arith.constant 0 : index
    %c0_206 = arith.constant 0 : index
    %c0_207 = arith.constant 0 : index
    %217 = vector.load %arg3[%c0_205, %c0_206, %c0_207] : memref<4x768x256xbf16, #tpu.memory_space<vmem>>, vector<1x256x256xbf16>
    %218 = vector.shape_cast %217 : vector<1x256x256xbf16> to vector<256x256xbf16>
    %cst_208 = arith.constant dense<0.000000e+00> : vector<32x256xf32>
    %219 = tpu.matmul %216, %218, %cst_208 {dimension_numbers = #tpu.dot_dimension_numbers<[1], [0], [0], [1], [0, 0, 1, 1], [], []>} : vector<32x256xbf16>, vector<256x256xbf16>, vector<32x256xf32> -> vector<32x256xf32>
    %220 = arith.addf %212, %219 : vector<32x256xf32>
    %c0_209 = arith.constant 0 : index
    %c0_210 = arith.constant 0 : index
    %c1_211 = arith.constant 1 : index
    %c1_212 = arith.constant 1 : index
    %c0_213 = arith.constant 0 : index
    %221 = vector.load %arg11[%c0_209, %c0_210, %c1_211, %c1_212, %c0_213] : memref<2x6x2x6x256xf32, #tpu.memory_space<vmem>>, vector<2x4x1x4x256xf32>
    %222 = vector.shape_cast %221 : vector<2x4x1x4x256xf32> to vector<2x4x4x256xf32>
    %223 = vector.shape_cast %222 : vector<2x4x4x256xf32> to vector<32x256xf32>
    %224 = arith.truncf %223 : vector<32x256xf32> to vector<32x256xbf16>
    %c0_214 = arith.constant 0 : index
    %c256_215 = arith.constant 256 : index
    %c0_216 = arith.constant 0 : index
    %225 = vector.load %arg3[%c0_214, %c256_215, %c0_216] : memref<4x768x256xbf16, #tpu.memory_space<vmem>>, vector<1x256x256xbf16>
    %226 = vector.shape_cast %225 : vector<1x256x256xbf16> to vector<256x256xbf16>
    %cst_217 = arith.constant dense<0.000000e+00> : vector<32x256xf32>
    %227 = tpu.matmul %224, %226, %cst_217 {dimension_numbers = #tpu.dot_dimension_numbers<[1], [0], [0], [1], [0, 0, 1, 1], [], []>} : vector<32x256xbf16>, vector<256x256xbf16>, vector<32x256xf32> -> vector<32x256xf32>
    %228 = arith.addf %220, %227 : vector<32x256xf32>
    %c0_218 = arith.constant 0 : index
    %c0_219 = arith.constant 0 : index
    %c1_220 = arith.constant 1 : index
    %c2_221 = arith.constant 2 : index
    %c0_222 = arith.constant 0 : index
    %229 = vector.load %arg11[%c0_218, %c0_219, %c1_220, %c2_221, %c0_222] : memref<2x6x2x6x256xf32, #tpu.memory_space<vmem>>, vector<2x4x1x4x256xf32>
    %230 = vector.shape_cast %229 : vector<2x4x1x4x256xf32> to vector<2x4x4x256xf32>
    %231 = vector.shape_cast %230 : vector<2x4x4x256xf32> to vector<32x256xf32>
    %232 = arith.truncf %231 : vector<32x256xf32> to vector<32x256xbf16>
    %c0_223 = arith.constant 0 : index
    %c512_224 = arith.constant 512 : index
    %c0_225 = arith.constant 0 : index
    %233 = vector.load %arg3[%c0_223, %c512_224, %c0_225] : memref<4x768x256xbf16, #tpu.memory_space<vmem>>, vector<1x256x256xbf16>
    %234 = vector.shape_cast %233 : vector<1x256x256xbf16> to vector<256x256xbf16>
    %cst_226 = arith.constant dense<0.000000e+00> : vector<32x256xf32>
    %235 = tpu.matmul %232, %234, %cst_226 {dimension_numbers = #tpu.dot_dimension_numbers<[1], [0], [0], [1], [0, 0, 1, 1], [], []>} : vector<32x256xbf16>, vector<256x256xbf16>, vector<32x256xf32> -> vector<32x256xf32>
    %236 = arith.addf %228, %235 : vector<32x256xf32>
    %c0_227 = arith.constant 0 : index
    %c1_228 = arith.constant 1 : index
    %c0_229 = arith.constant 0 : index
    %c0_230 = arith.constant 0 : index
    %c0_231 = arith.constant 0 : index
    %237 = vector.load %arg11[%c0_227, %c1_228, %c0_229, %c0_230, %c0_231] : memref<2x6x2x6x256xf32, #tpu.memory_space<vmem>>, vector<2x4x1x4x256xf32>
    %238 = vector.shape_cast %237 : vector<2x4x1x4x256xf32> to vector<2x4x4x256xf32>
    %239 = vector.shape_cast %238 : vector<2x4x4x256xf32> to vector<32x256xf32>
    %240 = arith.truncf %239 : vector<32x256xf32> to vector<32x256xbf16>
    %c1_232 = arith.constant 1 : index
    %c0_233 = arith.constant 0 : index
    %c0_234 = arith.constant 0 : index
    %241 = vector.load %arg3[%c1_232, %c0_233, %c0_234] : memref<4x768x256xbf16, #tpu.memory_space<vmem>>, vector<1x256x256xbf16>
    %242 = vector.shape_cast %241 : vector<1x256x256xbf16> to vector<256x256xbf16>
    %cst_235 = arith.constant dense<0.000000e+00> : vector<32x256xf32>
    %243 = tpu.matmul %240, %242, %cst_235 {dimension_numbers = #tpu.dot_dimension_numbers<[1], [0], [0], [1], [0, 0, 1, 1], [], []>} : vector<32x256xbf16>, vector<256x256xbf16>, vector<32x256xf32> -> vector<32x256xf32>
    %244 = arith.addf %236, %243 : vector<32x256xf32>
    %c0_236 = arith.constant 0 : index
    %c1_237 = arith.constant 1 : index
    %c0_238 = arith.constant 0 : index
    %c1_239 = arith.constant 1 : index
    %c0_240 = arith.constant 0 : index
    %245 = vector.load %arg11[%c0_236, %c1_237, %c0_238, %c1_239, %c0_240] : memref<2x6x2x6x256xf32, #tpu.memory_space<vmem>>, vector<2x4x1x4x256xf32>
    %246 = vector.shape_cast %245 : vector<2x4x1x4x256xf32> to vector<2x4x4x256xf32>
    %247 = vector.shape_cast %246 : vector<2x4x4x256xf32> to vector<32x256xf32>
    %248 = arith.truncf %247 : vector<32x256xf32> to vector<32x256xbf16>
    %c1_241 = arith.constant 1 : index
    %c256_242 = arith.constant 256 : index
    %c0_243 = arith.constant 0 : index
    %249 = vector.load %arg3[%c1_241, %c256_242, %c0_243] : memref<4x768x256xbf16, #tpu.memory_space<vmem>>, vector<1x256x256xbf16>
    %250 = vector.shape_cast %249 : vector<1x256x256xbf16> to vector<256x256xbf16>
    %cst_244 = arith.constant dense<0.000000e+00> : vector<32x256xf32>
    %251 = tpu.matmul %248, %250, %cst_244 {dimension_numbers = #tpu.dot_dimension_numbers<[1], [0], [0], [1], [0, 0, 1, 1], [], []>} : vector<32x256xbf16>, vector<256x256xbf16>, vector<32x256xf32> -> vector<32x256xf32>
    %252 = arith.addf %244, %251 : vector<32x256xf32>
    %c0_245 = arith.constant 0 : index
    %c1_246 = arith.constant 1 : index
    %c0_247 = arith.constant 0 : index
    %c2_248 = arith.constant 2 : index
    %c0_249 = arith.constant 0 : index
    %253 = vector.load %arg11[%c0_245, %c1_246, %c0_247, %c2_248, %c0_249] : memref<2x6x2x6x256xf32, #tpu.memory_space<vmem>>, vector<2x4x1x4x256xf32>
    %254 = vector.shape_cast %253 : vector<2x4x1x4x256xf32> to vector<2x4x4x256xf32>
    %255 = vector.shape_cast %254 : vector<2x4x4x256xf32> to vector<32x256xf32>
    %256 = arith.truncf %255 : vector<32x256xf32> to vector<32x256xbf16>
    %c1_250 = arith.constant 1 : index
    %c512_251 = arith.constant 512 : index
    %c0_252 = arith.constant 0 : index
    %257 = vector.load %arg3[%c1_250, %c512_251, %c0_252] : memref<4x768x256xbf16, #tpu.memory_space<vmem>>, vector<1x256x256xbf16>
    %258 = vector.shape_cast %257 : vector<1x256x256xbf16> to vector<256x256xbf16>
    %cst_253 = arith.constant dense<0.000000e+00> : vector<32x256xf32>
    %259 = tpu.matmul %256, %258, %cst_253 {dimension_numbers = #tpu.dot_dimension_numbers<[1], [0], [0], [1], [0, 0, 1, 1], [], []>} : vector<32x256xbf16>, vector<256x256xbf16>, vector<32x256xf32> -> vector<32x256xf32>
    %260 = arith.addf %252, %259 : vector<32x256xf32>
    %c0_254 = arith.constant 0 : index
    %c1_255 = arith.constant 1 : index
    %c1_256 = arith.constant 1 : index
    %c0_257 = arith.constant 0 : index
    %c0_258 = arith.constant 0 : index
    %261 = vector.load %arg11[%c0_254, %c1_255, %c1_256, %c0_257, %c0_258] : memref<2x6x2x6x256xf32, #tpu.memory_space<vmem>>, vector<2x4x1x4x256xf32>
    %262 = vector.shape_cast %261 : vector<2x4x1x4x256xf32> to vector<2x4x4x256xf32>
    %263 = vector.shape_cast %262 : vector<2x4x4x256xf32> to vector<32x256xf32>
    %264 = arith.truncf %263 : vector<32x256xf32> to vector<32x256xbf16>
    %c2_259 = arith.constant 2 : index
    %c0_260 = arith.constant 0 : index
    %c0_261 = arith.constant 0 : index
    %265 = vector.load %arg3[%c2_259, %c0_260, %c0_261] : memref<4x768x256xbf16, #tpu.memory_space<vmem>>, vector<1x256x256xbf16>
    %266 = vector.shape_cast %265 : vector<1x256x256xbf16> to vector<256x256xbf16>
    %cst_262 = arith.constant dense<0.000000e+00> : vector<32x256xf32>
    %267 = tpu.matmul %264, %266, %cst_262 {dimension_numbers = #tpu.dot_dimension_numbers<[1], [0], [0], [1], [0, 0, 1, 1], [], []>} : vector<32x256xbf16>, vector<256x256xbf16>, vector<32x256xf32> -> vector<32x256xf32>
    %268 = arith.addf %260, %267 : vector<32x256xf32>
    %c0_263 = arith.constant 0 : index
    %c1_264 = arith.constant 1 : index
    %c1_265 = arith.constant 1 : index
    %c1_266 = arith.constant 1 : index
    %c0_267 = arith.constant 0 : index
    %269 = vector.load %arg11[%c0_263, %c1_264, %c1_265, %c1_266, %c0_267] : memref<2x6x2x6x256xf32, #tpu.memory_space<vmem>>, vector<2x4x1x4x256xf32>
    %270 = vector.shape_cast %269 : vector<2x4x1x4x256xf32> to vector<2x4x4x256xf32>
    %271 = vector.shape_cast %270 : vector<2x4x4x256xf32> to vector<32x256xf32>
    %272 = arith.truncf %271 : vector<32x256xf32> to vector<32x256xbf16>
    %c2_268 = arith.constant 2 : index
    %c256_269 = arith.constant 256 : index
    %c0_270 = arith.constant 0 : index
    %273 = vector.load %arg3[%c2_268, %c256_269, %c0_270] : memref<4x768x256xbf16, #tpu.memory_space<vmem>>, vector<1x256x256xbf16>
    %274 = vector.shape_cast %273 : vector<1x256x256xbf16> to vector<256x256xbf16>
    %cst_271 = arith.constant dense<0.000000e+00> : vector<32x256xf32>
    %275 = tpu.matmul %272, %274, %cst_271 {dimension_numbers = #tpu.dot_dimension_numbers<[1], [0], [0], [1], [0, 0, 1, 1], [], []>} : vector<32x256xbf16>, vector<256x256xbf16>, vector<32x256xf32> -> vector<32x256xf32>
    %276 = arith.addf %268, %275 : vector<32x256xf32>
    %c0_272 = arith.constant 0 : index
    %c1_273 = arith.constant 1 : index
    %c1_274 = arith.constant 1 : index
    %c2_275 = arith.constant 2 : index
    %c0_276 = arith.constant 0 : index
    %277 = vector.load %arg11[%c0_272, %c1_273, %c1_274, %c2_275, %c0_276] : memref<2x6x2x6x256xf32, #tpu.memory_space<vmem>>, vector<2x4x1x4x256xf32>
    %278 = vector.shape_cast %277 : vector<2x4x1x4x256xf32> to vector<2x4x4x256xf32>
    %279 = vector.shape_cast %278 : vector<2x4x4x256xf32> to vector<32x256xf32>
    %280 = arith.truncf %279 : vector<32x256xf32> to vector<32x256xbf16>
    %c2_277 = arith.constant 2 : index
    %c512_278 = arith.constant 512 : index
    %c0_279 = arith.constant 0 : index
    %281 = vector.load %arg3[%c2_277, %c512_278, %c0_279] : memref<4x768x256xbf16, #tpu.memory_space<vmem>>, vector<1x256x256xbf16>
    %282 = vector.shape_cast %281 : vector<1x256x256xbf16> to vector<256x256xbf16>
    %cst_280 = arith.constant dense<0.000000e+00> : vector<32x256xf32>
    %283 = tpu.matmul %280, %282, %cst_280 {dimension_numbers = #tpu.dot_dimension_numbers<[1], [0], [0], [1], [0, 0, 1, 1], [], []>} : vector<32x256xbf16>, vector<256x256xbf16>, vector<32x256xf32> -> vector<32x256xf32>
    %284 = arith.addf %276, %283 : vector<32x256xf32>
    %c0_281 = arith.constant 0 : index
    %c2_282 = arith.constant 2 : index
    %c0_283 = arith.constant 0 : index
    %c0_284 = arith.constant 0 : index
    %c0_285 = arith.constant 0 : index
    %285 = vector.load %arg11[%c0_281, %c2_282, %c0_283, %c0_284, %c0_285] : memref<2x6x2x6x256xf32, #tpu.memory_space<vmem>>, vector<2x4x1x4x256xf32>
    %286 = vector.shape_cast %285 : vector<2x4x1x4x256xf32> to vector<2x4x4x256xf32>
    %287 = vector.shape_cast %286 : vector<2x4x4x256xf32> to vector<32x256xf32>
    %288 = arith.truncf %287 : vector<32x256xf32> to vector<32x256xbf16>
    %c3_286 = arith.constant 3 : index
    %c0_287 = arith.constant 0 : index
    %c0_288 = arith.constant 0 : index
    %289 = vector.load %arg3[%c3_286, %c0_287, %c0_288] : memref<4x768x256xbf16, #tpu.memory_space<vmem>>, vector<1x256x256xbf16>
    %290 = vector.shape_cast %289 : vector<1x256x256xbf16> to vector<256x256xbf16>
    %cst_289 = arith.constant dense<0.000000e+00> : vector<32x256xf32>
    %291 = tpu.matmul %288, %290, %cst_289 {dimension_numbers = #tpu.dot_dimension_numbers<[1], [0], [0], [1], [0, 0, 1, 1], [], []>} : vector<32x256xbf16>, vector<256x256xbf16>, vector<32x256xf32> -> vector<32x256xf32>
    %292 = arith.addf %284, %291 : vector<32x256xf32>
    %c0_290 = arith.constant 0 : index
    %c2_291 = arith.constant 2 : index
    %c0_292 = arith.constant 0 : index
    %c1_293 = arith.constant 1 : index
    %c0_294 = arith.constant 0 : index
    %293 = vector.load %arg11[%c0_290, %c2_291, %c0_292, %c1_293, %c0_294] : memref<2x6x2x6x256xf32, #tpu.memory_space<vmem>>, vector<2x4x1x4x256xf32>
    %294 = vector.shape_cast %293 : vector<2x4x1x4x256xf32> to vector<2x4x4x256xf32>
    %295 = vector.shape_cast %294 : vector<2x4x4x256xf32> to vector<32x256xf32>
    %296 = arith.truncf %295 : vector<32x256xf32> to vector<32x256xbf16>
    %c3_295 = arith.constant 3 : index
    %c256_296 = arith.constant 256 : index
    %c0_297 = arith.constant 0 : index
    %297 = vector.load %arg3[%c3_295, %c256_296, %c0_297] : memref<4x768x256xbf16, #tpu.memory_space<vmem>>, vector<1x256x256xbf16>
    %298 = vector.shape_cast %297 : vector<1x256x256xbf16> to vector<256x256xbf16>
    %cst_298 = arith.constant dense<0.000000e+00> : vector<32x256xf32>
    %299 = tpu.matmul %296, %298, %cst_298 {dimension_numbers = #tpu.dot_dimension_numbers<[1], [0], [0], [1], [0, 0, 1, 1], [], []>} : vector<32x256xbf16>, vector<256x256xbf16>, vector<32x256xf32> -> vector<32x256xf32>
    %300 = arith.addf %292, %299 : vector<32x256xf32>
    %c0_299 = arith.constant 0 : index
    %c2_300 = arith.constant 2 : index
    %c0_301 = arith.constant 0 : index
    %c2_302 = arith.constant 2 : index
    %c0_303 = arith.constant 0 : index
    %301 = vector.load %arg11[%c0_299, %c2_300, %c0_301, %c2_302, %c0_303] : memref<2x6x2x6x256xf32, #tpu.memory_space<vmem>>, vector<2x4x1x4x256xf32>
    %302 = vector.shape_cast %301 : vector<2x4x1x4x256xf32> to vector<2x4x4x256xf32>
    %303 = vector.shape_cast %302 : vector<2x4x4x256xf32> to vector<32x256xf32>
    %304 = arith.truncf %303 : vector<32x256xf32> to vector<32x256xbf16>
    %c3_304 = arith.constant 3 : index
    %c512_305 = arith.constant 512 : index
    %c0_306 = arith.constant 0 : index
    %305 = vector.load %arg3[%c3_304, %c512_305, %c0_306] : memref<4x768x256xbf16, #tpu.memory_space<vmem>>, vector<1x256x256xbf16>
    %306 = vector.shape_cast %305 : vector<1x256x256xbf16> to vector<256x256xbf16>
    %cst_307 = arith.constant dense<0.000000e+00> : vector<32x256xf32>
    %307 = tpu.matmul %304, %306, %cst_307 {dimension_numbers = #tpu.dot_dimension_numbers<[1], [0], [0], [1], [0, 0, 1, 1], [], []>} : vector<32x256xbf16>, vector<256x256xbf16>, vector<32x256xf32> -> vector<32x256xf32>
    %308 = arith.addf %300, %307 : vector<32x256xf32>
    %cst_308 = arith.constant dense<0.000000e+00> : vector<256xf32>
    %309 = vector.multi_reduction <add>, %308, %cst_308 [0] : vector<32x256xf32> to vector<256xf32>
    %310 = vector.shape_cast %309 : vector<256xf32> to vector<1x256xf32>
    %311 = arith.mulf %308, %308 : vector<32x256xf32>
    %cst_309 = arith.constant dense<0.000000e+00> : vector<256xf32>
    %312 = vector.multi_reduction <add>, %311, %cst_309 [0] : vector<32x256xf32> to vector<256xf32>
    %313 = vector.shape_cast %312 : vector<256xf32> to vector<1x256xf32>
    %cst_310 = arith.constant 3.200000e+01 : f32
    %314 = vector.broadcast %cst_310 : f32 to vector<1x256xf32>
    %315 = arith.divf %310, %314 : vector<1x256xf32>
    %cst_311 = arith.constant 3.200000e+01 : f32
    %316 = vector.broadcast %cst_311 : f32 to vector<1x256xf32>
    %317 = arith.divf %313, %316 : vector<1x256xf32>
    %318 = arith.mulf %315, %315 : vector<1x256xf32>
    %319 = arith.subf %317, %318 : vector<1x256xf32>
    %c0_312 = arith.constant 0 : index
    %c0_313 = arith.constant 0 : index
    %320 = vector.load %arg7[%c0_312, %c0_313] : memref<1x256xf32, #tpu.memory_space<vmem>>, vector<1x256xf32>
    %cst_314 = arith.constant 9.99999974E-6 : f32
    %321 = vector.broadcast %cst_314 : f32 to vector<1x256xf32>
    %322 = arith.addf %319, %321 : vector<1x256xf32>
    %323 = math.rsqrt %322 : vector<1x256xf32>
    %324 = arith.mulf %320, %323 : vector<1x256xf32>
    %c0_315 = arith.constant 0 : index
    %c0_316 = arith.constant 0 : index
    %325 = vector.load %arg8[%c0_315, %c0_316] : memref<1x256xf32, #tpu.memory_space<vmem>>, vector<1x256xf32>
    %326 = arith.mulf %315, %324 : vector<1x256xf32>
    %327 = arith.subf %325, %326 : vector<1x256xf32>
    %328 = vector.broadcast %324 : vector<1x256xf32> to vector<32x256xf32>
    %329 = arith.mulf %308, %328 : vector<32x256xf32>
    %330 = vector.broadcast %327 : vector<1x256xf32> to vector<32x256xf32>
    %331 = arith.addf %329, %330 : vector<32x256xf32>
    %cst_317 = arith.constant 0.000000e+00 : f32
    %332 = vector.broadcast %cst_317 : f32 to vector<32x256xf32>
    %333 = arith.cmpf ogt, %331, %332 : vector<32x256xf32>
    %cst_318 = arith.constant 2.000000e-01 : f32
    %334 = vector.broadcast %cst_318 : f32 to vector<32x256xf32>
    %335 = arith.mulf %334, %331 : vector<32x256xf32>
    %336 = arith.select %333, %331, %335 : vector<32x256xi1>, vector<32x256xf32>
    %c0_319 = arith.constant 0 : index
    %c0_320 = arith.constant 0 : index
    %337 = vector.load %arg4[%c0_319, %c0_320] : memref<16x256xf32, #tpu.memory_space<vmem>>, vector<16x256xf32>
    %338 = vector.shape_cast %337 : vector<16x256xf32> to vector<1x16x256xf32>
    %339 = vector.shape_cast %336 : vector<32x256xf32> to vector<2x16x256xf32>
    %340 = vector.broadcast %338 : vector<1x16x256xf32> to vector<2x16x256xf32>
    %341 = arith.mulf %339, %340 : vector<2x16x256xf32>
    %cst_321 = arith.constant dense<0.000000e+00> : vector<2x16xf32>
    %342 = vector.multi_reduction <add>, %341, %cst_321 [2] : vector<2x16x256xf32> to vector<2x16xf32>
    %cst_322 = arith.constant dense<0.000000e+00> : vector<2xf32>
    %343 = vector.multi_reduction <add>, %342, %cst_322 [1] : vector<2x16xf32> to vector<2xf32>
    %344 = vector.shape_cast %343 : vector<2xf32> to vector<2x1xf32>
    %345 = arith.negf %344 : vector<2x1xf32>
    %346 = math.exp %345 : vector<2x1xf32>
    %cst_323 = arith.constant 1.000000e+00 : f32
    %347 = vector.broadcast %cst_323 : f32 to vector<2x1xf32>
    %348 = arith.addf %347, %346 : vector<2x1xf32>
    %349 = arith.divf %347, %348 : vector<2x1xf32>
    %cst_324 = arith.constant 1.000000e+00 : f32
    %350 = vector.broadcast %cst_324 : f32 to vector<1x128xf32>
    %351 = vector.broadcast %349 : vector<2x1xf32> to vector<2x128xf32>
    %352 = vector.broadcast %350 : vector<1x128xf32> to vector<2x128xf32>
    %353 = arith.mulf %351, %352 : vector<2x128xf32>
    %c0_325 = arith.constant 0 : index
    %c0_326 = arith.constant 0 : index
    %354 = vector.load %arg9[%c0_325, %c0_326] : memref<2x128xf32, #tpu.memory_space<vmem>>, vector<2x128xf32>
    tpu.vector_store %arg9[%c0_325, %c0_326], %353 {strides = array<i32>} : memref<2x128xf32, #tpu.memory_space<vmem>>, vector<2x128xf32>,
    return
  }
}

</mosaic_0001>

<bundles_post_ra>
// kernel: discriminator_forward.1
= control target key start
LH: loop header
LB: loop body
LE: loop exit
PB: predicated region body
PF: predicated region fallthrough
CT: control target
= control target key end

     0   :  { %14 = vsyncpa [#allocation5], 0  ;;  %s21782_s30 = smov [#allocation4]   ;;  %s27724_s0 = inlined_call_operand.vmem [shape: bf16[128,128], index: 0, kind: input, shape index: {}]   ;;  %s27725_s1 = inlined_call_operand.vmem [shape: bf16[128,256], index: 1, kind: input, shape index: {}]   ;;  %s27726_s2 = inlined_call_operand.vmem [shape: bf16[6,768,512], index: 2, kind: input, shape index: {}]   ;;  %s27727_s3 = inlined_call_operand.hbm [shape: bf16[4,768,256], index: 3, kind: input, shape index: {}]   ;;  %s27728_s4 = inlined_call_operand.vmem [shape: f32[16,256], index: 4, kind: input, shape index: {}]   ;;  %s27729_s5 = inlined_call_operand.vmem [shape: f32[1,128], index: 5, kind: input, shape index: {}]   ;;  %s27730_s6 = inlined_call_operand.vmem [shape: f32[1,128], index: 6, kind: input, shape index: {}]   ;;  %s27731_s7 = inlined_call_operand.vmem [shape: f32[1,256], index: 7, kind: input, shape index: {}]   ;;  %s27732_s8 = inlined_call_operand.vmem [shape: f32[1,256], index: 8, kind: input, shape index: {}]   ;;  %s27733_s9 = inlined_call_operand.vmem [shape: f32[2,128], index: 9, kind: output, shape index: {}]  }
   0x1   :  { %s26_s10 = sshll.u32 %s21782_s30, 4  ;;  %s27_s10 = int_to_ptr.vmem [resolvable:$true] %s26_s10 }
   0x2   :  { %s21768_s11 = scalar_lea.vmem %s27_s10, 49152  ;;  %p21773_p1 = scmp.lt.s32.totalorder %s27_s10, %s27_s10 }
   0x3   :  { %p21769_p0 = scmp.ne.s32.totalorder %s27_s10, %s21768_s11  ;;  %p21774_p2 = scmp.lt.s32.totalorder %s21768_s11, %s21768_s11 }
   0x5   :  { %p21775_p3 = por %p21774_p2, %p21773_p1 }
   0x7   :  { %p21776_p4 = pnand %p21775_p3, %p21769_p0 }
   0x9   :  { %21779 = shalt.err (!%p21776_p4)
}
   0xa   :  { %s21783_s12 = smov 128   ;;  %s21784_s13 = smov 8  }
   0xb   :  { %32 = dma.hbm_to_vmem [thread:$0]  %s27727_s3, 49152, %s27_s10, [#allocation5], %s21783_s12, %s21783_s12, %s21784_s13  }
   0xc   :  { %21780 = dma.done.wait [#allocation5], 49152  }
   0xd   :  { %21781 = vsyncadd [#allocation5], 4294918144  ;;  %v21785_v0 = vmov 0.0   ;;  %v21786_v1 = vmov 0   ;;  %v18951_v2 = vld [vmem:[%s27725_s1 + $0x74] ss:$8 sps:$4 sm:$0xff]  }
   0xe   :  { %53 = vst [vmem:[#allocation2 + $0xf8] sm:$0x3f] %v21785_v0  ;;  %54 = vst [vmem:[#allocation2 + $0x78] sm:$0x3f] %v21785_v0  ;;  %383 = vmatprep.mubr.bf16.mxu0 %v21786_v1  ;;  %v18953_v3 = vld [vmem:[%s27725_s1 + $0x70] ss:$8 sps:$4 sm:$0xff]   ;;  %351 = vmatprep.subr.bf16.mxu0 %v18951_v2 }
   0xf   :  { %55 = vst [vmem:[#allocation2 + $0x128] sm:$0x3f] %v21785_v0  ;;  %56 = vst [vmem:[#allocation2 + $0xe0] sm:$0x3f] %v21785_v0  ;;  %v18954_v4 = vld [vmem:[%s27725_s1 + $0x64] ss:$8 sps:$4 sm:$0xff]   ;;  %352 = vmatpush1.bf16.msra.mxu0 %v18953_v3 }
  0x10   :  { %57 = vst [vmem:[#allocation2 + $0x2f8] sm:$0x3f] %v21785_v0  ;;  %58 = vst [vmem:[#allocation2 + $0x2b8] sm:$0x3f] %v21785_v0  ;;  %v18956_v5 = vld [vmem:[%s27725_s1 + $0x60] ss:$8 sps:$4 sm:$0xff]   ;;  %353 = vmatprep.subr.bf16.mxu0 %v18954_v4 }
  0x11   :  { %59 = vst [vmem:[#allocation2 + $0x2a0] sm:$0x3f] %v21785_v0  ;;  %60 = vst [vmem:[#allocation2 + $0x168] sm:$0x3f] %v21785_v0  ;;  %v18957_v6 = vld [vmem:[%s27725_s1 + $0x54] ss:$8 sps:$4 sm:$0xff]  }
  0x12   :  { %61 = vst [vmem:[#allocation2 + $0x178] sm:$0x3f] %v21785_v0  ;;  %62 = vst [vmem:[#allocation2 + $0x40] sm:$0x3f] %v21785_v0  ;;  %v18959_v7 = vld [vmem:[%s27725_s1 + $0x50] ss:$8 sps:$4 sm:$0xff]  }
  0x13   :  { %63 = vst [vmem:[#allocation2] sm:$0x3f] %v21785_v0  ;;  %64 = vst [vmem:[#allocation2 + $0x248] sm:$0x3f] %v21785_v0  ;;  %354 = vmatpush1.bf16.msra.mxu0 %v18956_v5  ;;  %v18960_v8 = vld [vmem:[%s27725_s1 + $0x44] ss:$8 sps:$4 sm:$0xff]  }
  0x14   :  { %65 = vst [vmem:[#allocation2 + $0xe8] sm:$0x3f] %v21785_v0  ;;  %66 = vst [vmem:[#allocation2 + $0x68] sm:$0x3f] %v21785_v0  ;;  %355 = vmatprep.subr.bf16.mxu0 %v18957_v6  ;;  %v18962_v9 = vld [vmem:[%s27725_s1 + $0x40] ss:$8 sps:$4 sm:$0xff]  }
  0x15   :  { %67 = vst [vmem:[#allocation2 + $0x228] sm:$0x3f] %v21785_v0  ;;  %68 = vst [vmem:[#allocation2 + $0xa8] sm:$0x3f] %v21785_v0  ;;  %v18963_v10 = vld [vmem:[%s27725_s1 + $0x34] ss:$8 sps:$4 sm:$0xff]  }
  0x16   :  { %69 = vst [vmem:[#allocation2 + $0x20] sm:$0x3f] %v21785_v0  ;;  %70 = vst [vmem:[#allocation2 + $0x1b0] sm:$0x3f] %v21785_v0  ;;  %v18965_v11 = vld [vmem:[%s27725_s1 + $0x30] ss:$8 sps:$4 sm:$0xff]  }
  0x17   :  { %71 = vst [vmem:[#allocation2 + $0x220] sm:$0x3f] %v21785_v0  ;;  %72 = vst [vmem:[#allocation2 + $0x258] sm:$0x3f] %v21785_v0  ;;  %356 = vmatpush1.bf16.msra.mxu0 %v18959_v7  ;;  %v18966_v12 = vld [vmem:[%s27725_s1 + $0x24] ss:$8 sps:$4 sm:$0xff]  }
  0x18   :  { %73 = vst [vmem:[#allocation2 + $0x238] sm:$0x3f] %v21785_v0  ;;  %74 = vst [vmem:[#allocation2 + $0x130] sm:$0x3f] %v21785_v0  ;;  %357 = vmatprep.subr.bf16.mxu0 %v18960_v8  ;;  %v18968_v13 = vld [vmem:[%s27725_s1 + $0x20] ss:$8 sps:$4 sm:$0xff]  }
  0x19   :  { %75 = vst [vmem:[#allocation2 + $0x158] sm:$0x3f] %v21785_v0  ;;  %76 = vst [vmem:[#allocation2 + $0x98] sm:$0x3f] %v21785_v0  ;;  %v18983_v14 = vld [vmem:[%s27726_s2 + $0x2e4] ss:$16 sps:$4 sm:$0xff]  }
  0x1a   :  { %77 = vst [vmem:[#allocation2 + $0x2e0] sm:$0x3f] %v21785_v0  ;;  %78 = vst [vmem:[#allocation2 + $0x1a8] sm:$0x3f] %v21785_v0  ;;  %v18969_v15 = vld [vmem:[%s27725_s1 + $0x14] ss:$8 sps:$4 sm:$0xff]   ;;  %1461 = vmatprep.subr.bf16.mxu1 %v18983_v14 }
  0x1b   :  { %79 = vst [vmem:[#allocation2 + $0x1b8] sm:$0x3f] %v21785_v0  ;;  %80 = vst [vmem:[#allocation2 + $0x80] sm:$0x3f] %v21785_v0  ;;  %358 = vmatpush1.bf16.msra.mxu0 %v18962_v9  ;;  %v18988_v16 = vld [vmem:[%s27726_s2 + $0x2e0] ss:$16 sps:$4 sm:$0xff]  }
  0x1c   :  { %81 = vst [vmem:[#allocation2 + $0x188] sm:$0x3f] %v21785_v0  ;;  %82 = vst [vmem:[#allocation2 + $0x208] sm:$0x3f] %v21785_v0  ;;  %359 = vmatprep.subr.bf16.mxu0 %v18963_v10  ;;  %v18989_v17 = vld [vmem:[%s27726_s2 + $0x2c4] ss:$16 sps:$4 sm:$0xff]   ;;  %1462 = vmatpush1.bf16.msra.mxu1 %v18988_v16 }
  0x1d   :  { %83 = vst [vmem:[#allocation2 + $0x38] sm:$0x3f] %v21785_v0  ;;  %84 = vst [vmem:[#allocation2 + $0x190] sm:$0x3f] %v21785_v0  ;;  %v18971_v18 = vld [vmem:[%s27725_s1 + $0x10] ss:$8 sps:$4 sm:$0xff]   ;;  %1463 = vmatprep.subr.bf16.mxu1 %v18989_v17 }
  0x1e   :  { %85 = vst [vmem:[#allocation2 + $0x218] sm:$0x3f] %v21785_v0  ;;  %86 = vst [vmem:[#allocation2 + $0x250] sm:$0x3f] %v21785_v0  ;;  %v18972_v19 = vld [vmem:[%s27725_s1 + $0x4] ss:$8 sps:$4 sm:$0xff]  }
  0x1f   :  { %87 = vst [vmem:[#allocation2 + $0x1c8] sm:$0x3f] %v21785_v0  ;;  %88 = vst [vmem:[#allocation2 + $0x280] sm:$0x3f] %v21785_v0  ;;  %360 = vmatpush1.bf16.msra.mxu0 %v18965_v11  ;;  %v18994_v20 = vld [vmem:[%s27726_s2 + $0x2c0] ss:$16 sps:$4 sm:$0xff]  }
  0x20   :  { %101 = vst [vmem:[#allocation2 + $0x58] sm:$0x3f] %v21785_v0  ;;  %102 = vst [vmem:[#allocation2 + $0x1c0] sm:$0x3f] %v21785_v0  ;;  %361 = vmatprep.subr.bf16.mxu0 %v18966_v12  ;;  %v18995_v21 = vld [vmem:[%s27726_s2 + $0x2a4] ss:$16 sps:$4 sm:$0xff]   ;;  %1464 = vmatpush1.bf16.msra.mxu1 %v18994_v20 }
  0x21   :  { %103 = vst [vmem:[#allocation2 + $0x298] sm:$0x3f] %v21785_v0  ;;  %104 = vst [vmem:[#allocation2 + $0x70] sm:$0x3f] %v21785_v0  ;;  %v18974_v22 = vld [vmem:[%s27725_s1] ss:$8 sps:$4 sm:$0xff]   ;;  %1465 = vmatprep.subr.bf16.mxu1 %v18995_v21 }
  0x22   :  { %105 = vst [vmem:[#allocation2 + $0x18] sm:$0x3f] %v21785_v0  ;;  %106 = vst [vmem:[#allocation2 + $0x120] sm:$0x3f] %v21785_v0  ;;  %v19000_v23 = vld [vmem:[%s27726_s2 + $0x2a0] ss:$16 sps:$4 sm:$0xff]  }
  0x23   :  { %107 = vst [vmem:[#allocation2 + $0x240] sm:$0x3f] %v21785_v0  ;;  %108 = vst [vmem:[#allocation2 + $0x180] sm:$0x3f] %v21785_v0  ;;  %362 = vmatpush1.bf16.msra.mxu0 %v18968_v13  ;;  %v18975_v24 = vld [vmem:[%s27724_s0] sm:$0xff]   ;;  %v18976_v33 = vld [vmem:[%s27724_s0 + $0x8] sm:$0xff]  }
  0x24   :  { %109 = vst [vmem:[#allocation2 + $0x1f8] sm:$0x3f] %v21785_v0  ;;  %110 = vst [vmem:[#allocation2 + $0x1a0] sm:$0x3f] %v21785_v0  ;;  %363 = vmatprep.subr.bf16.mxu0 %v18969_v15  ;;  %v18987_v25 = vld [vmem:[%s27726_s2 + $0x2ec] ss:$16 sps:$4 sm:$0xff]   ;;  %1466 = vmatpush1.bf16.msra.mxu1 %v19000_v23 }
  0x25   :  { %111 = vst [vmem:[#allocation2 + $0xa0] sm:$0x3f] %v21785_v0  ;;  %112 = vst [vmem:[#allocation2 + $0x278] sm:$0x3f] %v21785_v0  ;;  %v19001_v26 = vld [vmem:[%s27726_s2 + $0x284] ss:$16 sps:$4 sm:$0xff]  }
  0x26   :  { %113 = vst [vmem:[#allocation2 + $0x8] sm:$0x3f] %v21785_v0  ;;  %114 = vst [vmem:[#allocation2 + $0x2c0] sm:$0x3f] %v21785_v0  ;;  %v18985_v27 = vld [vmem:[%s27726_s2 + $0x2e8] ss:$16 sps:$4 sm:$0xff]   ;;  %1467 = vmatprep.subr.bf16.mxu1 %v19001_v26 }
  0x27   :  { %115 = vst [vmem:[#allocation2 + $0x270] sm:$0x3f] %v21785_v0  ;;  %116 = vst [vmem:[#allocation2 + $0x290] sm:$0x3f] %v21785_v0  ;;  %364 = vmatpush1.bf16.msra.mxu0 %v18971_v18  ;;  %v18993_v28 = vld [vmem:[%s27726_s2 + $0x2cc] ss:$16 sps:$4 sm:$0xff]  }
  0x28   :  { %117 = vst [vmem:[#allocation2 + $0x2a8] sm:$0x3f] %v21785_v0  ;;  %118 = vst [vmem:[#allocation2 + $0x2f0] sm:$0x3f] %v21785_v0  ;;  %365 = vmatprep.subr.bf16.mxu0 %v18972_v19  ;;  %v19006_v29 = vld [vmem:[%s27726_s2 + $0x280] ss:$16 sps:$4 sm:$0xff]  }
  0x29   :  { %119 = vst [vmem:[#allocation2 + $0x1e0] sm:$0x3f] %v21785_v0  ;;  %120 = vst [vmem:[#allocation2 + $0x150] sm:$0x3f] %v21785_v0  ;;  %v19007_v30 = vld [vmem:[%s27726_s2 + $0x264] ss:$16 sps:$4 sm:$0xff]   ;;  %1468 = vmatpush1.bf16.msra.mxu1 %v19006_v29 }
  0x2a   :  { %121 = vst [vmem:[#allocation2 + $0x2c8] sm:$0x3f] %v21785_v0  ;;  %122 = vst [vmem:[#allocation2 + $0x1d0] sm:$0x3f] %v21785_v0  ;;  %v18991_v31 = vld [vmem:[%s27726_s2 + $0x2c8] ss:$16 sps:$4 sm:$0xff]   ;;  %1469 = vmatprep.subr.bf16.mxu1 %v19007_v30 }
  0x2b   :  { %123 = vst [vmem:[#allocation2 + $0x140] sm:$0x3f] %v21785_v0  ;;  %124 = vst [vmem:[#allocation2 + $0x230] sm:$0x3f] %v21785_v0  ;;  %366 = vmatpush1.bf16.msra.mxu0 %v18974_v22  ;;  %v18999_v32 = vld [vmem:[%s27726_s2 + $0x2ac] ss:$16 sps:$4 sm:$0xff]  }
  0x2c   :  { %125 = vst [vmem:[#allocation2 + $0x160] sm:$0x3f] %v21785_v0  ;;  %126 = vst [vmem:[#allocation2 + $0x2d8] sm:$0x3f] %v21785_v0  ;;  %1514 = vmatprep.subr.bf16.mxu0 %v18987_v25  ;;  %v18997_v34 = vld [vmem:[%s27726_s2 + $0x2a8] ss:$16 sps:$4 sm:$0xff]  }
  0x2d   :  { %127 = vst [vmem:[#allocation2 + $0xc0] sm:$0x3f] %v21785_v0  ;;  %128 = vst [vmem:[#allocation2 + $0x170] sm:$0x3f] %v21785_v0  ;;  %v19005_v35 = vld [vmem:[%s27726_s2 + $0x28c] ss:$16 sps:$4 sm:$0xff]  }
  0x2e   :  { %129 = vst [vmem:[#allocation2 + $0x90] sm:$0x3f] %v21785_v0  ;;  %130 = vst [vmem:[#allocation2 + $0xb0] sm:$0x3f] %v21785_v0  ;;  %384 = vmatmul.mubr.bf16.vlgmr.msra.gmra.mxu0 %v18975_v24  ;;  %v19003_v36 = vld [vmem:[%s27726_s2 + $0x288] ss:$16 sps:$4 sm:$0xff]  }
  0x2f   :  { %131 = vst [vmem:[#allocation2 + $0x200] sm:$0x3f] %v21785_v0  ;;  %132 = vst [vmem:[#allocation2 + $0xd8] sm:$0x3f] %v21785_v0  ;;  %393 = vmatprep.mubr.bf16.mxu0 %v21786_v1  ;;  %1515 = vmatpush1.bf16.msra.mxu0 %v18985_v27  ;;  %v19011_v37 = vld [vmem:[%s27726_s2 + $0x26c] ss:$16 sps:$4 sm:$0xff]  }
  0x30   :  { %133 = vst [vmem:[#allocation2 + $0x1d8] sm:$0x3f] %v21785_v0  ;;  %134 = vst [vmem:[#allocation2 + $0x2e8] sm:$0x3f] %v21785_v0  ;;  %1516 = vmatprep.subr.bf16.mxu0 %v18993_v28  ;;  %v18977_v38 = vld [vmem:[%s27724_s0 + $0x10] sm:$0xff]   ;;  %v18978_v40 = vld [vmem:[%s27724_s0 + $0x18] sm:$0xff]  }
  0x31   :  { %135 = vst [vmem:[#allocation2 + $0x260] sm:$0x3f] %v21785_v0  ;;  %136 = vst [vmem:[#allocation2 + $0x268] sm:$0x3f] %v21785_v0  ;;  %v19009_v39 = vld [vmem:[%s27726_s2 + $0x268] ss:$16 sps:$4 sm:$0xff]  }
  0x32   :  { %145 = vst [vmem:[#allocation3 + $0x20] sm:$0x3f] %v21785_v0  ;;  %146 = vst [vmem:[#allocation3 + $0x8] sm:$0x3f] %v21785_v0  ;;  %v18979_v41 = vld [vmem:[%s27724_s0 + $0x20] sm:$0xff]   ;;  %v18980_v42 = vld [vmem:[%s27724_s0 + $0x28] sm:$0xff]  }
  0x33   :  { %147 = vst [vmem:[#allocation3 + $0x10] sm:$0x3f] %v21785_v0  ;;  %148 = vst [vmem:[#allocation3 + $0x160] sm:$0x3f] %v21785_v0  ;;  %1517 = vmatpush1.bf16.msra.mxu0 %v18991_v31  ;;  %v18981_v43 = vld [vmem:[%s27724_s0 + $0x30] sm:$0xff]   ;;  %v18982_v44 = vld [vmem:[%s27724_s0 + $0x38] sm:$0xff]  }
  0x34   :  { %149 = vst [vmem:[#allocation3 + $0xd8] sm:$0x3f] %v21785_v0  ;;  %150 = vst [vmem:[#allocation3 + $0x80] sm:$0x3f] %v21785_v0  ;;  %1518 = vmatprep.subr.bf16.mxu0 %v18999_v32  ;;  %v19012_v45 = vld [vmem:[%s27726_s2 + $0x260] ss:$16 sps:$4 sm:$0xff]  }
  0x35   :  { %151 = vst [vmem:[#allocation3 + $0x150] sm:$0x3f] %v21785_v0  ;;  %152 = vst [vmem:[#allocation3] sm:$0x3f] %v21785_v0  ;;  %1470 = vmatpush1.bf16.msra.mxu1 %v19012_v45  ;;  %v19013_v46 = vld [vmem:[%s27726_s2 + $0x244] ss:$16 sps:$4 sm:$0xff]  }
  0x36   :  { %153 = vst [vmem:[#allocation3 + $0xa0] sm:$0x3f] %v21785_v0  ;;  %154 = vst [vmem:[#allocation3 + $0xf0] sm:$0x3f] %v21785_v0  ;;  %394 = vmatmul.mubr.bf16.gmra.mxu0 %v18976_v33  ;;  %v19017_v47 = vld [vmem:[%s27726_s2 + $0x24c] ss:$16 sps:$4 sm:$0xff]   ;;  %1471 = vmatprep.subr.bf16.mxu1 %v19013_v46 }
  0x37   :  { %155 = vst [vmem:[#allocation3 + $0x120] sm:$0x3f] %v21785_v0  ;;  %156 = vst [vmem:[#allocation3 + $0x118] sm:$0x3f] %v21785_v0  ;;  %403 = vmatprep.mubr.bf16.mxu0 %v21786_v1  ;;  %1519 = vmatpush1.bf16.msra.mxu0 %v18997_v34  ;;  %v19015_v48 = vld [vmem:[%s27726_s2 + $0x248] ss:$16 sps:$4 sm:$0xff]  }
  0x38   :  { %157 = vst [vmem:[#allocation3 + $0x60] sm:$0x3f] %v21785_v0  ;;  %158 = vst [vmem:[#allocation3 + $0x128] sm:$0x3f] %v21785_v0  ;;  %1520 = vmatprep.subr.bf16.mxu0 %v19005_v35  ;;  %v19018_v49 = vld [vmem:[%s27726_s2 + $0x240] ss:$16 sps:$4 sm:$0xff]  }
  0x39   :  { %159 = vst [vmem:[#allocation3 + $0x140] sm:$0x3f] %v21785_v0  ;;  %160 = vst [vmem:[#allocation3 + $0x110] sm:$0x3f] %v21785_v0  ;;  %1472 = vmatpush1.bf16.msra.mxu1 %v19018_v49  ;;  %v19019_v50 = vld [vmem:[%s27726_s2 + $0x224] ss:$16 sps:$4 sm:$0xff]  }
  0x3a   :  { %161 = vst [vmem:[#allocation3 + $0xb0] sm:$0x3f] %v21785_v0  ;;  %162 = vst [vmem:[#allocation3 + $0xa8] sm:$0x3f] %v21785_v0  ;;  %v19023_v51 = vld [vmem:[%s27726_s2 + $0x22c] ss:$16 sps:$4 sm:$0xff]   ;;  %1473 = vmatprep.subr.bf16.mxu1 %v19019_v50 }
  0x3b   :  { %163 = vst [vmem:[#allocation3 + $0x18] sm:$0x3f] %v21785_v0  ;;  %164 = vst [vmem:[#allocation3 + $0x48] sm:$0x3f] %v21785_v0  ;;  %1521 = vmatpush1.bf16.msra.mxu0 %v19003_v36  ;;  %v19021_v52 = vld [vmem:[%s27726_s2 + $0x228] ss:$16 sps:$4 sm:$0xff]  }
  0x3c   :  { %169 = vst [vmem:[#allocation3 + $0xe8] sm:$0x3f] %v21785_v0  ;;  %170 = vst [vmem:[#allocation3 + $0x28] sm:$0x3f] %v21785_v0  ;;  %1522 = vmatprep.subr.bf16.mxu0 %v19011_v37  ;;  %v19024_v53 = vld [vmem:[%s27726_s2 + $0x220] ss:$16 sps:$4 sm:$0xff]  }
  0x3d   :  { %171 = vst [vmem:[#allocation3 + $0x170] sm:$0x3f] %v21785_v0  ;;  %172 = vst [vmem:[#allocation3 + $0x58] sm:$0x3f] %v21785_v0  ;;  %1474 = vmatpush1.bf16.msra.mxu1 %v19024_v53  ;;  %v19025_v54 = vld [vmem:[%s27726_s2 + $0x204] ss:$16 sps:$4 sm:$0xff]  }
  0x3e   :  { %173 = vst [vmem:[#allocation3 + $0xe0] sm:$0x3f] %v21785_v0  ;;  %174 = vst [vmem:[#allocation3 + $0x90] sm:$0x3f] %v21785_v0  ;;  %404 = vmatmul.mubr.bf16.gmra.mxu0 %v18977_v38  ;;  %v19029_v55 = vld [vmem:[%s27726_s2 + $0x20c] ss:$16 sps:$4 sm:$0xff]   ;;  %1475 = vmatprep.subr.bf16.mxu1 %v19025_v54 }
  0x3f   :  { %175 = vst [vmem:[#allocation3 + $0x138] sm:$0x3f] %v21785_v0  ;;  %176 = vst [vmem:[#allocation3 + $0x68] sm:$0x3f] %v21785_v0  ;;  %413 = vmatprep.mubr.bf16.mxu0 %v21786_v1  ;;  %1523 = vmatpush1.bf16.msra.mxu0 %v19009_v39  ;;  %v19027_v56 = vld [vmem:[%s27726_s2 + $0x208] ss:$16 sps:$4 sm:$0xff]  }
  0x40   :  { %177 = vst [vmem:[#allocation3 + $0x78] sm:$0x3f] %v21785_v0  ;;  %178 = vst [vmem:[#allocation3 + $0xd0] sm:$0x3f] %v21785_v0  ;;  %1524 = vmatprep.subr.bf16.mxu0 %v19017_v47  ;;  %v19030_v57 = vld [vmem:[%s27726_s2 + $0x200] ss:$16 sps:$4 sm:$0xff]  }
  0x41   :  { %179 = vst [vmem:[#allocation3 + $0xf8] sm:$0x3f] %v21785_v0  ;;  %180 = vst [vmem:[#allocation3 + $0x88] sm:$0x3f] %v21785_v0  ;;  %1476 = vmatpush1.bf16.msra.mxu1 %v19030_v57  ;;  %v19031_v58 = vld [vmem:[%s27726_s2 + $0x3e4] ss:$16 sps:$4 sm:$0xff]  }
  0x42   :  { %181 = vst [vmem:[#allocation3 + $0x30] sm:$0x3f] %v21785_v0  ;;  %182 = vst [vmem:[#allocation3 + $0x50] sm:$0x3f] %v21785_v0  ;;  %v19035_v59 = vld [vmem:[%s27726_s2 + $0x3ec] ss:$16 sps:$4 sm:$0xff]   ;;  %1477 = vmatprep.subr.bf16.mxu1 %v19031_v58 }
  0x43   :  { %183 = vst [vmem:[#allocation3 + $0x168] sm:$0x3f] %v21785_v0  ;;  %184 = vst [vmem:[#allocation3 + $0x178] sm:$0x3f] %v21785_v0  ;;  %1525 = vmatpush1.bf16.msra.mxu0 %v19015_v48  ;;  %v19033_v60 = vld [vmem:[%s27726_s2 + $0x3e8] ss:$16 sps:$4 sm:$0xff]  }
  0x44   :  { %185 = vst [vmem:[#allocation3 + $0x148] sm:$0x3f] %v21785_v0  ;;  %186 = vst [vmem:[#allocation3 + $0xb8] sm:$0x3f] %v21785_v0  ;;  %1526 = vmatprep.subr.bf16.mxu0 %v19023_v51  ;;  %v19036_v61 = vld [vmem:[%s27726_s2 + $0x3e0] ss:$16 sps:$4 sm:$0xff]  }
  0x45   :  { %187 = vst [vmem:[#allocation3 + $0x130] sm:$0x3f] %v21785_v0  ;;  %188 = vst [vmem:[#allocation3 + $0x38] sm:$0x3f] %v21785_v0  ;;  %1478 = vmatpush2.bf16.msra.mxu1 %v19036_v61  ;;  %v19037_v62 = vld [vmem:[%s27726_s2 + $0x3c4] ss:$16 sps:$4 sm:$0xff]  }
  0x46   :  { %414 = vmatmul.mubr.bf16.gmra.mxu0 %v18978_v40  ;;  %v19041_v63 = vld [vmem:[%s27726_s2 + $0x3cc] ss:$16 sps:$4 sm:$0xff]   ;;  %v19039_v0 = vld [vmem:[%s27726_s2 + $0x3c8] ss:$16 sps:$4 sm:$0xff]   ;;  %1479 = vmatprep.subr.bf16.mxu1 %v19037_v62  ;;  %v19043_v2 = vld [vmem:[%s27726_s2 + $0x3a4] ss:$16 sps:$4 sm:$0xff]  }
  0x47   :  { %423 = vmatprep.mubr.bf16.mxu0 %v21786_v1  ;;  %1527 = vmatpush1.bf16.msra.mxu0 %v19021_v52  ;;  %v19047_v3 = vld [vmem:[%s27726_s2 + $0x3ac] ss:$16 sps:$4 sm:$0xff]   ;;  %v19045_v4 = vld [vmem:[%s27726_s2 + $0x3a8] ss:$16 sps:$4 sm:$0xff]   ;;  %v19048_v5 = vld [vmem:[%s27726_s2 + $0x3a0] ss:$16 sps:$4 sm:$0xff]  }
  0x48   :  { %1528 = vmatprep.subr.bf16.mxu0 %v19029_v55  ;;  %v19049_v6 = vld [vmem:[%s27726_s2 + $0x384] ss:$16 sps:$4 sm:$0xff]   ;;  %v19053_v7 = vld [vmem:[%s27726_s2 + $0x38c] ss:$16 sps:$4 sm:$0xff]   ;;  %v19051_v8 = vld [vmem:[%s27726_s2 + $0x388] ss:$16 sps:$4 sm:$0xff]  }
  0x49   :  { %v19054_v9 = vld [vmem:[%s27726_s2 + $0x380] ss:$16 sps:$4 sm:$0xff]   ;;  %v19055_v10 = vld [vmem:[%s27726_s2 + $0x364] ss:$16 sps:$4 sm:$0xff]   ;;  %v19059_v11 = vld [vmem:[%s27726_s2 + $0x36c] ss:$16 sps:$4 sm:$0xff]  }
  0x4a   :  { %v19057_v12 = vld [vmem:[%s27726_s2 + $0x368] ss:$16 sps:$4 sm:$0xff]   ;;  %v19060_v13 = vld [vmem:[%s27726_s2 + $0x360] ss:$16 sps:$4 sm:$0xff]   ;;  %v19061_v14 = vld [vmem:[%s27726_s2 + $0x344] ss:$16 sps:$4 sm:$0xff]  }
  0x4b   :  { %1529 = vmatpush1.bf16.msra.mxu0 %v19027_v56  ;;  %v19065_v15 = vld [vmem:[%s27726_s2 + $0x34c] ss:$16 sps:$4 sm:$0xff]   ;;  %v19063_v16 = vld [vmem:[%s27726_s2 + $0x348] ss:$16 sps:$4 sm:$0xff]   ;;  %v19066_v17 = vld [vmem:[%s27726_s2 + $0x340] ss:$16 sps:$4 sm:$0xff]  }
  0x4c   :  { %1530 = vmatprep.subr.bf16.mxu0 %v19035_v59  ;;  %v19067_v18 = vld [vmem:[%s27726_s2 + $0x324] ss:$16 sps:$4 sm:$0xff]   ;;  %v19071_v19 = vld [vmem:[%s27726_s2 + $0x32c] ss:$16 sps:$4 sm:$0xff]   ;;  %v19069_v20 = vld [vmem:[%s27726_s2 + $0x328] ss:$16 sps:$4 sm:$0xff]  }
  0x4d   :  { %v19072_v21 = vld [vmem:[%s27726_s2 + $0x320] ss:$16 sps:$4 sm:$0xff]   ;;  %v19073_v22 = vld [vmem:[%s27726_s2 + $0x304] ss:$16 sps:$4 sm:$0xff]   ;;  %v19077_v23 = vld [vmem:[%s27726_s2 + $0x30c] ss:$16 sps:$4 sm:$0xff]  }
  0x4e   :  { %424 = vmatmul.mubr.bf16.gmra.mxu0 %v18979_v41  ;;  %v19075_v24 = vld [vmem:[%s27726_s2 + $0x308] ss:$16 sps:$4 sm:$0xff]   ;;  %v19078_v25 = vld [vmem:[%s27726_s2 + $0x300] ss:$16 sps:$4 sm:$0xff]   ;;  %v19090_v26 = vld [vmem:[%s27726_s2 + $0xe4] ss:$16 sps:$4 sm:$0xff]  }
  0x4f   :  { %433 = vmatprep.mubr.bf16.mxu0 %v21786_v1  ;;  %1531 = vmatpush2.bf16.msra.mxu0 %v19033_v60  ;;  %v19093_v27 = vld [vmem:[%s27726_s2 + $0xec] ss:$16 sps:$4 sm:$0xff]   ;;  %vm1022_vm5 = vcmask 1042432   ;;  %vm1023_vm6 = vcmask 1046532  }
  0x50   :  { %1532 = vmatprep.subr.bf16.mxu0 %v19041_v63  ;;  %v974_v28 = vld [vmem:[#allocation2 + $0xf8] sm:$0x1e]  ;;  %vm22240_vm13 = vmor %vm1022_vm5, %vm1023_vm6 }
  0x51   :  { %v975_v29 = vld [vmem:[#allocation2 + $0x78] sm:$0x1e] }
  0x52   :  { %v1006_v31 = vcombine.low %v974_v28, %v975_v29  ;;  %v1007_v32 = vcombine.high %v974_v28, %v975_v29 }
  0x53   :  { %1533 = vmatpush2.bf16.msra.mxu0 %v19039_v0 }
  0x54   :  { %1534 = vmatprep.subr.bf16.mxu0 %v19047_v3  ;;  %v22231_v37 = vrot.slane %v1006_v31, 9  ;;  %v22233_v38 = vrot.slane %v1007_v32, 5 }
  0x56   :  { %434 = vmatmul.mubr.bf16.gmra.mxu0 %v18980_v42 }
  0x57   :  { %443 = vmatprep.mubr.bf16.mxu0 %v21786_v1  ;;  %1535 = vmatpush2.bf16.msra.mxu0 %v19045_v4 }
  0x58   :  { %1536 = vmatprep.subr.bf16.mxu0 %v19053_v7 }
  0x5b   :  { %1537 = vmatpush2.bf16.msra.mxu0 %v19051_v8 }
  0x5c   :  { %1538 = vmatprep.subr.bf16.mxu0 %v19059_v11 }
  0x5e   :  { %444 = vmatmul.mubr.bf16.gmra.mxu0 %v18981_v43 }
  0x5f   :  { %453 = vmatprep.mubr.bf16.mxu0 %v21786_v1  ;;  %v19042_v1 = vld [vmem:[%s27726_s2 + $0x3c0] ss:$16 sps:$4 sm:$0xff]   ;;  %1539 = vmatpush2.bf16.msra.mxu0 %v19057_v12 }
  0x60   :  { %1480 = vmatpush2.bf16.msra.mxu1 %v19042_v1  ;;  %1540 = vmatprep.subr.bf16.mxu0 %v19065_v15 }
  0x61   :  { %1481 = vmatprep.subr.bf16.mxu1 %v19043_v2 }
  0x63   :  { %1541 = vmatpush2.bf16.msra.mxu0 %v19063_v16 }
  0x64   :  { %1482 = vmatpush2.bf16.msra.mxu1 %v19048_v5  ;;  %1542 = vmatprep.subr.bf16.mxu0 %v19071_v19 }
  0x65   :  { %1483 = vmatprep.subr.bf16.mxu1 %v19049_v6 }
  0x66   :  { %454 = vmatmul.mubr.bf16.gmra.mxu0 %v18982_v44 }
  0x67   :  { %1543 = vmatpush2.bf16.msra.mxu0 %v19069_v20 }
  0x68   :  { %1484 = vmatpush2.bf16.msra.mxu1 %v19054_v9  ;;  %1544 = vmatprep.subr.bf16.mxu0 %v19077_v23 }
  0x69   :  { %1485 = vmatprep.subr.bf16.mxu1 %v19055_v10 }
  0x6b   :  { %1545 = vmatpush2.bf16.msra.mxu0 %v19075_v24 }
  0x6c   :  { %1486 = vmatpush2.bf16.msra.mxu1 %v19060_v13  ;;  %1940 = vmatprep.subr.bf16.mxu0 %v19093_v27 }
  0x6d   :  { %1487 = vmatprep.subr.bf16.mxu1 %v19061_v14 }
  0x70   :  { %1488 = vmatpush2.bf16.msra.mxu1 %v19066_v17 }
  0x71   :  { %1489 = vmatprep.subr.bf16.mxu1 %v19067_v18 }
  0x74   :  { %1490 = vmatpush2.bf16.msra.mxu1 %v19072_v21 }
  0x75   :  { %1491 = vmatprep.subr.bf16.mxu1 %v19073_v22 }
  0x78   :  { %1492 = vmatpush2.bf16.msra.mxu1 %v19078_v25 }
  0x79   :  { %1887 = vmatprep.subr.bf16.mxu1 %v19090_v26 }
  0xee   :  { %v385_v30 = vpop.f32.mrf.mxu0 }
  0xef   :  { %v496_v33 = vmul.f32 0.2, %v385_v30  ;;  %vm464_vm0 = vcmp.gt.f32.partialorder %v385_v30, 0.0 }
  0xf0   :  { %v387_v34 = vpop.f32.mrf.mxu0 }
  0xf1   :  { %vm465_vm1 = vcmp.gt.f32.partialorder %v387_v34, 0.0  ;;  %v497_v35 = vmul.f32 0.2, %v387_v34  ;;  %v528_v39 = vsel %vm464_vm0, %v385_v30, %v496_v33 }
  0xf2   :  { %v389_v36 = vpop.f32.mrf.mxu0 }
  0xf3   :  { %v529_v40 = vsel %vm465_vm1, %v387_v34, %v497_v35  ;;  %vm466_vm2 = vcmp.gt.f32.partialorder %v389_v36, 0.0  ;;  %v498_v41 = vmul.f32 0.2, %v389_v36  ;;  %v27744_v34 = vmov 0 }
  0xf4   :  { %v592_v42 = vcombine.low %v528_v39, %v529_v40  ;;  %v593_v43 = vcombine.high %v528_v39, %v529_v40  ;;  %v16160_v44 = vcombine.low %v529_v40, %v529_v40  ;;  %v16161_v45 = vcombine.high %v529_v40, %v529_v40  ;;  %v391_v46 = vpop.f32.mrf.mxu0 }
  0xf5   :  { %vm467_vm3 = vcmp.gt.f32.partialorder %v391_v46, 0.0  ;;  %v499_v47 = vmul.f32 0.2, %v391_v46  ;;  %v530_v53 = vsel %vm466_vm2, %v389_v36, %v498_v41  ;;  %v27745_v34 = vsel %vm22240_vm13, 4294967295, %v27744_v34 }
  0xf6   :  { %v656_v48 = vrot.slane %v592_v42, 7  ;;  %v657_v49 = vrot.slane %v16160_v44, 7  ;;  %v658_v50 = vrot.slane %v593_v43, 7  ;;  %v659_v51 = vrot.slane %v16161_v45, 7  ;;  %v395_v52 = vpop.f32.mrf.mxu0  ;;  %27746 = vst [vmem:[#allocation7_spill] sm:$0xff] %v27745_v34 }
  0xf7   :  { %v531_v54 = vsel %vm467_vm3, %v391_v46, %v499_v47  ;;  %vm468_vm4 = vcmp.gt.f32.partialorder %v395_v52, 0.0  ;;  %v500_v55 = vmul.f32 0.2, %v395_v52  ;;  %v22248_v46 = vsel %vm22240_vm13, %v22231_v37, %v22233_v38 }
  0xf8   :  { %785 = vst [vmem:[#allocation2 + $0x128] sm:$0x1e] %v656_v48  ;;  %786 = vst [vmem:[#allocation2 + $0xe0] sm:$0x1e] %v657_v49  ;;  %v594_v56 = vcombine.low %v530_v53, %v531_v54  ;;  %v595_v57 = vcombine.high %v530_v53, %v531_v54  ;;  %v16162_v58 = vcombine.low %v531_v54, %v531_v54  ;;  %v397_v60 = vpop.f32.mrf.mxu0 }
  0xf9   :  { %787 = vst [vmem:[#allocation2 + $0x2f8] sm:$0x1e] %v658_v50  ;;  %788 = vst [vmem:[#allocation2 + $0x2b8] sm:$0x1e] %v659_v51  ;;  %v16163_v59 = vcombine.high %v531_v54, %v531_v54  ;;  %vm469_vm7 = vcmp.gt.f32.partialorder %v397_v60, 0.0  ;;  %v532_v3 = vsel %vm468_vm4, %v395_v52, %v500_v55 }
  0xfa   :  { %v501_v61 = vmul.f32 0.2, %v397_v60  ;;  %v660_v62 = vrot.slane %v594_v56, 7  ;;  %v661_v63 = vrot.slane %v16162_v58, 7  ;;  %v662_v0 = vrot.slane %v595_v57, 7  ;;  %v399_v2 = vpop.f32.mrf.mxu0 }
  0xfb   :  { %v663_v1 = vrot.slane %v16163_v59, 7  ;;  %vm470_vm8 = vcmp.gt.f32.partialorder %v399_v2, 0.0  ;;  %v502_v5 = vmul.f32 0.2, %v399_v2 }
  0xfc   :  { %v533_v4 = vsel %vm469_vm7, %v397_v60, %v501_v61  ;;  %789 = vst [vmem:[#allocation2 + $0x2a0] sm:$0x1e] %v660_v62  ;;  %790 = vst [vmem:[#allocation2 + $0x168] sm:$0x1e] %v661_v63  ;;  %v401_v10 = vpop.f32.mrf.mxu0 }
  0xfd   :  { %791 = vst [vmem:[#allocation2 + $0x178] sm:$0x1e] %v662_v0  ;;  %792 = vst [vmem:[#allocation2 + $0x40] sm:$0x1e] %v663_v1  ;;  %v596_v6 = vcombine.low %v532_v3, %v533_v4  ;;  %v597_v7 = vcombine.high %v532_v3, %v533_v4  ;;  %v16164_v8 = vcombine.low %v533_v4, %v533_v4  ;;  %vm471_vm9 = vcmp.gt.f32.partialorder %v401_v10, 0.0 }
  0xfe   :  { %v16165_v9 = vcombine.high %v533_v4, %v533_v4  ;;  %v503_v11 = vmul.f32 0.2, %v401_v10  ;;  %v405_v16 = vpop.f32.mrf.mxu0  ;;  %v534_v17 = vsel %vm470_vm8, %v399_v2, %v502_v5 }
  0xff   :  { %v664_v12 = vrot.slane %v596_v6, 7  ;;  %v665_v13 = vrot.slane %v16164_v8, 7  ;;  %v666_v14 = vrot.slane %v597_v7, 7  ;;  %vm472_vm10 = vcmp.gt.f32.partialorder %v405_v16, 0.0 }
 0x100   :  { %v667_v15 = vrot.slane %v16165_v9, 7  ;;  %v535_v18 = vsel %vm471_vm9, %v401_v10, %v503_v11  ;;  %v504_v19 = vmul.f32 0.2, %v405_v16  ;;  %v407_v24 = vpop.f32.mrf.mxu0 }
 0x101   :  { %793 = vst [vmem:[#allocation2] sm:$0x1e] %v664_v12  ;;  %794 = vst [vmem:[#allocation2 + $0x248] sm:$0x1e] %v665_v13  ;;  %v598_v20 = vcombine.low %v534_v17, %v535_v18  ;;  %v599_v21 = vcombine.high %v534_v17, %v535_v18  ;;  %v16166_v22 = vcombine.low %v535_v18, %v535_v18  ;;  %vm473_vm11 = vcmp.gt.f32.partialorder %v407_v24, 0.0 }
 0x102   :  { %795 = vst [vmem:[#allocation2 + $0xe8] sm:$0x1e] %v666_v14  ;;  %796 = vst [vmem:[#allocation2 + $0x68] sm:$0x1e] %v667_v15  ;;  %v16167_v23 = vcombine.high %v535_v18, %v535_v18  ;;  %v505_v25 = vmul.f32 0.2, %v407_v24  ;;  %v409_v30 = vpop.f32.mrf.mxu0  ;;  %v536_v31 = vsel %vm472_vm10, %v405_v16, %v504_v19 }
 0x103   :  { %v668_v26 = vrot.slane %v598_v20, 7  ;;  %v669_v27 = vrot.slane %v16166_v22, 7  ;;  %v670_v28 = vrot.slane %v599_v21, 7  ;;  %vm474_vm12 = vcmp.gt.f32.partialorder %v409_v30, 0.0 }
 0x104   :  { %v671_v29 = vrot.slane %v16167_v23, 7  ;;  %v537_v32 = vsel %vm473_vm11, %v407_v24, %v505_v25  ;;  %v506_v33 = vmul.f32 0.2, %v409_v30  ;;  %v411_v41 = vpop.f32.mrf.mxu0  ;;  %v19079_v42 = vld [vmem:[#allocation2 + $0x178] ss:$-312 sps:$4 sm:$0xee]  }
 0x105   :  { %797 = vst [vmem:[#allocation2 + $0x228] sm:$0x1e] %v668_v26  ;;  %798 = vst [vmem:[#allocation2 + $0xa8] sm:$0x1e] %v669_v27  ;;  %v600_v35 = vcombine.low %v536_v31, %v537_v32  ;;  %v601_v36 = vcombine.high %v536_v31, %v537_v32  ;;  %v16168_v39 = vcombine.low %v537_v32, %v537_v32  ;;  %vm475_vm14 = vcmp.gt.f32.partialorder %v411_v41, 0.0 }
 0x106   :  { %799 = vst [vmem:[#allocation2 + $0x20] sm:$0x1e] %v670_v28  ;;  %800 = vst [vmem:[#allocation2 + $0x1b0] sm:$0x1e] %v671_v29  ;;  %v16169_v40 = vcombine.high %v537_v32, %v537_v32  ;;  %v538_v43 = vsel %vm474_vm12, %v409_v30, %v506_v33  ;;  %v507_v44 = vmul.f32 0.2, %v411_v41  ;;  %v415_v51 = vpop.f32.mrf.mxu0 }
 0x107   :  { %v19081_v45 = vld [vmem:[#allocation2 + $0x17c] ss:$-312 sps:$4 sm:$0x11]   ;;  %v672_v47 = vrot.slane %v600_v35, 7  ;;  %v673_v48 = vrot.slane %v16168_v39, 7  ;;  %v674_v49 = vrot.slane %v601_v36, 7 }
 0x108   :  { %v675_v50 = vrot.slane %v16169_v40, 7  ;;  %v539_v52 = vsel %vm475_vm14, %v411_v41, %v507_v44  ;;  %vm476_vm15 = vcmp.gt.f32.partialorder %v415_v51, 0.0  ;;  %v508_v53 = vmul.f32 0.2, %v415_v51  ;;  %v417_v59 = vpop.f32.mrf.mxu0 }
 0x109   :  { %v16201_v54 = vrot.slane %v19079_v42, 9  ;;  %801 = vst [vmem:[#allocation2 + $0x220] sm:$0x1e] %v672_v47  ;;  %802 = vst [vmem:[#allocation2 + $0x258] sm:$0x1e] %v673_v48  ;;  %v602_v55 = vcombine.low %v538_v43, %v539_v52  ;;  %v603_v56 = vcombine.high %v538_v43, %v539_v52  ;;  %v16170_v57 = vcombine.low %v539_v52, %v539_v52 }
 0x10a   :  { %803 = vst [vmem:[#allocation2 + $0x238] sm:$0x1e] %v674_v49  ;;  %804 = vst [vmem:[#allocation2 + $0x130] sm:$0x1e] %v675_v50  ;;  %v16171_v58 = vcombine.high %v539_v52, %v539_v52  ;;  %v540_v37 = vsel %vm476_vm15, %v415_v51, %v508_v53  ;;  %vm477_vm0 = vcmp.gt.f32.partialorder %v417_v59, 0.0  ;;  %v1031_v60 = vrot.slane %v19081_v45, 5  ;;  %v419_v1 = vpop.f32.mrf.mxu0 }
 0x10b   :  { %v509_v38 = vmul.f32 0.2, %v417_v59  ;;  %v676_v61 = vrot.slane %v602_v55, 7  ;;  %v677_v62 = vrot.slane %v16170_v57, 7  ;;  %v678_v63 = vrot.slane %v603_v56, 7 }
 0x10c   :  { %v679_v0 = vrot.slane %v16171_v58, 7  ;;  %vm478_vm1 = vcmp.gt.f32.partialorder %v419_v1, 0.0  ;;  %v510_v3 = vmul.f32 0.2, %v419_v1  ;;  %v22252_v4 = vsel %vm22240_vm13, %v16201_v54, %v1031_v60  ;;  %v421_v9 = vpop.f32.mrf.mxu0 }
 0x10d   :  { %v541_v2 = vsel %vm477_vm0, %v417_v59, %v509_v38  ;;  %805 = vst [vmem:[#allocation2 + $0x158] sm:$0x1e] %v676_v61  ;;  %806 = vst [vmem:[#allocation2 + $0x98] sm:$0x1e] %v677_v62  ;;  %vm479_vm2 = vcmp.gt.f32.partialorder %v421_v9, 0.0  ;;  %v1057_v14 = vcombine.low %v22248_v46, %v22252_v4  ;;  %v1058_v52 = vcombine.high %v22248_v46, %v22252_v4 }
 0x10e   :  { %807 = vst [vmem:[#allocation2 + $0x2e0] sm:$0x1e] %v678_v63  ;;  %808 = vst [vmem:[#allocation2 + $0x1a8] sm:$0x1e] %v679_v0  ;;  %v604_v5 = vcombine.low %v540_v37, %v541_v2  ;;  %v605_v6 = vcombine.high %v540_v37, %v541_v2  ;;  %v16172_v7 = vcombine.low %v541_v2, %v541_v2  ;;  %v511_v12 = vmul.f32 0.2, %v421_v9  ;;  %v425_v19 = vpop.f32.mrf.mxu0 }
 0x10f   :  { %v16173_v8 = vcombine.high %v541_v2, %v541_v2  ;;  %v19082_v10 = vld [vmem:[#allocation2 + $0x20] ss:$400 sps:$4 sm:$0xee]   ;;  %v542_v11 = vsel %vm478_vm1, %v419_v1, %v510_v3  ;;  %v19084_v13 = vld [vmem:[#allocation2 + $0x24] ss:$400 sps:$4 sm:$0x11]  }
 0x110   :  { %v680_v15 = vrot.slane %v604_v5, 7  ;;  %v681_v16 = vrot.slane %v16172_v7, 7  ;;  %v682_v17 = vrot.slane %v605_v6, 7  ;;  %v543_v20 = vsel %vm479_vm2, %v421_v9, %v511_v12  ;;  %v427_v27 = vpop.f32.mrf.mxu0 }
 0x111   :  { %v683_v18 = vrot.slane %v16173_v8, 7  ;;  %vm480_vm3 = vcmp.gt.f32.partialorder %v425_v19, 0.0  ;;  %v512_v21 = vmul.f32 0.2, %v425_v19  ;;  %v16202_v22 = vrot.slane %v19082_v10, 9 }
 0x112   :  { %809 = vst [vmem:[#allocation2 + $0x1b8] sm:$0x1e] %v680_v15  ;;  %810 = vst [vmem:[#allocation2 + $0x80] sm:$0x1e] %v681_v16  ;;  %v606_v23 = vcombine.low %v542_v11, %v543_v20  ;;  %v607_v24 = vcombine.high %v542_v11, %v543_v20  ;;  %v16174_v25 = vcombine.low %v543_v20, %v543_v20  ;;  %vm481_vm4 = vcmp.gt.f32.partialorder %v427_v27, 0.0  ;;  %v429_v36 = vpop.f32.mrf.mxu0 }
 0x113   :  { %811 = vst [vmem:[#allocation2 + $0x188] sm:$0x1e] %v682_v17  ;;  %812 = vst [vmem:[#allocation2 + $0x208] sm:$0x1e] %v683_v18  ;;  %v16175_v26 = vcombine.high %v543_v20, %v543_v20  ;;  %v544_v28 = vsel %vm480_vm3, %v425_v19, %v512_v21  ;;  %v513_v29 = vmul.f32 0.2, %v427_v27 }
 0x114   :  { %v1035_v30 = vrot.slane %v19084_v13, 5  ;;  %v684_v31 = vrot.slane %v606_v23, 7  ;;  %v685_v32 = vrot.slane %v16174_v25, 7  ;;  %v686_v33 = vrot.slane %v607_v24, 7  ;;  %v431_v47 = vpop.f32.mrf.mxu0 }
 0x115   :  { %v687_v35 = vrot.slane %v16175_v26, 7  ;;  %v545_v39 = vsel %vm481_vm4, %v427_v27, %v513_v29  ;;  %vm482_vm5 = vcmp.gt.f32.partialorder %v429_v36, 0.0  ;;  %v514_v40 = vmul.f32 0.2, %v429_v36 }
 0x116   :  { %v22258_v41 = vsel %vm22240_vm13, %v16202_v22, %v1035_v30  ;;  %813 = vst [vmem:[#allocation2 + $0x38] sm:$0x1e] %v684_v31  ;;  %814 = vst [vmem:[#allocation2 + $0x190] sm:$0x1e] %v685_v32  ;;  %v608_v42 = vcombine.low %v544_v28, %v545_v39  ;;  %v609_v43 = vcombine.high %v544_v28, %v545_v39  ;;  %vm483_vm6 = vcmp.gt.f32.partialorder %v431_v47, 0.0  ;;  %v435_v57 = vpop.f32.mrf.mxu0 }
 0x117   :  { %815 = vst [vmem:[#allocation2 + $0x218] sm:$0x1e] %v686_v33  ;;  %816 = vst [vmem:[#allocation2 + $0x250] sm:$0x1e] %v687_v35  ;;  %v16176_v44 = vcombine.low %v545_v39, %v545_v39  ;;  %v16177_v45 = vcombine.high %v545_v39, %v545_v39  ;;  %v546_v49 = vsel %vm482_vm5, %v429_v36, %v514_v40  ;;  %v515_v50 = vmul.f32 0.2, %v431_v47 }
 0x118   :  { %v19085_v48 = vld [vmem:[#allocation2 + $0x2e0] ss:$-312 sps:$4 sm:$0xee]   ;;  %v19087_v51 = vld [vmem:[#allocation2 + $0x2e4] ss:$-312 sps:$4 sm:$0x11]   ;;  %v437_v63 = vpop.f32.mrf.mxu0 }
 0x119   :  { %v688_v53 = vrot.slane %v608_v42, 7  ;;  %v689_v54 = vrot.slane %v16176_v44, 7  ;;  %v690_v55 = vrot.slane %v609_v43, 7  ;;  %v691_v56 = vrot.slane %v16177_v45, 7  ;;  %v19088_v33 = vld [vmem:[%s27726_s2 + $0xe0] ss:$16 sps:$4 sm:$0xff]  }
 0x11a   :  { %v547_v58 = vsel %vm483_vm6, %v431_v47, %v515_v50  ;;  %vm484_vm7 = vcmp.gt.f32.partialorder %v435_v57, 0.0  ;;  %v516_v59 = vmul.f32 0.2, %v435_v57  ;;  %v16203_v37 = vrot.slane %v19085_v48, 9  ;;  %v439_v8 = vpop.f32.mrf.mxu0  ;;  %v19091_v39 = vld [vmem:[%s27726_s2 + $0xe8] ss:$16 sps:$4 sm:$0xff]  }
 0x11b   :  { %817 = vst [vmem:[#allocation2 + $0x298] sm:$0x1e] %v688_v53  ;;  %818 = vst [vmem:[#allocation2 + $0x70] sm:$0x1e] %v689_v54  ;;  %v610_v38 = vcombine.low %v546_v49, %v547_v58  ;;  %v611_v60 = vcombine.high %v546_v49, %v547_v58  ;;  %v16178_v61 = vcombine.low %v547_v58, %v547_v58  ;;  %vm485_vm8 = vcmp.gt.f32.partialorder %v437_v63, 0.0 }
 0x11c   :  { %819 = vst [vmem:[#allocation2 + $0x18] sm:$0x1e] %v690_v55  ;;  %820 = vst [vmem:[#allocation2 + $0x120] sm:$0x1e] %v691_v56  ;;  %v16179_v62 = vcombine.high %v547_v58, %v547_v58  ;;  %v548_v0 = vsel %vm484_vm7, %v435_v57, %v516_v59  ;;  %v517_v1 = vmul.f32 0.2, %v437_v63  ;;  %v441_v17 = vpop.f32.mrf.mxu0 }
 0x11d   :  { %v1039_v2 = vrot.slane %v19087_v51, 5  ;;  %v692_v3 = vrot.slane %v610_v38, 7  ;;  %v693_v5 = vrot.slane %v16178_v61, 7  ;;  %v694_v6 = vrot.slane %v611_v60, 7  ;;  %v19099_v47 = vld [vmem:[%s27726_s2 + $0xcc] ss:$16 sps:$4 sm:$0xff]  }
 0x11e   :  { %v695_v7 = vrot.slane %v16179_v62, 7  ;;  %v549_v9 = vsel %vm485_vm8, %v437_v63, %v517_v1  ;;  %vm486_vm9 = vcmp.gt.f32.partialorder %v439_v8, 0.0  ;;  %v518_v10 = vmul.f32 0.2, %v439_v8  ;;  %v445_v25 = vpop.f32.mrf.mxu0  ;;  %v19102_v59 = vld [vmem:[%s27726_s2 + $0xa4] ss:$16 sps:$4 sm:$0xff]  }
 0x11f   :  { %v1040_v11 = vsel %vm22240_vm13, %v16203_v37, %v1039_v2  ;;  %821 = vst [vmem:[#allocation2 + $0x240] sm:$0x1e] %v692_v3  ;;  %822 = vst [vmem:[#allocation2 + $0x180] sm:$0x1e] %v693_v5  ;;  %v612_v12 = vcombine.low %v548_v0, %v549_v9  ;;  %v613_v13 = vcombine.high %v548_v0, %v549_v9  ;;  %vm487_vm10 = vcmp.gt.f32.partialorder %v441_v17, 0.0 }
 0x120   :  { %823 = vst [vmem:[#allocation2 + $0x1f8] sm:$0x1e] %v694_v6  ;;  %824 = vst [vmem:[#allocation2 + $0x1a0] sm:$0x1e] %v695_v7  ;;  %v16180_v15 = vcombine.low %v549_v9, %v549_v9  ;;  %v16181_v16 = vcombine.high %v549_v9, %v549_v9  ;;  %v550_v18 = vsel %vm486_vm9, %v439_v8, %v518_v10  ;;  %v519_v19 = vmul.f32 0.2, %v441_v17  ;;  %v447_v35 = vpop.f32.mrf.mxu0 }
 0x121   :  { %v1059_v20 = vcombine.low %v22258_v41, %v1040_v11  ;;  %v696_v21 = vrot.slane %v612_v12, 7  ;;  %v698_v23 = vrot.slane %v613_v13, 7  ;;  %v1060_v27 = vcombine.high %v22258_v41, %v1040_v11  ;;  %v19096_v41 = vld [vmem:[%s27726_s2 + $0xc4] ss:$16 sps:$4 sm:$0xff]   ;;  %v19105_v37 = vld [vmem:[%s27726_s2 + $0xac] ss:$16 sps:$4 sm:$0xff]  }
 0x122   :  { %v697_v22 = vrot.slane %v16180_v15, 7  ;;  %v699_v24 = vrot.slane %v16181_v16, 7  ;;  %v551_v26 = vsel %vm487_vm10, %v441_v17, %v519_v19  ;;  %vm488_vm11 = vcmp.gt.f32.partialorder %v445_v25, 0.0  ;;  %v449_v48 = vpop.f32.mrf.mxu0  ;;  %v19100_v2 = vld [vmem:[%s27726_s2 + $0xa0] ss:$16 sps:$4 sm:$0xff]  }
 0x123   :  { %v520_v28 = vmul.f32 0.2, %v445_v25  ;;  %825 = vst [vmem:[#allocation2 + $0xa0] sm:$0x1e] %v696_v21  ;;  %827 = vst [vmem:[#allocation2 + $0x8] sm:$0x1e] %v698_v23  ;;  %v614_v29 = vcombine.low %v550_v18, %v551_v26  ;;  %v615_v30 = vcombine.high %v550_v18, %v551_v26  ;;  %v16182_v31 = vcombine.low %v551_v26, %v551_v26 }
 0x124   :  { %826 = vst [vmem:[#allocation2 + $0x278] sm:$0x1e] %v697_v22  ;;  %828 = vst [vmem:[#allocation2 + $0x2c0] sm:$0x1e] %v699_v24  ;;  %v16183_v32 = vcombine.high %v551_v26, %v551_v26  ;;  %v1074_v36 = vpack.c.bf16 %v1060_v27, %v1058_v52  ;;  %v1073_v40 = vpack.c.bf16 %v1059_v20, %v1057_v14  ;;  %vm489_vm12 = vcmp.gt.f32.partialorder %v447_v35, 0.0  ;;  %v451_v50 = vpop.f32.mrf.mxu0 }
 0x125   :  { %v700_v42 = vrot.slane %v614_v29, 7  ;;  %v701_v43 = vrot.slane %v16182_v31, 7  ;;  %v702_v44 = vrot.slane %v615_v30, 7  ;;  %v552_v49 = vsel %vm488_vm11, %v445_v25, %v520_v28  ;;  %v19094_v14 = vld [vmem:[%s27726_s2 + $0xc0] ss:$16 sps:$4 sm:$0xff]  }
 0x126   :  { %v703_v45 = vrot.slane %v16183_v32, 7  ;;  %1493 = vmatprep.mubr.bf16.mxu1 %v1074_v36  ;;  %1546 = vmatprep.mubr.bf16.mxu0 %v1074_v36  ;;  %v521_v46 = vmul.f32 0.2, %v447_v35  ;;  %vm490_vm14 = vcmp.gt.f32.partialorder %v449_v48, 0.0  ;;  %v522_v4 = vmul.f32 0.2, %v449_v48  ;;  %v455_v38 = vpop.f32.mrf.mxu0 }
 0x127   :  { %829 = vst [vmem:[#allocation2 + $0x270] sm:$0x1e] %v700_v42  ;;  %830 = vst [vmem:[#allocation2 + $0x290] sm:$0x1e] %v701_v43  ;;  %1494 = vmatmul.mubr.bf16.vlgmr.msra.gmra.mxu1 %v1073_v40  ;;  %1547 = vmatmul.mubr.bf16.vlgmr.msra.gmra.mxu0 %v1073_v40  ;;  %v19097_v52 = vld [vmem:[%s27726_s2 + $0xc8] ss:$16 sps:$4 sm:$0xff]  }
 0x128   :  { %831 = vst [vmem:[#allocation2 + $0x2a8] sm:$0x1e] %v702_v44  ;;  %832 = vst [vmem:[#allocation2 + $0x2f0] sm:$0x1e] %v703_v45  ;;  %1888 = vmatpush1.bf16.msra.mxu1 %v19088_v33  ;;  %1941 = vmatpush1.bf16.msra.mxu0 %v19091_v39  ;;  %v553_v51 = vsel %vm489_vm12, %v447_v35, %v521_v46  ;;  %v554_v53 = vsel %vm490_vm14, %v449_v48, %v522_v4  ;;  %vm491_vm15 = vcmp.gt.f32.partialorder %v451_v50, 0.0  ;;  %v457_v3 = vpop.f32.mrf.mxu0  ;;  %vm2041_vm4 = vcmask 1041408  }
 0x129   :  { %v523_v54 = vmul.f32 0.2, %v451_v50  ;;  %v616_v55 = vcombine.low %v552_v49, %v553_v51  ;;  %v617_v56 = vcombine.high %v552_v49, %v553_v51  ;;  %v16184_v57 = vcombine.low %v553_v51, %v553_v51  ;;  %1889 = vmatprep.subr.bf16.mxu1 %v19096_v41  ;;  %1942 = vmatprep.subr.bf16.mxu0 %v19099_v47  ;;  %v19103_v8 = vld [vmem:[%s27726_s2 + $0xa8] ss:$16 sps:$4 sm:$0xff]   ;;  %v19108_v9 = vld [vmem:[%s27726_s2 + $0x84] ss:$16 sps:$4 sm:$0xff]  }
 0x12a   :  { %v16185_v58 = vcombine.high %v553_v51, %v553_v51  ;;  %vm492_vm0 = vcmp.gt.f32.partialorder %v455_v38, 0.0  ;;  %v524_v61 = vmul.f32 0.2, %v455_v38  ;;  %vm493_vm1 = vcmp.gt.f32.partialorder %v457_v3, 0.0  ;;  %v19111_v13 = vld [vmem:[%s27726_s2 + $0x8c] ss:$16 sps:$4 sm:$0xff]   ;;  %v459_v15 = vpop.f32.mrf.mxu0 }
 0x12b   :  { %v555_v60 = vsel %vm491_vm15, %v451_v50, %v523_v54  ;;  %v704_v62 = vrot.slane %v616_v55, 7  ;;  %v705_v63 = vrot.slane %v16184_v57, 7  ;;  %v706_v0 = vrot.slane %v617_v56, 7  ;;  %v19106_v19 = vld [vmem:[%s27726_s2 + $0x80] ss:$16 sps:$4 sm:$0xff]  }
 0x12c   :  { %v707_v1 = vrot.slane %v16185_v58, 7  ;;  %1890 = vmatpush1.bf16.msra.mxu1 %v19094_v14  ;;  %1943 = vmatpush1.bf16.msra.mxu0 %v19097_v52  ;;  %v618_v5 = vcombine.low %v554_v53, %v555_v60  ;;  %v619_v6 = vcombine.high %v554_v53, %v555_v60  ;;  %v16186_v7 = vcombine.low %v555_v60, %v555_v60  ;;  %v19109_v20 = vld [vmem:[%s27726_s2 + $0x88] ss:$16 sps:$4 sm:$0xff]   ;;  %v461_v25 = vpop.f32.mrf.mxu0  ;;  %v19114_v26 = vld [vmem:[%s27726_s2 + $0x64] ss:$16 sps:$4 sm:$0xff]  }
 0x12d   :  { %833 = vst [vmem:[#allocation2 + $0x1e0] sm:$0x1e] %v704_v62  ;;  %834 = vst [vmem:[#allocation2 + $0x150] sm:$0x1e] %v705_v63  ;;  %v16187_v10 = vcombine.high %v555_v60, %v555_v60  ;;  %1891 = vmatprep.subr.bf16.mxu1 %v19102_v59  ;;  %1944 = vmatprep.subr.bf16.mxu0 %v19105_v37  ;;  %v556_v11 = vsel %vm492_vm0, %v455_v38, %v524_v61  ;;  %v525_v12 = vmul.f32 0.2, %v457_v3 }
 0x12e   :  { %835 = vst [vmem:[#allocation2 + $0x2c8] sm:$0x1e] %v706_v0  ;;  %836 = vst [vmem:[#allocation2 + $0x1d0] sm:$0x1e] %v707_v1  ;;  %v708_v16 = vrot.slane %v618_v5, 7  ;;  %v709_v17 = vrot.slane %v16186_v7, 7 }
 0x12f   :  { %v710_v18 = vrot.slane %v619_v6, 7  ;;  %vm494_vm2 = vcmp.gt.f32.partialorder %v459_v15, 0.0  ;;  %v22317_v21 = vld [vmem:[#allocation2 + $0x58] ss:$360 sps:$4 sm:$0xee]   ;;  %v711_v22 = vrot.slane %v16187_v10, 7  ;;  %v557_v23 = vsel %vm493_vm1, %v457_v3, %v525_v12 }
 0x130   :  { %v526_v24 = vmul.f32 0.2, %v459_v15  ;;  %v19117_v27 = vld [vmem:[%s27726_s2 + $0x6c] ss:$16 sps:$4 sm:$0xff]   ;;  %837 = vst [vmem:[#allocation2 + $0x140] sm:$0x1e] %v708_v16  ;;  %1892 = vmatpush1.bf16.msra.mxu1 %v19100_v2  ;;  %1945 = vmatpush1.bf16.msra.mxu0 %v19103_v8  ;;  %v620_v30 = vcombine.low %v556_v11, %v557_v23  ;;  %v621_v31 = vcombine.high %v556_v11, %v557_v23 }
 0x131   :  { %v22326_v28 = vld [vmem:[#allocation2 + $0x5c] ss:$360 sps:$4 sm:$0x11]   ;;  %v22328_v29 = vld [vmem:[#allocation2 + $0x1f8] ss:$-88 sps:$4 sm:$0xee]   ;;  %v16188_v32 = vcombine.low %v557_v23, %v557_v23  ;;  %v16189_v35 = vcombine.high %v557_v23, %v557_v23  ;;  %1893 = vmatprep.subr.bf16.mxu1 %v19108_v9  ;;  %1946 = vmatprep.subr.bf16.mxu0 %v19111_v13 }
 0x132   :  { %838 = vst [vmem:[#allocation2 + $0x230] sm:$0x1e] %v709_v17  ;;  %839 = vst [vmem:[#allocation2 + $0x160] sm:$0x1e] %v710_v18  ;;  %vm495_vm3 = vcmp.gt.f32.partialorder %v461_v25, 0.0  ;;  %v558_v36 = vsel %vm494_vm2, %v459_v15, %v526_v24  ;;  %v712_v41 = vrot.slane %v620_v30, 7 }
 0x133   :  { %v19141_v33 = vld [vmem:[#allocation2 + $0x1fc] ss:$-88 sps:$4 sm:$0x11]   ;;  %840 = vst [vmem:[#allocation2 + $0x2d8] sm:$0x1e] %v711_v22  ;;  %v713_v42 = vrot.slane %v16188_v32, 7 }
 0x134   :  { %v527_v39 = vmul.f32 0.2, %v461_v25  ;;  %v19142_v40 = vld [vmem:[#allocation2 + $0x2a8] ss:$72 sps:$4 sm:$0xee]   ;;  %v714_v43 = vrot.slane %v621_v31, 7  ;;  %1894 = vmatpush1.bf16.msra.mxu1 %v19106_v19  ;;  %1947 = vmatpush1.bf16.msra.mxu0 %v19109_v20 }
 0x135   :  { %v715_v44 = vrot.slane %v16189_v35, 7  ;;  %v19112_v47 = vld [vmem:[%s27726_s2 + $0x60] ss:$16 sps:$4 sm:$0xff]   ;;  %v19144_v48 = vld [vmem:[#allocation2 + $0x2ac] ss:$72 sps:$4 sm:$0x11]   ;;  %1895 = vmatprep.subr.bf16.mxu1 %v19114_v26  ;;  %1948 = vmatprep.subr.bf16.mxu0 %v19117_v27 }
 0x136   :  { %v559_v45 = vsel %vm495_vm3, %v461_v25, %v527_v39  ;;  %841 = vst [vmem:[#allocation2 + $0xc0] sm:$0x1e] %v712_v41  ;;  %842 = vst [vmem:[#allocation2 + $0x170] sm:$0x1e] %v713_v42  ;;  %v19115_v14 = vld [vmem:[%s27726_s2 + $0x68] ss:$16 sps:$4 sm:$0xff]  }
 0x137   :  { %843 = vst [vmem:[#allocation2 + $0x90] sm:$0x1e] %v714_v43  ;;  %v622_v49 = vcombine.low %v558_v36, %v559_v45  ;;  %v623_v46 = vcombine.high %v558_v36, %v559_v45  ;;  %v16190_v4 = vcombine.low %v559_v45, %v559_v45  ;;  %v19120_v50 = vld [vmem:[%s27726_s2 + $0x44] ss:$16 sps:$4 sm:$0xff]   ;;  %v16204_v51 = vrot.slane %v22317_v21, 9 }
 0x138   :  { %844 = vst [vmem:[#allocation2 + $0xb0] sm:$0x1e] %v715_v44  ;;  %v16191_v52 = vcombine.high %v559_v45, %v559_v45  ;;  %v19123_v53 = vld [vmem:[%s27726_s2 + $0x4c] ss:$16 sps:$4 sm:$0xff]   ;;  %v1043_v54 = vrot.slane %v22326_v28, 5  ;;  %v16205_v55 = vrot.slane %v22328_v29, 9  ;;  %1896 = vmatpush1.bf16.msra.mxu1 %v19112_v47  ;;  %1949 = vmatpush1.bf16.msra.mxu0 %v19115_v14 }
 0x139   :  { %v1047_v56 = vrot.slane %v19141_v33, 5  ;;  %v716_v57 = vrot.slane %v622_v49, 7  ;;  %v717_v58 = vrot.slane %v16190_v4, 7  ;;  %v718_v59 = vrot.slane %v623_v46, 7  ;;  %v19118_v37 = vld [vmem:[%s27726_s2 + $0x40] ss:$16 sps:$4 sm:$0xff]   ;;  %1897 = vmatprep.subr.bf16.mxu1 %v19120_v50  ;;  %1950 = vmatprep.subr.bf16.mxu0 %v19123_v53 }
 0x13a   :  { %v19121_v38 = vld [vmem:[%s27726_s2 + $0x48] ss:$16 sps:$4 sm:$0xff]   ;;  %v16206_v60 = vrot.slane %v19142_v40, 9  ;;  %v719_v61 = vrot.slane %v16191_v52, 7  ;;  %v19126_v62 = vld [vmem:[%s27726_s2 + $0x24] ss:$16 sps:$4 sm:$0xff]   ;;  %v1044_v3 = vsel %vm22240_vm13, %v16204_v51, %v1043_v54 }
 0x13b   :  { %v19129_v63 = vld [vmem:[%s27726_s2 + $0x2c] ss:$16 sps:$4 sm:$0xff]   ;;  %v1051_v0 = vrot.slane %v19144_v48, 5  ;;  %845 = vst [vmem:[#allocation2 + $0x200] sm:$0x1e] %v716_v57  ;;  %v1048_v5 = vsel %vm22240_vm13, %v16205_v55, %v1047_v56  ;;  %vm2042_vm5 = vcmask 1045508  }
 0x13c   :  { %846 = vst [vmem:[#allocation2 + $0xd8] sm:$0x1e] %v717_v58  ;;  %847 = vst [vmem:[#allocation2 + $0x1d8] sm:$0x1e] %v718_v59  ;;  %1898 = vmatpush1.bf16.msra.mxu1 %v19118_v37  ;;  %1951 = vmatpush1.bf16.msra.mxu0 %v19121_v38  ;;  %v19124_v9 = vld [vmem:[%s27726_s2 + $0x20] ss:$16 sps:$4 sm:$0xff]   ;;  %v1062_v11 = vcombine.high %v1044_v3, %v1048_v5  ;;  %v1061_v12 = vcombine.low %v1044_v3, %v1048_v5 }
 0x13d   :  { %v19145_v1 = vld [vmem:[#allocation2 + $0x160] ss:$376 sps:$4 sm:$0xee]   ;;  %848 = vst [vmem:[#allocation2 + $0x2e8] sm:$0x1e] %v719_v61  ;;  %v1052_v7 = vsel %vm22240_vm13, %v16206_v60, %v1051_v0  ;;  %1899 = vmatprep.subr.bf16.mxu1 %v19126_v62  ;;  %1952 = vmatprep.subr.bf16.mxu0 %v19129_v63  ;;  %vm22494_vm6 = vmor %vm2041_vm4, %vm2042_vm5 }
 0x13e   :  { %v19147_v2 = vld [vmem:[#allocation2 + $0x164] ss:$376 sps:$4 sm:$0x11]   ;;  %v16207_v6 = vrot.slane %v19145_v1, 9  ;;  %v19127_v10 = vld [vmem:[%s27726_s2 + $0x28] ss:$16 sps:$4 sm:$0xff]  }
 0x13f   :  { %v1055_v8 = vrot.slane %v19147_v2, 5  ;;  %v19132_v13 = vld [vmem:[%s27726_s2 + $0x4] ss:$16 sps:$4 sm:$0xff]   ;;  %v19135_v15 = vld [vmem:[%s27726_s2 + $0xc] ss:$16 sps:$4 sm:$0xff]  }
 0x140   :  { %v19130_v17 = vld [vmem:[%s27726_s2] ss:$16 sps:$4 sm:$0xff]   ;;  %v19133_v18 = vld [vmem:[%s27726_s2 + $0x8] ss:$16 sps:$4 sm:$0xff]   ;;  %1900 = vmatpush1.bf16.msra.mxu1 %v19124_v9  ;;  %1953 = vmatpush1.bf16.msra.mxu0 %v19127_v10  ;;  %v19150_v24 = vld [vmem:[%s27726_s2 + $0x1e4] ss:$16 sps:$4 sm:$0xff]  }
 0x141   :  { %v1056_v16 = vsel %vm22240_vm13, %v16207_v6, %v1055_v8  ;;  %v19155_v21 = vld [vmem:[#allocation2 + $0x1b0] ss:$-8 sps:$4 sm:$0xff]   ;;  %1901 = vmatprep.subr.bf16.mxu1 %v19132_v13  ;;  %1954 = vmatprep.subr.bf16.mxu0 %v19135_v15  ;;  %v19153_v25 = vld [vmem:[%s27726_s2 + $0x1ec] ss:$16 sps:$4 sm:$0xff]   ;;  %v19154_v26 = vld [vmem:[#allocation2 + $0x78] ss:$-56 sps:$4 sm:$0xff]  }
 0x142   :  { %v1064_v19 = vcombine.high %v1052_v7, %v1056_v16  ;;  %v1063_v20 = vcombine.low %v1052_v7, %v1056_v16  ;;  %v19148_v27 = vld [vmem:[%s27726_s2 + $0x1e0] ss:$16 sps:$4 sm:$0xff]   ;;  %v19151_v28 = vld [vmem:[%s27726_s2 + $0x1e8] ss:$16 sps:$4 sm:$0xff]   ;;  %v907_v29 = vpack.c.bf16 %v19155_v21, %v19154_v26  ;;  %v19158_v30 = vld [vmem:[%s27726_s2 + $0x1c4] ss:$16 sps:$4 sm:$0xff]  }
 0x143   :  { %v19161_v31 = vld [vmem:[%s27726_s2 + $0x1cc] ss:$16 sps:$4 sm:$0xff]   ;;  %v19156_v32 = vld [vmem:[%s27726_s2 + $0x1c0] ss:$16 sps:$4 sm:$0xff]   ;;  %v19159_v33 = vld [vmem:[%s27726_s2 + $0x1c8] ss:$16 sps:$4 sm:$0xff]  }
 0x144   :  { %v1076_v22 = vpack.c.bf16 %v1064_v19, %v1062_v11  ;;  %v1075_v23 = vpack.c.bf16 %v1063_v20, %v1061_v12  ;;  %1902 = vmatpush1.bf16.msra.mxu1 %v19130_v17  ;;  %1955 = vmatpush1.bf16.msra.mxu0 %v19133_v18  ;;  %v19164_v35 = vld [vmem:[%s27726_s2 + $0x1a4] ss:$16 sps:$4 sm:$0xff]   ;;  %v19167_v36 = vld [vmem:[%s27726_s2 + $0x1ac] ss:$16 sps:$4 sm:$0xff]   ;;  %v19162_v39 = vld [vmem:[%s27726_s2 + $0x1a0] ss:$16 sps:$4 sm:$0xff]  }
 0x145   :  { %1903 = vmatprep.subr.bf16.mxu1 %v19150_v24  ;;  %1956 = vmatprep.subr.bf16.mxu0 %v19153_v25  ;;  %v19165_v40 = vld [vmem:[%s27726_s2 + $0x1a8] ss:$16 sps:$4 sm:$0xff]   ;;  %v19170_v41 = vld [vmem:[%s27726_s2 + $0x184] ss:$16 sps:$4 sm:$0xff]   ;;  %v19173_v42 = vld [vmem:[%s27726_s2 + $0x18c] ss:$16 sps:$4 sm:$0xff]  }
 0x146   :  { %1503 = vmatprep.mubr.bf16.mxu1 %v1076_v22  ;;  %1556 = vmatprep.mubr.bf16.mxu0 %v1076_v22  ;;  %v19168_v43 = vld [vmem:[%s27726_s2 + $0x180] ss:$16 sps:$4 sm:$0xff]   ;;  %v19171_v44 = vld [vmem:[%s27726_s2 + $0x188] ss:$16 sps:$4 sm:$0xff]   ;;  %v19176_v45 = vld [vmem:[%s27726_s2 + $0x164] ss:$16 sps:$4 sm:$0xff]  }
 0x147   :  { %1504 = vmatmul.mubr.bf16.gmra.mxu1 %v1075_v23  ;;  %1557 = vmatmul.mubr.bf16.gmra.mxu0 %v1075_v23  ;;  %v19179_v47 = vld [vmem:[%s27726_s2 + $0x16c] ss:$16 sps:$4 sm:$0xff]   ;;  %v19174_v48 = vld [vmem:[%s27726_s2 + $0x160] ss:$16 sps:$4 sm:$0xff]   ;;  %v19177_v49 = vld [vmem:[%s27726_s2 + $0x168] ss:$16 sps:$4 sm:$0xff]  }
 0x148   :  { %1919 = vmatprep.mubr.bf16.mxu1 %v907_v29  ;;  %1972 = vmatprep.mubr.bf16.mxu0 %v907_v29  ;;  %v19182_v46 = vld [vmem:[%s27726_s2 + $0x144] ss:$16 sps:$4 sm:$0xff]   ;;  %v19185_v4 = vld [vmem:[%s27726_s2 + $0x14c] ss:$16 sps:$4 sm:$0xff]   ;;  %v19180_v14 = vld [vmem:[%s27726_s2 + $0x140] ss:$16 sps:$4 sm:$0xff]  }
 0x149   :  { %1904 = vmatpush2.bf16.msra.mxu1 %v19148_v27  ;;  %1957 = vmatpush2.bf16.msra.mxu0 %v19151_v28  ;;  %v19183_v50 = vld [vmem:[%s27726_s2 + $0x148] ss:$16 sps:$4 sm:$0xff]   ;;  %v19188_v51 = vld [vmem:[%s27726_s2 + $0x124] ss:$16 sps:$4 sm:$0xff]   ;;  %v19191_v52 = vld [vmem:[%s27726_s2 + $0x12c] ss:$16 sps:$4 sm:$0xff]  }
 0x14a   :  { %1905 = vmatprep.subr.bf16.mxu1 %v19158_v30  ;;  %1958 = vmatprep.subr.bf16.mxu0 %v19161_v31  ;;  %v1993_v53 = vld [vmem:[#allocation2 + $0xf8] sm:$0x3c]  ;;  %v19186_v55 = vld [vmem:[%s27726_s2 + $0x120] ss:$16 sps:$4 sm:$0xff]   ;;  %v19194_v57 = vld [vmem:[%s27726_s2 + $0x104] ss:$16 sps:$4 sm:$0xff]  }
 0x14b   :  { %v1994_v54 = vld [vmem:[#allocation2 + $0x78] sm:$0x3c]  ;;  %v856_v59 = vld [vmem:[#allocation2 + $0x2e0] sm:$0xf]  ;;  %v19200_v3 = vld [vmem:[%s27726_s2 + $0x4e4] ss:$16 sps:$4 sm:$0xff]  }
 0x14c   :  { %v19189_v56 = vld [vmem:[%s27726_s2 + $0x128] ss:$16 sps:$4 sm:$0xff]   ;;  %v19197_v58 = vld [vmem:[%s27726_s2 + $0x10c] ss:$16 sps:$4 sm:$0xff]   ;;  %v859_v37 = vld [vmem:[#allocation2 + $0x1c0] sm:$0xf]  ;;  %v2025_v7 = vcombine.low %v1993_v53, %v1994_v54  ;;  %v2026_v9 = vcombine.high %v1993_v53, %v1994_v54 }
 0x14d   :  { %1906 = vmatpush2.bf16.msra.mxu1 %v19156_v32  ;;  %1959 = vmatpush2.bf16.msra.mxu0 %v19159_v33  ;;  %v19224_v38 = vld [vmem:[#allocation2 + $0x2e0] ss:$-312 sps:$4 sm:$0xcc]   ;;  %v850_v62 = vld [vmem:[#allocation2 + $0xf8] sm:$0xf]  ;;  %v27747_v26 = vmov 0 }
 0x14e   :  { %1907 = vmatprep.subr.bf16.mxu1 %v19164_v35  ;;  %1960 = vmatprep.subr.bf16.mxu0 %v19167_v36  ;;  %v19192_v60 = vld [vmem:[%s27726_s2 + $0x100] ss:$16 sps:$4 sm:$0xff]   ;;  %v19195_v61 = vld [vmem:[%s27726_s2 + $0x108] ss:$16 sps:$4 sm:$0xff]   ;;  %v19203_v5 = vld [vmem:[%s27726_s2 + $0x4ec] ss:$16 sps:$4 sm:$0xff]  }
 0x14f   :  { %v852_v63 = vld [vmem:[#allocation2 + $0x178] sm:$0xf]  ;;  %v19226_v1 = vld [vmem:[#allocation2 + $0x2e4] ss:$-312 sps:$4 sm:$0x33]   ;;  %v16336_v17 = vrot.slane %v2025_v7, 10 }
 0x150   :  { %v19218_v0 = vld [vmem:[#allocation2 + $0x178] ss:$-312 sps:$4 sm:$0xcc]   ;;  %v19220_v8 = vld [vmem:[#allocation2 + $0x17c] ss:$-312 sps:$4 sm:$0x33]   ;;  %v16192_v16 = vcombine.low %v850_v62, %v852_v63 }
 0x151   :  { %1908 = vmatpush2.bf16.msra.mxu1 %v19162_v39  ;;  %1961 = vmatpush2.bf16.msra.mxu0 %v19165_v40  ;;  %v854_v2 = vld [vmem:[#allocation2 + $0x20] sm:$0xf]  ;;  %v19223_v12 = vld [vmem:[#allocation2 + $0x24] ss:$400 sps:$4 sm:$0x33]   ;;  %v16339_v18 = vrot.slane %v19224_v38, 10 }
 0x152   :  { %1909 = vmatprep.subr.bf16.mxu1 %v19170_v41  ;;  %1962 = vmatprep.subr.bf16.mxu0 %v19173_v42  ;;  %v861_v6 = vld [vmem:[#allocation2 + $0x1a0] sm:$0xf]  ;;  %v16194_v10 = vcombine.low %v854_v2, %v856_v59  ;;  %v19204_v15 = vld [vmem:[#allocation2 + $0x2f0] ss:$-24 sps:$4 sm:$0xff]   ;;  %v2058_v19 = vrot.slane %v19226_v1, 6  ;;  %v2046_v22 = vrot.slane %v2026_v9, 6 }
 0x153   :  { %v19221_v11 = vld [vmem:[#allocation2 + $0x20] ss:$400 sps:$4 sm:$0xcc]   ;;  %v16197_v13 = vcombine.low %v859_v37, %v861_v6  ;;  %v858_v21 = vld [vmem:[#allocation2 + $0x58] sm:$0xf]  ;;  %v16337_v23 = vrot.slane %v19218_v0, 10 }
 0x154   :  { %v19198_v20 = vld [vmem:[%s27726_s2 + $0x4e0] ss:$16 sps:$4 sm:$0xff]   ;;  %v906_v24 = vpack.c.bf16 %v16194_v10, %v16192_v16  ;;  %v19201_v25 = vld [vmem:[%s27726_s2 + $0x4e8] ss:$16 sps:$4 sm:$0xff]   ;;  %v27748_v26 = vsel %vm22494_vm6, 4294967295, %v27747_v26  ;;  %v2050_v27 = vrot.slane %v19220_v8, 6  ;;  %v22506_v35 = vsel %vm22494_vm6, %v16339_v18, %v2058_v19 }
 0x155   :  { %1910 = vmatpush2.bf16.msra.mxu1 %v19168_v43  ;;  %1963 = vmatpush2.bf16.msra.mxu0 %v19171_v44  ;;  %27749 = vst [vmem:[#allocation8_spill] sm:$0xff] %v27748_v26  ;;  %v16338_v28 = vrot.slane %v19221_v11, 10  ;;  %v2054_v29 = vrot.slane %v19223_v12, 6  ;;  %v909_v30 = vpack.c.bf16 %v19204_v15, %v16197_v13  ;;  %v19207_v31 = vld [vmem:[%s27726_s2 + $0x4c4] ss:$16 sps:$4 sm:$0xff]   ;;  %v22513_v39 = vsel %vm22494_vm6, %v16336_v17, %v2046_v22 }
 0x156   :  { %1911 = vmatprep.subr.bf16.mxu1 %v19176_v45  ;;  %1964 = vmatprep.subr.bf16.mxu0 %v19179_v47  ;;  %v19210_v32 = vld [vmem:[%s27726_s2 + $0x4cc] ss:$16 sps:$4 sm:$0xff]   ;;  %v860_v33 = vld [vmem:[#allocation2 + $0x1f8] sm:$0xf]  ;;  %v19205_v36 = vld [vmem:[%s27726_s2 + $0x4c0] ss:$16 sps:$4 sm:$0xff]   ;;  %v22523_v44 = vsel %vm22494_vm6, %v16337_v23, %v2050_v27 }
 0x157   :  { %v19208_v40 = vld [vmem:[%s27726_s2 + $0x4c8] ss:$16 sps:$4 sm:$0xff]   ;;  %v16196_v41 = vcombine.low %v858_v21, %v860_v33  ;;  %v19214_v43 = vld [vmem:[%s27726_s2 + $0x4a4] ss:$16 sps:$4 sm:$0xff]   ;;  %v22527_v45 = vsel %vm22494_vm6, %v16338_v28, %v2054_v29  ;;  %v19217_v47 = vld [vmem:[%s27726_s2 + $0x4ac] ss:$16 sps:$4 sm:$0xff]  }
 0x158   :  { %v19211_v42 = vld [vmem:[#allocation2 + $0x2a8] ss:$-328 sps:$4 sm:$0xff]   ;;  %v19241_v59 = vld [vmem:[%s27726_s2 + $0x444] ss:$16 sps:$4 sm:$0xff]   ;;  %v19244_v37 = vld [vmem:[%s27726_s2 + $0x44c] ss:$16 sps:$4 sm:$0xff]  }
 0x159   :  { %1912 = vmatpush2.bf16.msra.mxu1 %v19174_v48  ;;  %1965 = vmatpush2.bf16.msra.mxu0 %v19177_v49  ;;  %v2079_v48 = vcombine.high %v22527_v45, %v22506_v35  ;;  %v2077_v49 = vcombine.high %v22513_v39, %v22523_v44  ;;  %v19227_v53 = vld [vmem:[%s27726_s2 + $0x480] ss:$16 sps:$4 sm:$0xff]   ;;  %v19230_v54 = vld [vmem:[%s27726_s2 + $0x488] ss:$16 sps:$4 sm:$0xff]   ;;  %v19250_v62 = vld [vmem:[%s27726_s2 + $0x42c] ss:$16 sps:$4 sm:$0xff]  }
 0x15a   :  { %1913 = vmatprep.subr.bf16.mxu1 %v19182_v46  ;;  %1966 = vmatprep.subr.bf16.mxu0 %v19185_v4  ;;  %v908_v46 = vpack.c.bf16 %v19211_v42, %v16196_v41  ;;  %v19212_v4 = vld [vmem:[%s27726_s2 + $0x4a0] ss:$16 sps:$4 sm:$0xff]   ;;  %v19248_v0 = vld [vmem:[%s27726_s2 + $0x428] ss:$16 sps:$4 sm:$0xff]   ;;  %v19253_v1 = vld [vmem:[%s27726_s2 + $0x404] ss:$16 sps:$4 sm:$0xff]  }
 0x15b   :  { %v19239_v38 = vld [vmem:[%s27726_s2 + $0x440] ss:$16 sps:$4 sm:$0xff]   ;;  %v19256_v2 = vld [vmem:[%s27726_s2 + $0x40c] ss:$16 sps:$4 sm:$0xff]   ;;  %v19259_v6 = vld [vmem:[%s27726_s2 + $0x5e4] ss:$16 sps:$4 sm:$0xff]  }
 0x15c   :  { %v19245_v63 = vld [vmem:[%s27726_s2 + $0x420] ss:$16 sps:$4 sm:$0xff]   ;;  %v19262_v7 = vld [vmem:[%s27726_s2 + $0x5ec] ss:$16 sps:$4 sm:$0xff]   ;;  %v19260_v9 = vld [vmem:[%s27726_s2 + $0x5e8] ss:$16 sps:$4 sm:$0xff]  }
 0x15d   :  { %1914 = vmatpush2.bf16.msra.mxu1 %v19180_v14  ;;  %1967 = vmatpush2.bf16.msra.mxu0 %v19183_v50  ;;  %v19215_v14 = vld [vmem:[%s27726_s2 + $0x4a8] ss:$16 sps:$4 sm:$0xff]   ;;  %v2093_v50 = vpack.c.bf16 %v2079_v48, %v2077_v49  ;;  %v19257_v8 = vld [vmem:[%s27726_s2 + $0x5e0] ss:$16 sps:$4 sm:$0xff]   ;;  %v19265_v10 = vld [vmem:[%s27726_s2 + $0x5c4] ss:$16 sps:$4 sm:$0xff]  }
 0x15e   :  { %1915 = vmatprep.subr.bf16.mxu1 %v19188_v51  ;;  %1968 = vmatprep.subr.bf16.mxu0 %v19191_v52  ;;  %v19229_v51 = vld [vmem:[%s27726_s2 + $0x484] ss:$16 sps:$4 sm:$0xff]   ;;  %v19232_v52 = vld [vmem:[%s27726_s2 + $0x48c] ss:$16 sps:$4 sm:$0xff]   ;;  %v19263_v12 = vld [vmem:[%s27726_s2 + $0x5c0] ss:$16 sps:$4 sm:$0xff]  }
 0x15f   :  { %v19268_v11 = vld [vmem:[%s27726_s2 + $0x5cc] ss:$16 sps:$4 sm:$0xff]   ;;  %v19266_v13 = vld [vmem:[%s27726_s2 + $0x5c8] ss:$16 sps:$4 sm:$0xff]   ;;  %v19271_v15 = vld [vmem:[%s27726_s2 + $0x5a4] ss:$16 sps:$4 sm:$0xff]  }
 0x160   :  { %v19274_v16 = vld [vmem:[%s27726_s2 + $0x5ac] ss:$16 sps:$4 sm:$0xff]   ;;  %v19269_v17 = vld [vmem:[%s27726_s2 + $0x5a0] ss:$16 sps:$4 sm:$0xff]   ;;  %v19272_v18 = vld [vmem:[%s27726_s2 + $0x5a8] ss:$16 sps:$4 sm:$0xff]  }
 0x161   :  { %1916 = vmatpush2.bf16.msra.mxu1 %v19186_v55  ;;  %1969 = vmatpush2.bf16.msra.mxu0 %v19189_v56  ;;  %v19235_v55 = vld [vmem:[%s27726_s2 + $0x464] ss:$16 sps:$4 sm:$0xff]   ;;  %v19238_v56 = vld [vmem:[%s27726_s2 + $0x46c] ss:$16 sps:$4 sm:$0xff]   ;;  %v19275_v21 = vld [vmem:[%s27726_s2 + $0x580] ss:$16 sps:$4 sm:$0xff]  }
 0x162   :  { %1917 = vmatprep.subr.bf16.mxu1 %v19194_v57  ;;  %1970 = vmatprep.subr.bf16.mxu0 %v19197_v58  ;;  %v19233_v57 = vld [vmem:[%s27726_s2 + $0x460] ss:$16 sps:$4 sm:$0xff]   ;;  %v19236_v58 = vld [vmem:[%s27726_s2 + $0x468] ss:$16 sps:$4 sm:$0xff]   ;;  %v19277_v19 = vld [vmem:[%s27726_s2 + $0x584] ss:$16 sps:$4 sm:$0xff]  }
 0x163   :  { %v19278_v22 = vld [vmem:[%s27726_s2 + $0x588] ss:$16 sps:$4 sm:$0xff]   ;;  %v19283_v23 = vld [vmem:[%s27726_s2 + $0x564] ss:$16 sps:$4 sm:$0xff]   ;;  %v19292_v29 = vld [vmem:[%s27726_s2 + $0x54c] ss:$16 sps:$4 sm:$0xff]  }
 0x164   :  { %v19284_v27 = vld [vmem:[%s27726_s2 + $0x568] ss:$16 sps:$4 sm:$0xff]   ;;  %v19289_v28 = vld [vmem:[%s27726_s2 + $0x544] ss:$16 sps:$4 sm:$0xff]   ;;  %v19298_v49 = vld [vmem:[%s27726_s2 + $0x52c] ss:$16 sps:$4 sm:$0xff]  }
 0x165   :  { %1918 = vmatpush2.bf16.msra.mxu1 %v19192_v60  ;;  %1971 = vmatpush2.bf16.msra.mxu0 %v19195_v61  ;;  %v19242_v60 = vld [vmem:[%s27726_s2 + $0x448] ss:$16 sps:$4 sm:$0xff]   ;;  %v19247_v61 = vld [vmem:[%s27726_s2 + $0x424] ss:$16 sps:$4 sm:$0xff]  }
 0x166   :  { %2480 = vmatprep.subr.bf16.mxu1 %v19200_v3  ;;  %2533 = vmatprep.subr.bf16.mxu0 %v19203_v5  ;;  %v19251_v3 = vld [vmem:[%s27726_s2 + $0x400] ss:$16 sps:$4 sm:$0xff]   ;;  %v19254_v5 = vld [vmem:[%s27726_s2 + $0x408] ss:$16 sps:$4 sm:$0xff]   ;;  %v19295_v48 = vld [vmem:[%s27726_s2 + $0x524] ss:$16 sps:$4 sm:$0xff]  }
 0x167   :  { %v19316_v33 = vld [vmem:[#allocation2 + $0x1fc] ss:$-88 sps:$4 sm:$0x33]   ;;  %v19320_v41 = vld [vmem:[#allocation2 + $0x160] ss:$376 sps:$4 sm:$0xcc]  }
 0x168   :  { %1920 = vmatmul.mubr.bf16.vlgmr.msra.gmra.mxu1 %v906_v24  ;;  %1973 = vmatmul.mubr.bf16.vlgmr.msra.gmra.mxu0 %v906_v24  ;;  %v19286_v24 = vld [vmem:[%s27726_s2 + $0x56c] ss:$16 sps:$4 sm:$0xff]  }
 0x169   :  { %1929 = vmatprep.mubr.bf16.mxu1 %v909_v30  ;;  %1982 = vmatprep.mubr.bf16.mxu0 %v909_v30  ;;  %v19311_v30 = vld [vmem:[#allocation2 + $0x58] ss:$360 sps:$4 sm:$0xcc]   ;;  %v19322_v42 = vld [vmem:[#allocation2 + $0x164] ss:$376 sps:$4 sm:$0x33]  }
 0x16a   :  { %2481 = vmatpush1.bf16.msra.mxu1 %v19198_v20  ;;  %2534 = vmatpush1.bf16.msra.mxu0 %v19201_v25  ;;  %v19280_v20 = vld [vmem:[%s27726_s2 + $0x58c] ss:$16 sps:$4 sm:$0xff]   ;;  %v19281_v25 = vld [vmem:[%s27726_s2 + $0x560] ss:$16 sps:$4 sm:$0xff]  }
 0x16b   :  { %2482 = vmatprep.subr.bf16.mxu1 %v19207_v31  ;;  %2535 = vmatprep.subr.bf16.mxu0 %v19210_v32  ;;  %v19313_v31 = vld [vmem:[#allocation2 + $0x5c] ss:$360 sps:$4 sm:$0x33]   ;;  %v19314_v32 = vld [vmem:[#allocation2 + $0x1f8] ss:$-88 sps:$4 sm:$0xcc]  }
 0x16e   :  { %2483 = vmatpush1.bf16.msra.mxu1 %v19205_v36  ;;  %2536 = vmatpush1.bf16.msra.mxu0 %v19208_v40  ;;  %v19317_v36 = vld [vmem:[#allocation2 + $0x2a8] ss:$72 sps:$4 sm:$0xcc]   ;;  %v19319_v40 = vld [vmem:[#allocation2 + $0x2ac] ss:$72 sps:$4 sm:$0x33]  }
 0x16f   :  { %2484 = vmatprep.subr.bf16.mxu1 %v19214_v43  ;;  %2537 = vmatprep.subr.bf16.mxu0 %v19217_v47  ;;  %v19287_v43 = vld [vmem:[%s27726_s2 + $0x540] ss:$16 sps:$4 sm:$0xff]   ;;  %v19290_v47 = vld [vmem:[%s27726_s2 + $0x548] ss:$16 sps:$4 sm:$0xff]  }
 0x170   :  { %1930 = vmatmul.mubr.bf16.gmra.mxu1 %v908_v46  ;;  %1983 = vmatmul.mubr.bf16.gmra.mxu0 %v908_v46  ;;  %v16340_v46 = vrot.slane %v19311_v30, 10  ;;  %v19351_v30 = vld [vmem:[%s27726_s2 + $0x644] ss:$16 sps:$4 sm:$0xff]  }
 0x171   :  { %2512 = vmatprep.mubr.bf16.mxu1 %v2093_v50  ;;  %2565 = vmatprep.mubr.bf16.mxu0 %v2093_v50  ;;  %v2066_v50 = vrot.slane %v19316_v33, 6  ;;  %v19352_v33 = vld [vmem:[%s27726_s2 + $0x648] ss:$16 sps:$4 sm:$0xff]  }
 0x172   :  { %2485 = vmatpush1.bf16.msra.mxu1 %v19212_v4  ;;  %2538 = vmatpush1.bf16.msra.mxu0 %v19215_v14  ;;  %v2062_v4 = vrot.slane %v19313_v31, 6  ;;  %v16341_v14 = vrot.slane %v19314_v32, 10  ;;  %v19354_v31 = vld [vmem:[%s27726_s2 + $0x64c] ss:$16 sps:$4 sm:$0xff]   ;;  %v19349_v32 = vld [vmem:[%s27726_s2 + $0x640] ss:$16 sps:$4 sm:$0xff]  }
 0x173   :  { %2486 = vmatprep.subr.bf16.mxu1 %v19229_v51  ;;  %2539 = vmatprep.subr.bf16.mxu0 %v19232_v52  ;;  %v19293_v51 = vld [vmem:[%s27726_s2 + $0x520] ss:$16 sps:$4 sm:$0xff]   ;;  %v16342_v52 = vrot.slane %v19317_v36, 10  ;;  %v19357_v36 = vld [vmem:[%s27726_s2 + $0x624] ss:$16 sps:$4 sm:$0xff]  }
 0x176   :  { %2487 = vmatpush1.bf16.msra.mxu1 %v19227_v53  ;;  %2540 = vmatpush1.bf16.msra.mxu0 %v19230_v54  ;;  %v2070_v53 = vrot.slane %v19319_v40, 6  ;;  %v16343_v54 = vrot.slane %v19320_v41, 10  ;;  %v19360_v40 = vld [vmem:[%s27726_s2 + $0x62c] ss:$16 sps:$4 sm:$0xff]   ;;  %v19355_v41 = vld [vmem:[%s27726_s2 + $0x620] ss:$16 sps:$4 sm:$0xff]  }
 0x177   :  { %2488 = vmatprep.subr.bf16.mxu1 %v19235_v55  ;;  %2541 = vmatprep.subr.bf16.mxu0 %v19238_v56  ;;  %v2074_v55 = vrot.slane %v19322_v42, 6  ;;  %v19296_v56 = vld [vmem:[%s27726_s2 + $0x528] ss:$16 sps:$4 sm:$0xff]  }
 0x178   :  { %v19358_v42 = vld [vmem:[%s27726_s2 + $0x628] ss:$16 sps:$4 sm:$0xff]  }
 0x17a   :  { %2489 = vmatpush1.bf16.msra.mxu1 %v19233_v57  ;;  %2542 = vmatpush1.bf16.msra.mxu0 %v19236_v58  ;;  %v19301_v57 = vld [vmem:[%s27726_s2 + $0x504] ss:$16 sps:$4 sm:$0xff]   ;;  %v19304_v58 = vld [vmem:[%s27726_s2 + $0x50c] ss:$16 sps:$4 sm:$0xff]  }
 0x17b   :  { %2490 = vmatprep.subr.bf16.mxu1 %v19241_v59  ;;  %2543 = vmatprep.subr.bf16.mxu0 %v19244_v37  ;;  %v19299_v59 = vld [vmem:[%s27726_s2 + $0x500] ss:$16 sps:$4 sm:$0xff]   ;;  %v19302_v37 = vld [vmem:[%s27726_s2 + $0x508] ss:$16 sps:$4 sm:$0xff]  }
 0x17e   :  { %2491 = vmatpush1.bf16.msra.mxu1 %v19239_v38  ;;  %2544 = vmatpush1.bf16.msra.mxu0 %v19242_v60  ;;  %v19307_v38 = vld [vmem:[%s27726_s2 + $0x6e4] ss:$16 sps:$4 sm:$0xff]   ;;  %v19310_v60 = vld [vmem:[%s27726_s2 + $0x6ec] ss:$16 sps:$4 sm:$0xff]  }
 0x17f   :  { %2492 = vmatprep.subr.bf16.mxu1 %v19247_v61  ;;  %2545 = vmatprep.subr.bf16.mxu0 %v19250_v62  ;;  %v2063_v61 = vsel %vm22494_vm6, %v16340_v46, %v2062_v4  ;;  %v2067_v62 = vsel %vm22494_vm6, %v16341_v14, %v2066_v50  ;;  %v19369_v46 = vld [vmem:[%s27726_s2 + $0x7e4] ss:$16 sps:$4 sm:$0xff]   ;;  %v19372_v4 = vld [vmem:[%s27726_s2 + $0x7ec] ss:$16 sps:$4 sm:$0xff]   ;;  %v19367_v14 = vld [vmem:[%s27726_s2 + $0x7e0] ss:$16 sps:$4 sm:$0xff]  }
 0x180   :  { %v19370_v50 = vld [vmem:[%s27726_s2 + $0x7e8] ss:$16 sps:$4 sm:$0xff]  }
 0x182   :  { %2493 = vmatpush1.bf16.msra.mxu1 %v19245_v63  ;;  %2546 = vmatpush1.bf16.msra.mxu0 %v19248_v0  ;;  %v2071_v63 = vsel %vm22494_vm6, %v16342_v52, %v2070_v53  ;;  %v2075_v0 = vsel %vm22494_vm6, %v16343_v54, %v2074_v55  ;;  %v19378_v52 = vld [vmem:[%s27726_s2 + $0x7cc] ss:$16 sps:$4 sm:$0xff]   ;;  %v19373_v53 = vld [vmem:[%s27726_s2 + $0x7c0] ss:$16 sps:$4 sm:$0xff]   ;;  %v19376_v54 = vld [vmem:[%s27726_s2 + $0x7c8] ss:$16 sps:$4 sm:$0xff]  }
 0x183   :  { %2494 = vmatprep.subr.bf16.mxu1 %v19253_v1  ;;  %2547 = vmatprep.subr.bf16.mxu0 %v19256_v2  ;;  %v2078_v1 = vcombine.low %v22527_v45, %v22506_v35  ;;  %v2081_v2 = vcombine.high %v2063_v61, %v2067_v62  ;;  %v19325_v45 = vld [vmem:[%s27726_s2 + $0x6c4] ss:$16 sps:$4 sm:$0xff]  }
 0x184   :  { %v19381_v55 = vld [vmem:[%s27726_s2 + $0x7a4] ss:$16 sps:$4 sm:$0xff]  }
 0x186   :  { %2495 = vmatpush1.bf16.msra.mxu1 %v19251_v3  ;;  %2548 = vmatpush1.bf16.msra.mxu0 %v19254_v5  ;;  %v2083_v3 = vcombine.high %v2071_v63, %v2075_v0  ;;  %v2076_v5 = vcombine.low %v22513_v39, %v22523_v44  ;;  %v19328_v39 = vld [vmem:[%s27726_s2 + $0x6cc] ss:$16 sps:$4 sm:$0xff]   ;;  %v19323_v44 = vld [vmem:[%s27726_s2 + $0x6c0] ss:$16 sps:$4 sm:$0xff]  }
 0x187   :  { %2496 = vmatprep.subr.bf16.mxu1 %v19259_v6  ;;  %2549 = vmatprep.subr.bf16.mxu0 %v19262_v7  ;;  %v19305_v6 = vld [vmem:[%s27726_s2 + $0x6e0] ss:$16 sps:$4 sm:$0xff]   ;;  %v19308_v7 = vld [vmem:[%s27726_s2 + $0x6e8] ss:$16 sps:$4 sm:$0xff]  }
 0x188   :  { %v2095_v35 = vpack.c.bf16 %v2083_v3, %v2081_v2  ;;  %v19402_v2 = vld [vmem:[%s27726_s2 + $0x74c] ss:$16 sps:$4 sm:$0xff]   ;;  %v19397_v3 = vld [vmem:[%s27726_s2 + $0x740] ss:$16 sps:$4 sm:$0xff]  }
 0x18a   :  { %2497 = vmatpush2.bf16.msra.mxu1 %v19257_v8  ;;  %2550 = vmatpush2.bf16.msra.mxu0 %v19260_v9  ;;  %v2092_v8 = vpack.c.bf16 %v2078_v1, %v2076_v5  ;;  %v19326_v9 = vld [vmem:[%s27726_s2 + $0x6c8] ss:$16 sps:$4 sm:$0xff]   ;;  %v19399_v1 = vld [vmem:[%s27726_s2 + $0x744] ss:$16 sps:$4 sm:$0xff]  }
 0x18b   :  { %2498 = vmatprep.subr.bf16.mxu1 %v19265_v10  ;;  %2551 = vmatprep.subr.bf16.mxu0 %v19268_v11  ;;  %v2080_v10 = vcombine.low %v2063_v61, %v2067_v62  ;;  %v2082_v11 = vcombine.low %v2071_v63, %v2075_v0  ;;  %v19393_v61 = vld [vmem:[%s27726_s2 + $0x764] ss:$16 sps:$4 sm:$0xff]   ;;  %v19396_v62 = vld [vmem:[%s27726_s2 + $0x76c] ss:$16 sps:$4 sm:$0xff]   ;;  %v19391_v63 = vld [vmem:[%s27726_s2 + $0x760] ss:$16 sps:$4 sm:$0xff]  }
 0x18c   :  { %v19394_v0 = vld [vmem:[%s27726_s2 + $0x768] ss:$16 sps:$4 sm:$0xff]  }
 0x18d   :  { %v19400_v5 = vld [vmem:[%s27726_s2 + $0x748] ss:$16 sps:$4 sm:$0xff]  }
 0x18e   :  { %2499 = vmatpush2.bf16.msra.mxu1 %v19263_v12  ;;  %2552 = vmatpush2.bf16.msra.mxu0 %v19266_v13  ;;  %v19331_v12 = vld [vmem:[%s27726_s2 + $0x6a4] ss:$16 sps:$4 sm:$0xff]   ;;  %v19334_v13 = vld [vmem:[%s27726_s2 + $0x6ac] ss:$16 sps:$4 sm:$0xff]  }
 0x18f   :  { %2500 = vmatprep.subr.bf16.mxu1 %v19271_v15  ;;  %2553 = vmatprep.subr.bf16.mxu0 %v19274_v16  ;;  %v19336_v15 = vld [vmem:[#allocation2 + $0x258] ss:$-472 sps:$4 sm:$0xff]  }
 0x190   :  { %v19329_v16 = vld [vmem:[%s27726_s2 + $0x6a0] ss:$16 sps:$4 sm:$0xff]  }
 0x192   :  { %2501 = vmatpush2.bf16.msra.mxu1 %v19269_v17  ;;  %2554 = vmatpush2.bf16.msra.mxu0 %v19272_v18  ;;  %v19332_v17 = vld [vmem:[%s27726_s2 + $0x6a8] ss:$16 sps:$4 sm:$0xff]  }
 0x193   :  { %2502 = vmatprep.subr.bf16.mxu1 %v19277_v19  ;;  %2555 = vmatprep.subr.bf16.mxu0 %v19280_v20  ;;  %v19335_v18 = vld [vmem:[#allocation2 + $0xe0] ss:$360 sps:$4 sm:$0xff]   ;;  %v2094_v19 = vpack.c.bf16 %v2082_v11, %v2080_v10  ;;  %v19339_v20 = vld [vmem:[%s27726_s2 + $0x684] ss:$16 sps:$4 sm:$0xff]  }
 0x194   :  { %v19409_v10 = vld [vmem:[%s27726_s2 + $0x700] ss:$16 sps:$4 sm:$0xff]  }
 0x195   :  { %v19440_v11 = vld [vmem:[#allocation2] ss:$584 sps:$4 sm:$0xee]  }
 0x196   :  { %2503 = vmatpush2.bf16.msra.mxu1 %v19275_v21  ;;  %2556 = vmatpush2.bf16.msra.mxu0 %v19278_v22  ;;  %v19342_v21 = vld [vmem:[%s27726_s2 + $0x68c] ss:$16 sps:$4 sm:$0xff]   ;;  %v2659_v22 = vpack.c.bf16 %v19336_v15, %v19335_v18  ;;  %v19416_v15 = vld [vmem:[#allocation2 + $0x220] ss:$-104 sps:$4 sm:$0xff]  }
 0x197   :  { %2504 = vmatprep.subr.bf16.mxu1 %v19283_v23  ;;  %2557 = vmatprep.subr.bf16.mxu0 %v19286_v24  ;;  %v19337_v23 = vld [vmem:[%s27726_s2 + $0x680] ss:$16 sps:$4 sm:$0xff]   ;;  %v19340_v24 = vld [vmem:[%s27726_s2 + $0x688] ss:$16 sps:$4 sm:$0xff]  }
 0x198   :  { %v19445_v18 = vld [vmem:[#allocation2 + $0x224] ss:$56 sps:$4 sm:$0x11]  }
 0x19a   :  { %2505 = vmatpush2.bf16.msra.mxu1 %v19281_v25  ;;  %2558 = vmatpush2.bf16.msra.mxu0 %v19284_v27  ;;  %v19345_v25 = vld [vmem:[%s27726_s2 + $0x664] ss:$16 sps:$4 sm:$0xff]   ;;  %v19348_v27 = vld [vmem:[%s27726_s2 + $0x66c] ss:$16 sps:$4 sm:$0xff]  }
 0x19b   :  { %2506 = vmatprep.subr.bf16.mxu1 %v19289_v28  ;;  %2559 = vmatprep.subr.bf16.mxu0 %v19292_v29  ;;  %v19343_v28 = vld [vmem:[%s27726_s2 + $0x660] ss:$16 sps:$4 sm:$0xff]   ;;  %v19346_v29 = vld [vmem:[%s27726_s2 + $0x668] ss:$16 sps:$4 sm:$0xff]  }
 0x19e   :  { %2507 = vmatpush2.bf16.msra.mxu1 %v19287_v43  ;;  %2560 = vmatpush2.bf16.msra.mxu0 %v19290_v47  ;;  %v19363_v43 = vld [vmem:[%s27726_s2 + $0x604] ss:$16 sps:$4 sm:$0xff]   ;;  %v19366_v47 = vld [vmem:[%s27726_s2 + $0x60c] ss:$16 sps:$4 sm:$0xff]  }
 0x19f   :  { %2508 = vmatprep.subr.bf16.mxu1 %v19295_v48  ;;  %2561 = vmatprep.subr.bf16.mxu0 %v19298_v49  ;;  %v19361_v48 = vld [vmem:[%s27726_s2 + $0x600] ss:$16 sps:$4 sm:$0xff]   ;;  %v19364_v49 = vld [vmem:[%s27726_s2 + $0x608] ss:$16 sps:$4 sm:$0xff]  }
 0x1a2   :  { %2509 = vmatpush2.bf16.msra.mxu1 %v19293_v51  ;;  %2562 = vmatpush2.bf16.msra.mxu0 %v19296_v56  ;;  %v19375_v51 = vld [vmem:[%s27726_s2 + $0x7c4] ss:$16 sps:$4 sm:$0xff]   ;;  %v19384_v56 = vld [vmem:[%s27726_s2 + $0x7ac] ss:$16 sps:$4 sm:$0xff]  }
 0x1a3   :  { %2510 = vmatprep.subr.bf16.mxu1 %v19301_v57  ;;  %2563 = vmatprep.subr.bf16.mxu0 %v19304_v58  ;;  %v19379_v57 = vld [vmem:[%s27726_s2 + $0x7a0] ss:$16 sps:$4 sm:$0xff]   ;;  %v19382_v58 = vld [vmem:[%s27726_s2 + $0x7a8] ss:$16 sps:$4 sm:$0xff]  }
 0x1a6   :  { %2511 = vmatpush2.bf16.msra.mxu1 %v19299_v59  ;;  %2564 = vmatpush2.bf16.msra.mxu0 %v19302_v37  ;;  %v19387_v59 = vld [vmem:[%s27726_s2 + $0x784] ss:$16 sps:$4 sm:$0xff]   ;;  %v19390_v37 = vld [vmem:[%s27726_s2 + $0x78c] ss:$16 sps:$4 sm:$0xff]  }
 0x1a7   :  { %3047 = vmatprep.subr.bf16.mxu1 %v19307_v38  ;;  %3100 = vmatprep.subr.bf16.mxu0 %v19310_v60  ;;  %v19385_v38 = vld [vmem:[%s27726_s2 + $0x780] ss:$16 sps:$4 sm:$0xff]   ;;  %v19388_v60 = vld [vmem:[%s27726_s2 + $0x788] ss:$16 sps:$4 sm:$0xff]  }
 0x1a9   :  { %2513 = vmatmul.mubr.bf16.vlgmr.msra.gmra.mxu1 %v2092_v8  ;;  %2566 = vmatmul.mubr.bf16.vlgmr.msra.gmra.mxu0 %v2092_v8  ;;  %v19403_v8 = vld [vmem:[%s27726_s2 + $0x720] ss:$16 sps:$4 sm:$0xff]  }
 0x1aa   :  { %2522 = vmatprep.mubr.bf16.mxu1 %v2095_v35  ;;  %2575 = vmatprep.mubr.bf16.mxu0 %v2095_v35  ;;  %v19406_v35 = vld [vmem:[%s27726_s2 + $0x728] ss:$16 sps:$4 sm:$0xff]  }
 0x1ab   :  { %3048 = vmatpush1.bf16.msra.mxu1 %v19305_v6  ;;  %3101 = vmatpush1.bf16.msra.mxu0 %v19308_v7  ;;  %v19405_v6 = vld [vmem:[%s27726_s2 + $0x724] ss:$16 sps:$4 sm:$0xff]   ;;  %v19408_v7 = vld [vmem:[%s27726_s2 + $0x72c] ss:$16 sps:$4 sm:$0xff]  }
 0x1ac   :  { %3049 = vmatprep.subr.bf16.mxu1 %v19325_v45  ;;  %3102 = vmatprep.subr.bf16.mxu0 %v19328_v39  ;;  %v19411_v45 = vld [vmem:[%s27726_s2 + $0x704] ss:$16 sps:$4 sm:$0xff]   ;;  %v19414_v39 = vld [vmem:[%s27726_s2 + $0x70c] ss:$16 sps:$4 sm:$0xff]  }
 0x1af   :  { %3050 = vmatpush1.bf16.msra.mxu1 %v19323_v44  ;;  %3103 = vmatpush1.bf16.msra.mxu0 %v19326_v9  ;;  %v2615_v44 = vld [vmem:[#allocation2 + $0x150] sm:$0xf] }
 0x1b0   :  { %3051 = vmatprep.subr.bf16.mxu1 %v19331_v12  ;;  %3104 = vmatprep.subr.bf16.mxu0 %v19334_v13  ;;  %v2617_v9 = vld [vmem:[#allocation2 + $0x170] sm:$0xf]  ;;  %v19446_v12 = vld [vmem:[#allocation2 + $0x1b8] ss:$-312 sps:$4 sm:$0xee]  }
 0x1b1   :  { %2523 = vmatmul.mubr.bf16.gmra.mxu1 %v2094_v19  ;;  %2576 = vmatmul.mubr.bf16.gmra.mxu0 %v2094_v19  ;;  %v19412_v13 = vld [vmem:[%s27726_s2 + $0x708] ss:$16 sps:$4 sm:$0xff]   ;;  %v19448_v19 = vld [vmem:[#allocation2 + $0x1bc] ss:$-312 sps:$4 sm:$0x11]  }
 0x1b2   :  { %3079 = vmatprep.mubr.bf16.mxu1 %v2659_v22  ;;  %3132 = vmatprep.mubr.bf16.mxu0 %v2659_v22  ;;  %v19422_v22 = vld [vmem:[%s27726_s2 + $0x8ec] ss:$16 sps:$4 sm:$0xff]  }
 0x1b3   :  { %3052 = vmatpush1.bf16.msra.mxu1 %v19329_v16  ;;  %3105 = vmatpush1.bf16.msra.mxu0 %v19332_v17  ;;  %v19442_v16 = vld [vmem:[#allocation2 + $0x4] ss:$584 sps:$4 sm:$0x11]   ;;  %v19443_v17 = vld [vmem:[#allocation2 + $0x220] ss:$56 sps:$4 sm:$0xee]  }
 0x1b4   :  { %3053 = vmatprep.subr.bf16.mxu1 %v19339_v20  ;;  %3106 = vmatprep.subr.bf16.mxu0 %v19342_v21  ;;  %v19415_v20 = vld [vmem:[#allocation2 + $0x128] ss:$-296 sps:$4 sm:$0xff]   ;;  %v19419_v21 = vld [vmem:[%s27726_s2 + $0x8e4] ss:$16 sps:$4 sm:$0xff]  }
 0x1b7   :  { %3054 = vmatpush1.bf16.msra.mxu1 %v19337_v23  ;;  %3107 = vmatpush1.bf16.msra.mxu0 %v19340_v24  ;;  %v19437_v23 = vld [vmem:[#allocation2 + $0x128] ss:$-72 sps:$4 sm:$0xee]   ;;  %v19423_v24 = vld [vmem:[#allocation2 + $0x70] ss:$520 sps:$4 sm:$0xff]  }
 0x1b8   :  { %3055 = vmatprep.subr.bf16.mxu1 %v19345_v25  ;;  %3108 = vmatprep.subr.bf16.mxu0 %v19348_v27  ;;  %v16415_v25 = vcombine.low %v2615_v44, %v2617_v9  ;;  %v19439_v27 = vld [vmem:[#allocation2 + $0x12c] ss:$-72 sps:$4 sm:$0x11]  }
 0x1b9   :  { %v19469_v44 = vld [vmem:[%s27726_s2 + $0x824] ss:$16 sps:$4 sm:$0xff]   ;;  %v19472_v9 = vld [vmem:[%s27726_s2 + $0x82c] ss:$16 sps:$4 sm:$0xff]  }
 0x1bb   :  { %3056 = vmatpush1.bf16.msra.mxu1 %v19343_v28  ;;  %3109 = vmatpush1.bf16.msra.mxu0 %v19346_v29  ;;  %v19417_v28 = vld [vmem:[%s27726_s2 + $0x8e0] ss:$16 sps:$4 sm:$0xff]   ;;  %v19420_v29 = vld [vmem:[%s27726_s2 + $0x8e8] ss:$16 sps:$4 sm:$0xff]  }
 0x1bc   :  { %3057 = vmatprep.subr.bf16.mxu1 %v19351_v30  ;;  %3110 = vmatprep.subr.bf16.mxu0 %v19354_v31  ;;  %v16547_v30 = vrot.slane %v19446_v12, 9  ;;  %v3231_v31 = vrot.slane %v19448_v19, 5  ;;  %v19475_v12 = vld [vmem:[%s27726_s2 + $0x804] ss:$16 sps:$4 sm:$0xff]   ;;  %v19479_v19 = vld [vmem:[%s27726_s2 + $0x9e0] ss:$16 sps:$4 sm:$0xff]  }
 0x1bf   :  { %3058 = vmatpush1.bf16.msra.mxu1 %v19349_v32  ;;  %3111 = vmatpush1.bf16.msra.mxu0 %v19352_v33  ;;  %v19426_v32 = vld [vmem:[%s27726_s2 + $0x8c4] ss:$16 sps:$4 sm:$0xff]   ;;  %v19429_v33 = vld [vmem:[%s27726_s2 + $0x8cc] ss:$16 sps:$4 sm:$0xff]  }
 0x1c0   :  { %3059 = vmatprep.subr.bf16.mxu1 %v19357_v36  ;;  %3112 = vmatprep.subr.bf16.mxu0 %v19360_v40  ;;  %v2614_v36 = vld [vmem:[#allocation2 + $0x1e0] sm:$0xf] }
 0x1c1   :  { %v2616_v40 = vld [vmem:[#allocation2 + $0xc0] sm:$0xf] }
 0x1c3   :  { %3060 = vmatpush1.bf16.msra.mxu1 %v19355_v41  ;;  %3113 = vmatpush1.bf16.msra.mxu0 %v19358_v42  ;;  %v16545_v41 = vrot.slane %v19440_v11, 9  ;;  %v2658_v42 = vpack.c.bf16 %v19416_v15, %v19415_v20  ;;  %v19470_v11 = vld [vmem:[%s27726_s2 + $0x828] ss:$16 sps:$4 sm:$0xff]   ;;  %v19473_v15 = vld [vmem:[%s27726_s2 + $0x800] ss:$16 sps:$4 sm:$0xff]  }
 0x1c4   :  { %3061 = vmatprep.subr.bf16.mxu1 %v19363_v43  ;;  %3114 = vmatprep.subr.bf16.mxu0 %v19366_v47  ;;  %v3223_v43 = vrot.slane %v19442_v16, 5  ;;  %v16546_v47 = vrot.slane %v19443_v17, 9  ;;  %v19476_v16 = vld [vmem:[%s27726_s2 + $0x808] ss:$16 sps:$4 sm:$0xff]   ;;  %v19481_v17 = vld [vmem:[%s27726_s2 + $0x9e4] ss:$16 sps:$4 sm:$0xff]  }
 0x1c5   :  { %v19482_v20 = vld [vmem:[%s27726_s2 + $0x9e8] ss:$16 sps:$4 sm:$0xff]  }
 0x1c7   :  { %3062 = vmatpush1.bf16.msra.mxu1 %v19361_v48  ;;  %3115 = vmatpush1.bf16.msra.mxu0 %v19364_v49  ;;  %v3227_v48 = vrot.slane %v19445_v18, 5  ;;  %v2661_v49 = vpack.c.bf16 %v16415_v25, %v19423_v24  ;;  %v19484_v18 = vld [vmem:[%s27726_s2 + $0x9ec] ss:$16 sps:$4 sm:$0xff]   ;;  %v19488_v24 = vld [vmem:[%s27726_s2 + $0x9c8] ss:$16 sps:$4 sm:$0xff]  }
 0x1c8   :  { %3063 = vmatprep.subr.bf16.mxu1 %v19369_v46  ;;  %3116 = vmatprep.subr.bf16.mxu0 %v19372_v4  ;;  %v16544_v46 = vrot.slane %v19437_v23, 9  ;;  %v3219_v4 = vrot.slane %v19439_v27, 5  ;;  %v19485_v23 = vld [vmem:[%s27726_s2 + $0x9c0] ss:$16 sps:$4 sm:$0xff]   ;;  %v19493_v25 = vld [vmem:[%s27726_s2 + $0x9a4] ss:$16 sps:$4 sm:$0xff]  }
 0x1cb   :  { %3064 = vmatpush2.bf16.msra.mxu1 %v19367_v14  ;;  %3117 = vmatpush2.bf16.msra.mxu0 %v19370_v50  ;;  %v22922_v14 = vsel %vm22240_vm13, %v16547_v30, %v3231_v31  ;;  %v19424_v50 = vld [vmem:[%s27726_s2 + $0x8c0] ss:$16 sps:$4 sm:$0xff]  }
 0x1cc   :  { %3065 = vmatprep.subr.bf16.mxu1 %v19375_v51  ;;  %3118 = vmatprep.subr.bf16.mxu0 %v19378_v52  ;;  %v19427_v51 = vld [vmem:[%s27726_s2 + $0x8c8] ss:$16 sps:$4 sm:$0xff]   ;;  %v19491_v30 = vld [vmem:[%s27726_s2 + $0x9a0] ss:$16 sps:$4 sm:$0xff]  }
 0x1cd   :  { %v19430_v52 = vld [vmem:[#allocation2 + $0x298] ss:$-504 sps:$4 sm:$0xff]  }
 0x1cf   :  { %3066 = vmatpush2.bf16.msra.mxu1 %v19373_v53  ;;  %3119 = vmatpush2.bf16.msra.mxu0 %v19376_v54  ;;  %v16414_v53 = vcombine.low %v2614_v36, %v2616_v40  ;;  %v19433_v54 = vld [vmem:[%s27726_s2 + $0x8a4] ss:$16 sps:$4 sm:$0xff]   ;;  %v19502_v40 = vld [vmem:[%s27726_s2 + $0x98c] ss:$16 sps:$4 sm:$0xff]  }
 0x1d0   :  { %3067 = vmatprep.subr.bf16.mxu1 %v19381_v55  ;;  %3120 = vmatprep.subr.bf16.mxu0 %v19384_v56  ;;  %v22935_v55 = vsel %vm22240_vm13, %v16545_v41, %v3223_v43  ;;  %v22939_v56 = vsel %vm22240_vm13, %v16546_v47, %v3227_v48  ;;  %v19499_v36 = vld [vmem:[%s27726_s2 + $0x984] ss:$16 sps:$4 sm:$0xff]   ;;  %v19497_v43 = vld [vmem:[%s27726_s2 + $0x980] ss:$16 sps:$4 sm:$0xff]   ;;  %v19500_v47 = vld [vmem:[%s27726_s2 + $0x988] ss:$16 sps:$4 sm:$0xff]  }
 0x1d1   :  { %v19505_v48 = vld [vmem:[%s27726_s2 + $0x964] ss:$16 sps:$4 sm:$0xff]  }
 0x1d3   :  { %3068 = vmatpush2.bf16.msra.mxu1 %v19379_v57  ;;  %3121 = vmatpush2.bf16.msra.mxu0 %v19382_v58  ;;  %v19436_v57 = vld [vmem:[%s27726_s2 + $0x8ac] ss:$16 sps:$4 sm:$0xff]   ;;  %v3252_v58 = vcombine.high %v22939_v56, %v22922_v14 }
 0x1d4   :  { %3069 = vmatprep.subr.bf16.mxu1 %v19387_v59  ;;  %3122 = vmatprep.subr.bf16.mxu0 %v19390_v37  ;;  %v19431_v59 = vld [vmem:[%s27726_s2 + $0x8a0] ss:$16 sps:$4 sm:$0xff]   ;;  %v19434_v37 = vld [vmem:[%s27726_s2 + $0x8a8] ss:$16 sps:$4 sm:$0xff]  }
 0x1d7   :  { %3070 = vmatpush2.bf16.msra.mxu1 %v19385_v38  ;;  %3123 = vmatpush2.bf16.msra.mxu0 %v19388_v60  ;;  %v22954_v38 = vsel %vm22240_vm13, %v16544_v46, %v3219_v4  ;;  %v19503_v46 = vld [vmem:[%s27726_s2 + $0x960] ss:$16 sps:$4 sm:$0xff]   ;;  %v19506_v4 = vld [vmem:[%s27726_s2 + $0x968] ss:$16 sps:$4 sm:$0xff]  }
 0x1d8   :  { %3071 = vmatprep.subr.bf16.mxu1 %v19393_v61  ;;  %3124 = vmatprep.subr.bf16.mxu0 %v19396_v62  ;;  %v3250_v60 = vcombine.high %v22954_v38, %v22935_v55  ;;  %v19451_v61 = vld [vmem:[%s27726_s2 + $0x884] ss:$16 sps:$4 sm:$0xff]   ;;  %v19454_v62 = vld [vmem:[%s27726_s2 + $0x88c] ss:$16 sps:$4 sm:$0xff]  }
 0x1db   :  { %3072 = vmatpush2.bf16.msra.mxu1 %v19391_v63  ;;  %3125 = vmatpush2.bf16.msra.mxu0 %v19394_v0  ;;  %v2660_v63 = vpack.c.bf16 %v16414_v53, %v19430_v52  ;;  %v3266_v0 = vpack.c.bf16 %v3252_v58, %v3250_v60  ;;  %v19539_v52 = vld [vmem:[#allocation2 + $0x1e0] ss:$-144 sps:$4 sm:$0xee]   ;;  %v19541_v53 = vld [vmem:[#allocation2 + $0x1e4] ss:$-144 sps:$4 sm:$0x11]  }
 0x1dc   :  { %3073 = vmatprep.subr.bf16.mxu1 %v19399_v1  ;;  %3126 = vmatprep.subr.bf16.mxu0 %v19402_v2  ;;  %v19449_v1 = vld [vmem:[%s27726_s2 + $0x880] ss:$16 sps:$4 sm:$0xff]   ;;  %v19452_v2 = vld [vmem:[%s27726_s2 + $0x888] ss:$16 sps:$4 sm:$0xff]  }
 0x1dd   :  { %v19542_v58 = vld [vmem:[#allocation2 + $0xc0] ss:$176 sps:$4 sm:$0xee]  }
 0x1df   :  { %3074 = vmatpush2.bf16.msra.mxu1 %v19397_v3  ;;  %3127 = vmatpush2.bf16.msra.mxu0 %v19400_v5  ;;  %v19457_v3 = vld [vmem:[%s27726_s2 + $0x864] ss:$16 sps:$4 sm:$0xff]   ;;  %v19460_v5 = vld [vmem:[%s27726_s2 + $0x86c] ss:$16 sps:$4 sm:$0xff]  }
 0x1e0   :  { %3075 = vmatprep.subr.bf16.mxu1 %v19405_v6  ;;  %3128 = vmatprep.subr.bf16.mxu0 %v19408_v7  ;;  %v19455_v6 = vld [vmem:[%s27726_s2 + $0x860] ss:$16 sps:$4 sm:$0xff]   ;;  %v19458_v7 = vld [vmem:[%s27726_s2 + $0x868] ss:$16 sps:$4 sm:$0xff]  }
 0x1e3   :  { %3076 = vmatpush2.bf16.msra.mxu1 %v19403_v8  ;;  %3129 = vmatpush2.bf16.msra.mxu0 %v19406_v35  ;;  %v19463_v8 = vld [vmem:[%s27726_s2 + $0x844] ss:$16 sps:$4 sm:$0xff]   ;;  %v19466_v35 = vld [vmem:[%s27726_s2 + $0x84c] ss:$16 sps:$4 sm:$0xff]  }
 0x1e4   :  { %3077 = vmatprep.subr.bf16.mxu1 %v19411_v45  ;;  %3130 = vmatprep.subr.bf16.mxu0 %v19414_v39  ;;  %v19461_v45 = vld [vmem:[%s27726_s2 + $0x840] ss:$16 sps:$4 sm:$0xff]   ;;  %v19464_v39 = vld [vmem:[%s27726_s2 + $0x848] ss:$16 sps:$4 sm:$0xff]  }
 0x1e7   :  { %3078 = vmatpush2.bf16.msra.mxu1 %v19409_v10  ;;  %3131 = vmatpush2.bf16.msra.mxu0 %v19412_v13  ;;  %v19467_v10 = vld [vmem:[%s27726_s2 + $0x820] ss:$16 sps:$4 sm:$0xff]   ;;  %v19478_v13 = vld [vmem:[%s27726_s2 + $0x80c] ss:$16 sps:$4 sm:$0xff]   ;;  %v23045_v27 = vpop.f32.mrf.mxu1 }
 0x1e8   :  { %3653 = vmatprep.subr.bf16.mxu1 %v19419_v21  ;;  %3706 = vmatprep.subr.bf16.mxu0 %v19422_v22  ;;  %v19487_v21 = vld [vmem:[%s27726_s2 + $0x9c4] ss:$16 sps:$4 sm:$0xff]   ;;  %v19490_v22 = vld [vmem:[%s27726_s2 + $0x9cc] ss:$16 sps:$4 sm:$0xff]  }
 0x1e9   :  { %v23055_v31 = vpop.f32.mrf.mxu1 }
 0x1ea   :  { %3080 = vmatmul.mubr.bf16.vlgmr.msra.gmra.mxu1 %v2658_v42  ;;  %3133 = vmatmul.mubr.bf16.vlgmr.msra.gmra.mxu0 %v2658_v42 }
 0x1eb   :  { %3089 = vmatprep.mubr.bf16.mxu1 %v2661_v49  ;;  %3142 = vmatprep.mubr.bf16.mxu0 %v2661_v49  ;;  %v23068_v41 = vpop.f32.mrf.mxu1  ;;  %v19508_v49 = vld [vmem:[%s27726_s2 + $0x96c] ss:$16 sps:$4 sm:$0xff]  }
 0x1ec   :  { %3654 = vmatpush1.bf16.msra.mxu1 %v19417_v28  ;;  %3707 = vmatpush1.bf16.msra.mxu0 %v19420_v29  ;;  %v23047_v28 = vpop.f32.mrf.mxu0  ;;  %v19496_v29 = vld [vmem:[%s27726_s2 + $0x9ac] ss:$16 sps:$4 sm:$0xff]  }
 0x1ed   :  { %3655 = vmatprep.subr.bf16.mxu1 %v19426_v32  ;;  %3708 = vmatprep.subr.bf16.mxu0 %v19429_v33  ;;  %v19494_v33 = vld [vmem:[%s27726_s2 + $0x9a8] ss:$16 sps:$4 sm:$0xff]  }
 0x1ee   :  { %v23057_v32 = vpop.f32.mrf.mxu0 }
 0x1f0   :  { %3656 = vmatpush1.bf16.msra.mxu1 %v19424_v50  ;;  %3709 = vmatpush1.bf16.msra.mxu0 %v19427_v51  ;;  %v23070_v42 = vpop.f32.mrf.mxu0  ;;  %v19511_v50 = vld [vmem:[%s27726_s2 + $0x944] ss:$16 sps:$4 sm:$0xff]   ;;  %v19514_v51 = vld [vmem:[%s27726_s2 + $0x94c] ss:$16 sps:$4 sm:$0xff]  }
 0x1f1   :  { %3657 = vmatprep.subr.bf16.mxu1 %v19433_v54  ;;  %3710 = vmatprep.subr.bf16.mxu0 %v19436_v57  ;;  %v23096_v54 = vpop.f32.mrf.mxu1 }
 0x1f2   :  { %3090 = vmatmul.mubr.bf16.gmra.mxu1 %v2660_v63  ;;  %3143 = vmatmul.mubr.bf16.gmra.mxu0 %v2660_v63  ;;  %v23098_v57 = vpop.f32.mrf.mxu0  ;;  %v19533_v63 = vld [vmem:[#allocation2 + $0x298] ss:$-552 sps:$4 sm:$0xee]  }
 0x1f3   :  { %3685 = vmatprep.mubr.bf16.mxu1 %v3266_v0  ;;  %3738 = vmatprep.mubr.bf16.mxu0 %v3266_v0  ;;  %v19517_v0 = vld [vmem:[%s27726_s2 + $0x924] ss:$16 sps:$4 sm:$0xff]  }
 0x1f4   :  { %3658 = vmatpush1.bf16.msra.mxu1 %v19431_v59  ;;  %3711 = vmatpush1.bf16.msra.mxu0 %v19434_v37  ;;  %v19544_v59 = vld [vmem:[#allocation2 + $0xc4] ss:$176 sps:$4 sm:$0x11]  }
 0x1f5   :  { %3659 = vmatprep.subr.bf16.mxu1 %v19451_v61  ;;  %3712 = vmatprep.subr.bf16.mxu0 %v19454_v62  ;;  %v19509_v61 = vld [vmem:[%s27726_s2 + $0x940] ss:$16 sps:$4 sm:$0xff]   ;;  %v19512_v62 = vld [vmem:[%s27726_s2 + $0x948] ss:$16 sps:$4 sm:$0xff]  }
 0x1f8   :  { %3660 = vmatpush1.bf16.msra.mxu1 %v19449_v1  ;;  %3713 = vmatpush1.bf16.msra.mxu0 %v19452_v2  ;;  %v19520_v1 = vld [vmem:[%s27726_s2 + $0x92c] ss:$16 sps:$4 sm:$0xff]  }
 0x1f9   :  { %3661 = vmatprep.subr.bf16.mxu1 %v19457_v3  ;;  %3714 = vmatprep.subr.bf16.mxu0 %v19460_v5  ;;  %v19535_v2 = vld [vmem:[#allocation2 + $0x29c] ss:$-552 sps:$4 sm:$0x11]   ;;  %v19536_v3 = vld [vmem:[#allocation2 + $0xa0] ss:$472 sps:$4 sm:$0xee]  }
 0x1fa   :  { %v19538_v5 = vld [vmem:[#allocation2 + $0xa4] ss:$472 sps:$4 sm:$0x11]  }
 0x1fc   :  { %3662 = vmatpush1.bf16.msra.mxu1 %v19455_v6  ;;  %3715 = vmatpush1.bf16.msra.mxu0 %v19458_v7  ;;  %v16550_v6 = vrot.slane %v19539_v52, 9  ;;  %v3243_v7 = vrot.slane %v19541_v53, 5  ;;  %v19527_v52 = vld [vmem:[%s27726_s2 + $0xae0] ss:$16 sps:$4 sm:$0xff]   ;;  %v19530_v53 = vld [vmem:[%s27726_s2 + $0xae8] ss:$16 sps:$4 sm:$0xff]  }
 0x1fd   :  { %3663 = vmatprep.subr.bf16.mxu1 %v19463_v8  ;;  %3716 = vmatprep.subr.bf16.mxu0 %v19466_v35 }
 0x200   :  { %3664 = vmatpush1.bf16.msra.mxu1 %v19461_v45  ;;  %3717 = vmatpush1.bf16.msra.mxu0 %v19464_v39  ;;  %v19515_v45 = vld [vmem:[%s27726_s2 + $0x920] ss:$16 sps:$4 sm:$0xff]   ;;  %v19518_v39 = vld [vmem:[%s27726_s2 + $0x928] ss:$16 sps:$4 sm:$0xff]  }
 0x201   :  { %3665 = vmatprep.subr.bf16.mxu1 %v19469_v44  ;;  %3718 = vmatprep.subr.bf16.mxu0 %v19472_v9  ;;  %v16551_v44 = vrot.slane %v19542_v58, 9  ;;  %v19523_v9 = vld [vmem:[%s27726_s2 + $0x904] ss:$16 sps:$4 sm:$0xff]  }
 0x204   :  { %3666 = vmatpush1.bf16.msra.mxu1 %v19467_v10  ;;  %3719 = vmatpush1.bf16.msra.mxu0 %v19470_v11  ;;  %v19526_v10 = vld [vmem:[%s27726_s2 + $0x90c] ss:$16 sps:$4 sm:$0xff]   ;;  %v3247_v11 = vrot.slane %v19544_v59, 5 }
 0x205   :  { %3667 = vmatprep.subr.bf16.mxu1 %v19475_v12  ;;  %3720 = vmatprep.subr.bf16.mxu0 %v19478_v13  ;;  %v16548_v12 = vrot.slane %v19533_v63, 9  ;;  %v23132_v13 = vld [vmem:[#allocation2 + $0x1b8] ss:$-312 sps:$4 sm:$0xcc]   ;;  %v19550_v63 = vld [vmem:[%s27726_s2 + $0xacc] ss:$16 sps:$4 sm:$0xff]  }
 0x207   :  { %v23100_v37 = vpop.f32.mrf.mxu1  ;;  %v23102_v60 = vpop.f32.mrf.mxu0 }
 0x208   :  { %3668 = vmatpush1.bf16.msra.mxu1 %v19473_v15  ;;  %3721 = vmatpush1.bf16.msra.mxu0 %v19476_v16  ;;  %v3235_v15 = vrot.slane %v19535_v2, 5  ;;  %v16549_v16 = vrot.slane %v19536_v3, 9 }
 0x209   :  { %3669 = vmatprep.subr.bf16.mxu1 %v19481_v17  ;;  %3722 = vmatprep.subr.bf16.mxu0 %v19484_v18  ;;  %v23116_v8 = vpop.f32.mrf.mxu1  ;;  %v23118_v35 = vpop.f32.mrf.mxu0  ;;  %v3239_v17 = vrot.slane %v19538_v5, 5  ;;  %v19568_v18 = vld [vmem:[#allocation2 + $0x1bc] ss:$-312 sps:$4 sm:$0x33]  }
 0x20a   :  { %v3837_v58 = vrot.slane %v19568_v18, 6  ;;  %v19553_v18 = vld [vmem:[%s27726_s2 + $0xaa4] ss:$16 sps:$4 sm:$0xff]  }
 0x20c   :  { %3670 = vmatpush2.bf16.msra.mxu1 %v19479_v19  ;;  %3723 = vmatpush2.bf16.msra.mxu0 %v19482_v20  ;;  %v23134_v19 = vpop.f32.mrf.mxu1  ;;  %v23136_v20 = vpop.f32.mrf.mxu0 }
 0x20d   :  { %3671 = vmatprep.subr.bf16.mxu1 %v19487_v21  ;;  %3724 = vmatprep.subr.bf16.mxu0 %v19490_v22  ;;  %v19521_v21 = vld [vmem:[%s27726_s2 + $0x900] ss:$16 sps:$4 sm:$0xff]   ;;  %v19524_v22 = vld [vmem:[%s27726_s2 + $0x908] ss:$16 sps:$4 sm:$0xff]  }
 0x210   :  { %3672 = vmatpush2.bf16.msra.mxu1 %v19485_v23  ;;  %3725 = vmatpush2.bf16.msra.mxu0 %v19488_v24  ;;  %v19560_v23 = vld [vmem:[#allocation2] ss:$584 sps:$4 sm:$0xcc]   ;;  %v19562_v24 = vld [vmem:[#allocation2 + $0x4] ss:$584 sps:$4 sm:$0x33]  }
 0x211   :  { %3673 = vmatprep.subr.bf16.mxu1 %v19493_v25  ;;  %3726 = vmatprep.subr.bf16.mxu0 %v19496_v29  ;;  %v19529_v25 = vld [vmem:[%s27726_s2 + $0xae4] ss:$16 sps:$4 sm:$0xff]   ;;  %v19532_v29 = vld [vmem:[%s27726_s2 + $0xaec] ss:$16 sps:$4 sm:$0xff]  }
 0x214   :  { %3674 = vmatpush2.bf16.msra.mxu1 %v19491_v30  ;;  %3727 = vmatpush2.bf16.msra.mxu0 %v19494_v33  ;;  %v23152_v30 = vsel %vm22240_vm13, %v16550_v6, %v3243_v7  ;;  %v23156_v33 = vsel %vm22240_vm13, %v16551_v44, %v3247_v11 }
 0x215   :  { %3675 = vmatprep.subr.bf16.mxu1 %v19499_v36  ;;  %3728 = vmatprep.subr.bf16.mxu0 %v19502_v40  ;;  %v19563_v36 = vld [vmem:[#allocation2 + $0x220] ss:$56 sps:$4 sm:$0xcc]   ;;  %v19565_v40 = vld [vmem:[#allocation2 + $0x224] ss:$56 sps:$4 sm:$0x33]  }
 0x216   :  { %v16682_v5 = vrot.slane %v19563_v36, 10  ;;  %v3833_v6 = vrot.slane %v19565_v40, 6  ;;  %v19554_v36 = vld [vmem:[%s27726_s2 + $0xaa8] ss:$16 sps:$4 sm:$0xff]  }
 0x218   :  { %3676 = vmatpush2.bf16.msra.mxu1 %v19497_v43  ;;  %3729 = vmatpush2.bf16.msra.mxu0 %v19500_v47  ;;  %v3251_v43 = vcombine.low %v22939_v56, %v22922_v14  ;;  %v23160_v47 = vld [vmem:[#allocation2 + $0x128] ss:$-72 sps:$4 sm:$0xcc]   ;;  %v23174_v14 = vpop.f32.mrf.mxu0  ;;  %v3256_v56 = vcombine.high %v23152_v30, %v23156_v33 }
 0x219   :  { %3677 = vmatprep.subr.bf16.mxu1 %v19505_v48  ;;  %3730 = vmatprep.subr.bf16.mxu0 %v19508_v49  ;;  %v23164_v48 = vsel %vm22240_vm13, %v16548_v12, %v3235_v15  ;;  %v23168_v49 = vsel %vm22240_vm13, %v16549_v16, %v3239_v17  ;;  %v16680_v44 = vrot.slane %v23160_v47, 10  ;;  %v19545_v16 = vld [vmem:[%s27726_s2 + $0xac0] ss:$16 sps:$4 sm:$0xff]   ;;  %v19548_v17 = vld [vmem:[%s27726_s2 + $0xac8] ss:$16 sps:$4 sm:$0xff]  }
 0x21c   :  { %3678 = vmatpush2.bf16.msra.mxu1 %v19503_v46  ;;  %3731 = vmatpush2.bf16.msra.mxu0 %v19506_v4  ;;  %v3249_v46 = vcombine.low %v22954_v38, %v22935_v55  ;;  %v23172_v4 = vpop.f32.mrf.mxu1 }
 0x21d   :  { %3679 = vmatprep.subr.bf16.mxu1 %v19511_v50  ;;  %3732 = vmatprep.subr.bf16.mxu0 %v19514_v51  ;;  %v19559_v50 = vld [vmem:[#allocation2 + $0x12c] ss:$-72 sps:$4 sm:$0x33]   ;;  %v16683_v51 = vrot.slane %v23132_v13, 10  ;;  %v3255_v13 = vcombine.low %v23152_v30, %v23156_v33  ;;  %v19551_v33 = vld [vmem:[%s27726_s2 + $0xaa0] ss:$16 sps:$4 sm:$0xff]  }
 0x21e   :  { %v3265_v55 = vpack.c.bf16 %v3251_v43, %v3249_v46 }
 0x220   :  { %3680 = vmatpush2.bf16.msra.mxu1 %v19509_v61  ;;  %3733 = vmatpush2.bf16.msra.mxu0 %v19512_v62  ;;  %v3254_v61 = vcombine.high %v23164_v48, %v23168_v49  ;;  %v19547_v62 = vld [vmem:[%s27726_s2 + $0xac4] ss:$16 sps:$4 sm:$0xff]  }
 0x221   :  { %3681 = vmatprep.subr.bf16.mxu1 %v19517_v0  ;;  %3734 = vmatprep.subr.bf16.mxu0 %v19520_v1  ;;  %v16681_v0 = vrot.slane %v19560_v23, 10  ;;  %v3829_v1 = vrot.slane %v19562_v24, 6  ;;  %v3253_v24 = vcombine.low %v23164_v48, %v23168_v49 }
 0x222   :  { %v3268_v7 = vpack.c.bf16 %v3256_v56, %v3254_v61  ;;  %v19583_v61 = vld [vmem:[%s27726_s2 + $0xa44] ss:$16 sps:$4 sm:$0xff]  }
 0x223   :  { %v23214_v15 = vsel %vm22494_vm6, %v16681_v0, %v3829_v1  ;;  %v3267_v48 = vpack.c.bf16 %v3255_v13, %v3253_v24  ;;  %v19584_v0 = vld [vmem:[%s27726_s2 + $0xa48] ss:$16 sps:$4 sm:$0xff]   ;;  %v19589_v1 = vld [vmem:[%s27726_s2 + $0xa24] ss:$16 sps:$4 sm:$0xff]   ;;  %v19599_v13 = vld [vmem:[%s27726_s2 + $0xbe0] ss:$16 sps:$4 sm:$0xff]  }
 0x224   :  { %3682 = vmatpush2.bf16.msra.mxu1 %v19515_v45  ;;  %3735 = vmatpush2.bf16.msra.mxu0 %v19518_v39  ;;  %v19613_v24 = vld [vmem:[%s27726_s2 + $0xba4] ss:$16 sps:$4 sm:$0xff]  }
 0x225   :  { %3683 = vmatprep.subr.bf16.mxu1 %v19523_v9  ;;  %3736 = vmatprep.subr.bf16.mxu0 %v19526_v10  ;;  %v3825_v10 = vrot.slane %v19559_v50, 6  ;;  %v19571_v50 = vld [vmem:[%s27726_s2 + $0xa84] ss:$16 sps:$4 sm:$0xff]  }
 0x228   :  { %3684 = vmatpush2.bf16.msra.mxu1 %v19521_v21  ;;  %3737 = vmatpush2.bf16.msra.mxu0 %v19524_v22  ;;  %v1921_v38 = vpop.f32.mrf.mxu1  ;;  %v1974_v59 = vpop.f32.mrf.mxu0  ;;  %v23233_v21 = vsel %vm22494_vm6, %v16682_v5, %v3833_v6  ;;  %v19556_v22 = vld [vmem:[%s27726_s2 + $0xaac] ss:$16 sps:$4 sm:$0xff]   ;;  %v19587_v6 = vld [vmem:[%s27726_s2 + $0xa20] ss:$16 sps:$4 sm:$0xff]  }
 0x229   :  { %v23194_v2 = vadd.f32 %v1921_v38, %v23045_v27  ;;  %v23197_v3 = vadd.f32 %v1974_v59, %v23047_v28  ;;  %4259 = vmatprep.subr.bf16.mxu1 %v19529_v25  ;;  %4312 = vmatprep.subr.bf16.mxu0 %v19532_v29  ;;  %v23208_v28 = vsel %vm22494_vm6, %v16683_v51, %v3837_v58  ;;  %v19574_v51 = vld [vmem:[%s27726_s2 + $0xa8c] ss:$16 sps:$4 sm:$0xff]   ;;  %v19577_v38 = vld [vmem:[%s27726_s2 + $0xa64] ss:$16 sps:$4 sm:$0xff]   ;;  %v19578_v59 = vld [vmem:[%s27726_s2 + $0xa68] ss:$16 sps:$4 sm:$0xff]  }
 0x22a   :  { %v1923_v45 = vpop.f32.mrf.mxu1  ;;  %v1976_v39 = vpop.f32.mrf.mxu0  ;;  %v3858_v23 = vcombine.high %v23233_v21, %v23208_v28  ;;  %v23248_v25 = vsel %vm22494_vm6, %v16680_v44, %v3825_v10  ;;  %v19592_v5 = vld [vmem:[%s27726_s2 + $0xa2c] ss:$16 sps:$4 sm:$0xff]   ;;  %v19593_v44 = vld [vmem:[%s27726_s2 + $0xa00] ss:$16 sps:$4 sm:$0xff]   ;;  %v19596_v10 = vld [vmem:[%s27726_s2 + $0xa08] ss:$16 sps:$4 sm:$0xff]  }
 0x22b   :  { %3686 = vmatmul.mubr.bf16.vlgmr.msra.gmra.mxu1 %v3265_v55  ;;  %3739 = vmatmul.mubr.bf16.vlgmr.msra.gmra.mxu0 %v3265_v55  ;;  %v23201_v9 = vadd.f32 %v1923_v45, %v23055_v31  ;;  %v23204_v27 = vadd.f32 %v1976_v39, %v23057_v32  ;;  %v3856_v40 = vcombine.high %v23248_v25, %v23214_v15  ;;  %v19595_v45 = vld [vmem:[%s27726_s2 + $0xa04] ss:$16 sps:$4 sm:$0xff]   ;;  %v19598_v39 = vld [vmem:[%s27726_s2 + $0xa0c] ss:$16 sps:$4 sm:$0xff]  }
 0x22c   :  { %3695 = vmatprep.mubr.bf16.mxu1 %v3268_v7  ;;  %3748 = vmatprep.mubr.bf16.mxu0 %v3268_v7  ;;  %v1925_v11 = vpop.f32.mrf.mxu1  ;;  %v1978_v12 = vpop.f32.mrf.mxu0  ;;  %v19590_v7 = vld [vmem:[%s27726_s2 + $0xa28] ss:$16 sps:$4 sm:$0xff]  }
 0x22d   :  { %4260 = vmatpush1.bf16.msra.mxu1 %v19527_v52  ;;  %4313 = vmatpush1.bf16.msra.mxu0 %v19530_v53  ;;  %v23217_v31 = vadd.f32 %v1925_v11, %v23068_v41  ;;  %v23220_v32 = vadd.f32 %v1978_v12, %v23070_v42  ;;  %v3872_v49 = vpack.c.bf16 %v3858_v23, %v3856_v40  ;;  %v19601_v11 = vld [vmem:[%s27726_s2 + $0xbe4] ss:$16 sps:$4 sm:$0xff]   ;;  %v19604_v12 = vld [vmem:[%s27726_s2 + $0xbec] ss:$16 sps:$4 sm:$0xff]   ;;  %v19608_v23 = vld [vmem:[%s27726_s2 + $0xbc8] ss:$16 sps:$4 sm:$0xff]  }
 0x22e   :  { %4261 = vmatprep.subr.bf16.mxu1 %v19547_v62  ;;  %4314 = vmatprep.subr.bf16.mxu0 %v19550_v63  ;;  %v23235_v41 = vpop.f32.mrf.mxu1  ;;  %v23237_v42 = vpop.f32.mrf.mxu0  ;;  %v19586_v62 = vld [vmem:[%s27726_s2 + $0xa4c] ss:$16 sps:$4 sm:$0xff]   ;;  %v19581_v63 = vld [vmem:[%s27726_s2 + $0xa40] ss:$16 sps:$4 sm:$0xff]  }
 0x22f   :  { %v19622_v40 = vld [vmem:[%s27726_s2 + $0xb8c] ss:$16 sps:$4 sm:$0xff]  }
 0x230   :  { %v1931_v29 = vpop.f32.mrf.mxu1  ;;  %v1984_v30 = vpop.f32.mrf.mxu0 }
 0x231   :  { %4262 = vmatpush1.bf16.msra.mxu1 %v19545_v16  ;;  %4315 = vmatpush1.bf16.msra.mxu0 %v19548_v17  ;;  %v23259_v43 = vadd.f32 %v1931_v29, %v23100_v37  ;;  %v23262_v47 = vadd.f32 %v1984_v30, %v23102_v60  ;;  %v19602_v16 = vld [vmem:[%s27726_s2 + $0xbe8] ss:$16 sps:$4 sm:$0xff]   ;;  %v19607_v17 = vld [vmem:[%s27726_s2 + $0xbc4] ss:$16 sps:$4 sm:$0xff]   ;;  %v19616_v29 = vld [vmem:[%s27726_s2 + $0xbac] ss:$16 sps:$4 sm:$0xff]  }
 0x232   :  { %4263 = vmatprep.subr.bf16.mxu1 %v19553_v18  ;;  %4316 = vmatprep.subr.bf16.mxu0 %v19556_v22  ;;  %v1933_v46 = vpop.f32.mrf.mxu1  ;;  %v1986_v56 = vpop.f32.mrf.mxu0  ;;  %v19610_v18 = vld [vmem:[%s27726_s2 + $0xbcc] ss:$16 sps:$4 sm:$0xff]   ;;  %v19605_v22 = vld [vmem:[%s27726_s2 + $0xbc0] ss:$16 sps:$4 sm:$0xff]  }
 0x233   :  { %3696 = vmatmul.mubr.bf16.gmra.mxu1 %v3267_v48  ;;  %3749 = vmatmul.mubr.bf16.gmra.mxu0 %v3267_v48  ;;  %v23271_v37 = vadd.f32 %v1933_v46, %v23116_v8  ;;  %v23274_v60 = vadd.f32 %v1986_v56, %v23118_v35  ;;  %v19569_v8 = vld [vmem:[%s27726_s2 + $0xa80] ss:$16 sps:$4 sm:$0xff]   ;;  %v19572_v35 = vld [vmem:[%s27726_s2 + $0xa88] ss:$16 sps:$4 sm:$0xff]   ;;  %v19625_v46 = vld [vmem:[%s27726_s2 + $0xb64] ss:$16 sps:$4 sm:$0xff]  }
 0x234   :  { %4291 = vmatprep.mubr.bf16.mxu1 %v3872_v49  ;;  %4344 = vmatprep.mubr.bf16.mxu0 %v3872_v49  ;;  %v1935_v52 = vpop.f32.mrf.mxu1  ;;  %v1988_v53 = vpop.f32.mrf.mxu0  ;;  %v19611_v30 = vld [vmem:[%s27726_s2 + $0xba0] ss:$16 sps:$4 sm:$0xff]   ;;  %v19620_v49 = vld [vmem:[%s27726_s2 + $0xb88] ss:$16 sps:$4 sm:$0xff]   ;;  %v19628_v56 = vld [vmem:[%s27726_s2 + $0xb6c] ss:$16 sps:$4 sm:$0xff]  }
 0x235   :  { %4264 = vmatpush1.bf16.msra.mxu1 %v19551_v33  ;;  %4317 = vmatpush1.bf16.msra.mxu0 %v19554_v36  ;;  %v23277_v58 = vadd.f32 %v1935_v52, %v23134_v19  ;;  %v23280_v55 = vadd.f32 %v1988_v53, %v23136_v20  ;;  %v19580_v19 = vld [vmem:[%s27726_s2 + $0xa6c] ss:$16 sps:$4 sm:$0xff]   ;;  %v19575_v20 = vld [vmem:[%s27726_s2 + $0xa60] ss:$16 sps:$4 sm:$0xff]   ;;  %v19614_v33 = vld [vmem:[%s27726_s2 + $0xba8] ss:$16 sps:$4 sm:$0xff]  }
 0x236   :  { %4265 = vmatprep.subr.bf16.mxu1 %v19571_v50  ;;  %4318 = vmatprep.subr.bf16.mxu0 %v19574_v51  ;;  %v19619_v36 = vld [vmem:[%s27726_s2 + $0xb84] ss:$16 sps:$4 sm:$0xff]   ;;  %v19617_v48 = vld [vmem:[%s27726_s2 + $0xb80] ss:$16 sps:$4 sm:$0xff]   ;;  %v19626_v51 = vld [vmem:[%s27726_s2 + $0xb68] ss:$16 sps:$4 sm:$0xff]  }
 0x237   :  { %v19623_v50 = vld [vmem:[%s27726_s2 + $0xb60] ss:$16 sps:$4 sm:$0xff]   ;;  %v19631_v52 = vld [vmem:[%s27726_s2 + $0xb44] ss:$16 sps:$4 sm:$0xff]   ;;  %v19634_v53 = vld [vmem:[%s27726_s2 + $0xb4c] ss:$16 sps:$4 sm:$0xff]  }
 0x239   :  { %4266 = vmatpush1.bf16.msra.mxu1 %v19569_v8  ;;  %4319 = vmatpush1.bf16.msra.mxu0 %v19572_v35  ;;  %v19659_v8 = vld [vmem:[#allocation2 + $0x1e0] ss:$-144 sps:$4 sm:$0xcc]   ;;  %v19661_v35 = vld [vmem:[#allocation2 + $0x1e4] ss:$-144 sps:$4 sm:$0x33]  }
 0x23a   :  { %4267 = vmatprep.subr.bf16.mxu1 %v19577_v38  ;;  %4320 = vmatprep.subr.bf16.mxu0 %v19580_v19  ;;  %v19662_v38 = vld [vmem:[#allocation2 + $0xc0] ss:$176 sps:$4 sm:$0xcc]   ;;  %v19664_v19 = vld [vmem:[#allocation2 + $0xc4] ss:$176 sps:$4 sm:$0x33]  }
 0x23d   :  { %4268 = vmatpush1.bf16.msra.mxu1 %v19575_v20  ;;  %4321 = vmatpush1.bf16.msra.mxu0 %v19578_v59  ;;  %v19629_v20 = vld [vmem:[%s27726_s2 + $0xb40] ss:$16 sps:$4 sm:$0xff]   ;;  %v19632_v59 = vld [vmem:[%s27726_s2 + $0xb48] ss:$16 sps:$4 sm:$0xff]  }
 0x23e   :  { %4269 = vmatprep.subr.bf16.mxu1 %v19583_v61  ;;  %4322 = vmatprep.subr.bf16.mxu0 %v19586_v62  ;;  %v19653_v61 = vld [vmem:[#allocation2 + $0x298] ss:$-552 sps:$4 sm:$0xcc]   ;;  %v19655_v62 = vld [vmem:[#allocation2 + $0x29c] ss:$-552 sps:$4 sm:$0x33]  }
 0x241   :  { %4270 = vmatpush1.bf16.msra.mxu1 %v19581_v63  ;;  %4323 = vmatpush1.bf16.msra.mxu0 %v19584_v0  ;;  %v19656_v63 = vld [vmem:[#allocation2 + $0xa0] ss:$472 sps:$4 sm:$0xcc]   ;;  %v19637_v0 = vld [vmem:[%s27726_s2 + $0xb24] ss:$16 sps:$4 sm:$0xff]  }
 0x242   :  { %4271 = vmatprep.subr.bf16.mxu1 %v19589_v1  ;;  %4324 = vmatprep.subr.bf16.mxu0 %v19592_v5  ;;  %v19640_v1 = vld [vmem:[%s27726_s2 + $0xb2c] ss:$16 sps:$4 sm:$0xff]  }
 0x243   :  { %v19658_v5 = vld [vmem:[#allocation2 + $0xa4] ss:$472 sps:$4 sm:$0x33]  }
 0x245   :  { %4272 = vmatpush1.bf16.msra.mxu1 %v19587_v6  ;;  %4325 = vmatpush1.bf16.msra.mxu0 %v19590_v7  ;;  %v16686_v6 = vrot.slane %v19659_v8, 10  ;;  %v3849_v7 = vrot.slane %v19661_v35, 6  ;;  %v19667_v8 = vld [vmem:[%s27726_s2 + $0xcc4] ss:$16 sps:$4 sm:$0xff]  }
 0x246   :  { %4273 = vmatprep.subr.bf16.mxu1 %v19595_v45  ;;  %4326 = vmatprep.subr.bf16.mxu0 %v19598_v39  ;;  %v16687_v45 = vrot.slane %v19662_v38, 10  ;;  %v19635_v39 = vld [vmem:[%s27726_s2 + $0xb20] ss:$16 sps:$4 sm:$0xff]   ;;  %v19670_v38 = vld [vmem:[%s27726_s2 + $0xccc] ss:$16 sps:$4 sm:$0xff]  }
 0x249   :  { %4274 = vmatpush1.bf16.msra.mxu1 %v19593_v44  ;;  %4327 = vmatpush1.bf16.msra.mxu0 %v19596_v10  ;;  %v19638_v44 = vld [vmem:[%s27726_s2 + $0xb28] ss:$16 sps:$4 sm:$0xff]   ;;  %v3853_v10 = vrot.slane %v19664_v19, 6 }
 0x24a   :  { %4275 = vmatprep.subr.bf16.mxu1 %v19601_v11  ;;  %4328 = vmatprep.subr.bf16.mxu0 %v19604_v12  ;;  %v16684_v11 = vrot.slane %v19653_v61, 10  ;;  %v3841_v12 = vrot.slane %v19655_v62, 6 }
 0x24d   :  { %4276 = vmatpush2.bf16.msra.mxu1 %v19599_v13  ;;  %4329 = vmatpush2.bf16.msra.mxu0 %v19602_v16  ;;  %v16685_v13 = vrot.slane %v19656_v63, 10  ;;  %v19643_v16 = vld [vmem:[%s27726_s2 + $0xb04] ss:$16 sps:$4 sm:$0xff]  }
 0x24e   :  { %4277 = vmatprep.subr.bf16.mxu1 %v19607_v17  ;;  %4330 = vmatprep.subr.bf16.mxu0 %v19610_v18  ;;  %v19646_v17 = vld [vmem:[%s27726_s2 + $0xb0c] ss:$16 sps:$4 sm:$0xff]   ;;  %v3845_v18 = vrot.slane %v19658_v5, 6  ;;  %v19678_v5 = vld [vmem:[#allocation2 + $0x130] ss:$216 sps:$4 sm:$0xff]  }
 0x251   :  { %4278 = vmatpush2.bf16.msra.mxu1 %v19605_v22  ;;  %4331 = vmatpush2.bf16.msra.mxu0 %v19608_v23  ;;  %v19641_v22 = vld [vmem:[%s27726_s2 + $0xb00] ss:$16 sps:$4 sm:$0xff]   ;;  %v19644_v23 = vld [vmem:[%s27726_s2 + $0xb08] ss:$16 sps:$4 sm:$0xff]  }
 0x252   :  { %4279 = vmatprep.subr.bf16.mxu1 %v19613_v24  ;;  %4332 = vmatprep.subr.bf16.mxu0 %v19616_v29  ;;  %v23434_v24 = vsel %vm22494_vm6, %v16686_v6, %v3849_v7  ;;  %v23438_v29 = vsel %vm22494_vm6, %v16687_v45, %v3853_v10  ;;  %v19676_v7 = vld [vmem:[%s27726_s2 + $0xcac] ss:$16 sps:$4 sm:$0xff]   ;;  %v19677_v10 = vld [vmem:[#allocation2 + $0x2b8] ss:$-592 sps:$4 sm:$0xff]  }
 0x255   :  { %4280 = vmatpush2.bf16.msra.mxu1 %v19611_v30  ;;  %4333 = vmatpush2.bf16.msra.mxu0 %v19614_v33  ;;  %v3857_v30 = vcombine.low %v23233_v21, %v23208_v28  ;;  %v19649_v33 = vld [vmem:[%s27726_s2 + $0xce4] ss:$16 sps:$4 sm:$0xff]   ;;  %v3862_v28 = vcombine.high %v23434_v24, %v23438_v29  ;;  %v3855_v21 = vcombine.low %v23248_v25, %v23214_v15 }
 0x256   :  { %4281 = vmatprep.subr.bf16.mxu1 %v19619_v36  ;;  %4334 = vmatprep.subr.bf16.mxu0 %v19622_v40  ;;  %v19652_v36 = vld [vmem:[%s27726_s2 + $0xcec] ss:$16 sps:$4 sm:$0xff]   ;;  %v3842_v40 = vsel %vm22494_vm6, %v16684_v11, %v3841_v12 }
 0x257   :  { %v3871_v35 = vpack.c.bf16 %v3857_v30, %v3855_v21  ;;  %v19693_v21 = vld [vmem:[%s27726_s2 + $0xc44] ss:$16 sps:$4 sm:$0xff]  }
 0x259   :  { %4282 = vmatpush2.bf16.msra.mxu1 %v19617_v48  ;;  %4335 = vmatpush2.bf16.msra.mxu0 %v19620_v49  ;;  %v3846_v48 = vsel %vm22494_vm6, %v16685_v13, %v3845_v18  ;;  %v23452_v49 = vpop.f32.mrf.mxu1  ;;  %v19681_v13 = vld [vmem:[%s27726_s2 + $0xc84] ss:$16 sps:$4 sm:$0xff]  }
 0x25a   :  { %4283 = vmatprep.subr.bf16.mxu1 %v19625_v46  ;;  %4336 = vmatprep.subr.bf16.mxu0 %v19628_v56  ;;  %v23454_v46 = vpop.f32.mrf.mxu0  ;;  %v3859_v45 = vcombine.low %v3842_v40, %v3846_v48 }
 0x25d   :  { %4284 = vmatpush2.bf16.msra.mxu1 %v19623_v50  ;;  %4337 = vmatpush2.bf16.msra.mxu0 %v19626_v51  ;;  %v19647_v51 = vld [vmem:[%s27726_s2 + $0xce0] ss:$16 sps:$4 sm:$0xff]  }
 0x25e   :  { %4285 = vmatprep.subr.bf16.mxu1 %v19631_v52  ;;  %4338 = vmatprep.subr.bf16.mxu0 %v19634_v53  ;;  %v19650_v52 = vld [vmem:[%s27726_s2 + $0xce8] ss:$16 sps:$4 sm:$0xff]   ;;  %v3860_v53 = vcombine.high %v3842_v40, %v3846_v48  ;;  %v19687_v48 = vld [vmem:[%s27726_s2 + $0xc64] ss:$16 sps:$4 sm:$0xff]  }
 0x260   :  { %v3874_v19 = vpack.c.bf16 %v3862_v28, %v3860_v53  ;;  %v19688_v28 = vld [vmem:[%s27726_s2 + $0xc68] ss:$16 sps:$4 sm:$0xff]   ;;  %v19702_v53 = vld [vmem:[%s27726_s2 + $0xc2c] ss:$16 sps:$4 sm:$0xff]  }
 0x261   :  { %4286 = vmatpush2.bf16.msra.mxu1 %v19629_v20  ;;  %4339 = vmatpush2.bf16.msra.mxu0 %v19632_v59 }
 0x262   :  { %4287 = vmatprep.subr.bf16.mxu1 %v19637_v0  ;;  %4340 = vmatprep.subr.bf16.mxu0 %v19640_v1  ;;  %v3861_v1 = vcombine.low %v23434_v24, %v23438_v29 }
 0x265   :  { %4288 = vmatpush2.bf16.msra.mxu1 %v19635_v39  ;;  %4341 = vmatpush2.bf16.msra.mxu0 %v19638_v44  ;;  %v19671_v39 = vld [vmem:[%s27726_s2 + $0xca0] ss:$16 sps:$4 sm:$0xff]   ;;  %v19674_v44 = vld [vmem:[%s27726_s2 + $0xca8] ss:$16 sps:$4 sm:$0xff]  }
 0x266   :  { %4289 = vmatprep.subr.bf16.mxu1 %v19643_v16  ;;  %4342 = vmatprep.subr.bf16.mxu0 %v19646_v17  ;;  %v19684_v16 = vld [vmem:[%s27726_s2 + $0xc8c] ss:$16 sps:$4 sm:$0xff]  }
 0x269   :  { %4290 = vmatpush2.bf16.msra.mxu1 %v19641_v22  ;;  %4343 = vmatpush2.bf16.msra.mxu0 %v19644_v23  ;;  %v2514_v56 = vpop.f32.mrf.mxu1  ;;  %v2567_v50 = vpop.f32.mrf.mxu0  ;;  %v3873_v22 = vpack.c.bf16 %v3861_v1, %v3859_v45  ;;  %v4439_v23 = vpack.c.bf16 %v19678_v5, %v19677_v10  ;;  %v19717_v1 = vld [vmem:[%s27726_s2 + $0xdc4] ss:$16 sps:$4 sm:$0xff]   ;;  %v19720_v5 = vld [vmem:[%s27726_s2 + $0xdcc] ss:$16 sps:$4 sm:$0xff]   ;;  %v19724_v10 = vld [vmem:[%s27726_s2 + $0xda8] ss:$16 sps:$4 sm:$0xff]  }
 0x26a   :  { %v23470_v15 = vadd.f32 %v2514_v56, %v23194_v2  ;;  %v23473_v25 = vadd.f32 %v2567_v50, %v23197_v3  ;;  %4827 = vmatprep.subr.bf16.mxu1 %v19649_v33  ;;  %4880 = vmatprep.subr.bf16.mxu0 %v19652_v36  ;;  %v19696_v56 = vld [vmem:[%s27726_s2 + $0xc4c] ss:$16 sps:$4 sm:$0xff]   ;;  %v19691_v50 = vld [vmem:[%s27726_s2 + $0xc40] ss:$16 sps:$4 sm:$0xff]   ;;  %v19723_v45 = vld [vmem:[%s27726_s2 + $0xda4] ss:$16 sps:$4 sm:$0xff]  }
 0x26b   :  { %v2516_v20 = vpop.f32.mrf.mxu1  ;;  %v2569_v59 = vpop.f32.mrf.mxu0 }
 0x26c   :  { %4292 = vmatmul.mubr.bf16.vlgmr.msra.gmra.mxu1 %v3871_v35  ;;  %4345 = vmatmul.mubr.bf16.vlgmr.msra.gmra.mxu0 %v3871_v35  ;;  %v23479_v61 = vadd.f32 %v2516_v20, %v23201_v9  ;;  %v23482_v2 = vadd.f32 %v2569_v59, %v23204_v27  ;;  %v19665_v9 = vld [vmem:[%s27726_s2 + $0xcc0] ss:$16 sps:$4 sm:$0xff]   ;;  %v19668_v27 = vld [vmem:[%s27726_s2 + $0xcc8] ss:$16 sps:$4 sm:$0xff]  }
 0x26d   :  { %4301 = vmatprep.mubr.bf16.mxu1 %v3874_v19  ;;  %4354 = vmatprep.mubr.bf16.mxu0 %v3874_v19  ;;  %v2518_v3 = vpop.f32.mrf.mxu1  ;;  %v2571_v62 = vpop.f32.mrf.mxu0  ;;  %v19700_v35 = vld [vmem:[%s27726_s2 + $0xc28] ss:$16 sps:$4 sm:$0xff]   ;;  %v19708_v19 = vld [vmem:[%s27726_s2 + $0xc0c] ss:$16 sps:$4 sm:$0xff]   ;;  %v19703_v20 = vld [vmem:[%s27726_s2 + $0xc00] ss:$16 sps:$4 sm:$0xff]  }
 0x26e   :  { %4828 = vmatpush1.bf16.msra.mxu1 %v19647_v51  ;;  %4881 = vmatpush1.bf16.msra.mxu0 %v19650_v52  ;;  %v23485_v63 = vadd.f32 %v2518_v3, %v23217_v31  ;;  %v23488_v0 = vadd.f32 %v2571_v62, %v23220_v32  ;;  %v19673_v32 = vld [vmem:[%s27726_s2 + $0xca4] ss:$16 sps:$4 sm:$0xff]   ;;  %v19694_v51 = vld [vmem:[%s27726_s2 + $0xc48] ss:$16 sps:$4 sm:$0xff]   ;;  %v19714_v62 = vld [vmem:[%s27726_s2 + $0xdec] ss:$16 sps:$4 sm:$0xff]  }
 0x26f   :  { %4829 = vmatprep.subr.bf16.mxu1 %v19667_v8  ;;  %4882 = vmatprep.subr.bf16.mxu0 %v19670_v38  ;;  %v23498_v6 = vpop.f32.mrf.mxu1  ;;  %v23500_v31 = vpop.f32.mrf.mxu0  ;;  %v19699_v52 = vld [vmem:[%s27726_s2 + $0xc24] ss:$16 sps:$4 sm:$0xff]   ;;  %v19697_v8 = vld [vmem:[%s27726_s2 + $0xc20] ss:$16 sps:$4 sm:$0xff]   ;;  %v19706_v59 = vld [vmem:[%s27726_s2 + $0xc08] ss:$16 sps:$4 sm:$0xff]  }
 0x270   :  { %v19705_v38 = vld [vmem:[%s27726_s2 + $0xc04] ss:$16 sps:$4 sm:$0xff]  }
 0x271   :  { %v2524_v11 = vpop.f32.mrf.mxu1  ;;  %v2577_v12 = vpop.f32.mrf.mxu0  ;;  %v19711_v3 = vld [vmem:[%s27726_s2 + $0xde4] ss:$16 sps:$4 sm:$0xff]  }
 0x272   :  { %4830 = vmatpush1.bf16.msra.mxu1 %v19665_v9  ;;  %4883 = vmatpush1.bf16.msra.mxu0 %v19668_v27  ;;  %v23521_v17 = vadd.f32 %v2524_v11, %v23259_v43  ;;  %v23524_v18 = vadd.f32 %v2577_v12, %v23262_v47  ;;  %v19709_v9 = vld [vmem:[%s27726_s2 + $0xde0] ss:$16 sps:$4 sm:$0xff]   ;;  %v19712_v27 = vld [vmem:[%s27726_s2 + $0xde8] ss:$16 sps:$4 sm:$0xff]   ;;  %v19729_v11 = vld [vmem:[%s27726_s2 + $0xd84] ss:$16 sps:$4 sm:$0xff]  }
 0x273   :  { %4831 = vmatprep.subr.bf16.mxu1 %v19673_v32  ;;  %4884 = vmatprep.subr.bf16.mxu0 %v19676_v7  ;;  %v2526_v24 = vpop.f32.mrf.mxu1  ;;  %v2579_v29 = vpop.f32.mrf.mxu0  ;;  %v19715_v32 = vld [vmem:[%s27726_s2 + $0xdc0] ss:$16 sps:$4 sm:$0xff]   ;;  %v19718_v7 = vld [vmem:[%s27726_s2 + $0xdc8] ss:$16 sps:$4 sm:$0xff]   ;;  %v19732_v12 = vld [vmem:[%s27726_s2 + $0xd8c] ss:$16 sps:$4 sm:$0xff]  }
 0x274   :  { %4302 = vmatmul.mubr.bf16.gmra.mxu1 %v3873_v22  ;;  %4355 = vmatmul.mubr.bf16.gmra.mxu0 %v3873_v22  ;;  %v23527_v30 = vadd.f32 %v2526_v24, %v23271_v37  ;;  %v23530_v33 = vadd.f32 %v2579_v29, %v23274_v60  ;;  %v19679_v37 = vld [vmem:[%s27726_s2 + $0xc80] ss:$16 sps:$4 sm:$0xff]   ;;  %v19682_v60 = vld [vmem:[%s27726_s2 + $0xc88] ss:$16 sps:$4 sm:$0xff]   ;;  %v19735_v22 = vld [vmem:[%s27726_s2 + $0xd64] ss:$16 sps:$4 sm:$0xff]  }
 0x275   :  { %4859 = vmatprep.mubr.bf16.mxu1 %v4439_v23  ;;  %4912 = vmatprep.mubr.bf16.mxu0 %v4439_v23  ;;  %v2528_v43 = vpop.f32.mrf.mxu1  ;;  %v2581_v36 = vpop.f32.mrf.mxu0  ;;  %v19738_v23 = vld [vmem:[%s27726_s2 + $0xd6c] ss:$16 sps:$4 sm:$0xff]   ;;  %v19733_v24 = vld [vmem:[%s27726_s2 + $0xd60] ss:$16 sps:$4 sm:$0xff]   ;;  %v19736_v29 = vld [vmem:[%s27726_s2 + $0xd68] ss:$16 sps:$4 sm:$0xff]  }
 0x276   :  { %4832 = vmatpush1.bf16.msra.mxu1 %v19671_v39  ;;  %4885 = vmatpush1.bf16.msra.mxu0 %v19674_v44  ;;  %v23533_v47 = vadd.f32 %v2528_v43, %v23277_v58  ;;  %v23536_v40 = vadd.f32 %v2581_v36, %v23280_v55  ;;  %v19690_v58 = vld [vmem:[%s27726_s2 + $0xc6c] ss:$16 sps:$4 sm:$0xff]   ;;  %v19685_v55 = vld [vmem:[%s27726_s2 + $0xc60] ss:$16 sps:$4 sm:$0xff]   ;;  %v19741_v43 = vld [vmem:[%s27726_s2 + $0xd44] ss:$16 sps:$4 sm:$0xff]  }
 0x277   :  { %4833 = vmatprep.subr.bf16.mxu1 %v19681_v13  ;;  %4886 = vmatprep.subr.bf16.mxu0 %v19684_v16  ;;  %v19726_v39 = vld [vmem:[%s27726_s2 + $0xdac] ss:$16 sps:$4 sm:$0xff]   ;;  %v19721_v44 = vld [vmem:[%s27726_s2 + $0xda0] ss:$16 sps:$4 sm:$0xff]   ;;  %v19730_v16 = vld [vmem:[%s27726_s2 + $0xd88] ss:$16 sps:$4 sm:$0xff]  }
 0x278   :  { %v19727_v13 = vld [vmem:[%s27726_s2 + $0xd80] ss:$16 sps:$4 sm:$0xff]   ;;  %v19744_v36 = vld [vmem:[%s27726_s2 + $0xd4c] ss:$16 sps:$4 sm:$0xff]  }
 0x27a   :  { %4834 = vmatpush1.bf16.msra.mxu1 %v19679_v37  ;;  %4887 = vmatpush1.bf16.msra.mxu0 %v19682_v60  ;;  %v19739_v37 = vld [vmem:[%s27726_s2 + $0xd40] ss:$16 sps:$4 sm:$0xff]   ;;  %v19742_v60 = vld [vmem:[%s27726_s2 + $0xd48] ss:$16 sps:$4 sm:$0xff]  }
 0x27b   :  { %4835 = vmatprep.subr.bf16.mxu1 %v19687_v48  ;;  %4888 = vmatprep.subr.bf16.mxu0 %v19690_v58  ;;  %v19747_v48 = vld [vmem:[%s27726_s2 + $0xd24] ss:$16 sps:$4 sm:$0xff]   ;;  %v19750_v58 = vld [vmem:[%s27726_s2 + $0xd2c] ss:$16 sps:$4 sm:$0xff]  }
 0x27e   :  { %4836 = vmatpush1.bf16.msra.mxu1 %v19685_v55  ;;  %4889 = vmatpush1.bf16.msra.mxu0 %v19688_v28  ;;  %v4955_v55 = vld [vmem:[#allocation2 + $0x188] sm:$0x1e] }
 0x27f   :  { %4837 = vmatprep.subr.bf16.mxu1 %v19693_v21  ;;  %4890 = vmatprep.subr.bf16.mxu0 %v19696_v56  ;;  %v4956_v28 = vld [vmem:[#allocation2 + $0x208] sm:$0x1e]  ;;  %v19745_v21 = vld [vmem:[%s27726_s2 + $0xd20] ss:$16 sps:$4 sm:$0xff]  }
 0x280   :  { %v19748_v56 = vld [vmem:[%s27726_s2 + $0xd28] ss:$16 sps:$4 sm:$0xff]  }
 0x282   :  { %4838 = vmatpush1.bf16.msra.mxu1 %v19691_v50  ;;  %4891 = vmatpush1.bf16.msra.mxu0 %v19694_v51  ;;  %v4951_v50 = vld [vmem:[#allocation2 + $0xe8] sm:$0x1e]  ;;  %v19753_v51 = vld [vmem:[%s27726_s2 + $0xd04] ss:$16 sps:$4 sm:$0xff]  }
 0x283   :  { %4839 = vmatprep.subr.bf16.mxu1 %v19699_v52  ;;  %4892 = vmatprep.subr.bf16.mxu0 %v19702_v53  ;;  %v19756_v52 = vld [vmem:[%s27726_s2 + $0xd0c] ss:$16 sps:$4 sm:$0xff]   ;;  %v4395_v53 = vld [vmem:[#allocation2 + $0x1d0] sm:$0xf] }
 0x286   :  { %4840 = vmatpush1.bf16.msra.mxu1 %v19697_v8  ;;  %4893 = vmatpush1.bf16.msra.mxu0 %v19700_v35  ;;  %v4952_v8 = vld [vmem:[#allocation2 + $0x68] sm:$0x1e] }
 0x287   :  { %4841 = vmatprep.subr.bf16.mxu1 %v19705_v38  ;;  %4894 = vmatprep.subr.bf16.mxu0 %v19708_v19  ;;  %v19758_v35 = vld [vmem:[#allocation2 + $0x238] ss:$-176 sps:$4 sm:$0xff]   ;;  %v4397_v38 = vld [vmem:[#allocation2 + $0xb0] sm:$0xf] }
 0x288   :  { %v4949_v19 = vld [vmem:[#allocation2 + $0x2f8] sm:$0x1e] }
 0x28a   :  { %4842 = vmatpush1.bf16.msra.mxu1 %v19703_v20  ;;  %4895 = vmatpush1.bf16.msra.mxu0 %v19706_v59  ;;  %v4950_v20 = vld [vmem:[#allocation2 + $0x2b8] sm:$0x1e]  ;;  %v4987_v59 = vcombine.low %v4955_v55, %v4956_v28 }
 0x28b   :  { %4843 = vmatprep.subr.bf16.mxu1 %v19711_v3  ;;  %4896 = vmatprep.subr.bf16.mxu0 %v19714_v62  ;;  %v19751_v3 = vld [vmem:[%s27726_s2 + $0xd00] ss:$16 sps:$4 sm:$0xff]   ;;  %v19754_v62 = vld [vmem:[%s27726_s2 + $0xd08] ss:$16 sps:$4 sm:$0xff]  }
 0x28e   :  { %4844 = vmatpush2.bf16.msra.mxu1 %v19709_v9  ;;  %4897 = vmatpush2.bf16.msra.mxu0 %v19712_v27  ;;  %v19761_v9 = vld [vmem:[%s27726_s2 + $0xee4] ss:$16 sps:$4 sm:$0xff]   ;;  %v4391_v27 = vld [vmem:[#allocation2 + $0x120] sm:$0xf] }
 0x28f   :  { %4845 = vmatprep.subr.bf16.mxu1 %v19717_v1  ;;  %4898 = vmatprep.subr.bf16.mxu0 %v19720_v5  ;;  %v4393_v1 = vld [vmem:[#allocation2 + $0x2c0] sm:$0xf]  ;;  %v19779_v5 = vld [vmem:[#allocation2 + $0x238] ss:$-264 sps:$4 sm:$0xee]  }
 0x292   :  { %4846 = vmatpush2.bf16.msra.mxu1 %v19715_v32  ;;  %4899 = vmatpush2.bf16.msra.mxu0 %v19718_v7  ;;  %v19781_v32 = vld [vmem:[#allocation2 + $0x23c] ss:$-264 sps:$4 sm:$0x11]   ;;  %v4988_v7 = vcombine.high %v4955_v55, %v4956_v28 }
 0x293   :  { %4847 = vmatprep.subr.bf16.mxu1 %v19723_v45  ;;  %4900 = vmatprep.subr.bf16.mxu0 %v19726_v39  ;;  %v19764_v45 = vld [vmem:[%s27726_s2 + $0xeec] ss:$16 sps:$4 sm:$0xff]   ;;  %v4983_v39 = vcombine.low %v4951_v50, %v4952_v8 }
 0x294   :  { %v19770_v55 = vld [vmem:[%s27726_s2 + $0xecc] ss:$16 sps:$4 sm:$0xff]  }
 0x295   :  { %v16953_v28 = vrot.slane %v4983_v39, 9 }
 0x296   :  { %4848 = vmatpush2.bf16.msra.mxu1 %v19721_v44  ;;  %4901 = vmatpush2.bf16.msra.mxu0 %v19724_v10  ;;  %v4984_v44 = vcombine.high %v4951_v50, %v4952_v8  ;;  %v23694_v10 = vpop.f32.mrf.mxu1 }
 0x297   :  { %4849 = vmatprep.subr.bf16.mxu1 %v19729_v11  ;;  %4902 = vmatprep.subr.bf16.mxu0 %v19732_v12  ;;  %v23696_v11 = vpop.f32.mrf.mxu0  ;;  %v19757_v12 = vld [vmem:[#allocation2 + $0x2f8] ss:$-528 sps:$4 sm:$0xff]  }
 0x29a   :  { %4850 = vmatpush2.bf16.msra.mxu1 %v19727_v13  ;;  %4903 = vmatpush2.bf16.msra.mxu0 %v19730_v16  ;;  %v16823_v13 = vcombine.low %v4395_v53, %v4397_v38  ;;  %v4981_v16 = vcombine.low %v4949_v19, %v4950_v20 }
 0x29b   :  { %4851 = vmatprep.subr.bf16.mxu1 %v19735_v22  ;;  %4904 = vmatprep.subr.bf16.mxu0 %v19738_v23  ;;  %v16955_v22 = vrot.slane %v4987_v59, 9  ;;  %v19759_v23 = vld [vmem:[%s27726_s2 + $0xee0] ss:$16 sps:$4 sm:$0xff]  }
 0x29c   :  { %v16952_v38 = vrot.slane %v4981_v16, 9 }
 0x29e   :  { %4852 = vmatpush2.bf16.msra.mxu1 %v19733_v24  ;;  %4905 = vmatpush2.bf16.msra.mxu0 %v19736_v29  ;;  %v19762_v24 = vld [vmem:[%s27726_s2 + $0xee8] ss:$16 sps:$4 sm:$0xff]   ;;  %v4982_v29 = vcombine.high %v4949_v19, %v4950_v20 }
 0x29f   :  { %4853 = vmatprep.subr.bf16.mxu1 %v19741_v43  ;;  %4906 = vmatprep.subr.bf16.mxu0 %v19744_v36  ;;  %v5011_v43 = vrot.slane %v4988_v7, 5 }
 0x2a0   :  { %v4999_v59 = vrot.slane %v4982_v29, 5  ;;  %v19787_v29 = vld [vmem:[%s27726_s2 + $0xe8c] ss:$16 sps:$4 sm:$0xff]  }
 0x2a2   :  { %4854 = vmatpush2.bf16.msra.mxu1 %v19739_v37  ;;  %4907 = vmatpush2.bf16.msra.mxu0 %v19742_v60  ;;  %v4438_v60 = vpack.c.bf16 %v19758_v35, %v19757_v12  ;;  %v19776_v12 = vld [vmem:[%s27726_s2 + $0xea8] ss:$16 sps:$4 sm:$0xff]  }
 0x2a3   :  { %4855 = vmatprep.subr.bf16.mxu1 %v19747_v48  ;;  %4908 = vmatprep.subr.bf16.mxu0 %v19750_v58  ;;  %v16821_v48 = vcombine.low %v4391_v27, %v4393_v1  ;;  %v19767_v58 = vld [vmem:[%s27726_s2 + $0xec4] ss:$16 sps:$4 sm:$0xff]   ;;  %v19765_v27 = vld [vmem:[%s27726_s2 + $0xec0] ss:$16 sps:$4 sm:$0xff]   ;;  %v19768_v1 = vld [vmem:[%s27726_s2 + $0xec8] ss:$16 sps:$4 sm:$0xff]  }
 0x2a5   :  { %v4441_v53 = vpack.c.bf16 %v16823_v13, %v16821_v48  ;;  %v23766_v13 = vsel %vm22240_vm13, %v16952_v38, %v4999_v59  ;;  %v19794_v38 = vld [vmem:[%s27726_s2 + $0xe40] ss:$16 sps:$4 sm:$0xff]   ;;  %v19802_v59 = vld [vmem:[%s27726_s2 + $0xe24] ss:$16 sps:$4 sm:$0xff]  }
 0x2a6   :  { %4856 = vmatpush2.bf16.msra.mxu1 %v19745_v21  ;;  %4909 = vmatpush2.bf16.msra.mxu0 %v19748_v56  ;;  %v5003_v21 = vrot.slane %v4984_v44, 5  ;;  %v19773_v44 = vld [vmem:[%s27726_s2 + $0xea0] ss:$16 sps:$4 sm:$0xff]  }
 0x2a7   :  { %4857 = vmatprep.subr.bf16.mxu1 %v19753_v51  ;;  %4910 = vmatprep.subr.bf16.mxu0 %v19756_v52  ;;  %v16954_v51 = vrot.slane %v19779_v5, 9  ;;  %v5007_v52 = vrot.slane %v19781_v32, 5  ;;  %v19771_v5 = vld [vmem:[#allocation2 + $0x18] ss:$-16 sps:$4 sm:$0xff]   ;;  %v19775_v32 = vld [vmem:[%s27726_s2 + $0xea4] ss:$16 sps:$4 sm:$0xff]  }
 0x2aa   :  { %4858 = vmatpush2.bf16.msra.mxu1 %v19751_v3  ;;  %4911 = vmatpush2.bf16.msra.mxu0 %v19754_v62  ;;  %v3081_v36 = vpop.f32.mrf.mxu1  ;;  %v3134_v37 = vpop.f32.mrf.mxu0 }
 0x2ab   :  { %v23711_v56 = vadd.f32 %v3081_v36, %v23470_v15  ;;  %v23714_v50 = vadd.f32 %v3134_v37, %v23473_v25  ;;  %5433 = vmatprep.subr.bf16.mxu1 %v19761_v9  ;;  %5486 = vmatprep.subr.bf16.mxu0 %v19764_v45  ;;  %v19772_v15 = vld [vmem:[#allocation2 + $0x2c8] ss:$-568 sps:$4 sm:$0xff]   ;;  %v23724_v25 = vsel %vm22240_vm13, %v16955_v22, %v5011_v43  ;;  %v19778_v45 = vld [vmem:[%s27726_s2 + $0xeac] ss:$16 sps:$4 sm:$0xff]  }
 0x2ac   :  { %v3083_v8 = vpop.f32.mrf.mxu1  ;;  %v3136_v35 = vpop.f32.mrf.mxu0  ;;  %v23728_v9 = vsel %vm22240_vm13, %v16953_v28, %v5003_v21  ;;  %v4440_v37 = vpack.c.bf16 %v19772_v15, %v19771_v5  ;;  %v19797_v15 = vld [vmem:[%s27726_s2 + $0xe48] ss:$16 sps:$4 sm:$0xff]   ;;  %v19811_v5 = vld [vmem:[%s27726_s2 + $0xe0c] ss:$16 sps:$4 sm:$0xff]  }
 0x2ad   :  { %4860 = vmatmul.mubr.bf16.vlgmr.msra.gmra.mxu1 %v4438_v60  ;;  %4913 = vmatmul.mubr.bf16.vlgmr.msra.gmra.mxu0 %v4438_v60  ;;  %v23717_v19 = vadd.f32 %v3083_v8, %v23479_v61  ;;  %v23720_v20 = vadd.f32 %v3136_v35, %v23482_v2  ;;  %v19796_v8 = vld [vmem:[%s27726_s2 + $0xe44] ss:$16 sps:$4 sm:$0xff]   ;;  %v19799_v35 = vld [vmem:[%s27726_s2 + $0xe4c] ss:$16 sps:$4 sm:$0xff]  }
 0x2ae   :  { %4869 = vmatprep.mubr.bf16.mxu1 %v4441_v53  ;;  %4922 = vmatprep.mubr.bf16.mxu0 %v4441_v53  ;;  %v3085_v3 = vpop.f32.mrf.mxu1  ;;  %v3138_v62 = vpop.f32.mrf.mxu0  ;;  %v19791_v53 = vld [vmem:[%s27726_s2 + $0xe68] ss:$16 sps:$4 sm:$0xff]  }
 0x2af   :  { %5434 = vmatpush1.bf16.msra.mxu1 %v19759_v23  ;;  %5487 = vmatpush1.bf16.msra.mxu0 %v19762_v24  ;;  %v23731_v61 = vadd.f32 %v3085_v3, %v23485_v63  ;;  %v23734_v2 = vadd.f32 %v3138_v62, %v23488_v0  ;;  %v23747_v63 = vsel %vm22240_vm13, %v16954_v51, %v5007_v52  ;;  %v19784_v24 = vld [vmem:[%s27726_s2 + $0xe84] ss:$16 sps:$4 sm:$0xff]   ;;  %v19805_v3 = vld [vmem:[%s27726_s2 + $0xe2c] ss:$16 sps:$4 sm:$0xff]   ;;  %v19800_v62 = vld [vmem:[%s27726_s2 + $0xe20] ss:$16 sps:$4 sm:$0xff]  }
 0x2b0   :  { %5435 = vmatprep.subr.bf16.mxu1 %v19767_v58  ;;  %5488 = vmatprep.subr.bf16.mxu0 %v19770_v55  ;;  %v23749_v0 = vpop.f32.mrf.mxu1  ;;  %v23751_v7 = vpop.f32.mrf.mxu0  ;;  %v5032_v39 = vcombine.high %v23747_v63, %v23724_v25  ;;  %v5030_v23 = vcombine.high %v23766_v13, %v23728_v9  ;;  %v19790_v52 = vld [vmem:[%s27726_s2 + $0xe64] ss:$16 sps:$4 sm:$0xff]  }
 0x2b2   :  { %v3091_v16 = vpop.f32.mrf.mxu1  ;;  %v3144_v22 = vpop.f32.mrf.mxu0  ;;  %v5046_v60 = vpack.c.bf16 %v5032_v39, %v5030_v23  ;;  %v19814_v39 = vld [vmem:[%s27726_s2 + $0xfe4] ss:$16 sps:$4 sm:$0xff]   ;;  %v19823_v23 = vld [vmem:[%s27726_s2 + $0xfcc] ss:$16 sps:$4 sm:$0xff]  }
 0x2b3   :  { %5436 = vmatpush1.bf16.msra.mxu1 %v19765_v27  ;;  %5489 = vmatpush1.bf16.msra.mxu0 %v19768_v1  ;;  %v23777_v43 = vadd.f32 %v3091_v16, %v23521_v17  ;;  %v23780_v36 = vadd.f32 %v3144_v22, %v23524_v18  ;;  %v19803_v27 = vld [vmem:[%s27726_s2 + $0xe28] ss:$16 sps:$4 sm:$0xff]   ;;  %v19808_v1 = vld [vmem:[%s27726_s2 + $0xe04] ss:$16 sps:$4 sm:$0xff]  }
 0x2b4   :  { %5437 = vmatprep.subr.bf16.mxu1 %v19775_v32  ;;  %5490 = vmatprep.subr.bf16.mxu0 %v19778_v45  ;;  %v3093_v48 = vpop.f32.mrf.mxu1  ;;  %v3146_v58 = vpop.f32.mrf.mxu0  ;;  %v19806_v32 = vld [vmem:[%s27726_s2 + $0xe00] ss:$16 sps:$4 sm:$0xff]   ;;  %v19809_v45 = vld [vmem:[%s27726_s2 + $0xe08] ss:$16 sps:$4 sm:$0xff]   ;;  %v19820_v22 = vld [vmem:[%s27726_s2 + $0xfc4] ss:$16 sps:$4 sm:$0xff]  }
 0x2b5   :  { %4870 = vmatmul.mubr.bf16.gmra.mxu1 %v4440_v37  ;;  %4923 = vmatmul.mubr.bf16.gmra.mxu0 %v4440_v37  ;;  %v23783_v55 = vadd.f32 %v3093_v48, %v23527_v30  ;;  %v23786_v28 = vadd.f32 %v3146_v58, %v23530_v33  ;;  %v19782_v30 = vld [vmem:[%s27726_s2 + $0xe80] ss:$16 sps:$4 sm:$0xff]   ;;  %v19785_v33 = vld [vmem:[%s27726_s2 + $0xe88] ss:$16 sps:$4 sm:$0xff]   ;;  %v19826_v37 = vld [vmem:[%s27726_s2 + $0xfa4] ss:$16 sps:$4 sm:$0xff]  }
 0x2b6   :  { %5465 = vmatprep.mubr.bf16.mxu1 %v5046_v60  ;;  %5518 = vmatprep.mubr.bf16.mxu0 %v5046_v60  ;;  %v3095_v17 = vpop.f32.mrf.mxu1  ;;  %v3148_v21 = vpop.f32.mrf.mxu0  ;;  %v19815_v16 = vld [vmem:[%s27726_s2 + $0xfe8] ss:$16 sps:$4 sm:$0xff]   ;;  %v19829_v60 = vld [vmem:[%s27726_s2 + $0xfac] ss:$16 sps:$4 sm:$0xff]   ;;  %v19824_v48 = vld [vmem:[%s27726_s2 + $0xfa0] ss:$16 sps:$4 sm:$0xff]  }
 0x2b7   :  { %5438 = vmatpush1.bf16.msra.mxu1 %v19773_v44  ;;  %5491 = vmatpush1.bf16.msra.mxu0 %v19776_v12  ;;  %v23789_v18 = vadd.f32 %v3095_v17, %v23533_v47  ;;  %v23792_v51 = vadd.f32 %v3148_v21, %v23536_v40  ;;  %v19793_v47 = vld [vmem:[%s27726_s2 + $0xe6c] ss:$16 sps:$4 sm:$0xff]   ;;  %v19788_v40 = vld [vmem:[%s27726_s2 + $0xe60] ss:$16 sps:$4 sm:$0xff]   ;;  %v19827_v58 = vld [vmem:[%s27726_s2 + $0xfa8] ss:$16 sps:$4 sm:$0xff]  }
 0x2b8   :  { %5439 = vmatprep.subr.bf16.mxu1 %v19784_v24  ;;  %5492 = vmatprep.subr.bf16.mxu0 %v19787_v29  ;;  %v19817_v44 = vld [vmem:[%s27726_s2 + $0xfec] ss:$16 sps:$4 sm:$0xff]   ;;  %v19812_v12 = vld [vmem:[%s27726_s2 + $0xfe0] ss:$16 sps:$4 sm:$0xff]   ;;  %v19821_v29 = vld [vmem:[%s27726_s2 + $0xfc8] ss:$16 sps:$4 sm:$0xff]  }
 0x2b9   :  { %v19818_v24 = vld [vmem:[%s27726_s2 + $0xfc0] ss:$16 sps:$4 sm:$0xff]   ;;  %v19832_v17 = vld [vmem:[%s27726_s2 + $0xf84] ss:$16 sps:$4 sm:$0xff]   ;;  %v19835_v21 = vld [vmem:[%s27726_s2 + $0xf8c] ss:$16 sps:$4 sm:$0xff]  }
 0x2bb   :  { %5440 = vmatpush1.bf16.msra.mxu1 %v19782_v30  ;;  %5493 = vmatpush1.bf16.msra.mxu0 %v19785_v33  ;;  %v19830_v30 = vld [vmem:[%s27726_s2 + $0xf80] ss:$16 sps:$4 sm:$0xff]   ;;  %v19833_v33 = vld [vmem:[%s27726_s2 + $0xf88] ss:$16 sps:$4 sm:$0xff]  }
 0x2bc   :  { %5441 = vmatprep.subr.bf16.mxu1 %v19790_v52  ;;  %5494 = vmatprep.subr.bf16.mxu0 %v19793_v47  ;;  %v19838_v52 = vld [vmem:[%s27726_s2 + $0xf64] ss:$16 sps:$4 sm:$0xff]   ;;  %v19841_v47 = vld [vmem:[%s27726_s2 + $0xf6c] ss:$16 sps:$4 sm:$0xff]  }
 0x2bf   :  { %5442 = vmatpush1.bf16.msra.mxu1 %v19788_v40  ;;  %5495 = vmatpush1.bf16.msra.mxu0 %v19791_v53  ;;  %v4963_v40 = vld [vmem:[#allocation2 + $0x90] sm:$0x1e] }
 0x2c0   :  { %5443 = vmatprep.subr.bf16.mxu1 %v19796_v8  ;;  %5496 = vmatprep.subr.bf16.mxu0 %v19799_v35  ;;  %v4964_v53 = vld [vmem:[#allocation2 + $0xb0] sm:$0x1e] }
 0x2c1   :  { %v19836_v8 = vld [vmem:[%s27726_s2 + $0xf60] ss:$16 sps:$4 sm:$0xff]  }
 0x2c2   :  { %v19872_v35 = vld [vmem:[#allocation2 + $0x2c8] ss:$-248 sps:$4 sm:$0xee]  }
 0x2c3   :  { %5444 = vmatpush1.bf16.msra.mxu1 %v19794_v38  ;;  %5497 = vmatpush1.bf16.msra.mxu0 %v19797_v15  ;;  %v19839_v38 = vld [vmem:[%s27726_s2 + $0xf68] ss:$16 sps:$4 sm:$0xff]   ;;  %v19844_v15 = vld [vmem:[%s27726_s2 + $0xf44] ss:$16 sps:$4 sm:$0xff]  }
 0x2c4   :  { %5445 = vmatprep.subr.bf16.mxu1 %v19802_v59  ;;  %5498 = vmatprep.subr.bf16.mxu0 %v19805_v3  ;;  %v19847_v59 = vld [vmem:[%s27726_s2 + $0xf4c] ss:$16 sps:$4 sm:$0xff]  }
 0x2c5   :  { %v19874_v3 = vld [vmem:[#allocation2 + $0x2cc] ss:$-248 sps:$4 sm:$0x11]  }
 0x2c7   :  { %5446 = vmatpush1.bf16.msra.mxu1 %v19800_v62  ;;  %5499 = vmatpush1.bf16.msra.mxu0 %v19803_v27  ;;  %v4995_v62 = vcombine.low %v4963_v40, %v4964_v53  ;;  %v19842_v27 = vld [vmem:[%s27726_s2 + $0xf40] ss:$16 sps:$4 sm:$0xff]  }
 0x2c8   :  { %5447 = vmatprep.subr.bf16.mxu1 %v19808_v1  ;;  %5500 = vmatprep.subr.bf16.mxu0 %v19811_v5  ;;  %v19845_v1 = vld [vmem:[%s27726_s2 + $0xf48] ss:$16 sps:$4 sm:$0xff]  }
 0x2c9   :  { %v19866_v5 = vld [vmem:[#allocation2 + $0x18] ss:$264 sps:$4 sm:$0xee]  }
 0x2cb   :  { %5448 = vmatpush1.bf16.msra.mxu1 %v19806_v32  ;;  %5501 = vmatpush1.bf16.msra.mxu0 %v19809_v45  ;;  %v4996_v32 = vcombine.high %v4963_v40, %v4964_v53  ;;  %v19850_v45 = vld [vmem:[%s27726_s2 + $0xf24] ss:$16 sps:$4 sm:$0xff]  }
 0x2cc   :  { %5449 = vmatprep.subr.bf16.mxu1 %v19814_v39  ;;  %5502 = vmatprep.subr.bf16.mxu0 %v19817_v44  ;;  %v19853_v39 = vld [vmem:[%s27726_s2 + $0xf2c] ss:$16 sps:$4 sm:$0xff]  }
 0x2cd   :  { %v19868_v44 = vld [vmem:[#allocation2 + $0x1c] ss:$264 sps:$4 sm:$0x11]  }
 0x2cf   :  { %5450 = vmatpush2.bf16.msra.mxu1 %v19812_v12  ;;  %5503 = vmatpush2.bf16.msra.mxu0 %v19815_v16  ;;  %v19869_v12 = vld [vmem:[#allocation2 + $0x8] ss:$696 sps:$4 sm:$0xee]   ;;  %v19871_v16 = vld [vmem:[#allocation2 + $0xc] ss:$696 sps:$4 sm:$0x11]  }
 0x2d0   :  { %5451 = vmatprep.subr.bf16.mxu1 %v19820_v22  ;;  %5504 = vmatprep.subr.bf16.mxu0 %v19823_v23  ;;  %v16958_v22 = vrot.slane %v19872_v35, 9  ;;  %v16959_v23 = vrot.slane %v4995_v62, 9  ;;  %v16957_v40 = vrot.slane %v19869_v12, 9  ;;  %v5019_v53 = vrot.slane %v19871_v16, 5  ;;  %v5556_v35 = vld [vmem:[#allocation2 + $0x2b8] sm:$0x3c] }
 0x2d1   :  { %v19865_v62 = vld [vmem:[%s27726_s2 + $0x10ec] ss:$16 sps:$4 sm:$0xff]  }
 0x2d3   :  { %5452 = vmatpush2.bf16.msra.mxu1 %v19818_v24  ;;  %5505 = vmatpush2.bf16.msra.mxu0 %v19821_v29  ;;  %v5561_v24 = vld [vmem:[#allocation2 + $0x188] sm:$0x3c] }
 0x2d4   :  { %5453 = vmatprep.subr.bf16.mxu1 %v19826_v37  ;;  %5506 = vmatprep.subr.bf16.mxu0 %v19829_v60  ;;  %v5562_v29 = vld [vmem:[#allocation2 + $0x208] sm:$0x3c]  ;;  %v19848_v37 = vld [vmem:[%s27726_s2 + $0xf20] ss:$16 sps:$4 sm:$0xff]  }
 0x2d5   :  { %v19851_v60 = vld [vmem:[%s27726_s2 + $0xf28] ss:$16 sps:$4 sm:$0xff]  }
 0x2d7   :  { %5454 = vmatpush2.bf16.msra.mxu1 %v19824_v48  ;;  %5507 = vmatpush2.bf16.msra.mxu0 %v19827_v58  ;;  %v5027_v48 = vrot.slane %v4996_v32, 5  ;;  %v19856_v58 = vld [vmem:[%s27726_s2 + $0xf04] ss:$16 sps:$4 sm:$0xff]  }
 0x2d8   :  { %5455 = vmatprep.subr.bf16.mxu1 %v19832_v17  ;;  %5508 = vmatprep.subr.bf16.mxu0 %v19835_v21  ;;  %v19859_v17 = vld [vmem:[%s27726_s2 + $0xf0c] ss:$16 sps:$4 sm:$0xff]   ;;  %v5023_v21 = vrot.slane %v19874_v3, 5  ;;  %v19862_v3 = vld [vmem:[%s27726_s2 + $0x10e4] ss:$16 sps:$4 sm:$0xff]  }
 0x2d9   :  { %v19889_v32 = vld [vmem:[#allocation2 + $0x23c] ss:$-264 sps:$4 sm:$0x33]  }
 0x2db   :  { %5456 = vmatpush2.bf16.msra.mxu1 %v19830_v30  ;;  %5509 = vmatpush2.bf16.msra.mxu0 %v19833_v33  ;;  %v5557_v30 = vld [vmem:[#allocation2 + $0xe8] sm:$0x3c] }
 0x2dc   :  { %5457 = vmatprep.subr.bf16.mxu1 %v19838_v52  ;;  %5510 = vmatprep.subr.bf16.mxu0 %v19841_v47  ;;  %v5558_v33 = vld [vmem:[#allocation2 + $0x68] sm:$0x3c]  ;;  %v16956_v52 = vrot.slane %v19866_v5, 9  ;;  %v5015_v47 = vrot.slane %v19868_v44, 5 }
 0x2dd   :  { %v23958_v5 = vld [vmem:[#allocation2 + $0x238] ss:$-264 sps:$4 sm:$0xcc]   ;;  %v5589_v44 = vcombine.low %v5557_v30, %v5558_v33  ;;  %v5590_v12 = vcombine.high %v5557_v30, %v5558_v33  ;;  %v19877_v33 = vld [vmem:[%s27726_s2 + $0x10c4] ss:$16 sps:$4 sm:$0xff]  }
 0x2de   :  { %v23964_v16 = vsel %vm22240_vm13, %v16956_v52, %v5015_v47  ;;  %v19880_v52 = vld [vmem:[%s27726_s2 + $0x10cc] ss:$16 sps:$4 sm:$0xff]  }
 0x2df   :  { %5458 = vmatpush2.bf16.msra.mxu1 %v19836_v8  ;;  %5511 = vmatpush2.bf16.msra.mxu0 %v19839_v38  ;;  %v5555_v8 = vld [vmem:[#allocation2 + $0x2f8] sm:$0x3c]  ;;  %v19854_v38 = vld [vmem:[%s27726_s2 + $0xf00] ss:$16 sps:$4 sm:$0xff]   ;;  %v17089_v47 = vrot.slane %v5589_v44, 10 }
 0x2e0   :  { %5459 = vmatprep.subr.bf16.mxu1 %v19844_v15  ;;  %5512 = vmatprep.subr.bf16.mxu0 %v19847_v59  ;;  %v19857_v15 = vld [vmem:[%s27726_s2 + $0xf08] ss:$16 sps:$4 sm:$0xff]   ;;  %v5593_v59 = vcombine.low %v5561_v24, %v5562_v29 }
 0x2e3   :  { %5460 = vmatpush2.bf16.msra.mxu1 %v19842_v27  ;;  %5513 = vmatpush2.bf16.msra.mxu0 %v19845_v1  ;;  %v23952_v27 = vsel %vm22240_vm13, %v16958_v22, %v5023_v21  ;;  %v23956_v1 = vsel %vm22240_vm13, %v16959_v23, %v5027_v48  ;;  %v23968_v22 = vsel %vm22240_vm13, %v16957_v40, %v5019_v53  ;;  %v19863_v48 = vld [vmem:[%s27726_s2 + $0x10e8] ss:$16 sps:$4 sm:$0xff]   ;;  %v5609_v40 = vrot.slane %v5590_v12, 6 }
 0x2e4   :  { %5461 = vmatprep.subr.bf16.mxu1 %v19850_v45  ;;  %5514 = vmatprep.subr.bf16.mxu0 %v19853_v39  ;;  %v5594_v45 = vcombine.high %v5561_v24, %v5562_v29  ;;  %v5031_v39 = vcombine.low %v23747_v63, %v23724_v25  ;;  %v5029_v23 = vcombine.low %v23766_v13, %v23728_v9  ;;  %v23972_v24 = vpop.f32.mrf.mxu1  ;;  %v23974_v25 = vpop.f32.mrf.mxu0 }
 0x2e5   :  { %27750 = vst [vmem:[#allocation9_spill] sm:$0xff] %v23974_v25  ;;  %v5036_v63 = vcombine.high %v23952_v27, %v23956_v1  ;;  %v5587_v29 = vcombine.low %v5555_v8, %v5556_v35  ;;  %v5034_v30 = vcombine.high %v23964_v16, %v23968_v22  ;;  %v6176_v25 = vld [vmem:[#allocation2 + $0x200] sm:$0xf] }
 0x2e6   :  { %v5045_v9 = vpack.c.bf16 %v5031_v39, %v5029_v23  ;;  %v19875_v23 = vld [vmem:[%s27726_s2 + $0x10c0] ss:$16 sps:$4 sm:$0xff]  }
 0x2e7   :  { %5462 = vmatpush2.bf16.msra.mxu1 %v19848_v37  ;;  %5515 = vmatpush2.bf16.msra.mxu0 %v19851_v60  ;;  %v17091_v37 = vrot.slane %v5593_v59, 10  ;;  %v19860_v60 = vld [vmem:[%s27726_s2 + $0x10e0] ss:$16 sps:$4 sm:$0xff]   ;;  %v17088_v39 = vrot.slane %v5587_v29, 10  ;;  %v19886_v29 = vld [vmem:[%s27726_s2 + $0x10ac] ss:$16 sps:$4 sm:$0xff]  }
 0x2e8   :  { %5463 = vmatprep.subr.bf16.mxu1 %v19856_v58  ;;  %5516 = vmatprep.subr.bf16.mxu0 %v19859_v17  ;;  %v5588_v58 = vcombine.high %v5555_v8, %v5556_v35  ;;  %v5617_v17 = vrot.slane %v5594_v45, 6  ;;  %v17090_v35 = vrot.slane %v23958_v5, 10  ;;  %v5035_v5 = vcombine.low %v23952_v27, %v23956_v1  ;;  %v19878_v27 = vld [vmem:[%s27726_s2 + $0x10c8] ss:$16 sps:$4 sm:$0xff]   ;;  %v19883_v1 = vld [vmem:[%s27726_s2 + $0x10a4] ss:$16 sps:$4 sm:$0xff]  }
 0x2ea   :  { %v5605_v12 = vrot.slane %v5588_v58, 6  ;;  %v19884_v58 = vld [vmem:[%s27726_s2 + $0x10a8] ss:$16 sps:$4 sm:$0xff]  }
 0x2eb   :  { %5464 = vmatpush2.bf16.msra.mxu1 %v19854_v38  ;;  %5517 = vmatpush2.bf16.msra.mxu0 %v19857_v15  ;;  %v3687_v13 = vpop.f32.mrf.mxu1  ;;  %v3740_v21 = vpop.f32.mrf.mxu0  ;;  %v5613_v38 = vrot.slane %v19889_v32, 6  ;;  %v5048_v15 = vpack.c.bf16 %v5036_v63, %v5034_v30  ;;  %v24013_v32 = vsel %vm22494_vm6, %v17089_v47, %v5609_v40 }
 0x2ec   :  { %v23993_v53 = vadd.f32 %v3687_v13, %v23711_v56  ;;  %v23996_v8 = vadd.f32 %v3740_v21, %v23714_v50  ;;  %6039 = vmatprep.subr.bf16.mxu1 %v19862_v3  ;;  %6092 = vmatprep.subr.bf16.mxu0 %v19865_v62  ;;  %v24007_v50 = vsel %vm22494_vm6, %v17091_v37, %v5617_v17 }
 0x2ed   :  { %v3689_v59 = vpop.f32.mrf.mxu1  ;;  %v3742_v45 = vpop.f32.mrf.mxu0  ;;  %v24032_v63 = vsel %vm22494_vm6, %v17090_v35, %v5613_v38  ;;  %v24053_v17 = vsel %vm22494_vm6, %v17088_v39, %v5605_v12  ;;  %v19898_v39 = vld [vmem:[%s27726_s2 + $0x1064] ss:$16 sps:$4 sm:$0xff]   ;;  %v19899_v12 = vld [vmem:[%s27726_s2 + $0x1068] ss:$16 sps:$4 sm:$0xff]  }
 0x2ee   :  { %5466 = vmatmul.mubr.bf16.vlgmr.msra.gmra.mxu1 %v5045_v9  ;;  %5519 = vmatmul.mubr.bf16.vlgmr.msra.gmra.mxu0 %v5045_v9  ;;  %v24000_v44 = vadd.f32 %v3689_v59, %v23717_v19  ;;  %v24003_v56 = vadd.f32 %v3742_v45, %v23720_v20  ;;  %v5638_v37 = vcombine.high %v24032_v63, %v24007_v50 }
 0x2ef   :  { %5475 = vmatprep.mubr.bf16.mxu1 %v5048_v15  ;;  %5528 = vmatprep.mubr.bf16.mxu0 %v5048_v15  ;;  %v3691_v3 = vpop.f32.mrf.mxu1  ;;  %v3744_v62 = vpop.f32.mrf.mxu0  ;;  %v5636_v21 = vcombine.high %v24053_v17, %v24013_v32 }
 0x2f0   :  { %6040 = vmatpush1.bf16.msra.mxu1 %v19860_v60  ;;  %6093 = vmatpush1.bf16.msra.mxu0 %v19863_v48  ;;  %v24016_v19 = vadd.f32 %v3691_v3, %v23731_v61  ;;  %v24019_v20 = vadd.f32 %v3744_v62, %v23734_v2  ;;  %v5033_v60 = vcombine.low %v23964_v16, %v23968_v22  ;;  %v19881_v48 = vld [vmem:[%s27726_s2 + $0x10a0] ss:$16 sps:$4 sm:$0xff]   ;;  %v19892_v16 = vld [vmem:[%s27726_s2 + $0x1084] ss:$16 sps:$4 sm:$0xff]   ;;  %v19895_v22 = vld [vmem:[%s27726_s2 + $0x108c] ss:$16 sps:$4 sm:$0xff]  }
 0x2f1   :  { %6041 = vmatprep.subr.bf16.mxu1 %v19877_v33  ;;  %6094 = vmatprep.subr.bf16.mxu0 %v19880_v52  ;;  %v24034_v61 = vpop.f32.mrf.mxu1  ;;  %v24036_v2 = vpop.f32.mrf.mxu0  ;;  %v5652_v47 = vpack.c.bf16 %v5638_v37, %v5636_v21  ;;  %v19904_v3 = vld [vmem:[%s27726_s2 + $0x1044] ss:$16 sps:$4 sm:$0xff]   ;;  %v19907_v62 = vld [vmem:[%s27726_s2 + $0x104c] ss:$16 sps:$4 sm:$0xff]   ;;  %v19911_v37 = vld [vmem:[%s27726_s2 + $0x1028] ss:$16 sps:$4 sm:$0xff]  }
 0x2f2   :  { %v5047_v52 = vpack.c.bf16 %v5035_v5, %v5033_v60  ;;  %v19902_v5 = vld [vmem:[%s27726_s2 + $0x1040] ss:$16 sps:$4 sm:$0xff]   ;;  %v19916_v60 = vld [vmem:[%s27726_s2 + $0x1004] ss:$16 sps:$4 sm:$0xff]   ;;  %v19925_v21 = vld [vmem:[%s27726_s2 + $0x11ec] ss:$16 sps:$4 sm:$0xff]  }
 0x2f3   :  { %v3697_v9 = vpop.f32.mrf.mxu1  ;;  %v3750_v13 = vpop.f32.mrf.mxu0 }
 0x2f4   :  { %6042 = vmatpush1.bf16.msra.mxu1 %v19875_v23  ;;  %6095 = vmatpush1.bf16.msra.mxu0 %v19878_v27  ;;  %v24064_v30 = vadd.f32 %v3697_v9, %v23777_v43  ;;  %v24067_v33 = vadd.f32 %v3750_v13, %v23780_v36  ;;  %v19905_v23 = vld [vmem:[%s27726_s2 + $0x1048] ss:$16 sps:$4 sm:$0xff]   ;;  %v19910_v27 = vld [vmem:[%s27726_s2 + $0x1024] ss:$16 sps:$4 sm:$0xff]  }
 0x2f5   :  { %6043 = vmatprep.subr.bf16.mxu1 %v19883_v1  ;;  %6096 = vmatprep.subr.bf16.mxu0 %v19886_v29  ;;  %v3699_v40 = vpop.f32.mrf.mxu1  ;;  %v3752_v35 = vpop.f32.mrf.mxu0  ;;  %v19913_v1 = vld [vmem:[%s27726_s2 + $0x102c] ss:$16 sps:$4 sm:$0xff]   ;;  %v19908_v29 = vld [vmem:[%s27726_s2 + $0x1020] ss:$16 sps:$4 sm:$0xff]   ;;  %v19917_v9 = vld [vmem:[%s27726_s2 + $0x1008] ss:$16 sps:$4 sm:$0xff]  }
 0x2f6   :  { %5476 = vmatmul.mubr.bf16.gmra.mxu1 %v5047_v52  ;;  %5529 = vmatmul.mubr.bf16.gmra.mxu0 %v5047_v52  ;;  %v24070_v38 = vadd.f32 %v3699_v40, %v23783_v55  ;;  %v24073_v15 = vadd.f32 %v3752_v35, %v23786_v28  ;;  %v19890_v55 = vld [vmem:[%s27726_s2 + $0x1080] ss:$16 sps:$4 sm:$0xff]   ;;  %v19893_v28 = vld [vmem:[%s27726_s2 + $0x1088] ss:$16 sps:$4 sm:$0xff]   ;;  %v19922_v13 = vld [vmem:[%s27726_s2 + $0x11e4] ss:$16 sps:$4 sm:$0xff]  }
 0x2f7   :  { %6071 = vmatprep.mubr.bf16.mxu1 %v5652_v47  ;;  %6124 = vmatprep.mubr.bf16.mxu0 %v5652_v47  ;;  %v3701_v43 = vpop.f32.mrf.mxu1  ;;  %v3754_v59 = vpop.f32.mrf.mxu0  ;;  %v19928_v52 = vld [vmem:[%s27726_s2 + $0x11c4] ss:$16 sps:$4 sm:$0xff]   ;;  %v19931_v47 = vld [vmem:[%s27726_s2 + $0x11cc] ss:$16 sps:$4 sm:$0xff]   ;;  %v19926_v40 = vld [vmem:[%s27726_s2 + $0x11c0] ss:$16 sps:$4 sm:$0xff]  }
 0x2f8   :  { %6044 = vmatpush1.bf16.msra.mxu1 %v19881_v48  ;;  %6097 = vmatpush1.bf16.msra.mxu0 %v19884_v58  ;;  %v24076_v36 = vadd.f32 %v3701_v43, %v23789_v18  ;;  %v24079_v45 = vadd.f32 %v3754_v59, %v23792_v51  ;;  %v19901_v18 = vld [vmem:[%s27726_s2 + $0x106c] ss:$16 sps:$4 sm:$0xff]   ;;  %v19896_v51 = vld [vmem:[%s27726_s2 + $0x1060] ss:$16 sps:$4 sm:$0xff]   ;;  %v19929_v35 = vld [vmem:[%s27726_s2 + $0x11c8] ss:$16 sps:$4 sm:$0xff]  }
 0x2f9   :  { %6045 = vmatprep.subr.bf16.mxu1 %v19892_v16  ;;  %6098 = vmatprep.subr.bf16.mxu0 %v19895_v22  ;;  %v19919_v48 = vld [vmem:[%s27726_s2 + $0x100c] ss:$16 sps:$4 sm:$0xff]   ;;  %v19914_v58 = vld [vmem:[%s27726_s2 + $0x1000] ss:$16 sps:$4 sm:$0xff]   ;;  %v19923_v22 = vld [vmem:[%s27726_s2 + $0x11e8] ss:$16 sps:$4 sm:$0xff]  }
 0x2fa   :  { %v19920_v16 = vld [vmem:[%s27726_s2 + $0x11e0] ss:$16 sps:$4 sm:$0xff]   ;;  %v19934_v43 = vld [vmem:[%s27726_s2 + $0x11a4] ss:$16 sps:$4 sm:$0xff]   ;;  %v19937_v59 = vld [vmem:[%s27726_s2 + $0x11ac] ss:$16 sps:$4 sm:$0xff]  }
 0x2fc   :  { %6046 = vmatpush1.bf16.msra.mxu1 %v19890_v55  ;;  %6099 = vmatpush1.bf16.msra.mxu0 %v19893_v28  ;;  %v19932_v55 = vld [vmem:[%s27726_s2 + $0x11a0] ss:$16 sps:$4 sm:$0xff]   ;;  %v19935_v28 = vld [vmem:[%s27726_s2 + $0x11a8] ss:$16 sps:$4 sm:$0xff]  }
 0x2fd   :  { %6047 = vmatprep.subr.bf16.mxu1 %v19898_v39  ;;  %6100 = vmatprep.subr.bf16.mxu0 %v19901_v18  ;;  %v19940_v39 = vld [vmem:[%s27726_s2 + $0x1184] ss:$16 sps:$4 sm:$0xff]   ;;  %v19943_v18 = vld [vmem:[%s27726_s2 + $0x118c] ss:$16 sps:$4 sm:$0xff]  }
 0x300   :  { %6048 = vmatpush1.bf16.msra.mxu1 %v19896_v51  ;;  %6101 = vmatpush1.bf16.msra.mxu0 %v19899_v12  ;;  %v19938_v51 = vld [vmem:[%s27726_s2 + $0x1180] ss:$16 sps:$4 sm:$0xff]   ;;  %v19941_v12 = vld [vmem:[%s27726_s2 + $0x1188] ss:$16 sps:$4 sm:$0xff]  }
 0x301   :  { %6049 = vmatprep.subr.bf16.mxu1 %v19904_v3  ;;  %6102 = vmatprep.subr.bf16.mxu0 %v19907_v62  ;;  %v19946_v3 = vld [vmem:[%s27726_s2 + $0x1164] ss:$16 sps:$4 sm:$0xff]   ;;  %v19949_v62 = vld [vmem:[%s27726_s2 + $0x116c] ss:$16 sps:$4 sm:$0xff]  }
 0x304   :  { %6050 = vmatpush1.bf16.msra.mxu1 %v19902_v5  ;;  %6103 = vmatpush1.bf16.msra.mxu0 %v19905_v23  ;;  %v5569_v5 = vld [vmem:[#allocation2 + $0x90] sm:$0x3c] }
 0x305   :  { %6051 = vmatprep.subr.bf16.mxu1 %v19910_v27  ;;  %6104 = vmatprep.subr.bf16.mxu0 %v19913_v1  ;;  %v5570_v23 = vld [vmem:[#allocation2 + $0xb0] sm:$0x3c]  ;;  %v19947_v1 = vld [vmem:[%s27726_s2 + $0x1168] ss:$16 sps:$4 sm:$0xff]  }
 0x306   :  { %v19944_v27 = vld [vmem:[%s27726_s2 + $0x1160] ss:$16 sps:$4 sm:$0xff]  }
 0x308   :  { %6052 = vmatpush1.bf16.msra.mxu1 %v19908_v29  ;;  %6105 = vmatpush1.bf16.msra.mxu0 %v19911_v37  ;;  %v19952_v29 = vld [vmem:[%s27726_s2 + $0x1144] ss:$16 sps:$4 sm:$0xff]   ;;  %v19955_v37 = vld [vmem:[%s27726_s2 + $0x114c] ss:$16 sps:$4 sm:$0xff]  }
 0x309   :  { %6053 = vmatprep.subr.bf16.mxu1 %v19916_v60  ;;  %6106 = vmatprep.subr.bf16.mxu0 %v19919_v48  ;;  %v19974_v60 = vld [vmem:[#allocation2 + $0x18] ss:$264 sps:$4 sm:$0xcc]   ;;  %v19976_v48 = vld [vmem:[#allocation2 + $0x1c] ss:$264 sps:$4 sm:$0x33]  }
 0x30c   :  { %6054 = vmatpush1.bf16.msra.mxu1 %v19914_v58  ;;  %6107 = vmatpush1.bf16.msra.mxu0 %v19917_v9  ;;  %v19977_v58 = vld [vmem:[#allocation2 + $0x8] ss:$696 sps:$4 sm:$0xcc]  }
 0x30d   :  { %6055 = vmatprep.subr.bf16.mxu1 %v19922_v13  ;;  %6108 = vmatprep.subr.bf16.mxu0 %v19925_v21  ;;  %v19980_v9 = vld [vmem:[#allocation2 + $0x2c8] ss:$-248 sps:$4 sm:$0xcc]   ;;  %v19982_v13 = vld [vmem:[#allocation2 + $0x2cc] ss:$-248 sps:$4 sm:$0x33]  }
 0x30e   :  { %v19950_v21 = vld [vmem:[%s27726_s2 + $0x1140] ss:$16 sps:$4 sm:$0xff]  }
 0x310   :  { %6056 = vmatpush2.bf16.msra.mxu1 %v19920_v16  ;;  %6109 = vmatpush2.bf16.msra.mxu0 %v19923_v22  ;;  %v19953_v16 = vld [vmem:[%s27726_s2 + $0x1148] ss:$16 sps:$4 sm:$0xff]   ;;  %v5601_v22 = vcombine.low %v5569_v5, %v5570_v23 }
 0x311   :  { %6057 = vmatprep.subr.bf16.mxu1 %v19928_v52  ;;  %6110 = vmatprep.subr.bf16.mxu0 %v19931_v47  ;;  %v19958_v52 = vld [vmem:[%s27726_s2 + $0x1124] ss:$16 sps:$4 sm:$0xff]   ;;  %v19961_v47 = vld [vmem:[%s27726_s2 + $0x112c] ss:$16 sps:$4 sm:$0xff]  }
 0x314   :  { %6058 = vmatpush2.bf16.msra.mxu1 %v19926_v40  ;;  %6111 = vmatpush2.bf16.msra.mxu0 %v19929_v35  ;;  %v19979_v40 = vld [vmem:[#allocation2 + $0xc] ss:$696 sps:$4 sm:$0x33]   ;;  %v5602_v35 = vcombine.high %v5569_v5, %v5570_v23 }
 0x315   :  { %6059 = vmatprep.subr.bf16.mxu1 %v19934_v43  ;;  %6112 = vmatprep.subr.bf16.mxu0 %v19937_v59  ;;  %v17092_v43 = vrot.slane %v19974_v60, 10  ;;  %v5621_v59 = vrot.slane %v19976_v48, 6  ;;  %v19967_v5 = vld [vmem:[%s27726_s2 + $0x110c] ss:$16 sps:$4 sm:$0xff]   ;;  %v5625_v23 = vrot.slane %v19979_v40, 6  ;;  %v5637_v48 = vcombine.low %v24032_v63, %v24007_v50 }
 0x316   :  { %v5635_v50 = vcombine.low %v24053_v17, %v24013_v32  ;;  %v19971_v32 = vld [vmem:[%s27726_s2 + $0x12e8] ss:$16 sps:$4 sm:$0xff]   ;;  %v19985_v17 = vld [vmem:[%s27726_s2 + $0x12c4] ss:$16 sps:$4 sm:$0xff]  }
 0x318   :  { %6060 = vmatpush2.bf16.msra.mxu1 %v19932_v55  ;;  %6113 = vmatpush2.bf16.msra.mxu0 %v19935_v28  ;;  %v17093_v55 = vrot.slane %v19977_v58, 10  ;;  %v17095_v28 = vrot.slane %v5601_v22, 10  ;;  %v19973_v58 = vld [vmem:[%s27726_s2 + $0x12ec] ss:$16 sps:$4 sm:$0xff]   ;;  %v5651_v40 = vpack.c.bf16 %v5637_v48, %v5635_v50 }
 0x319   :  { %6061 = vmatprep.subr.bf16.mxu1 %v19940_v39  ;;  %6114 = vmatprep.subr.bf16.mxu0 %v19943_v18  ;;  %v19956_v39 = vld [vmem:[%s27726_s2 + $0x1120] ss:$16 sps:$4 sm:$0xff]   ;;  %v17094_v18 = vrot.slane %v19980_v9, 10  ;;  %v5622_v9 = vsel %vm22494_vm6, %v17092_v43, %v5621_v59 }
 0x31a   :  { %v19968_v59 = vld [vmem:[%s27726_s2 + $0x12e0] ss:$16 sps:$4 sm:$0xff]  }
 0x31c   :  { %6062 = vmatpush2.bf16.msra.mxu1 %v19938_v51  ;;  %6115 = vmatpush2.bf16.msra.mxu0 %v19941_v12  ;;  %v5629_v51 = vrot.slane %v19982_v13, 6  ;;  %v5633_v12 = vrot.slane %v5602_v35, 6  ;;  %v5626_v13 = vsel %vm22494_vm6, %v17093_v55, %v5625_v23 }
 0x31d   :  { %6063 = vmatprep.subr.bf16.mxu1 %v19946_v3  ;;  %6116 = vmatprep.subr.bf16.mxu0 %v19949_v62  ;;  %v19959_v3 = vld [vmem:[%s27726_s2 + $0x1128] ss:$16 sps:$4 sm:$0xff]   ;;  %v19964_v62 = vld [vmem:[%s27726_s2 + $0x1104] ss:$16 sps:$4 sm:$0xff]   ;;  %v5639_v48 = vcombine.low %v5622_v9, %v5626_v13 }
 0x31e   :  { %v24240_v60 = vsel %vm22494_vm6, %v17095_v28, %v5633_v12 }
 0x320   :  { %6064 = vmatpush2.bf16.msra.mxu1 %v19944_v27  ;;  %6117 = vmatpush2.bf16.msra.mxu0 %v19947_v1  ;;  %v19962_v27 = vld [vmem:[%s27726_s2 + $0x1100] ss:$16 sps:$4 sm:$0xff]   ;;  %v19965_v1 = vld [vmem:[%s27726_s2 + $0x1108] ss:$16 sps:$4 sm:$0xff]  }
 0x321   :  { %6065 = vmatprep.subr.bf16.mxu1 %v19952_v29  ;;  %6118 = vmatprep.subr.bf16.mxu0 %v19955_v37  ;;  %v19970_v29 = vld [vmem:[%s27726_s2 + $0x12e4] ss:$16 sps:$4 sm:$0xff]   ;;  %v24236_v37 = vsel %vm22494_vm6, %v17094_v18, %v5629_v51  ;;  %v6165_v51 = vld [vmem:[#allocation2 + $0xa8] sm:$0xf] }
 0x322   :  { %v5642_v22 = vcombine.high %v24236_v37, %v24240_v60 }
 0x324   :  { %6066 = vmatpush2.bf16.msra.mxu1 %v19950_v21  ;;  %6119 = vmatpush2.bf16.msra.mxu0 %v19953_v16  ;;  %v24251_v21 = vpop.f32.mrf.mxu1  ;;  %v24253_v16 = vpop.f32.mrf.mxu0 }
 0x325   :  { %6067 = vmatprep.subr.bf16.mxu1 %v19958_v52  ;;  %6120 = vmatprep.subr.bf16.mxu0 %v19961_v47  ;;  %27751 = vst [vmem:[#allocation10_spill] sm:$0xff] %v24251_v21  ;;  %27752 = vst [vmem:[#allocation11_spill] sm:$0xff] %v24253_v16  ;;  %v5640_v47 = vcombine.high %v5622_v9, %v5626_v13  ;;  %v19992_v9 = vld [vmem:[%s27726_s2 + $0x12a8] ss:$16 sps:$4 sm:$0xff]   ;;  %v6174_v21 = vld [vmem:[#allocation2 + $0x140] sm:$0xf] }
 0x327   :  { %v5654_v55 = vpack.c.bf16 %v5642_v22, %v5640_v47  ;;  %v19989_v47 = vld [vmem:[%s27726_s2 + $0x12a0] ss:$16 sps:$4 sm:$0xff]  }
 0x328   :  { %6068 = vmatpush2.bf16.msra.mxu1 %v19956_v39  ;;  %6121 = vmatpush2.bf16.msra.mxu0 %v19959_v3 }
 0x329   :  { %6069 = vmatprep.subr.bf16.mxu1 %v19964_v62  ;;  %6122 = vmatprep.subr.bf16.mxu0 %v19967_v5  ;;  %v19995_v62 = vld [vmem:[#allocation2 + $0x98] ss:$248 sps:$4 sm:$0xff]  }
 0x32c   :  { %6070 = vmatpush2.bf16.msra.mxu1 %v19962_v27  ;;  %6123 = vmatpush2.bf16.msra.mxu0 %v19965_v1  ;;  %v4293_v63 = vpop.f32.mrf.mxu1  ;;  %v4346_v52 = vpop.f32.mrf.mxu0  ;;  %v5641_v27 = vcombine.low %v24236_v37, %v24240_v60  ;;  %v19991_v1 = vld [vmem:[%s27726_s2 + $0x12a4] ss:$16 sps:$4 sm:$0xff]  }
 0x32d   :  { %v24260_v35 = vadd.f32 %v4293_v63, %v23993_v53  ;;  %v24263_v43 = vadd.f32 %v4346_v52, %v23996_v8  ;;  %6607 = vmatprep.subr.bf16.mxu1 %v19970_v29  ;;  %6660 = vmatprep.subr.bf16.mxu0 %v19973_v58  ;;  %v19988_v8 = vld [vmem:[%s27726_s2 + $0x12cc] ss:$16 sps:$4 sm:$0xff]   ;;  %v6163_v58 = vld [vmem:[#allocation2 + $0x168] sm:$0xf] }
 0x32e   :  { %v4295_v53 = vpop.f32.mrf.mxu1  ;;  %v4348_v28 = vpop.f32.mrf.mxu0  ;;  %v19994_v29 = vld [vmem:[%s27726_s2 + $0x12ac] ss:$16 sps:$4 sm:$0xff]   ;;  %v17225_v63 = vcombine.low %v6163_v58, %v6165_v51  ;;  %v5653_v52 = vpack.c.bf16 %v5641_v27, %v5639_v48  ;;  %v20004_v51 = vld [vmem:[%s27726_s2 + $0x1264] ss:$16 sps:$4 sm:$0xff]   ;;  %v20017_v48 = vld [vmem:[%s27726_s2 + $0x1228] ss:$16 sps:$4 sm:$0xff]  }
 0x32f   :  { %6072 = vmatmul.mubr.bf16.vlgmr.msra.gmra.mxu1 %v5651_v40  ;;  %6125 = vmatmul.mubr.bf16.vlgmr.msra.gmra.mxu0 %v5651_v40  ;;  %v24278_v39 = vadd.f32 %v4295_v53, %v24000_v44  ;;  %v24281_v18 = vadd.f32 %v4348_v28, %v24003_v56  ;;  %v19983_v44 = vld [vmem:[%s27726_s2 + $0x12c0] ss:$16 sps:$4 sm:$0xff]   ;;  %v19986_v56 = vld [vmem:[%s27726_s2 + $0x12c8] ss:$16 sps:$4 sm:$0xff]   ;;  %v20016_v27 = vld [vmem:[%s27726_s2 + $0x1224] ss:$16 sps:$4 sm:$0xff]  }
 0x330   :  { %6081 = vmatprep.mubr.bf16.mxu1 %v5654_v55  ;;  %6134 = vmatprep.mubr.bf16.mxu0 %v5654_v55  ;;  %v4297_v12 = vpop.f32.mrf.mxu1  ;;  %v4350_v3 = vpop.f32.mrf.mxu0  ;;  %v6219_v13 = vpack.c.bf16 %v19995_v62, %v17225_v63  ;;  %v20013_v62 = vld [vmem:[%s27726_s2 + $0x124c] ss:$16 sps:$4 sm:$0xff]   ;;  %v20022_v58 = vld [vmem:[%s27726_s2 + $0x1204] ss:$16 sps:$4 sm:$0xff]   ;;  %v20023_v63 = vld [vmem:[%s27726_s2 + $0x1208] ss:$16 sps:$4 sm:$0xff]  }
 0x331   :  { %6608 = vmatpush1.bf16.msra.mxu1 %v19968_v59  ;;  %6661 = vmatpush1.bf16.msra.mxu0 %v19971_v32  ;;  %v24284_v5 = vadd.f32 %v4297_v12, %v24016_v19  ;;  %v24287_v23 = vadd.f32 %v4350_v3, %v24019_v20  ;;  %v20005_v12 = vld [vmem:[%s27726_s2 + $0x1268] ss:$16 sps:$4 sm:$0xff]   ;;  %v20010_v3 = vld [vmem:[%s27726_s2 + $0x1244] ss:$16 sps:$4 sm:$0xff]  }
 0x332   :  { %6609 = vmatprep.subr.bf16.mxu1 %v19985_v17  ;;  %6662 = vmatprep.subr.bf16.mxu0 %v19988_v8  ;;  %v24300_v19 = vpop.f32.mrf.mxu1  ;;  %v24302_v20 = vpop.f32.mrf.mxu0 }
 0x333   :  { %27753 = vst [vmem:[#allocation12_spill] sm:$0xff] %v24300_v19  ;;  %27754 = vst [vmem:[#allocation13_spill] sm:$0xff] %v24302_v20  ;;  %v20174_v20 = vld [vmem:[%s27726_s2 + $0x1500] ss:$16 sps:$4 sm:$0xff]  }
 0x334   :  { %v4303_v22 = vpop.f32.mrf.mxu1  ;;  %v4356_v50 = vpop.f32.mrf.mxu0 }
 0x335   :  { %6610 = vmatpush1.bf16.msra.mxu1 %v19983_v44  ;;  %6663 = vmatpush1.bf16.msra.mxu0 %v19986_v56  ;;  %v24308_v37 = vadd.f32 %v4303_v22, %v24064_v30  ;;  %v24311_v60 = vadd.f32 %v4356_v50, %v24067_v33  ;;  %v19998_v30 = vld [vmem:[%s27726_s2 + $0x1284] ss:$16 sps:$4 sm:$0xff]   ;;  %v20001_v33 = vld [vmem:[%s27726_s2 + $0x128c] ss:$16 sps:$4 sm:$0xff]   ;;  %v20008_v44 = vld [vmem:[%s27726_s2 + $0x1240] ss:$16 sps:$4 sm:$0xff]  }
 0x336   :  { %6611 = vmatprep.subr.bf16.mxu1 %v19991_v1  ;;  %6664 = vmatprep.subr.bf16.mxu0 %v19994_v29  ;;  %v4305_v40 = vpop.f32.mrf.mxu1  ;;  %v4358_v59 = vpop.f32.mrf.mxu0  ;;  %v20011_v56 = vld [vmem:[%s27726_s2 + $0x1248] ss:$16 sps:$4 sm:$0xff]   ;;  %v20019_v1 = vld [vmem:[%s27726_s2 + $0x122c] ss:$16 sps:$4 sm:$0xff]   ;;  %v20014_v29 = vld [vmem:[%s27726_s2 + $0x1220] ss:$16 sps:$4 sm:$0xff]  }
 0x337   :  { %6082 = vmatmul.mubr.bf16.gmra.mxu1 %v5653_v52  ;;  %6135 = vmatmul.mubr.bf16.gmra.mxu0 %v5653_v52  ;;  %v24326_v32 = vadd.f32 %v4305_v40, %v24070_v38  ;;  %v24329_v17 = vadd.f32 %v4358_v59, %v24073_v15  ;;  %v19996_v38 = vld [vmem:[%s27726_s2 + $0x1280] ss:$16 sps:$4 sm:$0xff]   ;;  %v19999_v15 = vld [vmem:[%s27726_s2 + $0x1288] ss:$16 sps:$4 sm:$0xff]   ;;  %v20025_v22 = vld [vmem:[%s27726_s2 + $0x120c] ss:$16 sps:$4 sm:$0xff]  }
 0x338   :  { %6639 = vmatprep.mubr.bf16.mxu1 %v6219_v13  ;;  %6692 = vmatprep.mubr.bf16.mxu0 %v6219_v13  ;;  %v4307_v55 = vpop.f32.mrf.mxu1  ;;  %v4360_v53 = vpop.f32.mrf.mxu0  ;;  %v20020_v50 = vld [vmem:[%s27726_s2 + $0x1200] ss:$16 sps:$4 sm:$0xff]   ;;  %v20028_v52 = vld [vmem:[%s27726_s2 + $0x13e4] ss:$16 sps:$4 sm:$0xff]   ;;  %v20029_v13 = vld [vmem:[%s27726_s2 + $0x13e8] ss:$16 sps:$4 sm:$0xff]  }
 0x339   :  { %6612 = vmatpush1.bf16.msra.mxu1 %v19989_v47  ;;  %6665 = vmatpush1.bf16.msra.mxu0 %v19992_v9  ;;  %v24332_v28 = vadd.f32 %v4307_v55, %v24076_v36  ;;  %v24335_v8 = vadd.f32 %v4360_v53, %v24079_v45  ;;  %v20007_v36 = vld [vmem:[%s27726_s2 + $0x126c] ss:$16 sps:$4 sm:$0xff]   ;;  %v20002_v45 = vld [vmem:[%s27726_s2 + $0x1260] ss:$16 sps:$4 sm:$0xff]   ;;  %v20034_v40 = vld [vmem:[%s27726_s2 + $0x13c4] ss:$16 sps:$4 sm:$0xff]  }
 0x33a   :  { %6613 = vmatprep.subr.bf16.mxu1 %v19998_v30  ;;  %6666 = vmatprep.subr.bf16.mxu0 %v20001_v33  ;;  %v20031_v47 = vld [vmem:[%s27726_s2 + $0x13ec] ss:$16 sps:$4 sm:$0xff]   ;;  %v20026_v9 = vld [vmem:[%s27726_s2 + $0x13e0] ss:$16 sps:$4 sm:$0xff]   ;;  %v20035_v33 = vld [vmem:[%s27726_s2 + $0x13c8] ss:$16 sps:$4 sm:$0xff]  }
 0x33b   :  { %v20037_v59 = vld [vmem:[%s27726_s2 + $0x13cc] ss:$16 sps:$4 sm:$0xff]   ;;  %v20032_v30 = vld [vmem:[%s27726_s2 + $0x13c0] ss:$16 sps:$4 sm:$0xff]   ;;  %v20040_v55 = vld [vmem:[%s27726_s2 + $0x13a4] ss:$16 sps:$4 sm:$0xff]  }
 0x33c   :  { %v20043_v53 = vld [vmem:[%s27726_s2 + $0x13ac] ss:$16 sps:$4 sm:$0xff]  }
 0x33d   :  { %6614 = vmatpush1.bf16.msra.mxu1 %v19996_v38  ;;  %6667 = vmatpush1.bf16.msra.mxu0 %v19999_v15  ;;  %v20038_v38 = vld [vmem:[%s27726_s2 + $0x13a0] ss:$16 sps:$4 sm:$0xff]   ;;  %v20041_v15 = vld [vmem:[%s27726_s2 + $0x13a8] ss:$16 sps:$4 sm:$0xff]  }
 0x33e   :  { %6615 = vmatprep.subr.bf16.mxu1 %v20004_v51  ;;  %6668 = vmatprep.subr.bf16.mxu0 %v20007_v36  ;;  %v20046_v51 = vld [vmem:[%s27726_s2 + $0x1384] ss:$16 sps:$4 sm:$0xff]   ;;  %v20049_v36 = vld [vmem:[%s27726_s2 + $0x138c] ss:$16 sps:$4 sm:$0xff]  }
 0x341   :  { %6616 = vmatpush1.bf16.msra.mxu1 %v20002_v45  ;;  %6669 = vmatpush1.bf16.msra.mxu0 %v20005_v12  ;;  %v20044_v45 = vld [vmem:[%s27726_s2 + $0x1380] ss:$16 sps:$4 sm:$0xff]   ;;  %v20047_v12 = vld [vmem:[%s27726_s2 + $0x1388] ss:$16 sps:$4 sm:$0xff]  }
 0x342   :  { %6617 = vmatprep.subr.bf16.mxu1 %v20010_v3  ;;  %6670 = vmatprep.subr.bf16.mxu0 %v20013_v62  ;;  %v20052_v3 = vld [vmem:[%s27726_s2 + $0x1364] ss:$16 sps:$4 sm:$0xff]   ;;  %v20055_v62 = vld [vmem:[%s27726_s2 + $0x136c] ss:$16 sps:$4 sm:$0xff]  }
 0x345   :  { %6618 = vmatpush1.bf16.msra.mxu1 %v20008_v44  ;;  %6671 = vmatpush1.bf16.msra.mxu0 %v20011_v56  ;;  %v20050_v44 = vld [vmem:[%s27726_s2 + $0x1360] ss:$16 sps:$4 sm:$0xff]   ;;  %v20053_v56 = vld [vmem:[%s27726_s2 + $0x1368] ss:$16 sps:$4 sm:$0xff]  }
 0x346   :  { %6619 = vmatprep.subr.bf16.mxu1 %v20016_v27  ;;  %6672 = vmatprep.subr.bf16.mxu0 %v20019_v1  ;;  %v20058_v27 = vld [vmem:[%s27726_s2 + $0x1344] ss:$16 sps:$4 sm:$0xff]   ;;  %v20061_v1 = vld [vmem:[%s27726_s2 + $0x134c] ss:$16 sps:$4 sm:$0xff]  }
 0x349   :  { %6620 = vmatpush1.bf16.msra.mxu1 %v20014_v29  ;;  %6673 = vmatpush1.bf16.msra.mxu0 %v20017_v48  ;;  %v20056_v29 = vld [vmem:[%s27726_s2 + $0x1340] ss:$16 sps:$4 sm:$0xff]   ;;  %v20059_v48 = vld [vmem:[%s27726_s2 + $0x1348] ss:$16 sps:$4 sm:$0xff]  }
 0x34a   :  { %6621 = vmatprep.subr.bf16.mxu1 %v20022_v58  ;;  %6674 = vmatprep.subr.bf16.mxu0 %v20025_v22  ;;  %v20064_v58 = vld [vmem:[%s27726_s2 + $0x1324] ss:$16 sps:$4 sm:$0xff]   ;;  %v20067_v22 = vld [vmem:[%s27726_s2 + $0x132c] ss:$16 sps:$4 sm:$0xff]  }
 0x34d   :  { %6622 = vmatpush1.bf16.msra.mxu1 %v20020_v50  ;;  %6675 = vmatpush1.bf16.msra.mxu0 %v20023_v63  ;;  %v20062_v50 = vld [vmem:[%s27726_s2 + $0x1320] ss:$16 sps:$4 sm:$0xff]   ;;  %v20065_v63 = vld [vmem:[%s27726_s2 + $0x1328] ss:$16 sps:$4 sm:$0xff]  }
 0x34e   :  { %6623 = vmatprep.subr.bf16.mxu1 %v20028_v52  ;;  %6676 = vmatprep.subr.bf16.mxu0 %v20031_v47  ;;  %v20070_v52 = vld [vmem:[%s27726_s2 + $0x1304] ss:$16 sps:$4 sm:$0xff]   ;;  %v20073_v47 = vld [vmem:[%s27726_s2 + $0x130c] ss:$16 sps:$4 sm:$0xff]  }
 0x351   :  { %6624 = vmatpush2.bf16.msra.mxu1 %v20026_v9  ;;  %6677 = vmatpush2.bf16.msra.mxu0 %v20029_v13  ;;  %v6168_v9 = vld [vmem:[#allocation2 + $0x38] sm:$0xf]  ;;  %v6731_v13 = vld [vmem:[#allocation2 + $0x228] sm:$0x1e] }
 0x352   :  { %6625 = vmatprep.subr.bf16.mxu1 %v20034_v40  ;;  %6678 = vmatprep.subr.bf16.mxu0 %v20037_v59  ;;  %v6732_v40 = vld [vmem:[#allocation2 + $0xa8] sm:$0x1e]  ;;  %v6733_v59 = vld [vmem:[#allocation2 + $0x158] sm:$0x1e] }
 0x355   :  { %6626 = vmatpush2.bf16.msra.mxu1 %v20032_v30  ;;  %6679 = vmatpush2.bf16.msra.mxu0 %v20035_v33  ;;  %v6734_v30 = vld [vmem:[#allocation2 + $0x98] sm:$0x1e] }
 0x356   :  { %6627 = vmatprep.subr.bf16.mxu1 %v20040_v55  ;;  %6680 = vmatprep.subr.bf16.mxu0 %v20043_v53  ;;  %v6166_v33 = vld [vmem:[#allocation2 + $0x158] sm:$0xf]  ;;  %v20101_v53 = vld [vmem:[#allocation2 + $0x3c] ss:$344 sps:$4 sm:$0x11]  }
 0x357   :  { %v20099_v55 = vld [vmem:[#allocation2 + $0x38] ss:$344 sps:$4 sm:$0xee]  }
 0x358   :  { %v17363_v16 = vrot.slane %v20099_v55, 9 }
 0x359   :  { %6628 = vmatpush2.bf16.msra.mxu1 %v20038_v38  ;;  %6681 = vmatpush2.bf16.msra.mxu0 %v20041_v15  ;;  %v20068_v38 = vld [vmem:[%s27726_s2 + $0x1300] ss:$16 sps:$4 sm:$0xff]   ;;  %v20071_v15 = vld [vmem:[%s27726_s2 + $0x1308] ss:$16 sps:$4 sm:$0xff]  }
 0x35a   :  { %6629 = vmatprep.subr.bf16.mxu1 %v20046_v51  ;;  %6682 = vmatprep.subr.bf16.mxu0 %v20049_v36  ;;  %v20077_v51 = vld [vmem:[%s27726_s2 + $0x14e4] ss:$16 sps:$4 sm:$0xff]   ;;  %v20080_v36 = vld [vmem:[%s27726_s2 + $0x14ec] ss:$16 sps:$4 sm:$0xff]  }
 0x35d   :  { %6630 = vmatpush2.bf16.msra.mxu1 %v20044_v45  ;;  %6683 = vmatpush2.bf16.msra.mxu0 %v20047_v12  ;;  %v20074_v45 = vld [vmem:[#allocation2 + $0x2a0] ss:$-120 sps:$4 sm:$0xff]   ;;  %v17226_v12 = vcombine.low %v6166_v33, %v6168_v9 }
 0x35e   :  { %6631 = vmatprep.subr.bf16.mxu1 %v20052_v3  ;;  %6684 = vmatprep.subr.bf16.mxu0 %v20055_v62  ;;  %v20082_v3 = vld [vmem:[#allocation2 + $0x230] ss:$-344 sps:$4 sm:$0xff]   ;;  %v24493_v62 = vld [vmem:[#allocation2 + $0x2a0] ss:$-312 sps:$4 sm:$0xee]  }
 0x35f   :  { %v6218_v33 = vpack.c.bf16 %v17226_v12, %v20074_v45 }
 0x361   :  { %6632 = vmatpush2.bf16.msra.mxu1 %v20050_v44  ;;  %6685 = vmatpush2.bf16.msra.mxu0 %v20053_v56  ;;  %v6763_v44 = vcombine.low %v6731_v13, %v6732_v40  ;;  %v6764_v56 = vcombine.high %v6731_v13, %v6732_v40 }
 0x362   :  { %6633 = vmatprep.subr.bf16.mxu1 %v20058_v27  ;;  %6686 = vmatprep.subr.bf16.mxu0 %v20061_v1  ;;  %v6765_v27 = vcombine.low %v6733_v59, %v6734_v30  ;;  %v6766_v1 = vcombine.high %v6733_v59, %v6734_v30  ;;  %v20075_v59 = vld [vmem:[%s27726_s2 + $0x14e0] ss:$16 sps:$4 sm:$0xff]   ;;  %v20078_v30 = vld [vmem:[%s27726_s2 + $0x14e8] ss:$16 sps:$4 sm:$0xff]  }
 0x363   :  { %v17361_v13 = vrot.slane %v6763_v44, 9 }
 0x364   :  { %v17362_v55 = vrot.slane %v6765_v27, 9 }
 0x365   :  { %6634 = vmatpush2.bf16.msra.mxu1 %v20056_v29  ;;  %6687 = vmatpush2.bf16.msra.mxu0 %v20059_v48  ;;  %v24495_v29 = vpop.f32.mrf.mxu1  ;;  %v24497_v48 = vpop.f32.mrf.mxu0 }
 0x366   :  { %6635 = vmatprep.subr.bf16.mxu1 %v20064_v58  ;;  %6688 = vmatprep.subr.bf16.mxu0 %v20067_v22  ;;  %27755 = vst [vmem:[#allocation14_spill] sm:$0xff] %v24495_v29  ;;  %27756 = vst [vmem:[#allocation15_spill] sm:$0xff] %v24497_v48  ;;  %v20098_v58 = vld [vmem:[#allocation2 + $0x2a4] ss:$-312 sps:$4 sm:$0x11]  }
 0x367   :  { %v20081_v22 = vld [vmem:[#allocation2 + $0x180] ss:$272 sps:$4 sm:$0xff]   ;;  %v20171_v48 = vld [vmem:[%s27726_s2 + $0x1528] ss:$16 sps:$4 sm:$0xff]  }
 0x369   :  { %6636 = vmatpush2.bf16.msra.mxu1 %v20062_v50  ;;  %6689 = vmatpush2.bf16.msra.mxu0 %v20065_v63  ;;  %v6791_v50 = vrot.slane %v20101_v53, 5  ;;  %v6787_v53 = vrot.slane %v6766_v1, 5  ;;  %v17230_v1 = vcombine.low %v6174_v21, %v6176_v25  ;;  %v20086_v25 = vld [vmem:[%s27726_s2 + $0x14c8] ss:$16 sps:$4 sm:$0xff]   ;;  %v20092_v21 = vld [vmem:[%s27726_s2 + $0x14a4] ss:$16 sps:$4 sm:$0xff]  }
 0x36a   :  { %6637 = vmatprep.subr.bf16.mxu1 %v20070_v52  ;;  %6690 = vmatprep.subr.bf16.mxu0 %v20073_v47  ;;  %v6783_v52 = vrot.slane %v6764_v56, 5 }
 0x36b   :  { %v24526_v44 = vsel %vm22240_vm13, %v17363_v16, %v6791_v50  ;;  %v20083_v16 = vld [vmem:[%s27726_s2 + $0x14c0] ss:$16 sps:$4 sm:$0xff]  }
 0x36d   :  { %6638 = vmatpush2.bf16.msra.mxu1 %v20068_v38  ;;  %6691 = vmatpush2.bf16.msra.mxu0 %v20071_v15  ;;  %v4861_v63 = vpop.f32.mrf.mxu1  ;;  %v4914_v9 = vpop.f32.mrf.mxu0  ;;  %v6221_v38 = vpack.c.bf16 %v20082_v3, %v20081_v22  ;;  %v6779_v3 = vrot.slane %v20098_v58, 5  ;;  %v24549_v58 = vsel %vm22240_vm13, %v17362_v55, %v6787_v53  ;;  %v20095_v22 = vld [vmem:[%s27726_s2 + $0x14ac] ss:$16 sps:$4 sm:$0xff]   ;;  %v20104_v55 = vld [vmem:[%s27726_s2 + $0x1484] ss:$16 sps:$4 sm:$0xff]  }
 0x36e   :  { %v24500_v47 = vadd.f32 %v4861_v63, %v24260_v35  ;;  %v24503_v40 = vadd.f32 %v4914_v9, %v24263_v43  ;;  %7213 = vmatprep.subr.bf16.mxu1 %v20077_v51  ;;  %7266 = vmatprep.subr.bf16.mxu0 %v20080_v36  ;;  %v20085_v35 = vld [vmem:[%s27726_s2 + $0x14c4] ss:$16 sps:$4 sm:$0xff]   ;;  %v20088_v43 = vld [vmem:[%s27726_s2 + $0x14cc] ss:$16 sps:$4 sm:$0xff]   ;;  %v17360_v51 = vrot.slane %v24493_v62, 9  ;;  %v24530_v62 = vsel %vm22240_vm13, %v17361_v13, %v6783_v52 }
 0x36f   :  { %v4863_v15 = vpop.f32.mrf.mxu1  ;;  %v4916_v45 = vpop.f32.mrf.mxu0  ;;  %v6812_v50 = vcombine.high %v24549_v58, %v24526_v44  ;;  %v20089_v63 = vld [vmem:[#allocation2 + $0x240] ss:$48 sps:$4 sm:$0xff]   ;;  %v20107_v53 = vld [vmem:[%s27726_s2 + $0x148c] ss:$16 sps:$4 sm:$0xff]  }
 0x370   :  { %6640 = vmatmul.mubr.bf16.vlgmr.msra.gmra.mxu1 %v6218_v33  ;;  %6693 = vmatmul.mubr.bf16.vlgmr.msra.gmra.mxu0 %v6218_v33  ;;  %v24519_v12 = vadd.f32 %v4863_v15, %v24278_v39  ;;  %v24522_v36 = vadd.f32 %v4916_v45, %v24281_v18  ;;  %v20090_v9 = vld [vmem:[%s27726_s2 + $0x14a0] ss:$16 sps:$4 sm:$0xff]   ;;  %v20093_v33 = vld [vmem:[%s27726_s2 + $0x14a8] ss:$16 sps:$4 sm:$0xff]   ;;  %v24568_v13 = vsel %vm22240_vm13, %v17360_v51, %v6779_v3 }
 0x371   :  { %6649 = vmatprep.mubr.bf16.mxu1 %v6221_v38  ;;  %6702 = vmatprep.mubr.bf16.mxu0 %v6221_v38  ;;  %v4865_v56 = vpop.f32.mrf.mxu1  ;;  %v4918_v27 = vpop.f32.mrf.mxu0  ;;  %v6220_v45 = vpack.c.bf16 %v17230_v1, %v20089_v63  ;;  %v20117_v63 = vld [vmem:[%s27726_s2 + $0x1448] ss:$16 sps:$4 sm:$0xff]  }
 0x372   :  { %7214 = vmatpush1.bf16.msra.mxu1 %v20075_v59  ;;  %7267 = vmatpush1.bf16.msra.mxu0 %v20078_v30  ;;  %v24533_v39 = vadd.f32 %v4865_v56, %v24284_v5  ;;  %v24536_v18 = vadd.f32 %v4918_v27, %v24287_v23  ;;  %v6810_v30 = vcombine.high %v24568_v13, %v24530_v62 }
 0x373   :  { %7215 = vmatprep.subr.bf16.mxu1 %v20085_v35  ;;  %7268 = vmatprep.subr.bf16.mxu0 %v20088_v43  ;;  %v24551_v5 = vpop.f32.mrf.mxu1  ;;  %v24553_v23 = vpop.f32.mrf.mxu0 }
 0x374   :  { %27757 = vst [vmem:[#allocation16_spill] sm:$0xff] %v24551_v5  ;;  %27758 = vst [vmem:[#allocation17_spill] sm:$0xff] %v24553_v23  ;;  %v6826_v35 = vpack.c.bf16 %v6812_v50, %v6810_v30  ;;  %v20114_v50 = vld [vmem:[%s27726_s2 + $0x1440] ss:$16 sps:$4 sm:$0xff]   ;;  %v20128_v30 = vld [vmem:[%s27726_s2 + $0x1404] ss:$16 sps:$4 sm:$0xff]  }
 0x375   :  { %v4871_v52 = vpop.f32.mrf.mxu1  ;;  %v4924_v59 = vpop.f32.mrf.mxu0  ;;  %v20209_v5 = vld [vmem:[#allocation2 + $0x3c] ss:$344 sps:$4 sm:$0x33]  }
 0x376   :  { %7216 = vmatpush1.bf16.msra.mxu1 %v20083_v16  ;;  %7269 = vmatpush1.bf16.msra.mxu0 %v20086_v25  ;;  %v24579_v38 = vadd.f32 %v4871_v52, %v24308_v37  ;;  %v24582_v15 = vadd.f32 %v4924_v59, %v24311_v60  ;;  %v20110_v16 = vld [vmem:[%s27726_s2 + $0x1464] ss:$16 sps:$4 sm:$0xff]   ;;  %v20111_v25 = vld [vmem:[%s27726_s2 + $0x1468] ss:$16 sps:$4 sm:$0xff]   ;;  %v20120_v52 = vld [vmem:[%s27726_s2 + $0x1420] ss:$16 sps:$4 sm:$0xff]  }
 0x377   :  { %7217 = vmatprep.subr.bf16.mxu1 %v20092_v21  ;;  %7270 = vmatprep.subr.bf16.mxu0 %v20095_v22  ;;  %v4873_v43 = vpop.f32.mrf.mxu1  ;;  %v4926_v51 = vpop.f32.mrf.mxu0  ;;  %v20116_v21 = vld [vmem:[%s27726_s2 + $0x1444] ss:$16 sps:$4 sm:$0xff]   ;;  %v20119_v22 = vld [vmem:[%s27726_s2 + $0x144c] ss:$16 sps:$4 sm:$0xff]   ;;  %v20123_v59 = vld [vmem:[%s27726_s2 + $0x1428] ss:$16 sps:$4 sm:$0xff]  }
 0x378   :  { %6650 = vmatmul.mubr.bf16.gmra.mxu1 %v6220_v45  ;;  %6703 = vmatmul.mubr.bf16.gmra.mxu0 %v6220_v45  ;;  %v24585_v3 = vadd.f32 %v4873_v43, %v24326_v32  ;;  %v24588_v56 = vadd.f32 %v4926_v51, %v24329_v17  ;;  %v20102_v32 = vld [vmem:[%s27726_s2 + $0x1480] ss:$16 sps:$4 sm:$0xff]   ;;  %v20105_v17 = vld [vmem:[%s27726_s2 + $0x1488] ss:$16 sps:$4 sm:$0xff]   ;;  %v20137_v43 = vld [vmem:[%s27726_s2 + $0x15ec] ss:$16 sps:$4 sm:$0xff]  }
 0x379   :  { %7245 = vmatprep.mubr.bf16.mxu1 %v6826_v35  ;;  %7298 = vmatprep.mubr.bf16.mxu0 %v6826_v35  ;;  %v4875_v37 = vpop.f32.mrf.mxu1  ;;  %v4928_v27 = vpop.f32.mrf.mxu0  ;;  %v20129_v45 = vld [vmem:[%s27726_s2 + $0x1408] ss:$16 sps:$4 sm:$0xff]   ;;  %v20134_v35 = vld [vmem:[%s27726_s2 + $0x15e4] ss:$16 sps:$4 sm:$0xff]   ;;  %v20132_v51 = vld [vmem:[%s27726_s2 + $0x15e0] ss:$16 sps:$4 sm:$0xff]  }
 0x37a   :  { %7218 = vmatpush1.bf16.msra.mxu1 %v20090_v9  ;;  %7271 = vmatpush1.bf16.msra.mxu0 %v20093_v33  ;;  %v24591_v60 = vadd.f32 %v4875_v37, %v24332_v28  ;;  %v24594_v1 = vadd.f32 %v4928_v27, %v24335_v8  ;;  %v20113_v28 = vld [vmem:[%s27726_s2 + $0x146c] ss:$16 sps:$4 sm:$0xff]   ;;  %v20108_v8 = vld [vmem:[%s27726_s2 + $0x1460] ss:$16 sps:$4 sm:$0xff]   ;;  %v20122_v9 = vld [vmem:[%s27726_s2 + $0x1424] ss:$16 sps:$4 sm:$0xff]  }
 0x37b   :  { %7219 = vmatprep.subr.bf16.mxu1 %v20104_v55  ;;  %7272 = vmatprep.subr.bf16.mxu0 %v20107_v53  ;;  %v20125_v33 = vld [vmem:[%s27726_s2 + $0x142c] ss:$16 sps:$4 sm:$0xff]   ;;  %v20126_v53 = vld [vmem:[%s27726_s2 + $0x1400] ss:$16 sps:$4 sm:$0xff]   ;;  %v20135_v37 = vld [vmem:[%s27726_s2 + $0x15e8] ss:$16 sps:$4 sm:$0xff]  }
 0x37c   :  { %v20131_v55 = vld [vmem:[%s27726_s2 + $0x140c] ss:$16 sps:$4 sm:$0xff]   ;;  %v20140_v27 = vld [vmem:[%s27726_s2 + $0x15c4] ss:$16 sps:$4 sm:$0xff]  }
 0x37e   :  { %7220 = vmatpush1.bf16.msra.mxu1 %v20102_v32  ;;  %7273 = vmatpush1.bf16.msra.mxu0 %v20105_v17  ;;  %v20143_v32 = vld [vmem:[%s27726_s2 + $0x15cc] ss:$16 sps:$4 sm:$0xff]   ;;  %v20138_v17 = vld [vmem:[%s27726_s2 + $0x15c0] ss:$16 sps:$4 sm:$0xff]  }
 0x37f   :  { %7221 = vmatprep.subr.bf16.mxu1 %v20110_v16  ;;  %7274 = vmatprep.subr.bf16.mxu0 %v20113_v28  ;;  %v20141_v16 = vld [vmem:[%s27726_s2 + $0x15c8] ss:$16 sps:$4 sm:$0xff]   ;;  %v20146_v28 = vld [vmem:[%s27726_s2 + $0x15a4] ss:$16 sps:$4 sm:$0xff]  }
 0x382   :  { %7222 = vmatpush1.bf16.msra.mxu1 %v20108_v8  ;;  %7275 = vmatpush1.bf16.msra.mxu0 %v20111_v25  ;;  %v20149_v8 = vld [vmem:[%s27726_s2 + $0x15ac] ss:$16 sps:$4 sm:$0xff]   ;;  %v20144_v25 = vld [vmem:[%s27726_s2 + $0x15a0] ss:$16 sps:$4 sm:$0xff]  }
 0x383   :  { %7223 = vmatprep.subr.bf16.mxu1 %v20116_v21  ;;  %7276 = vmatprep.subr.bf16.mxu0 %v20119_v22  ;;  %v20147_v21 = vld [vmem:[%s27726_s2 + $0x15a8] ss:$16 sps:$4 sm:$0xff]   ;;  %v20152_v22 = vld [vmem:[%s27726_s2 + $0x1584] ss:$16 sps:$4 sm:$0xff]  }
 0x386   :  { %7224 = vmatpush1.bf16.msra.mxu1 %v20114_v50  ;;  %7277 = vmatpush1.bf16.msra.mxu0 %v20117_v63  ;;  %v20155_v50 = vld [vmem:[%s27726_s2 + $0x158c] ss:$16 sps:$4 sm:$0xff]   ;;  %v20150_v63 = vld [vmem:[%s27726_s2 + $0x1580] ss:$16 sps:$4 sm:$0xff]  }
 0x387   :  { %7225 = vmatprep.subr.bf16.mxu1 %v20122_v9  ;;  %7278 = vmatprep.subr.bf16.mxu0 %v20125_v33  ;;  %v20153_v9 = vld [vmem:[%s27726_s2 + $0x1588] ss:$16 sps:$4 sm:$0xff]   ;;  %v20158_v33 = vld [vmem:[%s27726_s2 + $0x1564] ss:$16 sps:$4 sm:$0xff]  }
 0x38a   :  { %7226 = vmatpush1.bf16.msra.mxu1 %v20120_v52  ;;  %7279 = vmatpush1.bf16.msra.mxu0 %v20123_v59  ;;  %v20161_v52 = vld [vmem:[%s27726_s2 + $0x156c] ss:$16 sps:$4 sm:$0xff]   ;;  %v20156_v59 = vld [vmem:[%s27726_s2 + $0x1560] ss:$16 sps:$4 sm:$0xff]  }
 0x38b   :  { %7227 = vmatprep.subr.bf16.mxu1 %v20128_v30  ;;  %7280 = vmatprep.subr.bf16.mxu0 %v20131_v55  ;;  %v20159_v30 = vld [vmem:[%s27726_s2 + $0x1568] ss:$16 sps:$4 sm:$0xff]   ;;  %v20164_v55 = vld [vmem:[%s27726_s2 + $0x1544] ss:$16 sps:$4 sm:$0xff]  }
 0x38e   :  { %7228 = vmatpush1.bf16.msra.mxu1 %v20126_v53  ;;  %7281 = vmatpush1.bf16.msra.mxu0 %v20129_v45  ;;  %v20167_v53 = vld [vmem:[%s27726_s2 + $0x154c] ss:$16 sps:$4 sm:$0xff]   ;;  %v6737_v45 = vld [vmem:[#allocation2 + $0x240] sm:$0x1e] }
 0x38f   :  { %7229 = vmatprep.subr.bf16.mxu1 %v20134_v35  ;;  %7282 = vmatprep.subr.bf16.mxu0 %v20137_v43  ;;  %v6738_v35 = vld [vmem:[#allocation2 + $0x180] sm:$0x1e] }
 0x390   :  { %v20186_v43 = vld [vmem:[#allocation2 + $0x140] ss:$240 sps:$4 sm:$0xee]  }
 0x392   :  { %7230 = vmatpush2.bf16.msra.mxu1 %v20132_v51  ;;  %7283 = vmatpush2.bf16.msra.mxu0 %v20135_v37  ;;  %v20188_v51 = vld [vmem:[#allocation2 + $0x144] ss:$240 sps:$4 sm:$0x11]  }
 0x393   :  { %7231 = vmatprep.subr.bf16.mxu1 %v20140_v27  ;;  %7284 = vmatprep.subr.bf16.mxu0 %v20143_v32  ;;  %v6739_v37 = vld [vmem:[#allocation2 + $0x270] sm:$0x1e]  ;;  %v20189_v32 = vld [vmem:[#allocation2 + $0x200] ss:$-296 sps:$4 sm:$0xee]  }
 0x394   :  { %v6740_v27 = vld [vmem:[#allocation2 + $0x290] sm:$0x1e]  ;;  %v17367_v29 = vrot.slane %v20189_v32, 9 }
 0x396   :  { %7232 = vmatpush2.bf16.msra.mxu1 %v20138_v17  ;;  %7285 = vmatpush2.bf16.msra.mxu0 %v20141_v16  ;;  %v20191_v17 = vld [vmem:[#allocation2 + $0x204] ss:$-296 sps:$4 sm:$0x11]   ;;  %v20162_v16 = vld [vmem:[%s27726_s2 + $0x1540] ss:$16 sps:$4 sm:$0xff]  }
 0x397   :  { %7233 = vmatprep.subr.bf16.mxu1 %v20146_v28  ;;  %7286 = vmatprep.subr.bf16.mxu0 %v20149_v8  ;;  %v20165_v28 = vld [vmem:[%s27726_s2 + $0x1548] ss:$16 sps:$4 sm:$0xff]   ;;  %v20170_v8 = vld [vmem:[%s27726_s2 + $0x1524] ss:$16 sps:$4 sm:$0xff]  }
 0x39a   :  { %7234 = vmatpush2.bf16.msra.mxu1 %v20144_v25  ;;  %7287 = vmatpush2.bf16.msra.mxu0 %v20147_v21  ;;  %v20173_v25 = vld [vmem:[%s27726_s2 + $0x152c] ss:$16 sps:$4 sm:$0xff]   ;;  %v6769_v21 = vcombine.low %v6737_v45, %v6738_v35 }
 0x39b   :  { %7235 = vmatprep.subr.bf16.mxu1 %v20152_v22  ;;  %7288 = vmatprep.subr.bf16.mxu0 %v20155_v50  ;;  %v6770_v22 = vcombine.high %v6737_v45, %v6738_v35  ;;  %v6771_v50 = vcombine.low %v6739_v37, %v6740_v27  ;;  %v7338_v45 = vld [vmem:[#allocation2 + $0xa8] sm:$0x3c] }
 0x39c   :  { %v17364_v35 = vrot.slane %v6769_v21, 9 }
 0x39d   :  { %v17365_v32 = vrot.slane %v6771_v50, 9 }
 0x39e   :  { %7236 = vmatpush2.bf16.msra.mxu1 %v20150_v63  ;;  %7289 = vmatpush2.bf16.msra.mxu0 %v20153_v9  ;;  %v6772_v63 = vcombine.high %v6739_v37, %v6740_v27  ;;  %v17366_v9 = vrot.slane %v20186_v43, 9  ;;  %v6795_v43 = vrot.slane %v6770_v22, 5  ;;  %v7340_v37 = vld [vmem:[#allocation2 + $0x98] sm:$0x3c] }
 0x39f   :  { %7237 = vmatprep.subr.bf16.mxu1 %v20158_v33  ;;  %7290 = vmatprep.subr.bf16.mxu0 %v20161_v52  ;;  %v6803_v33 = vrot.slane %v20188_v51, 5  ;;  %v20168_v52 = vld [vmem:[%s27726_s2 + $0x1520] ss:$16 sps:$4 sm:$0xff]   ;;  %v7339_v51 = vld [vmem:[#allocation2 + $0x158] sm:$0x3c] }
 0x3a0   :  { %v20207_v27 = vld [vmem:[#allocation2 + $0x38] ss:$344 sps:$4 sm:$0xcc]   ;;  %v6799_v23 = vrot.slane %v6772_v63, 5 }
 0x3a2   :  { %7238 = vmatpush2.bf16.msra.mxu1 %v20156_v59  ;;  %7291 = vmatpush2.bf16.msra.mxu0 %v20159_v30  ;;  %v20176_v59 = vld [vmem:[%s27726_s2 + $0x1504] ss:$16 sps:$4 sm:$0xff]   ;;  %v20179_v30 = vld [vmem:[%s27726_s2 + $0x150c] ss:$16 sps:$4 sm:$0xff]   ;;  %v24770_v63 = vsel %vm22240_vm13, %v17365_v32, %v6799_v23  ;;  %v20183_v23 = vld [vmem:[%s27726_s2 + $0x16e8] ss:$16 sps:$4 sm:$0xff]  }
 0x3a3   :  { %7239 = vmatprep.subr.bf16.mxu1 %v20164_v55  ;;  %7292 = vmatprep.subr.bf16.mxu0 %v20167_v53  ;;  %v6807_v55 = vrot.slane %v20191_v17, 5  ;;  %v7337_v53 = vld [vmem:[#allocation2 + $0x228] sm:$0x3c] }
 0x3a4   :  { %v20177_v17 = vld [vmem:[%s27726_s2 + $0x1508] ss:$16 sps:$4 sm:$0xff]   ;;  %v7369_v22 = vcombine.low %v7337_v53, %v7338_v45  ;;  %v7370_v50 = vcombine.high %v7337_v53, %v7338_v45  ;;  %v17499_v53 = vrot.slane %v20207_v27, 10 }
 0x3a5   :  { %v24760_v21 = vsel %vm22240_vm13, %v17367_v29, %v6807_v55  ;;  %v6809_v29 = vcombine.low %v24568_v13, %v24530_v62 }
 0x3a6   :  { %7240 = vmatpush2.bf16.msra.mxu1 %v20162_v16  ;;  %7293 = vmatpush2.bf16.msra.mxu0 %v20165_v28  ;;  %v6811_v16 = vcombine.low %v24549_v58, %v24526_v44  ;;  %v20182_v28 = vld [vmem:[%s27726_s2 + $0x16e4] ss:$16 sps:$4 sm:$0xff]   ;;  %v24764_v44 = vsel %vm22240_vm13, %v17364_v35, %v6795_v43  ;;  %v24766_v58 = vld [vmem:[#allocation2 + $0x2a0] ss:$-312 sps:$4 sm:$0xcc]   ;;  %v17497_v27 = vrot.slane %v7369_v22, 10 }
 0x3a7   :  { %7241 = vmatprep.subr.bf16.mxu1 %v20170_v8  ;;  %7294 = vmatprep.subr.bf16.mxu0 %v20173_v25  ;;  %v20185_v8 = vld [vmem:[%s27726_s2 + $0x16ec] ss:$16 sps:$4 sm:$0xff]   ;;  %v24756_v25 = vsel %vm22240_vm13, %v17366_v9, %v6803_v33  ;;  %v7371_v9 = vcombine.low %v7339_v51, %v7340_v37  ;;  %v7372_v33 = vcombine.high %v7339_v51, %v7340_v37  ;;  %v20194_v51 = vld [vmem:[%s27726_s2 + $0x16c4] ss:$16 sps:$4 sm:$0xff]   ;;  %v7389_v32 = vrot.slane %v7370_v50, 6 }
 0x3a8   :  { %v6816_v55 = vcombine.high %v24756_v25, %v24760_v21  ;;  %v20206_v35 = vld [vmem:[#allocation2 + $0x2a4] ss:$-312 sps:$4 sm:$0x33]   ;;  %v6825_v45 = vpack.c.bf16 %v6811_v16, %v6809_v29  ;;  %v6814_v43 = vcombine.high %v24764_v44, %v24770_v63  ;;  %v17496_v19 = vrot.slane %v24766_v58, 10 }
 0x3a9   :  { %v20197_v37 = vld [vmem:[%s27726_s2 + $0x16cc] ss:$16 sps:$4 sm:$0xff]   ;;  %v7393_v16 = vrot.slane %v7372_v33, 6  ;;  %v7385_v50 = vrot.slane %v20206_v35, 6  ;;  %v6815_v58 = vcombine.low %v24756_v25, %v24760_v21  ;;  %v20192_v33 = vld [vmem:[%s27726_s2 + $0x16c0] ss:$16 sps:$4 sm:$0xff]   ;;  %v6813_v35 = vcombine.low %v24764_v44, %v24770_v63 }
 0x3aa   :  { %7242 = vmatpush2.bf16.msra.mxu1 %v20168_v52  ;;  %7295 = vmatpush2.bf16.msra.mxu0 %v20171_v48  ;;  %v24774_v48 = vpop.f32.mrf.mxu1  ;;  %v24776_v52 = vpop.f32.mrf.mxu0  ;;  %v6828_v29 = vpack.c.bf16 %v6816_v55, %v6814_v43  ;;  %v20195_v25 = vld [vmem:[%s27726_s2 + $0x16c8] ss:$16 sps:$4 sm:$0xff]   ;;  %v20200_v21 = vld [vmem:[%s27726_s2 + $0x16a4] ss:$16 sps:$4 sm:$0xff]   ;;  %v20215_v63 = vld [vmem:[%s27726_s2 + $0x168c] ss:$16 sps:$4 sm:$0xff]  }
 0x3ab   :  { %7243 = vmatprep.subr.bf16.mxu1 %v20176_v59  ;;  %7296 = vmatprep.subr.bf16.mxu0 %v20179_v30  ;;  %27759 = vst [vmem:[#allocation18_spill] sm:$0xff] %v24774_v48  ;;  %27760 = vst [vmem:[#allocation19_spill] sm:$0xff] %v24776_v52  ;;  %v20180_v59 = vld [vmem:[%s27726_s2 + $0x16e0] ss:$16 sps:$4 sm:$0xff]   ;;  %v7397_v30 = vrot.slane %v20209_v5, 6  ;;  %v6827_v43 = vpack.c.bf16 %v6815_v58, %v6813_v35 }
 0x3ac   :  { %v20212_v44 = vld [vmem:[%s27726_s2 + $0x1684] ss:$16 sps:$4 sm:$0xff]   ;;  %v20227_v58 = vld [vmem:[%s27726_s2 + $0x164c] ss:$16 sps:$4 sm:$0xff]   ;;  %v20231_v35 = vld [vmem:[%s27726_s2 + $0x1628] ss:$16 sps:$4 sm:$0xff]  }
 0x3ae   :  { %7244 = vmatpush2.bf16.msra.mxu1 %v20174_v20  ;;  %7297 = vmatpush2.bf16.msra.mxu0 %v20177_v17  ;;  %v5467_v62 = vpop.f32.mrf.mxu1  ;;  %v5520_v13 = vpop.f32.mrf.mxu0  ;;  %v17498_v17 = vrot.slane %v7371_v9, 10  ;;  %v24815_v9 = vsel %vm22494_vm6, %v17497_v27, %v7389_v32 }
 0x3af   :  { %v24795_v5 = vadd.f32 %v5467_v62, %v24500_v47  ;;  %v24798_v20 = vadd.f32 %v5520_v13, %v24503_v40  ;;  %7819 = vmatprep.subr.bf16.mxu1 %v20182_v28  ;;  %7872 = vmatprep.subr.bf16.mxu0 %v20185_v8  ;;  %v24809_v40 = vsel %vm22494_vm6, %v17499_v53, %v7397_v30  ;;  %v20198_v53 = vld [vmem:[%s27726_s2 + $0x16a0] ss:$16 sps:$4 sm:$0xff]  }
 0x3b0   :  { %v5469_v52 = vpop.f32.mrf.mxu1  ;;  %v5522_v48 = vpop.f32.mrf.mxu0 }
 0x3b1   :  { %7246 = vmatmul.mubr.bf16.vlgmr.msra.gmra.mxu1 %v6825_v45  ;;  %7299 = vmatmul.mubr.bf16.vlgmr.msra.gmra.mxu0 %v6825_v45  ;;  %v24802_v22 = vadd.f32 %v5469_v52, %v24519_v12  ;;  %v24805_v47 = vadd.f32 %v5522_v48, %v24522_v36  ;;  %v24834_v48 = vsel %vm22494_vm6, %v17498_v17, %v7393_v16  ;;  %v20203_v52 = vld [vmem:[%s27726_s2 + $0x16ac] ss:$16 sps:$4 sm:$0xff]  }
 0x3b2   :  { %7255 = vmatprep.mubr.bf16.mxu1 %v6828_v29  ;;  %7308 = vmatprep.mubr.bf16.mxu0 %v6828_v29  ;;  %v5471_v28 = vpop.f32.mrf.mxu1  ;;  %v5524_v8 = vpop.f32.mrf.mxu0  ;;  %v7418_v55 = vcombine.high %v24834_v48, %v24809_v40 }
 0x3b3   :  { %7820 = vmatpush1.bf16.msra.mxu1 %v20180_v59  ;;  %7873 = vmatpush1.bf16.msra.mxu0 %v20183_v23  ;;  %v24818_v12 = vadd.f32 %v5471_v28, %v24533_v39  ;;  %v24821_v36 = vadd.f32 %v5524_v8, %v24536_v18  ;;  %v20201_v59 = vld [vmem:[%s27726_s2 + $0x16a8] ss:$16 sps:$4 sm:$0xff]   ;;  %v24855_v23 = vsel %vm22494_vm6, %v17496_v19, %v7385_v50  ;;  %v20218_v50 = vld [vmem:[%s27726_s2 + $0x1664] ss:$16 sps:$4 sm:$0xff]  }
 0x3b4   :  { %7821 = vmatprep.subr.bf16.mxu1 %v20194_v51  ;;  %7874 = vmatprep.subr.bf16.mxu0 %v20197_v37  ;;  %v24836_v39 = vpop.f32.mrf.mxu1  ;;  %v24838_v18 = vpop.f32.mrf.mxu0  ;;  %v7416_v62 = vcombine.high %v24855_v23, %v24815_v9  ;;  %v20219_v28 = vld [vmem:[%s27726_s2 + $0x1668] ss:$16 sps:$4 sm:$0xff]   ;;  %v20224_v8 = vld [vmem:[%s27726_s2 + $0x1644] ss:$16 sps:$4 sm:$0xff]  }
 0x3b6   :  { %v5477_v30 = vpop.f32.mrf.mxu1  ;;  %v5530_v45 = vpop.f32.mrf.mxu0  ;;  %v7432_v51 = vpack.c.bf16 %v7418_v55, %v7416_v62  ;;  %v20228_v55 = vld [vmem:[%s27726_s2 + $0x1620] ss:$16 sps:$4 sm:$0xff]   ;;  %v20242_v62 = vld [vmem:[%s27726_s2 + $0x17e4] ss:$16 sps:$4 sm:$0xff]  }
 0x3b7   :  { %7822 = vmatpush1.bf16.msra.mxu1 %v20192_v33  ;;  %7875 = vmatpush1.bf16.msra.mxu0 %v20195_v25  ;;  %v24866_v13 = vadd.f32 %v5477_v30, %v24579_v38  ;;  %v24869_v19 = vadd.f32 %v5530_v45, %v24582_v15  ;;  %v20222_v33 = vld [vmem:[%s27726_s2 + $0x1640] ss:$16 sps:$4 sm:$0xff]   ;;  %v20225_v25 = vld [vmem:[%s27726_s2 + $0x1648] ss:$16 sps:$4 sm:$0xff]  }
 0x3b8   :  { %7823 = vmatprep.subr.bf16.mxu1 %v20200_v21  ;;  %7876 = vmatprep.subr.bf16.mxu0 %v20203_v52  ;;  %v5479_v37 = vpop.f32.mrf.mxu1  ;;  %v5532_v27 = vpop.f32.mrf.mxu0  ;;  %v20230_v21 = vld [vmem:[%s27726_s2 + $0x1624] ss:$16 sps:$4 sm:$0xff]   ;;  %v20233_v52 = vld [vmem:[%s27726_s2 + $0x162c] ss:$16 sps:$4 sm:$0xff]   ;;  %v20234_v30 = vld [vmem:[%s27726_s2 + $0x1600] ss:$16 sps:$4 sm:$0xff]  }
 0x3b9   :  { %7256 = vmatmul.mubr.bf16.gmra.mxu1 %v6827_v43  ;;  %7309 = vmatmul.mubr.bf16.gmra.mxu0 %v6827_v43  ;;  %v24872_v32 = vadd.f32 %v5479_v37, %v24585_v3  ;;  %v24875_v17 = vadd.f32 %v5532_v27, %v24588_v56  ;;  %v20210_v3 = vld [vmem:[%s27726_s2 + $0x1680] ss:$16 sps:$4 sm:$0xff]   ;;  %v20213_v56 = vld [vmem:[%s27726_s2 + $0x1688] ss:$16 sps:$4 sm:$0xff]   ;;  %v20251_v37 = vld [vmem:[%s27726_s2 + $0x17cc] ss:$16 sps:$4 sm:$0xff]  }
 0x3ba   :  { %7851 = vmatprep.mubr.bf16.mxu1 %v7432_v51  ;;  %7904 = vmatprep.mubr.bf16.mxu0 %v7432_v51  ;;  %v5481_v38 = vpop.f32.mrf.mxu1  ;;  %v5534_v16 = vpop.f32.mrf.mxu0  ;;  %v20237_v45 = vld [vmem:[%s27726_s2 + $0x1608] ss:$16 sps:$4 sm:$0xff]   ;;  %v20248_v51 = vld [vmem:[%s27726_s2 + $0x17c4] ss:$16 sps:$4 sm:$0xff]   ;;  %v20246_v27 = vld [vmem:[%s27726_s2 + $0x17c0] ss:$16 sps:$4 sm:$0xff]  }
 0x3bb   :  { %7824 = vmatpush1.bf16.msra.mxu1 %v20198_v53  ;;  %7877 = vmatpush1.bf16.msra.mxu0 %v20201_v59  ;;  %v24878_v15 = vadd.f32 %v5481_v38, %v24591_v60  ;;  %v24881_v29 = vadd.f32 %v5534_v16, %v24594_v1  ;;  %v20221_v60 = vld [vmem:[%s27726_s2 + $0x166c] ss:$16 sps:$4 sm:$0xff]   ;;  %v20216_v1 = vld [vmem:[%s27726_s2 + $0x1660] ss:$16 sps:$4 sm:$0xff]   ;;  %v20236_v53 = vld [vmem:[%s27726_s2 + $0x1604] ss:$16 sps:$4 sm:$0xff]  }
 0x3bc   :  { %7825 = vmatprep.subr.bf16.mxu1 %v20212_v44  ;;  %7878 = vmatprep.subr.bf16.mxu0 %v20215_v63  ;;  %v20239_v59 = vld [vmem:[%s27726_s2 + $0x160c] ss:$16 sps:$4 sm:$0xff]   ;;  %v20240_v63 = vld [vmem:[%s27726_s2 + $0x17e0] ss:$16 sps:$4 sm:$0xff]   ;;  %v20243_v43 = vld [vmem:[%s27726_s2 + $0x17e8] ss:$16 sps:$4 sm:$0xff]  }
 0x3bd   :  { %v20245_v44 = vld [vmem:[%s27726_s2 + $0x17ec] ss:$16 sps:$4 sm:$0xff]   ;;  %v20249_v38 = vld [vmem:[%s27726_s2 + $0x17c8] ss:$16 sps:$4 sm:$0xff]   ;;  %v20254_v16 = vld [vmem:[%s27726_s2 + $0x17a4] ss:$16 sps:$4 sm:$0xff]  }
 0x3bf   :  { %7826 = vmatpush1.bf16.msra.mxu1 %v20210_v3  ;;  %7879 = vmatpush1.bf16.msra.mxu0 %v20213_v56  ;;  %v20257_v3 = vld [vmem:[%s27726_s2 + $0x17ac] ss:$16 sps:$4 sm:$0xff]   ;;  %v20252_v56 = vld [vmem:[%s27726_s2 + $0x17a0] ss:$16 sps:$4 sm:$0xff]  }
 0x3c0   :  { %7827 = vmatprep.subr.bf16.mxu1 %v20218_v50  ;;  %7880 = vmatprep.subr.bf16.mxu0 %v20221_v60  ;;  %v20255_v50 = vld [vmem:[%s27726_s2 + $0x17a8] ss:$16 sps:$4 sm:$0xff]   ;;  %v20260_v60 = vld [vmem:[%s27726_s2 + $0x1784] ss:$16 sps:$4 sm:$0xff]  }
 0x3c3   :  { %7828 = vmatpush1.bf16.msra.mxu1 %v20216_v1  ;;  %7881 = vmatpush1.bf16.msra.mxu0 %v20219_v28  ;;  %v20263_v1 = vld [vmem:[%s27726_s2 + $0x178c] ss:$16 sps:$4 sm:$0xff]   ;;  %v20258_v28 = vld [vmem:[%s27726_s2 + $0x1780] ss:$16 sps:$4 sm:$0xff]  }
 0x3c4   :  { %7829 = vmatprep.subr.bf16.mxu1 %v20224_v8  ;;  %7882 = vmatprep.subr.bf16.mxu0 %v20227_v58  ;;  %v20261_v8 = vld [vmem:[%s27726_s2 + $0x1788] ss:$16 sps:$4 sm:$0xff]   ;;  %v20266_v58 = vld [vmem:[%s27726_s2 + $0x1764] ss:$16 sps:$4 sm:$0xff]  }
 0x3c7   :  { %7830 = vmatpush1.bf16.msra.mxu1 %v20222_v33  ;;  %7883 = vmatpush1.bf16.msra.mxu0 %v20225_v25  ;;  %v20269_v33 = vld [vmem:[%s27726_s2 + $0x176c] ss:$16 sps:$4 sm:$0xff]   ;;  %v20264_v25 = vld [vmem:[%s27726_s2 + $0x1760] ss:$16 sps:$4 sm:$0xff]  }
 0x3c8   :  { %7831 = vmatprep.subr.bf16.mxu1 %v20230_v21  ;;  %7884 = vmatprep.subr.bf16.mxu0 %v20233_v52  ;;  %v20267_v21 = vld [vmem:[%s27726_s2 + $0x1768] ss:$16 sps:$4 sm:$0xff]   ;;  %v20272_v52 = vld [vmem:[%s27726_s2 + $0x1744] ss:$16 sps:$4 sm:$0xff]  }
 0x3cb   :  { %7832 = vmatpush1.bf16.msra.mxu1 %v20228_v55  ;;  %7885 = vmatpush1.bf16.msra.mxu0 %v20231_v35  ;;  %v20275_v55 = vld [vmem:[%s27726_s2 + $0x174c] ss:$16 sps:$4 sm:$0xff]   ;;  %v7343_v35 = vld [vmem:[#allocation2 + $0x240] sm:$0x3c] }
 0x3cc   :  { %7833 = vmatprep.subr.bf16.mxu1 %v20236_v53  ;;  %7886 = vmatprep.subr.bf16.mxu0 %v20239_v59  ;;  %v7344_v53 = vld [vmem:[#allocation2 + $0x180] sm:$0x3c] }
 0x3cd   :  { %v20294_v59 = vld [vmem:[#allocation2 + $0x140] ss:$240 sps:$4 sm:$0xcc]  }
 0x3cf   :  { %7834 = vmatpush1.bf16.msra.mxu1 %v20234_v30  ;;  %7887 = vmatpush1.bf16.msra.mxu0 %v20237_v45  ;;  %v20296_v30 = vld [vmem:[#allocation2 + $0x144] ss:$240 sps:$4 sm:$0x33]  }
 0x3d0   :  { %7835 = vmatprep.subr.bf16.mxu1 %v20242_v62  ;;  %7888 = vmatprep.subr.bf16.mxu0 %v20245_v44  ;;  %v7345_v45 = vld [vmem:[#allocation2 + $0x270] sm:$0x3c]  ;;  %v20297_v44 = vld [vmem:[#allocation2 + $0x200] ss:$-296 sps:$4 sm:$0xcc]  }
 0x3d1   :  { %v7346_v62 = vld [vmem:[#allocation2 + $0x290] sm:$0x3c] }
 0x3d3   :  { %7836 = vmatpush2.bf16.msra.mxu1 %v20240_v63  ;;  %7889 = vmatpush2.bf16.msra.mxu0 %v20243_v43  ;;  %v20299_v63 = vld [vmem:[#allocation2 + $0x204] ss:$-296 sps:$4 sm:$0x33]   ;;  %v20270_v43 = vld [vmem:[%s27726_s2 + $0x1740] ss:$16 sps:$4 sm:$0xff]  }
 0x3d4   :  { %7837 = vmatprep.subr.bf16.mxu1 %v20248_v51  ;;  %7890 = vmatprep.subr.bf16.mxu0 %v20251_v37  ;;  %v20273_v51 = vld [vmem:[%s27726_s2 + $0x1748] ss:$16 sps:$4 sm:$0xff]   ;;  %v20278_v37 = vld [vmem:[%s27726_s2 + $0x1724] ss:$16 sps:$4 sm:$0xff]  }
 0x3d7   :  { %7838 = vmatpush2.bf16.msra.mxu1 %v20246_v27  ;;  %7891 = vmatpush2.bf16.msra.mxu0 %v20249_v38  ;;  %v20281_v27 = vld [vmem:[%s27726_s2 + $0x172c] ss:$16 sps:$4 sm:$0xff]   ;;  %v7375_v38 = vcombine.low %v7343_v35, %v7344_v53 }
 0x3d8   :  { %7839 = vmatprep.subr.bf16.mxu1 %v20254_v16  ;;  %7892 = vmatprep.subr.bf16.mxu0 %v20257_v3  ;;  %v7376_v16 = vcombine.high %v7343_v35, %v7344_v53  ;;  %v7377_v3 = vcombine.low %v7345_v45, %v7346_v62  ;;  %v20282_v53 = vld [vmem:[%s27726_s2 + $0x1700] ss:$16 sps:$4 sm:$0xff]  }
 0x3db   :  { %7840 = vmatpush2.bf16.msra.mxu1 %v20252_v56  ;;  %7893 = vmatpush2.bf16.msra.mxu0 %v20255_v50  ;;  %v7378_v56 = vcombine.high %v7345_v45, %v7346_v62  ;;  %v17502_v50 = vrot.slane %v20294_v59, 10  ;;  %v20285_v59 = vld [vmem:[%s27726_s2 + $0x1708] ss:$16 sps:$4 sm:$0xff]   ;;  %v20293_v45 = vld [vmem:[%s27726_s2 + $0x18ec] ss:$16 sps:$4 sm:$0xff]  }
 0x3dc   :  { %7841 = vmatprep.subr.bf16.mxu1 %v20260_v60  ;;  %7894 = vmatprep.subr.bf16.mxu0 %v20263_v1  ;;  %v7409_v60 = vrot.slane %v20296_v30, 6  ;;  %v20276_v1 = vld [vmem:[%s27726_s2 + $0x1720] ss:$16 sps:$4 sm:$0xff]   ;;  %v20290_v30 = vld [vmem:[%s27726_s2 + $0x18e4] ss:$16 sps:$4 sm:$0xff]  }
 0x3dd   :  { %v7405_v35 = vrot.slane %v7378_v56, 6 }
 0x3de   :  { %v25041_v62 = vsel %vm22494_vm6, %v17502_v50, %v7409_v60  ;;  %v20302_v60 = vld [vmem:[%s27726_s2 + $0x18c4] ss:$16 sps:$4 sm:$0xff]  }
 0x3df   :  { %7842 = vmatpush2.bf16.msra.mxu1 %v20258_v28  ;;  %7895 = vmatpush2.bf16.msra.mxu0 %v20261_v8  ;;  %v20279_v28 = vld [vmem:[%s27726_s2 + $0x1728] ss:$16 sps:$4 sm:$0xff]   ;;  %v17503_v8 = vrot.slane %v20297_v44, 10 }
 0x3e0   :  { %7843 = vmatprep.subr.bf16.mxu1 %v20266_v58  ;;  %7896 = vmatprep.subr.bf16.mxu0 %v20269_v33  ;;  %v20284_v58 = vld [vmem:[%s27726_s2 + $0x1704] ss:$16 sps:$4 sm:$0xff]   ;;  %v20287_v33 = vld [vmem:[%s27726_s2 + $0x170c] ss:$16 sps:$4 sm:$0xff]  }
 0x3e3   :  { %7844 = vmatpush2.bf16.msra.mxu1 %v20264_v25  ;;  %7897 = vmatpush2.bf16.msra.mxu0 %v20267_v21  ;;  %v7413_v25 = vrot.slane %v20299_v63, 6  ;;  %v17500_v21 = vrot.slane %v7375_v38, 10  ;;  %v7417_v63 = vcombine.low %v24834_v48, %v24809_v40  ;;  %v20288_v40 = vld [vmem:[%s27726_s2 + $0x18e0] ss:$16 sps:$4 sm:$0xff]   ;;  %v20291_v48 = vld [vmem:[%s27726_s2 + $0x18e8] ss:$16 sps:$4 sm:$0xff]  }
 0x3e4   :  { %7845 = vmatprep.subr.bf16.mxu1 %v20272_v52  ;;  %7898 = vmatprep.subr.bf16.mxu0 %v20275_v55  ;;  %v7401_v52 = vrot.slane %v7376_v16, 6  ;;  %v17501_v55 = vrot.slane %v7377_v3, 10  ;;  %v7415_v16 = vcombine.low %v24855_v23, %v24815_v9  ;;  %v20305_v9 = vld [vmem:[%s27726_s2 + $0x18cc] ss:$16 sps:$4 sm:$0xff]  }
 0x3e5   :  { %v25045_v44 = vsel %vm22494_vm6, %v17503_v8, %v7413_v25 }
 0x3e6   :  { %v7422_v38 = vcombine.high %v25041_v62, %v25045_v44  ;;  %v7431_v23 = vpack.c.bf16 %v7417_v63, %v7415_v16 }
 0x3e7   :  { %7846 = vmatpush2.bf16.msra.mxu1 %v20270_v43  ;;  %7899 = vmatpush2.bf16.msra.mxu0 %v20273_v51  ;;  %v7402_v43 = vsel %vm22494_vm6, %v17500_v21, %v7401_v52  ;;  %v7406_v51 = vsel %vm22494_vm6, %v17501_v55, %v7405_v35  ;;  %v20313_v55 = vld [vmem:[#allocation2 + $0x1a8] ss:$168 sps:$4 sm:$0xff]  }
 0x3e8   :  { %7847 = vmatprep.subr.bf16.mxu1 %v20278_v37  ;;  %7900 = vmatprep.subr.bf16.mxu0 %v20281_v27  ;;  %v25053_v37 = vpop.f32.mrf.mxu1  ;;  %v25055_v27 = vpop.f32.mrf.mxu0  ;;  %v7420_v50 = vcombine.high %v7402_v43, %v7406_v51  ;;  %v7419_v63 = vcombine.low %v7402_v43, %v7406_v51 }
 0x3e9   :  { %27761 = vst [vmem:[#allocation20_spill] sm:$0xff] %v25053_v37  ;;  %27762 = vst [vmem:[#allocation21_spill] sm:$0xff] %v25055_v27 }
 0x3ea   :  { %v7434_v8 = vpack.c.bf16 %v7422_v38, %v7420_v50 }
 0x3eb   :  { %7848 = vmatpush2.bf16.msra.mxu1 %v20276_v1  ;;  %7901 = vmatpush2.bf16.msra.mxu0 %v20279_v28 }
 0x3ec   :  { %7849 = vmatprep.subr.bf16.mxu1 %v20284_v58  ;;  %7902 = vmatprep.subr.bf16.mxu0 %v20287_v33 }
 0x3ef   :  { %7850 = vmatpush2.bf16.msra.mxu1 %v20282_v53  ;;  %7903 = vmatpush2.bf16.msra.mxu0 %v20285_v59  ;;  %v6073_v3 = vpop.f32.mrf.mxu1  ;;  %v6126_v56 = vpop.f32.mrf.mxu0  ;;  %v7421_v53 = vcombine.low %v25041_v62, %v25045_v44  ;;  %v20308_v59 = vld [vmem:[%s27726_s2 + $0x18a4] ss:$16 sps:$4 sm:$0xff]   ;;  %v20306_v62 = vld [vmem:[%s27726_s2 + $0x18a0] ss:$16 sps:$4 sm:$0xff]   ;;  %v20309_v44 = vld [vmem:[%s27726_s2 + $0x18a8] ss:$16 sps:$4 sm:$0xff]  }
 0x3f0   :  { %v25074_v1 = vadd.f32 %v6073_v3, %v24795_v5  ;;  %v25077_v28 = vadd.f32 %v6126_v56, %v24798_v20  ;;  %8387 = vmatprep.subr.bf16.mxu1 %v20290_v30  ;;  %8440 = vmatprep.subr.bf16.mxu0 %v20293_v45  ;;  %v20311_v30 = vld [vmem:[%s27726_s2 + $0x18ac] ss:$16 sps:$4 sm:$0xff]   ;;  %v20312_v45 = vld [vmem:[#allocation2 + $0x40] ss:$368 sps:$4 sm:$0xff]  }
 0x3f1   :  { %v6075_v58 = vpop.f32.mrf.mxu1  ;;  %v6128_v33 = vpop.f32.mrf.mxu0  ;;  %v7433_v3 = vpack.c.bf16 %v7421_v53, %v7419_v63  ;;  %v7999_v56 = vpack.c.bf16 %v20313_v55, %v20312_v45  ;;  %v20331_v55 = vld [vmem:[%s27726_s2 + $0x184c] ss:$16 sps:$4 sm:$0xff]   ;;  %v20334_v53 = vld [vmem:[%s27726_s2 + $0x1824] ss:$16 sps:$4 sm:$0xff]   ;;  %v20335_v45 = vld [vmem:[%s27726_s2 + $0x1828] ss:$16 sps:$4 sm:$0xff]  }
 0x3f2   :  { %7852 = vmatmul.mubr.bf16.vlgmr.msra.gmra.mxu1 %v7431_v23  ;;  %7905 = vmatmul.mubr.bf16.vlgmr.msra.gmra.mxu0 %v7431_v23  ;;  %v25080_v25 = vadd.f32 %v6075_v58, %v24802_v22  ;;  %v25083_v21 = vadd.f32 %v6128_v33, %v24805_v47  ;;  %v20300_v22 = vld [vmem:[%s27726_s2 + $0x18c0] ss:$16 sps:$4 sm:$0xff]   ;;  %v20303_v47 = vld [vmem:[%s27726_s2 + $0x18c8] ss:$16 sps:$4 sm:$0xff]   ;;  %v20322_v33 = vld [vmem:[%s27726_s2 + $0x1864] ss:$16 sps:$4 sm:$0xff]  }
 0x3f3   :  { %7861 = vmatprep.mubr.bf16.mxu1 %v7434_v8  ;;  %7914 = vmatprep.mubr.bf16.mxu0 %v7434_v8  ;;  %v6077_v5 = vpop.f32.mrf.mxu1  ;;  %v6130_v52 = vpop.f32.mrf.mxu0  ;;  %v20340_v63 = vld [vmem:[%s27726_s2 + $0x1804] ss:$16 sps:$4 sm:$0xff]  }
 0x3f4   :  { %8388 = vmatpush1.bf16.msra.mxu1 %v20288_v40  ;;  %8441 = vmatpush1.bf16.msra.mxu0 %v20291_v48  ;;  %v25086_v20 = vadd.f32 %v6077_v5, %v24818_v12  ;;  %v25089_v35 = vadd.f32 %v6130_v52, %v24821_v36  ;;  %v20316_v40 = vld [vmem:[%s27726_s2 + $0x1884] ss:$16 sps:$4 sm:$0xff]   ;;  %v20319_v48 = vld [vmem:[%s27726_s2 + $0x188c] ss:$16 sps:$4 sm:$0xff]   ;;  %v20323_v5 = vld [vmem:[%s27726_s2 + $0x1868] ss:$16 sps:$4 sm:$0xff]  }
 0x3f5   :  { %8389 = vmatprep.subr.bf16.mxu1 %v20302_v60  ;;  %8442 = vmatprep.subr.bf16.mxu0 %v20305_v9  ;;  %v25102_v12 = vpop.f32.mrf.mxu1  ;;  %v25104_v36 = vpop.f32.mrf.mxu0  ;;  %v20328_v52 = vld [vmem:[%s27726_s2 + $0x1844] ss:$16 sps:$4 sm:$0xff]  }
 0x3f6   :  { %27763 = vst [vmem:[#allocation22_spill] sm:$0xff] %v25104_v36 }
 0x3f7   :  { %v6083_v38 = vpop.f32.mrf.mxu1  ;;  %v6136_v16 = vpop.f32.mrf.mxu0 }
 0x3f8   :  { %8390 = vmatpush1.bf16.msra.mxu1 %v20300_v22  ;;  %8443 = vmatpush1.bf16.msra.mxu0 %v20303_v47  ;;  %v25122_v43 = vadd.f32 %v6083_v38, %v24866_v13  ;;  %v25125_v51 = vadd.f32 %v6136_v16, %v24869_v19  ;;  %v20326_v22 = vld [vmem:[%s27726_s2 + $0x1840] ss:$16 sps:$4 sm:$0xff]   ;;  %v20329_v47 = vld [vmem:[%s27726_s2 + $0x1848] ss:$16 sps:$4 sm:$0xff]   ;;  %v20346_v16 = vld [vmem:[%s27726_s2 + $0x19e4] ss:$16 sps:$4 sm:$0xff]  }
 0x3f9   :  { %8391 = vmatprep.subr.bf16.mxu1 %v20308_v59  ;;  %8444 = vmatprep.subr.bf16.mxu0 %v20311_v30  ;;  %v6085_v50 = vpop.f32.mrf.mxu1  ;;  %v6138_v60 = vpop.f32.mrf.mxu0  ;;  %v20337_v59 = vld [vmem:[%s27726_s2 + $0x182c] ss:$16 sps:$4 sm:$0xff]   ;;  %v20332_v30 = vld [vmem:[%s27726_s2 + $0x1820] ss:$16 sps:$4 sm:$0xff]   ;;  %v20341_v38 = vld [vmem:[%s27726_s2 + $0x1808] ss:$16 sps:$4 sm:$0xff]  }
 0x3fa   :  { %7862 = vmatmul.mubr.bf16.gmra.mxu1 %v7433_v3  ;;  %7915 = vmatmul.mubr.bf16.gmra.mxu0 %v7433_v3  ;;  %v25128_v9 = vadd.f32 %v6085_v50, %v24872_v32  ;;  %v25131_v23 = vadd.f32 %v6138_v60, %v24875_v17  ;;  %v20314_v32 = vld [vmem:[%s27726_s2 + $0x1880] ss:$16 sps:$4 sm:$0xff]   ;;  %v20317_v17 = vld [vmem:[%s27726_s2 + $0x1888] ss:$16 sps:$4 sm:$0xff]   ;;  %v20355_v50 = vld [vmem:[%s27726_s2 + $0x19cc] ss:$16 sps:$4 sm:$0xff]  }
 0x3fb   :  { %8419 = vmatprep.mubr.bf16.mxu1 %v7999_v56  ;;  %8472 = vmatprep.mubr.bf16.mxu0 %v7999_v56  ;;  %v6087_v13 = vpop.f32.mrf.mxu1  ;;  %v6140_v8 = vpop.f32.mrf.mxu0  ;;  %v20347_v3 = vld [vmem:[%s27726_s2 + $0x19e8] ss:$16 sps:$4 sm:$0xff]   ;;  %v20352_v56 = vld [vmem:[%s27726_s2 + $0x19c4] ss:$16 sps:$4 sm:$0xff]   ;;  %v20350_v60 = vld [vmem:[%s27726_s2 + $0x19c0] ss:$16 sps:$4 sm:$0xff]  }
 0x3fc   :  { %8392 = vmatpush1.bf16.msra.mxu1 %v20306_v62  ;;  %8445 = vmatpush1.bf16.msra.mxu0 %v20309_v44  ;;  %v25134_v19 = vadd.f32 %v6087_v13, %v24878_v15  ;;  %v25137_v58 = vadd.f32 %v6140_v8, %v24881_v29  ;;  %v20325_v15 = vld [vmem:[%s27726_s2 + $0x186c] ss:$16 sps:$4 sm:$0xff]   ;;  %v20320_v29 = vld [vmem:[%s27726_s2 + $0x1860] ss:$16 sps:$4 sm:$0xff]   ;;  %v20353_v13 = vld [vmem:[%s27726_s2 + $0x19c8] ss:$16 sps:$4 sm:$0xff]  }
 0x3fd   :  { %8393 = vmatprep.subr.bf16.mxu1 %v20316_v40  ;;  %8446 = vmatprep.subr.bf16.mxu0 %v20319_v48  ;;  %v20343_v62 = vld [vmem:[%s27726_s2 + $0x180c] ss:$16 sps:$4 sm:$0xff]   ;;  %v20338_v44 = vld [vmem:[%s27726_s2 + $0x1800] ss:$16 sps:$4 sm:$0xff]   ;;  %v20358_v8 = vld [vmem:[%s27726_s2 + $0x19a4] ss:$16 sps:$4 sm:$0xff]  }
 0x3fe   :  { %v20349_v40 = vld [vmem:[%s27726_s2 + $0x19ec] ss:$16 sps:$4 sm:$0xff]   ;;  %v20344_v48 = vld [vmem:[%s27726_s2 + $0x19e0] ss:$16 sps:$4 sm:$0xff]  }
 0x400   :  { %8394 = vmatpush1.bf16.msra.mxu1 %v20314_v32  ;;  %8447 = vmatpush1.bf16.msra.mxu0 %v20317_v17  ;;  %v20361_v32 = vld [vmem:[%s27726_s2 + $0x19ac] ss:$16 sps:$4 sm:$0xff]   ;;  %v20356_v17 = vld [vmem:[%s27726_s2 + $0x19a0] ss:$16 sps:$4 sm:$0xff]  }
 0x401   :  { %8395 = vmatprep.subr.bf16.mxu1 %v20322_v33  ;;  %8448 = vmatprep.subr.bf16.mxu0 %v20325_v15  ;;  %v20359_v33 = vld [vmem:[%s27726_s2 + $0x19a8] ss:$16 sps:$4 sm:$0xff]   ;;  %v20364_v15 = vld [vmem:[%s27726_s2 + $0x1984] ss:$16 sps:$4 sm:$0xff]  }
 0x404   :  { %8396 = vmatpush1.bf16.msra.mxu1 %v20320_v29  ;;  %8449 = vmatpush1.bf16.msra.mxu0 %v20323_v5  ;;  %v20367_v29 = vld [vmem:[%s27726_s2 + $0x198c] ss:$16 sps:$4 sm:$0xff]   ;;  %v20362_v5 = vld [vmem:[%s27726_s2 + $0x1980] ss:$16 sps:$4 sm:$0xff]  }
 0x405   :  { %8397 = vmatprep.subr.bf16.mxu1 %v20328_v52  ;;  %8450 = vmatprep.subr.bf16.mxu0 %v20331_v55  ;;  %v20365_v52 = vld [vmem:[%s27726_s2 + $0x1988] ss:$16 sps:$4 sm:$0xff]   ;;  %v20370_v55 = vld [vmem:[%s27726_s2 + $0x1964] ss:$16 sps:$4 sm:$0xff]  }
 0x408   :  { %8398 = vmatpush1.bf16.msra.mxu1 %v20326_v22  ;;  %8451 = vmatpush1.bf16.msra.mxu0 %v20329_v47  ;;  %v20373_v22 = vld [vmem:[%s27726_s2 + $0x196c] ss:$16 sps:$4 sm:$0xff]   ;;  %v20368_v47 = vld [vmem:[%s27726_s2 + $0x1960] ss:$16 sps:$4 sm:$0xff]  }
 0x409   :  { %8399 = vmatprep.subr.bf16.mxu1 %v20334_v53  ;;  %8452 = vmatprep.subr.bf16.mxu0 %v20337_v59  ;;  %v20371_v53 = vld [vmem:[%s27726_s2 + $0x1968] ss:$16 sps:$4 sm:$0xff]   ;;  %v20376_v59 = vld [vmem:[%s27726_s2 + $0x1944] ss:$16 sps:$4 sm:$0xff]  }
 0x40c   :  { %8400 = vmatpush1.bf16.msra.mxu1 %v20332_v30  ;;  %8453 = vmatpush1.bf16.msra.mxu0 %v20335_v45  ;;  %v20379_v30 = vld [vmem:[%s27726_s2 + $0x194c] ss:$16 sps:$4 sm:$0xff]   ;;  %v20374_v45 = vld [vmem:[%s27726_s2 + $0x1940] ss:$16 sps:$4 sm:$0xff]  }
 0x40d   :  { %8401 = vmatprep.subr.bf16.mxu1 %v20340_v63  ;;  %8454 = vmatprep.subr.bf16.mxu0 %v20343_v62  ;;  %v20377_v63 = vld [vmem:[%s27726_s2 + $0x1948] ss:$16 sps:$4 sm:$0xff]   ;;  %v20382_v62 = vld [vmem:[%s27726_s2 + $0x1924] ss:$16 sps:$4 sm:$0xff]  }
 0x410   :  { %8402 = vmatpush1.bf16.msra.mxu1 %v20338_v44  ;;  %8455 = vmatpush1.bf16.msra.mxu0 %v20341_v38  ;;  %v20385_v44 = vld [vmem:[%s27726_s2 + $0x192c] ss:$16 sps:$4 sm:$0xff]   ;;  %v20380_v38 = vld [vmem:[%s27726_s2 + $0x1920] ss:$16 sps:$4 sm:$0xff]  }
 0x411   :  { %8403 = vmatprep.subr.bf16.mxu1 %v20346_v16  ;;  %8456 = vmatprep.subr.bf16.mxu0 %v20349_v40  ;;  %v20383_v16 = vld [vmem:[%s27726_s2 + $0x1928] ss:$16 sps:$4 sm:$0xff]   ;;  %v20388_v40 = vld [vmem:[%s27726_s2 + $0x1904] ss:$16 sps:$4 sm:$0xff]  }
 0x414   :  { %8404 = vmatpush2.bf16.msra.mxu1 %v20344_v48  ;;  %8457 = vmatpush2.bf16.msra.mxu0 %v20347_v3  ;;  %v20391_v48 = vld [vmem:[%s27726_s2 + $0x190c] ss:$16 sps:$4 sm:$0xff]   ;;  %v20425_v3 = vld [vmem:[#allocation2 + $0x218] ss:$56 sps:$4 sm:$0xee]  }
 0x415   :  { %8405 = vmatprep.subr.bf16.mxu1 %v20352_v56  ;;  %8458 = vmatprep.subr.bf16.mxu0 %v20355_v50  ;;  %v20427_v56 = vld [vmem:[#allocation2 + $0x21c] ss:$56 sps:$4 sm:$0x11]   ;;  %v20386_v50 = vld [vmem:[%s27726_s2 + $0x1900] ss:$16 sps:$4 sm:$0xff]  }
 0x418   :  { %8406 = vmatpush2.bf16.msra.mxu1 %v20350_v60  ;;  %8459 = vmatpush2.bf16.msra.mxu0 %v20353_v13  ;;  %v20389_v60 = vld [vmem:[%s27726_s2 + $0x1908] ss:$16 sps:$4 sm:$0xff]  }
 0x419   :  { %8407 = vmatprep.subr.bf16.mxu1 %v20358_v8  ;;  %8460 = vmatprep.subr.bf16.mxu0 %v20361_v32  ;;  %v20393_v13 = vld [vmem:[#allocation2 + $0x2e0] ss:$-200 sps:$4 sm:$0xff]   ;;  %v20421_v32 = vld [vmem:[#allocation2 + $0x24] ss:$400 sps:$4 sm:$0x11]  }
 0x41a   :  { %v20419_v8 = vld [vmem:[#allocation2 + $0x20] ss:$400 sps:$4 sm:$0xee]  }
 0x41c   :  { %8408 = vmatpush2.bf16.msra.mxu1 %v20356_v17  ;;  %8461 = vmatpush2.bf16.msra.mxu0 %v20359_v33  ;;  %v20396_v17 = vld [vmem:[%s27726_s2 + $0x1ae4] ss:$16 sps:$4 sm:$0xff]   ;;  %v20399_v33 = vld [vmem:[%s27726_s2 + $0x1aec] ss:$16 sps:$4 sm:$0xff]  }
 0x41d   :  { %8409 = vmatprep.subr.bf16.mxu1 %v20364_v15  ;;  %8462 = vmatprep.subr.bf16.mxu0 %v20367_v29  ;;  %v20422_v15 = vld [vmem:[#allocation2 + $0x2e0] ss:$-312 sps:$4 sm:$0xee]   ;;  %v20424_v29 = vld [vmem:[#allocation2 + $0x2e4] ss:$-312 sps:$4 sm:$0x11]  }
 0x420   :  { %8410 = vmatpush2.bf16.msra.mxu1 %v20362_v5  ;;  %8463 = vmatpush2.bf16.msra.mxu0 %v20365_v52  ;;  %v20392_v5 = vld [vmem:[#allocation2 + $0x178] ss:$-344 sps:$4 sm:$0xff]  }
 0x421   :  { %8411 = vmatprep.subr.bf16.mxu1 %v20370_v55  ;;  %8464 = vmatprep.subr.bf16.mxu0 %v20373_v22  ;;  %v20401_v52 = vld [vmem:[#allocation2 + $0x2d8] ss:$16 sps:$4 sm:$0xff]   ;;  %v25295_v22 = vpop.f32.mrf.mxu1 }
 0x422   :  { %v20416_v55 = vld [vmem:[#allocation2 + $0x178] ss:$-312 sps:$4 sm:$0xee]   ;;  %27764 = vst [vmem:[#allocation23_spill] sm:$0xff] %v25295_v22 }
 0x423   :  { %v17768_v37 = vrot.slane %v20416_v55, 9  ;;  %v20412_v55 = vld [vmem:[%s27726_s2 + $0x1aa4] ss:$16 sps:$4 sm:$0xff]  }
 0x424   :  { %8412 = vmatpush2.bf16.msra.mxu1 %v20368_v47  ;;  %8465 = vmatpush2.bf16.msra.mxu0 %v20371_v53  ;;  %v25297_v47 = vpop.f32.mrf.mxu0  ;;  %v20400_v53 = vld [vmem:[#allocation2 + $0x1a0] ss:$336 sps:$4 sm:$0xff]  }
 0x425   :  { %8413 = vmatprep.subr.bf16.mxu1 %v20376_v59  ;;  %8466 = vmatprep.subr.bf16.mxu0 %v20379_v30  ;;  %27765 = vst [vmem:[#allocation24_spill] sm:$0xff] %v25297_v47  ;;  %v20418_v59 = vld [vmem:[#allocation2 + $0x17c] ss:$-312 sps:$4 sm:$0x11]   ;;  %v17771_v30 = vrot.slane %v20425_v3, 9  ;;  %v17769_v3 = vrot.slane %v20419_v8, 9 }
 0x426   :  { %v8563_v47 = vrot.slane %v20421_v32, 5  ;;  %v8559_v32 = vrot.slane %v20418_v59, 5 }
 0x428   :  { %8414 = vmatpush2.bf16.msra.mxu1 %v20374_v45  ;;  %8467 = vmatpush2.bf16.msra.mxu0 %v20377_v63  ;;  %v20394_v45 = vld [vmem:[%s27726_s2 + $0x1ae0] ss:$16 sps:$4 sm:$0xff]   ;;  %v20397_v63 = vld [vmem:[%s27726_s2 + $0x1ae8] ss:$16 sps:$4 sm:$0xff]  }
 0x429   :  { %8415 = vmatprep.subr.bf16.mxu1 %v20382_v62  ;;  %8468 = vmatprep.subr.bf16.mxu0 %v20385_v44  ;;  %v8571_v62 = vrot.slane %v20427_v56, 5 }
 0x42c   :  { %8416 = vmatpush2.bf16.msra.mxu1 %v20380_v38  ;;  %8469 = vmatpush2.bf16.msra.mxu0 %v20383_v16  ;;  %v7998_v16 = vpack.c.bf16 %v20393_v13, %v20392_v5  ;;  %v8001_v13 = vpack.c.bf16 %v20401_v52, %v20400_v53  ;;  %v20408_v52 = vld [vmem:[#allocation2 + $0x1f8] ss:$176 sps:$4 sm:$0xff]   ;;  %v20415_v53 = vld [vmem:[%s27726_s2 + $0x1aac] ss:$16 sps:$4 sm:$0xff]  }
 0x42d   :  { %8417 = vmatprep.subr.bf16.mxu1 %v20388_v40  ;;  %8470 = vmatprep.subr.bf16.mxu0 %v20391_v48  ;;  %v20404_v40 = vld [vmem:[%s27726_s2 + $0x1ac4] ss:$16 sps:$4 sm:$0xff]   ;;  %v20407_v48 = vld [vmem:[%s27726_s2 + $0x1acc] ss:$16 sps:$4 sm:$0xff]  }
 0x430   :  { %8418 = vmatpush2.bf16.msra.mxu1 %v20386_v50  ;;  %8471 = vmatpush2.bf16.msra.mxu0 %v20389_v60  ;;  %v6641_v44 = vpop.f32.mrf.mxu1  ;;  %v6694_v38 = vpop.f32.mrf.mxu0  ;;  %v17770_v50 = vrot.slane %v20422_v15, 9  ;;  %v8567_v60 = vrot.slane %v20424_v29, 5  ;;  %v25329_v15 = vsel %vm22240_vm13, %v17769_v3, %v8563_v47  ;;  %v20405_v29 = vld [vmem:[%s27726_s2 + $0x1ac8] ss:$16 sps:$4 sm:$0xff]  }
 0x431   :  { %v25312_v22 = vadd.f32 %v6641_v44, %v25074_v1  ;;  %v25315_v56 = vadd.f32 %v6694_v38, %v25077_v28  ;;  %8993 = vmatprep.subr.bf16.mxu1 %v20396_v17  ;;  %9046 = vmatprep.subr.bf16.mxu0 %v20399_v33  ;;  %v20409_v1 = vld [vmem:[#allocation2 + $0x160] ss:$120 sps:$4 sm:$0xff]   ;;  %v25325_v28 = vsel %vm22240_vm13, %v17771_v30, %v8571_v62 }
 0x432   :  { %v6643_v5 = vpop.f32.mrf.mxu1  ;;  %v6696_v27 = vpop.f32.mrf.mxu0  ;;  %v20410_v30 = vld [vmem:[%s27726_s2 + $0x1aa0] ss:$16 sps:$4 sm:$0xff]   ;;  %v8000_v3 = vpack.c.bf16 %v20409_v1, %v20408_v52  ;;  %v20445_v52 = vld [vmem:[%s27726_s2 + $0x1a4c] ss:$16 sps:$4 sm:$0xff]  }
 0x433   :  { %8420 = vmatmul.mubr.bf16.vlgmr.msra.gmra.mxu1 %v7998_v16  ;;  %8473 = vmatmul.mubr.bf16.vlgmr.msra.gmra.mxu0 %v7998_v16  ;;  %v25318_v36 = vadd.f32 %v6643_v5, %v25080_v25  ;;  %v25321_v8 = vadd.f32 %v6696_v27, %v25083_v21  ;;  %v20402_v21 = vld [vmem:[%s27726_s2 + $0x1ac0] ss:$16 sps:$4 sm:$0xff]   ;;  %v20430_v16 = vld [vmem:[%s27726_s2 + $0x1a84] ss:$16 sps:$4 sm:$0xff]  }
 0x434   :  { %8429 = vmatprep.mubr.bf16.mxu1 %v8001_v13  ;;  %8482 = vmatprep.mubr.bf16.mxu0 %v8001_v13  ;;  %v6645_v17 = vpop.f32.mrf.mxu1  ;;  %v6698_v33 = vpop.f32.mrf.mxu0 }
 0x435   :  { %8994 = vmatpush1.bf16.msra.mxu1 %v20394_v45  ;;  %9047 = vmatpush1.bf16.msra.mxu0 %v20397_v63  ;;  %v25332_v25 = vadd.f32 %v6645_v17, %v25086_v20  ;;  %v25335_v27 = vadd.f32 %v6698_v33, %v25089_v35  ;;  %v25348_v20 = vsel %vm22240_vm13, %v17770_v50, %v8567_v60  ;;  %v20413_v45 = vld [vmem:[%s27726_s2 + $0x1aa8] ss:$16 sps:$4 sm:$0xff]   ;;  %v20436_v33 = vld [vmem:[%s27726_s2 + $0x1a64] ss:$16 sps:$4 sm:$0xff]  }
 0x436   :  { %8995 = vmatprep.subr.bf16.mxu1 %v20404_v40  ;;  %9048 = vmatprep.subr.bf16.mxu0 %v20407_v48  ;;  %v25350_v35 = vpop.f32.mrf.mxu1  ;;  %v25352_v47 = vpop.f32.mrf.mxu0  ;;  %v8592_v59 = vcombine.high %v25348_v20, %v25325_v28  ;;  %v25367_v63 = vsel %vm22240_vm13, %v17768_v37, %v8559_v32  ;;  %v20433_v40 = vld [vmem:[%s27726_s2 + $0x1a8c] ss:$16 sps:$4 sm:$0xff]  }
 0x437   :  { %27766 = vst [vmem:[#allocation25_spill] sm:$0xff] %v25352_v47  ;;  %v8590_v38 = vcombine.high %v25367_v63, %v25329_v15 }
 0x438   :  { %v6651_v62 = vpop.f32.mrf.mxu1  ;;  %v6704_v44 = vpop.f32.mrf.mxu0 }
 0x439   :  { %8996 = vmatpush1.bf16.msra.mxu1 %v20402_v21  ;;  %9049 = vmatpush1.bf16.msra.mxu0 %v20405_v29  ;;  %v25378_v48 = vadd.f32 %v6651_v62, %v25122_v43  ;;  %v25381_v37 = vadd.f32 %v6704_v44, %v25125_v51  ;;  %v8606_v50 = vpack.c.bf16 %v8592_v59, %v8590_v38  ;;  %v20437_v21 = vld [vmem:[%s27726_s2 + $0x1a68] ss:$16 sps:$4 sm:$0xff]   ;;  %v20442_v29 = vld [vmem:[%s27726_s2 + $0x1a44] ss:$16 sps:$4 sm:$0xff]   ;;  %v20457_v38 = vld [vmem:[%s27726_s2 + $0x1a0c] ss:$16 sps:$4 sm:$0xff]  }
 0x43a   :  { %8997 = vmatprep.subr.bf16.mxu1 %v20412_v55  ;;  %9050 = vmatprep.subr.bf16.mxu0 %v20415_v53  ;;  %v6653_v60 = vpop.f32.mrf.mxu1  ;;  %v6706_v13 = vpop.f32.mrf.mxu0  ;;  %v20440_v55 = vld [vmem:[%s27726_s2 + $0x1a40] ss:$16 sps:$4 sm:$0xff]   ;;  %v20443_v53 = vld [vmem:[%s27726_s2 + $0x1a48] ss:$16 sps:$4 sm:$0xff]   ;;  %v20448_v59 = vld [vmem:[%s27726_s2 + $0x1a24] ss:$16 sps:$4 sm:$0xff]  }
 0x43b   :  { %8430 = vmatmul.mubr.bf16.gmra.mxu1 %v8000_v3  ;;  %8483 = vmatmul.mubr.bf16.gmra.mxu0 %v8000_v3  ;;  %v25384_v5 = vadd.f32 %v6653_v60, %v25128_v9  ;;  %v25387_v32 = vadd.f32 %v6706_v13, %v25131_v23  ;;  %v20428_v9 = vld [vmem:[%s27726_s2 + $0x1a80] ss:$16 sps:$4 sm:$0xff]   ;;  %v20431_v23 = vld [vmem:[%s27726_s2 + $0x1a88] ss:$16 sps:$4 sm:$0xff]   ;;  %v20454_v44 = vld [vmem:[%s27726_s2 + $0x1a04] ss:$16 sps:$4 sm:$0xff]  }
 0x43c   :  { %9025 = vmatprep.mubr.bf16.mxu1 %v8606_v50  ;;  %9078 = vmatprep.mubr.bf16.mxu0 %v8606_v50  ;;  %v6655_v43 = vpop.f32.mrf.mxu1  ;;  %v6708_v17 = vpop.f32.mrf.mxu0  ;;  %v20449_v62 = vld [vmem:[%s27726_s2 + $0x1a28] ss:$16 sps:$4 sm:$0xff]   ;;  %v20460_v3 = vld [vmem:[%s27726_s2 + $0x1be4] ss:$16 sps:$4 sm:$0xff]   ;;  %v20463_v50 = vld [vmem:[%s27726_s2 + $0x1bec] ss:$16 sps:$4 sm:$0xff]  }
 0x43d   :  { %8998 = vmatpush1.bf16.msra.mxu1 %v20410_v30  ;;  %9051 = vmatpush1.bf16.msra.mxu0 %v20413_v45  ;;  %v25390_v51 = vadd.f32 %v6655_v43, %v25134_v19  ;;  %v25393_v1 = vadd.f32 %v6708_v17, %v25137_v58  ;;  %v20439_v19 = vld [vmem:[%s27726_s2 + $0x1a6c] ss:$16 sps:$4 sm:$0xff]   ;;  %v20434_v58 = vld [vmem:[%s27726_s2 + $0x1a60] ss:$16 sps:$4 sm:$0xff]   ;;  %v20461_v13 = vld [vmem:[%s27726_s2 + $0x1be8] ss:$16 sps:$4 sm:$0xff]  }
 0x43e   :  { %8999 = vmatprep.subr.bf16.mxu1 %v20430_v16  ;;  %9052 = vmatprep.subr.bf16.mxu0 %v20433_v40  ;;  %v20451_v30 = vld [vmem:[%s27726_s2 + $0x1a2c] ss:$16 sps:$4 sm:$0xff]   ;;  %v20446_v45 = vld [vmem:[%s27726_s2 + $0x1a20] ss:$16 sps:$4 sm:$0xff]   ;;  %v20455_v40 = vld [vmem:[%s27726_s2 + $0x1a08] ss:$16 sps:$4 sm:$0xff]  }
 0x43f   :  { %v20452_v16 = vld [vmem:[%s27726_s2 + $0x1a00] ss:$16 sps:$4 sm:$0xff]   ;;  %v20466_v43 = vld [vmem:[%s27726_s2 + $0x1bc4] ss:$16 sps:$4 sm:$0xff]   ;;  %v20469_v17 = vld [vmem:[%s27726_s2 + $0x1bcc] ss:$16 sps:$4 sm:$0xff]  }
 0x440   :  { %v20458_v60 = vld [vmem:[%s27726_s2 + $0x1be0] ss:$16 sps:$4 sm:$0xff]  }
 0x441   :  { %9000 = vmatpush1.bf16.msra.mxu1 %v20428_v9  ;;  %9053 = vmatpush1.bf16.msra.mxu0 %v20431_v23  ;;  %v20464_v9 = vld [vmem:[%s27726_s2 + $0x1bc0] ss:$16 sps:$4 sm:$0xff]   ;;  %v20467_v23 = vld [vmem:[%s27726_s2 + $0x1bc8] ss:$16 sps:$4 sm:$0xff]  }
 0x442   :  { %9001 = vmatprep.subr.bf16.mxu1 %v20436_v33  ;;  %9054 = vmatprep.subr.bf16.mxu0 %v20439_v19  ;;  %v20472_v33 = vld [vmem:[%s27726_s2 + $0x1ba4] ss:$16 sps:$4 sm:$0xff]   ;;  %v20475_v19 = vld [vmem:[%s27726_s2 + $0x1bac] ss:$16 sps:$4 sm:$0xff]  }
 0x445   :  { %9002 = vmatpush1.bf16.msra.mxu1 %v20434_v58  ;;  %9055 = vmatpush1.bf16.msra.mxu0 %v20437_v21  ;;  %v20470_v58 = vld [vmem:[%s27726_s2 + $0x1ba0] ss:$16 sps:$4 sm:$0xff]   ;;  %v20473_v21 = vld [vmem:[%s27726_s2 + $0x1ba8] ss:$16 sps:$4 sm:$0xff]  }
 0x446   :  { %9003 = vmatprep.subr.bf16.mxu1 %v20442_v29  ;;  %9056 = vmatprep.subr.bf16.mxu0 %v20445_v52  ;;  %v20478_v29 = vld [vmem:[%s27726_s2 + $0x1b84] ss:$16 sps:$4 sm:$0xff]   ;;  %v20481_v52 = vld [vmem:[%s27726_s2 + $0x1b8c] ss:$16 sps:$4 sm:$0xff]  }
 0x449   :  { %9004 = vmatpush1.bf16.msra.mxu1 %v20440_v55  ;;  %9057 = vmatpush1.bf16.msra.mxu0 %v20443_v53  ;;  %v20476_v55 = vld [vmem:[%s27726_s2 + $0x1b80] ss:$16 sps:$4 sm:$0xff]   ;;  %v20479_v53 = vld [vmem:[%s27726_s2 + $0x1b88] ss:$16 sps:$4 sm:$0xff]  }
 0x44a   :  { %9005 = vmatprep.subr.bf16.mxu1 %v20448_v59  ;;  %9058 = vmatprep.subr.bf16.mxu0 %v20451_v30  ;;  %v20484_v59 = vld [vmem:[%s27726_s2 + $0x1b64] ss:$16 sps:$4 sm:$0xff]   ;;  %v20487_v30 = vld [vmem:[%s27726_s2 + $0x1b6c] ss:$16 sps:$4 sm:$0xff]  }
 0x44d   :  { %9006 = vmatpush1.bf16.msra.mxu1 %v20446_v45  ;;  %9059 = vmatpush1.bf16.msra.mxu0 %v20449_v62  ;;  %v20482_v45 = vld [vmem:[%s27726_s2 + $0x1b60] ss:$16 sps:$4 sm:$0xff]   ;;  %v20485_v62 = vld [vmem:[%s27726_s2 + $0x1b68] ss:$16 sps:$4 sm:$0xff]  }
 0x44e   :  { %9007 = vmatprep.subr.bf16.mxu1 %v20454_v44  ;;  %9060 = vmatprep.subr.bf16.mxu0 %v20457_v38  ;;  %v20490_v44 = vld [vmem:[%s27726_s2 + $0x1b44] ss:$16 sps:$4 sm:$0xff]   ;;  %v20493_v38 = vld [vmem:[%s27726_s2 + $0x1b4c] ss:$16 sps:$4 sm:$0xff]  }
 0x451   :  { %9008 = vmatpush1.bf16.msra.mxu1 %v20452_v16  ;;  %9061 = vmatpush1.bf16.msra.mxu0 %v20455_v40  ;;  %v20512_v16 = vld [vmem:[#allocation2 + $0x1f8] ss:$-88 sps:$4 sm:$0xee]   ;;  %v20514_v40 = vld [vmem:[#allocation2 + $0x1fc] ss:$-88 sps:$4 sm:$0x11]  }
 0x452   :  { %9009 = vmatprep.subr.bf16.mxu1 %v20460_v3  ;;  %9062 = vmatprep.subr.bf16.mxu0 %v20463_v50  ;;  %v20518_v3 = vld [vmem:[#allocation2 + $0x160] ss:$376 sps:$4 sm:$0xee]   ;;  %v20520_v50 = vld [vmem:[#allocation2 + $0x164] ss:$376 sps:$4 sm:$0x11]  }
 0x455   :  { %9010 = vmatpush2.bf16.msra.mxu1 %v20458_v60  ;;  %9063 = vmatpush2.bf16.msra.mxu0 %v20461_v13  ;;  %v20515_v60 = vld [vmem:[#allocation2 + $0x2a8] ss:$72 sps:$4 sm:$0xee]   ;;  %v20517_v13 = vld [vmem:[#allocation2 + $0x2ac] ss:$72 sps:$4 sm:$0x11]  }
 0x456   :  { %9011 = vmatprep.subr.bf16.mxu1 %v20466_v43  ;;  %9064 = vmatprep.subr.bf16.mxu0 %v20469_v17  ;;  %v20521_v43 = vld [vmem:[#allocation2 + $0x1d8] ss:$272 sps:$4 sm:$0xee]   ;;  %v20523_v17 = vld [vmem:[#allocation2 + $0x1dc] ss:$272 sps:$4 sm:$0x11]  }
 0x459   :  { %9012 = vmatpush2.bf16.msra.mxu1 %v20464_v9  ;;  %9065 = vmatpush2.bf16.msra.mxu0 %v20467_v23  ;;  %v20488_v9 = vld [vmem:[%s27726_s2 + $0x1b40] ss:$16 sps:$4 sm:$0xff]   ;;  %v20491_v23 = vld [vmem:[%s27726_s2 + $0x1b48] ss:$16 sps:$4 sm:$0xff]  }
 0x45a   :  { %9013 = vmatprep.subr.bf16.mxu1 %v20472_v33  ;;  %9066 = vmatprep.subr.bf16.mxu0 %v20475_v19  ;;  %v20496_v33 = vld [vmem:[%s27726_s2 + $0x1b24] ss:$16 sps:$4 sm:$0xff]   ;;  %v20499_v19 = vld [vmem:[%s27726_s2 + $0x1b2c] ss:$16 sps:$4 sm:$0xff]  }
 0x45d   :  { %9014 = vmatpush2.bf16.msra.mxu1 %v20470_v58  ;;  %9067 = vmatpush2.bf16.msra.mxu0 %v20473_v21  ;;  %v17774_v58 = vrot.slane %v20518_v3, 9  ;;  %v8583_v21 = vrot.slane %v20520_v50, 5  ;;  %v20539_v3 = vld [vmem:[#allocation2 + $0x20] ss:$400 sps:$4 sm:$0xcc]  }
 0x45e   :  { %9015 = vmatprep.subr.bf16.mxu1 %v20478_v29  ;;  %9068 = vmatprep.subr.bf16.mxu0 %v20481_v52  ;;  %v17775_v29 = vrot.slane %v20521_v43, 9  ;;  %v8587_v52 = vrot.slane %v20523_v17, 5  ;;  %v20541_v50 = vld [vmem:[#allocation2 + $0x24] ss:$400 sps:$4 sm:$0x33]  }
 0x45f   :  { %v25541_v43 = vsel %vm22240_vm13, %v17774_v58, %v8583_v21  ;;  %v25549_v17 = vld [vmem:[#allocation2 + $0x2e4] ss:$-312 sps:$4 sm:$0x33]   ;;  %v8589_v21 = vcombine.low %v25367_v63, %v25329_v15  ;;  %v17905_v15 = vrot.slane %v20539_v3, 10  ;;  %v9169_v63 = vrot.slane %v20541_v50, 6 }
 0x460   :  { %v9173_v3 = vrot.slane %v25549_v17, 6 }
 0x461   :  { %9016 = vmatpush2.bf16.msra.mxu1 %v20476_v55  ;;  %9069 = vmatpush2.bf16.msra.mxu0 %v20479_v53  ;;  %v20494_v55 = vld [vmem:[%s27726_s2 + $0x1b20] ss:$16 sps:$4 sm:$0xff]   ;;  %v20497_v53 = vld [vmem:[%s27726_s2 + $0x1b28] ss:$16 sps:$4 sm:$0xff]  }
 0x462   :  { %9017 = vmatprep.subr.bf16.mxu1 %v20484_v59  ;;  %9070 = vmatprep.subr.bf16.mxu0 %v20487_v30  ;;  %v17772_v59 = vrot.slane %v20512_v16, 9  ;;  %v8575_v30 = vrot.slane %v20514_v40, 5  ;;  %v25545_v16 = vsel %vm22240_vm13, %v17775_v29, %v8587_v52  ;;  %v25547_v40 = vld [vmem:[#allocation2 + $0x2e0] ss:$-312 sps:$4 sm:$0xcc]   ;;  %v25575_v29 = vpop.f32.mrf.mxu1  ;;  %v25577_v52 = vpop.f32.mrf.mxu0 }
 0x463   :  { %27767 = vst [vmem:[#allocation26_spill] sm:$0xff] %v25577_v52 }
 0x465   :  { %9018 = vmatpush2.bf16.msra.mxu1 %v20482_v45  ;;  %9071 = vmatpush2.bf16.msra.mxu0 %v20485_v62  ;;  %v20502_v45 = vld [vmem:[%s27726_s2 + $0x1b04] ss:$16 sps:$4 sm:$0xff]   ;;  %v20505_v62 = vld [vmem:[%s27726_s2 + $0x1b0c] ss:$16 sps:$4 sm:$0xff]  }
 0x466   :  { %9019 = vmatprep.subr.bf16.mxu1 %v20490_v44  ;;  %9072 = vmatprep.subr.bf16.mxu0 %v20493_v38  ;;  %v17773_v44 = vrot.slane %v20515_v60, 9  ;;  %v8579_v38 = vrot.slane %v20517_v13, 5  ;;  %v8591_v60 = vcombine.low %v25348_v20, %v25325_v28  ;;  %v20500_v13 = vld [vmem:[%s27726_s2 + $0x1b00] ss:$16 sps:$4 sm:$0xff]   ;;  %v20511_v28 = vld [vmem:[%s27726_s2 + $0x1cec] ss:$16 sps:$4 sm:$0xff]   ;;  %v25567_v20 = vsel %vm22240_vm13, %v17772_v59, %v8575_v30 }
 0x468   :  { %v25571_v58 = vsel %vm22240_vm13, %v17773_v44, %v8579_v38  ;;  %v8605_v59 = vpack.c.bf16 %v8591_v60, %v8589_v21  ;;  %v17906_v60 = vrot.slane %v25547_v40, 10 }
 0x469   :  { %9020 = vmatpush2.bf16.msra.mxu1 %v20488_v9  ;;  %9073 = vmatpush2.bf16.msra.mxu0 %v20491_v23  ;;  %v20545_v9 = vld [vmem:[#allocation2 + $0x218] ss:$56 sps:$4 sm:$0xcc]   ;;  %v20547_v23 = vld [vmem:[#allocation2 + $0x21c] ss:$56 sps:$4 sm:$0x33]   ;;  %v8594_v38 = vcombine.high %v25567_v20, %v25571_v58 }
 0x46a   :  { %9021 = vmatprep.subr.bf16.mxu1 %v20496_v33  ;;  %9074 = vmatprep.subr.bf16.mxu0 %v20499_v19  ;;  %v20503_v33 = vld [vmem:[%s27726_s2 + $0x1b08] ss:$16 sps:$4 sm:$0xff]   ;;  %v20508_v19 = vld [vmem:[%s27726_s2 + $0x1ce4] ss:$16 sps:$4 sm:$0xff]   ;;  %v9177_v47 = vrot.slane %v20547_v23, 6 }
 0x46b   :  { %v20509_v23 = vld [vmem:[%s27726_s2 + $0x1ce8] ss:$16 sps:$4 sm:$0xff]  }
 0x46d   :  { %9022 = vmatpush2.bf16.msra.mxu1 %v20494_v55  ;;  %9075 = vmatpush2.bf16.msra.mxu0 %v20497_v53  ;;  %v8596_v55 = vcombine.high %v25541_v43, %v25545_v16  ;;  %v20536_v53 = vld [vmem:[#allocation2 + $0x178] ss:$-312 sps:$4 sm:$0xcc]  }
 0x46e   :  { %9023 = vmatprep.subr.bf16.mxu1 %v20502_v45  ;;  %9076 = vmatprep.subr.bf16.mxu0 %v20505_v62  ;;  %v20538_v45 = vld [vmem:[#allocation2 + $0x17c] ss:$-312 sps:$4 sm:$0x33]   ;;  %v17907_v62 = vrot.slane %v20545_v9, 10  ;;  %v20506_v9 = vld [vmem:[%s27726_s2 + $0x1ce0] ss:$16 sps:$4 sm:$0xff]  }
 0x46f   :  { %v8608_v50 = vpack.c.bf16 %v8596_v55, %v8594_v38  ;;  %v9165_v17 = vrot.slane %v20538_v45, 6  ;;  %v8593_v38 = vcombine.low %v25567_v20, %v25571_v58  ;;  %v20530_v20 = vld [vmem:[%s27726_s2 + $0x1ca0] ss:$16 sps:$4 sm:$0xff]   ;;  %v20533_v58 = vld [vmem:[%s27726_s2 + $0x1ca8] ss:$16 sps:$4 sm:$0xff]  }
 0x470   :  { %v25611_v21 = vsel %vm22494_vm6, %v17907_v62, %v9177_v47  ;;  %v20524_v47 = vld [vmem:[%s27726_s2 + $0x1cc0] ss:$16 sps:$4 sm:$0xff]   ;;  %v20535_v62 = vld [vmem:[%s27726_s2 + $0x1cac] ss:$16 sps:$4 sm:$0xff]  }
 0x471   :  { %9024 = vmatpush2.bf16.msra.mxu1 %v20500_v13  ;;  %9077 = vmatpush2.bf16.msra.mxu0 %v20503_v33  ;;  %v7247_v30 = vpop.f32.mrf.mxu1  ;;  %v7300_v44 = vpop.f32.mrf.mxu0  ;;  %v20529_v33 = vld [vmem:[%s27726_s2 + $0x1ccc] ss:$16 sps:$4 sm:$0xff]  }
 0x472   :  { %v25584_v34 = vadd.f32 %v7247_v30, %v25312_v22  ;;  %v25587_v52 = vadd.f32 %v7300_v44, %v25315_v56  ;;  %9599 = vmatprep.subr.bf16.mxu1 %v20508_v19  ;;  %9652 = vmatprep.subr.bf16.mxu0 %v20511_v28  ;;  %v20526_v56 = vld [vmem:[%s27726_s2 + $0x1cc4] ss:$16 sps:$4 sm:$0xff]   ;;  %v17904_v19 = vrot.slane %v20536_v53, 10  ;;  %v8595_v53 = vcombine.low %v25541_v43, %v25545_v16  ;;  %v20527_v43 = vld [vmem:[%s27726_s2 + $0x1cc8] ss:$16 sps:$4 sm:$0xff]  }
 0x473   :  { %v7249_v22 = vpop.f32.mrf.mxu1  ;;  %v7302_v13 = vpop.f32.mrf.mxu0  ;;  %v25633_v16 = vsel %vm22494_vm6, %v17906_v60, %v9173_v3 }
 0x474   :  { %9026 = vmatmul.mubr.bf16.vlgmr.msra.gmra.mxu1 %v8605_v59  ;;  %9079 = vmatmul.mubr.bf16.vlgmr.msra.gmra.mxu0 %v8605_v59  ;;  %v25604_v28 = vadd.f32 %v7249_v22, %v25318_v36  ;;  %v25607_v40 = vadd.f32 %v7302_v13, %v25321_v8  ;;  %v25617_v59 = vsel %vm22494_vm6, %v17905_v15, %v9169_v63 }
 0x475   :  { %9035 = vmatprep.mubr.bf16.mxu1 %v8608_v50  ;;  %9088 = vmatprep.mubr.bf16.mxu0 %v8608_v50  ;;  %v7251_v55 = vpop.f32.mrf.mxu1  ;;  %v7304_v30 = vpop.f32.mrf.mxu0  ;;  %v9198_v44 = vcombine.high %v25633_v16, %v25611_v21  ;;  %v25651_v15 = vsel %vm22494_vm6, %v17904_v19, %v9165_v17  ;;  %v8607_v50 = vpack.c.bf16 %v8595_v53, %v8593_v38  ;;  %v20563_v38 = vld [vmem:[%s27726_s2 + $0x1c48] ss:$16 sps:$4 sm:$0xff]  }
 0x476   :  { %9600 = vmatpush1.bf16.msra.mxu1 %v20506_v9  ;;  %9653 = vmatpush1.bf16.msra.mxu0 %v20509_v23  ;;  %v25620_v36 = vadd.f32 %v7251_v55, %v25332_v25  ;;  %v25623_v8 = vadd.f32 %v7304_v30, %v25335_v27  ;;  %v20532_v27 = vld [vmem:[%s27726_s2 + $0x1ca4] ss:$16 sps:$4 sm:$0xff]   ;;  %v9196_v23 = vcombine.high %v25651_v15, %v25617_v59 }
 0x477   :  { %9601 = vmatprep.subr.bf16.mxu1 %v20526_v56  ;;  %9654 = vmatprep.subr.bf16.mxu0 %v20529_v33  ;;  %v25635_v45 = vpop.f32.mrf.mxu1  ;;  %v25637_v25 = vpop.f32.mrf.mxu0 }
 0x478   :  { %v9212_v22 = vpack.c.bf16 %v9198_v44, %v9196_v23  ;;  %v20560_v44 = vld [vmem:[%s27726_s2 + $0x1c40] ss:$16 sps:$4 sm:$0xff]  }
 0x479   :  { %v7257_v63 = vpop.f32.mrf.mxu1  ;;  %v7310_v9 = vpop.f32.mrf.mxu0  ;;  %v20566_v23 = vld [vmem:[%s27726_s2 + $0x1c20] ss:$16 sps:$4 sm:$0xff]  }
 0x47a   :  { %9602 = vmatpush1.bf16.msra.mxu1 %v20524_v47  ;;  %9655 = vmatpush1.bf16.msra.mxu0 %v20527_v43  ;;  %v25656_v60 = vadd.f32 %v7257_v63, %v25378_v48  ;;  %v25659_v3 = vadd.f32 %v7310_v9, %v25381_v37  ;;  %v20550_v48 = vld [vmem:[%s27726_s2 + $0x1c84] ss:$16 sps:$4 sm:$0xff]   ;;  %v20553_v37 = vld [vmem:[%s27726_s2 + $0x1c8c] ss:$16 sps:$4 sm:$0xff]   ;;  %v20557_v43 = vld [vmem:[%s27726_s2 + $0x1c68] ss:$16 sps:$4 sm:$0xff]  }
 0x47b   :  { %9603 = vmatprep.subr.bf16.mxu1 %v20532_v27  ;;  %9656 = vmatprep.subr.bf16.mxu0 %v20535_v62  ;;  %v7259_v13 = vpop.f32.mrf.mxu1  ;;  %v7312_v56 = vpop.f32.mrf.mxu0  ;;  %v20556_v47 = vld [vmem:[%s27726_s2 + $0x1c64] ss:$16 sps:$4 sm:$0xff]   ;;  %v20565_v62 = vld [vmem:[%s27726_s2 + $0x1c4c] ss:$16 sps:$4 sm:$0xff]  }
 0x47c   :  { %9036 = vmatmul.mubr.bf16.gmra.mxu1 %v8607_v50  ;;  %9089 = vmatmul.mubr.bf16.gmra.mxu0 %v8607_v50  ;;  %v25674_v33 = vadd.f32 %v7259_v13, %v25384_v5  ;;  %v25677_v19 = vadd.f32 %v7312_v56, %v25387_v32  ;;  %v20548_v5 = vld [vmem:[%s27726_s2 + $0x1c80] ss:$16 sps:$4 sm:$0xff]   ;;  %v20551_v32 = vld [vmem:[%s27726_s2 + $0x1c88] ss:$16 sps:$4 sm:$0xff]   ;;  %v20562_v27 = vld [vmem:[%s27726_s2 + $0x1c44] ss:$16 sps:$4 sm:$0xff]  }
 0x47d   :  { %9631 = vmatprep.mubr.bf16.mxu1 %v9212_v22  ;;  %9684 = vmatprep.mubr.bf16.mxu0 %v9212_v22  ;;  %v7261_v17 = vpop.f32.mrf.mxu1  ;;  %v7314_v55 = vpop.f32.mrf.mxu0  ;;  %v20568_v63 = vld [vmem:[%s27726_s2 + $0x1c24] ss:$16 sps:$4 sm:$0xff]   ;;  %v20571_v9 = vld [vmem:[%s27726_s2 + $0x1c2c] ss:$16 sps:$4 sm:$0xff]   ;;  %v20569_v50 = vld [vmem:[%s27726_s2 + $0x1c28] ss:$16 sps:$4 sm:$0xff]  }
 0x47e   :  { %9604 = vmatpush1.bf16.msra.mxu1 %v20530_v20  ;;  %9657 = vmatpush1.bf16.msra.mxu0 %v20533_v58  ;;  %v25680_v30 = vadd.f32 %v7261_v17, %v25390_v51  ;;  %v25683_v53 = vadd.f32 %v7314_v55, %v25393_v1  ;;  %v20559_v51 = vld [vmem:[%s27726_s2 + $0x1c6c] ss:$16 sps:$4 sm:$0xff]   ;;  %v20554_v1 = vld [vmem:[%s27726_s2 + $0x1c60] ss:$16 sps:$4 sm:$0xff]   ;;  %v20574_v20 = vld [vmem:[%s27726_s2 + $0x1c04] ss:$16 sps:$4 sm:$0xff]  }
 0x47f   :  { %9605 = vmatprep.subr.bf16.mxu1 %v20550_v48  ;;  %9658 = vmatprep.subr.bf16.mxu0 %v20553_v37  ;;  %v20577_v58 = vld [vmem:[%s27726_s2 + $0x1c0c] ss:$16 sps:$4 sm:$0xff]   ;;  %v20572_v22 = vld [vmem:[%s27726_s2 + $0x1c00] ss:$16 sps:$4 sm:$0xff]   ;;  %v20575_v13 = vld [vmem:[%s27726_s2 + $0x1c08] ss:$16 sps:$4 sm:$0xff]  }
 0x480   :  { %v20580_v56 = vld [vmem:[%s27726_s2 + $0x1de4] ss:$16 sps:$4 sm:$0xff]   ;;  %v20583_v48 = vld [vmem:[%s27726_s2 + $0x1dec] ss:$16 sps:$4 sm:$0xff]   ;;  %v20578_v37 = vld [vmem:[%s27726_s2 + $0x1de0] ss:$16 sps:$4 sm:$0xff]  }
 0x481   :  { %v20581_v17 = vld [vmem:[%s27726_s2 + $0x1de8] ss:$16 sps:$4 sm:$0xff]   ;;  %v20586_v55 = vld [vmem:[%s27726_s2 + $0x1dc4] ss:$16 sps:$4 sm:$0xff]  }
 0x482   :  { %9606 = vmatpush1.bf16.msra.mxu1 %v20548_v5  ;;  %9659 = vmatpush1.bf16.msra.mxu0 %v20551_v32  ;;  %v20589_v5 = vld [vmem:[%s27726_s2 + $0x1dcc] ss:$16 sps:$4 sm:$0xff]   ;;  %v20584_v32 = vld [vmem:[%s27726_s2 + $0x1dc0] ss:$16 sps:$4 sm:$0xff]  }
 0x483   :  { %9607 = vmatprep.subr.bf16.mxu1 %v20556_v47  ;;  %9660 = vmatprep.subr.bf16.mxu0 %v20559_v51  ;;  %v20587_v47 = vld [vmem:[%s27726_s2 + $0x1dc8] ss:$16 sps:$4 sm:$0xff]   ;;  %v20592_v51 = vld [vmem:[%s27726_s2 + $0x1da4] ss:$16 sps:$4 sm:$0xff]  }
 0x486   :  { %9608 = vmatpush1.bf16.msra.mxu1 %v20554_v1  ;;  %9661 = vmatpush1.bf16.msra.mxu0 %v20557_v43  ;;  %v20595_v1 = vld [vmem:[%s27726_s2 + $0x1dac] ss:$16 sps:$4 sm:$0xff]   ;;  %v20590_v43 = vld [vmem:[%s27726_s2 + $0x1da0] ss:$16 sps:$4 sm:$0xff]  }
 0x487   :  { %9609 = vmatprep.subr.bf16.mxu1 %v20562_v27  ;;  %9662 = vmatprep.subr.bf16.mxu0 %v20565_v62  ;;  %v20593_v27 = vld [vmem:[%s27726_s2 + $0x1da8] ss:$16 sps:$4 sm:$0xff]   ;;  %v20598_v62 = vld [vmem:[%s27726_s2 + $0x1d84] ss:$16 sps:$4 sm:$0xff]  }
 0x48a   :  { %9610 = vmatpush1.bf16.msra.mxu1 %v20560_v44  ;;  %9663 = vmatpush1.bf16.msra.mxu0 %v20563_v38  ;;  %v20601_v44 = vld [vmem:[%s27726_s2 + $0x1d8c] ss:$16 sps:$4 sm:$0xff]   ;;  %v20596_v38 = vld [vmem:[%s27726_s2 + $0x1d80] ss:$16 sps:$4 sm:$0xff]  }
 0x48b   :  { %9611 = vmatprep.subr.bf16.mxu1 %v20568_v63  ;;  %9664 = vmatprep.subr.bf16.mxu0 %v20571_v9  ;;  %v20599_v63 = vld [vmem:[%s27726_s2 + $0x1d88] ss:$16 sps:$4 sm:$0xff]   ;;  %v20604_v9 = vld [vmem:[%s27726_s2 + $0x1d64] ss:$16 sps:$4 sm:$0xff]  }
 0x48e   :  { %9612 = vmatpush1.bf16.msra.mxu1 %v20566_v23  ;;  %9665 = vmatpush1.bf16.msra.mxu0 %v20569_v50  ;;  %v20607_v23 = vld [vmem:[%s27726_s2 + $0x1d6c] ss:$16 sps:$4 sm:$0xff]   ;;  %v20602_v50 = vld [vmem:[%s27726_s2 + $0x1d60] ss:$16 sps:$4 sm:$0xff]  }
 0x48f   :  { %9613 = vmatprep.subr.bf16.mxu1 %v20574_v20  ;;  %9666 = vmatprep.subr.bf16.mxu0 %v20577_v58  ;;  %v20605_v20 = vld [vmem:[%s27726_s2 + $0x1d68] ss:$16 sps:$4 sm:$0xff]   ;;  %v20610_v58 = vld [vmem:[%s27726_s2 + $0x1d44] ss:$16 sps:$4 sm:$0xff]  }
 0x492   :  { %9614 = vmatpush1.bf16.msra.mxu1 %v20572_v22  ;;  %9667 = vmatpush1.bf16.msra.mxu0 %v20575_v13  ;;  %v20613_v22 = vld [vmem:[%s27726_s2 + $0x1d4c] ss:$16 sps:$4 sm:$0xff]   ;;  %v1928_v13 = vadd.f32 %v23235_v41, %v23096_v54  ;;  %v20608_v54 = vld [vmem:[%s27726_s2 + $0x1d40] ss:$16 sps:$4 sm:$0xff]   ;;  %v20616_v41 = vld [vmem:[%s27726_s2 + $0x1d24] ss:$16 sps:$4 sm:$0xff]  }
 0x493   :  { %9615 = vmatprep.subr.bf16.mxu1 %v20580_v56  ;;  %9668 = vmatprep.subr.bf16.mxu0 %v20583_v48  ;;  %v1981_v56 = vadd.f32 %v23237_v42, %v23098_v57  ;;  %v20632_v48 = vld [vmem:[#allocation2 + $0x1f8] ss:$-88 sps:$4 sm:$0xcc]   ;;  %v20619_v42 = vld [vmem:[%s27726_s2 + $0x1d2c] ss:$16 sps:$4 sm:$0xff]  }
 0x494   :  { %v20611_v57 = vld [vmem:[%s27726_s2 + $0x1d48] ss:$16 sps:$4 sm:$0xff]  }
 0x496   :  { %9616 = vmatpush2.bf16.msra.mxu1 %v20578_v37  ;;  %9669 = vmatpush2.bf16.msra.mxu0 %v20581_v17  ;;  %v20634_v37 = vld [vmem:[#allocation2 + $0x1fc] ss:$-88 sps:$4 sm:$0x33]   ;;  %v20638_v17 = vld [vmem:[#allocation2 + $0x160] ss:$376 sps:$4 sm:$0xcc]  }
 0x497   :  { %9617 = vmatprep.subr.bf16.mxu1 %v20586_v55  ;;  %9670 = vmatprep.subr.bf16.mxu0 %v20589_v5  ;;  %v20640_v55 = vld [vmem:[#allocation2 + $0x164] ss:$376 sps:$4 sm:$0x33]   ;;  %v20635_v5 = vld [vmem:[#allocation2 + $0x2a8] ss:$72 sps:$4 sm:$0xcc]  }
 0x49a   :  { %9618 = vmatpush2.bf16.msra.mxu1 %v20584_v32  ;;  %9671 = vmatpush2.bf16.msra.mxu0 %v20587_v47  ;;  %v20637_v32 = vld [vmem:[#allocation2 + $0x2ac] ss:$72 sps:$4 sm:$0x33]   ;;  %v20641_v47 = vld [vmem:[#allocation2 + $0x1d8] ss:$272 sps:$4 sm:$0xcc]  }
 0x49b   :  { %9619 = vmatprep.subr.bf16.mxu1 %v20592_v51  ;;  %9672 = vmatprep.subr.bf16.mxu0 %v20595_v1  ;;  %v20643_v51 = vld [vmem:[#allocation2 + $0x1dc] ss:$272 sps:$4 sm:$0x33]   ;;  %v2591_v1 = vadd.f32 %v23498_v6, %v1928_v13  ;;  %v1938_v6 = vadd.f32 %v23452_v49, %v23172_v4  ;;  %v20614_v4 = vld [vmem:[%s27726_s2 + $0x1d20] ss:$16 sps:$4 sm:$0xff]   ;;  %v17908_v49 = vrot.slane %v20632_v48, 10 }
 0x49c   :  { %v27768_v13 = vld [vmem:[#allocation12_spill] sm:$0xff]  ;;  %v27769_v48 = vld [vmem:[#allocation13_spill] sm:$0xff] }
 0x49e   :  { %9620 = vmatpush2.bf16.msra.mxu1 %v20590_v43  ;;  %9673 = vmatpush2.bf16.msra.mxu0 %v20593_v27  ;;  %v2593_v43 = vadd.f32 %v23500_v31, %v1981_v56  ;;  %v1991_v31 = vadd.f32 %v23454_v46, %v23174_v14  ;;  %v3158_v27 = vadd.f32 %v23749_v0, %v2591_v1  ;;  %v20617_v14 = vld [vmem:[%s27726_s2 + $0x1d28] ss:$16 sps:$4 sm:$0xff]   ;;  %v9181_v46 = vrot.slane %v20634_v37, 6 }
 0x49f   :  { %9621 = vmatprep.subr.bf16.mxu1 %v20598_v62  ;;  %9674 = vmatprep.subr.bf16.mxu0 %v20601_v44  ;;  %v17910_v44 = vrot.slane %v20638_v17, 10  ;;  %v9197_v37 = vcombine.low %v25633_v16, %v25611_v21  ;;  %v20620_v21 = vld [vmem:[%s27726_s2 + $0x1d00] ss:$16 sps:$4 sm:$0xff]   ;;  %v20623_v16 = vld [vmem:[%s27726_s2 + $0x1d08] ss:$16 sps:$4 sm:$0xff]  }
 0x4a0   :  { %v3160_v62 = vadd.f32 %v23751_v7, %v2593_v43  ;;  %v20625_v7 = vld [vmem:[%s27726_s2 + $0x1d0c] ss:$16 sps:$4 sm:$0xff]   ;;  %v20628_v43 = vld [vmem:[%s27726_s2 + $0x1ee4] ss:$16 sps:$4 sm:$0xff]  }
 0x4a2   :  { %9622 = vmatpush2.bf16.msra.mxu1 %v20596_v38  ;;  %9675 = vmatpush2.bf16.msra.mxu0 %v20599_v63  ;;  %v9189_v38 = vrot.slane %v20640_v55, 6  ;;  %v17911_v63 = vrot.slane %v20641_v47, 10  ;;  %v3766_v0 = vadd.f32 %v24036_v2, %v3160_v62  ;;  %v27774_v62 = vld [vmem:[#allocation11_spill] sm:$0xff] }
 0x4a3   :  { %9623 = vmatprep.subr.bf16.mxu1 %v20604_v9  ;;  %9676 = vmatprep.subr.bf16.mxu0 %v20607_v23  ;;  %v9193_v9 = vrot.slane %v20643_v51, 6  ;;  %v2599_v23 = vadd.f32 %v23694_v10, %v1938_v6  ;;  %v20622_v10 = vld [vmem:[%s27726_s2 + $0x1d04] ss:$16 sps:$4 sm:$0xff]  }
 0x4a4   :  { %v4372_v2 = vadd.f32 %v27769_v48, %v3766_v0  ;;  %v25852_v17 = vsel %vm22494_vm6, %v17910_v44, %v9189_v38  ;;  %v27772_v51 = vld [vmem:[#allocation17_spill] sm:$0xff]  ;;  %v20629_v0 = vld [vmem:[%s27726_s2 + $0x1ee8] ss:$16 sps:$4 sm:$0xff]  }
 0x4a5   :  { %v25856_v55 = vsel %vm22494_vm6, %v17911_v63, %v9193_v9  ;;  %v27778_v48 = vld [vmem:[#allocation25_spill] sm:$0xff] }
 0x4a6   :  { %9624 = vmatpush2.bf16.msra.mxu1 %v20602_v50  ;;  %9677 = vmatpush2.bf16.msra.mxu0 %v20605_v20  ;;  %v3764_v50 = vadd.f32 %v24034_v61, %v3158_v27  ;;  %v17909_v61 = vrot.slane %v20635_v5, 10  ;;  %v9185_v20 = vrot.slane %v20637_v32, 6  ;;  %v27770_v5 = vld [vmem:[#allocation9_spill] sm:$0xff]  ;;  %v4940_v1 = vadd.f32 %v27772_v51, %v4372_v2 }
 0x4a7   :  { %9625 = vmatprep.subr.bf16.mxu1 %v20610_v58  ;;  %9678 = vmatprep.subr.bf16.mxu0 %v20613_v22  ;;  %v2601_v58 = vadd.f32 %v23696_v11, %v1991_v31  ;;  %v3166_v22 = vadd.f32 %v23972_v24, %v2599_v23  ;;  %v27771_v11 = vld [vmem:[#allocation16_spill] sm:$0xff]  ;;  %v9195_v24 = vcombine.low %v25651_v15, %v25617_v59  ;;  %v27773_v31 = vld [vmem:[#allocation10_spill] sm:$0xff] }
 0x4a8   :  { %v4370_v56 = vadd.f32 %v27768_v13, %v3764_v50  ;;  %v20631_v59 = vld [vmem:[%s27726_s2 + $0x1eec] ss:$16 sps:$4 sm:$0xff]   ;;  %v25877_v15 = vsel %vm22494_vm6, %v17908_v49, %v9181_v46  ;;  %v9202_v6 = vcombine.high %v25852_v17, %v25856_v55  ;;  %v5546_v38 = vadd.f32 %v24838_v18, %v4940_v1  ;;  %v20646_v13 = vld [vmem:[%s27726_s2 + $0x1ec4] ss:$16 sps:$4 sm:$0xff]   ;;  %v20644_v1 = vld [vmem:[%s27726_s2 + $0x1ec0] ss:$16 sps:$4 sm:$0xff]  }
 0x4a9   :  { %v3168_v32 = vadd.f32 %v27770_v5, %v2601_v58  ;;  %v3772_v27 = vadd.f32 %v27773_v31, %v3166_v22  ;;  %v9211_v63 = vpack.c.bf16 %v9197_v37, %v9195_v24  ;;  %v27779_v5 = vld [vmem:[#allocation18_spill] sm:$0xff] }
 0x4aa   :  { %9626 = vmatpush2.bf16.msra.mxu1 %v20608_v54  ;;  %9679 = vmatpush2.bf16.msra.mxu0 %v20611_v57  ;;  %v4938_v47 = vadd.f32 %v27771_v11, %v4370_v56  ;;  %v25881_v54 = vsel %vm22494_vm6, %v17909_v61, %v9185_v20  ;;  %v27777_v61 = vld [vmem:[#allocation15_spill] sm:$0xff]  ;;  %v20649_v56 = vld [vmem:[%s27726_s2 + $0x1ecc] ss:$16 sps:$4 sm:$0xff]  }
 0x4ab   :  { %9627 = vmatprep.subr.bf16.mxu1 %v20616_v41  ;;  %9680 = vmatprep.subr.bf16.mxu0 %v20619_v42  ;;  %v25884_v41 = vpop.f32.mrf.mxu1  ;;  %v25886_v42 = vpop.f32.mrf.mxu0  ;;  %v3774_v44 = vadd.f32 %v27774_v62, %v3168_v32  ;;  %v9200_v50 = vcombine.high %v25877_v15, %v25881_v54  ;;  %v27780_v11 = vld [vmem:[#allocation19_spill] sm:$0xff] }
 0x4ac   :  { %v5544_v57 = vadd.f32 %v24836_v39, %v4938_v47 }
 0x4ad   :  { %v4380_v20 = vadd.f32 %v27777_v61, %v3774_v44  ;;  %v9214_v58 = vpack.c.bf16 %v9202_v6, %v9200_v50  ;;  %v20655_v6 = vld [vmem:[%s27726_s2 + $0x1eac] ss:$16 sps:$4 sm:$0xff]  }
 0x4ae   :  { %9628 = vmatpush2.bf16.msra.mxu1 %v20614_v4  ;;  %9681 = vmatpush2.bf16.msra.mxu0 %v20617_v14  ;;  %v6150_v9 = vadd.f32 %v25102_v12, %v5544_v57  ;;  %v9201_v4 = vcombine.low %v25852_v17, %v25856_v55  ;;  %v27775_v14 = vld [vmem:[#allocation22_spill] sm:$0xff]  ;;  %v20626_v12 = vld [vmem:[%s27726_s2 + $0x1ee0] ss:$16 sps:$4 sm:$0xff]   ;;  %v27784_v50 = vld [vmem:[#allocation24_spill] sm:$0xff] }
 0x4af   :  { %9629 = vmatprep.subr.bf16.mxu1 %v20622_v10  ;;  %9682 = vmatprep.subr.bf16.mxu0 %v20625_v7  ;;  %v6152_v49 = vadd.f32 %v27775_v14, %v5546_v38  ;;  %v27776_v10 = vld [vmem:[#allocation14_spill] sm:$0xff]  ;;  %v9727_v17 = vld [vmem:[#allocation2 + $0x80] sm:$0xf]  ;;  %v4948_v47 = vadd.f32 %v27780_v11, %v4380_v20 }
 0x4b0   :  { %v4378_v7 = vadd.f32 %v27776_v10, %v3772_v27  ;;  %v9729_v55 = vld [vmem:[#allocation2 + $0x280] sm:$0xf]  ;;  %v27782_v27 = vld [vmem:[#allocation21_spill] sm:$0xff]  ;;  %v20653_v10 = vld [vmem:[%s27726_s2 + $0x1ea8] ss:$16 sps:$4 sm:$0xff]  }
 0x4b1   :  { %v6720_v2 = vadd.f32 %v27778_v48, %v6152_v49  ;;  %v18043_v31 = vcombine.low %v9727_v17, %v9729_v55  ;;  %v5554_v62 = vadd.f32 %v27782_v27, %v4948_v47  ;;  %v20666_v11 = vld [vmem:[%s27726_s2 + $0x1e68] ss:$16 sps:$4 sm:$0xff]   ;;  %v20671_v47 = vld [vmem:[%s27726_s2 + $0x1e44] ss:$16 sps:$4 sm:$0xff]  }
 0x4b2   :  { %9630 = vmatpush2.bf16.msra.mxu1 %v20620_v21  ;;  %9683 = vmatpush2.bf16.msra.mxu0 %v20623_v16  ;;  %v7853_v23 = vpop.f32.mrf.mxu1  ;;  %v7906_v39 = vpop.f32.mrf.mxu0  ;;  %v4946_v32 = vadd.f32 %v27779_v5, %v4378_v7  ;;  %v20690_v27 = vld [vmem:[%s27726_s2 + $0x1fe8] ss:$16 sps:$4 sm:$0xff]  }
 0x4b3   :  { %v25900_v46 = vadd.f32 %v7853_v23, %v25584_v34  ;;  %v25903_v18 = vadd.f32 %v7906_v39, %v25587_v52  ;;  %10167 = vmatprep.subr.bf16.mxu1 %v20628_v43  ;;  %10220 = vmatprep.subr.bf16.mxu0 %v20631_v59  ;;  %v6718_v34 = vadd.f32 %v25350_v35, %v6150_v9  ;;  %v27781_v43 = vld [vmem:[#allocation20_spill] sm:$0xff] }
 0x4b4   :  { %v7855_v22 = vpop.f32.mrf.mxu1  ;;  %v7908_v52 = vpop.f32.mrf.mxu0  ;;  %v7326_v51 = vadd.f32 %v25637_v25, %v6720_v2  ;;  %v5552_v59 = vadd.f32 %v27781_v43, %v4946_v32  ;;  %v9199_v25 = vcombine.low %v25877_v15, %v25881_v54  ;;  %v27783_v15 = vld [vmem:[#allocation23_spill] sm:$0xff]  ;;  %v20656_v39 = vld [vmem:[#allocation2 + $0x248] ss:$16 sps:$4 sm:$0xff]   ;;  %v6160_v14 = vadd.f32 %v27784_v50, %v5554_v62 }
 0x4b5   :  { %9632 = vmatmul.mubr.bf16.vlgmr.msra.gmra.mxu1 %v9211_v63  ;;  %9685 = vmatmul.mubr.bf16.vlgmr.msra.gmra.mxu0 %v9211_v63  ;;  %v25922_v37 = vadd.f32 %v7855_v22, %v25604_v28  ;;  %v25925_v35 = vadd.f32 %v7908_v52, %v25607_v40  ;;  %v7324_v24 = vadd.f32 %v25635_v45, %v6718_v34  ;;  %v20647_v45 = vld [vmem:[%s27726_s2 + $0x1ec8] ss:$16 sps:$4 sm:$0xff]   ;;  %v20663_v32 = vld [vmem:[%s27726_s2 + $0x1e60] ss:$16 sps:$4 sm:$0xff]   ;;  %v20695_v62 = vld [vmem:[%s27726_s2 + $0x1fc4] ss:$16 sps:$4 sm:$0xff]  }
 0x4b6   :  { %9641 = vmatprep.mubr.bf16.mxu1 %v9214_v58  ;;  %9694 = vmatprep.mubr.bf16.mxu0 %v9214_v58  ;;  %v7857_v21 = vpop.f32.mrf.mxu1  ;;  %v7910_v16 = vpop.f32.mrf.mxu0  ;;  %v6158_v54 = vadd.f32 %v27783_v15, %v5552_v59  ;;  %v9213_v23 = vpack.c.bf16 %v9201_v4, %v9199_v25  ;;  %v9779_v7 = vpack.c.bf16 %v18043_v31, %v20656_v39  ;;  %v27785_v34 = vld [vmem:[#allocation26_spill] sm:$0xff]  ;;  %v20683_v59 = vld [vmem:[%s27726_s2 + $0x1e04] ss:$16 sps:$4 sm:$0xff]   ;;  %v20687_v31 = vld [vmem:[%s27726_s2 + $0x1fe0] ss:$16 sps:$4 sm:$0xff]  }
 0x4b7   :  { %10168 = vmatpush1.bf16.msra.mxu1 %v20626_v12  ;;  %10221 = vmatpush1.bf16.msra.mxu0 %v20629_v0  ;;  %v25932_v28 = vadd.f32 %v7857_v21, %v25620_v36  ;;  %v25935_v40 = vadd.f32 %v7910_v16, %v25623_v8  ;;  %v20652_v8 = vld [vmem:[%s27726_s2 + $0x1ea4] ss:$16 sps:$4 sm:$0xff]   ;;  %v20650_v0 = vld [vmem:[%s27726_s2 + $0x1ea0] ss:$16 sps:$4 sm:$0xff]   ;;  %v6728_v58 = vadd.f32 %v27785_v34, %v6160_v14  ;;  %v20672_v16 = vld [vmem:[%s27726_s2 + $0x1e48] ss:$16 sps:$4 sm:$0xff]  }
 0x4b8   :  { %10169 = vmatprep.subr.bf16.mxu1 %v20646_v13  ;;  %10222 = vmatprep.subr.bf16.mxu0 %v20649_v56  ;;  %v7859_v36 = vpop.f32.mrf.mxu1  ;;  %v7912_v57 = vpop.f32.mrf.mxu0  ;;  %v6726_v4 = vadd.f32 %v25575_v29, %v6158_v54  ;;  %v20669_v21 = vld [vmem:[%s27726_s2 + $0x1e40] ss:$16 sps:$4 sm:$0xff]   ;;  %v20678_v43 = vld [vmem:[%s27726_s2 + $0x1e28] ss:$16 sps:$4 sm:$0xff]   ;;  %v20686_v25 = vld [vmem:[%s27726_s2 + $0x1e0c] ss:$16 sps:$4 sm:$0xff]  }
 0x4b9   :  { %v25953_v44 = vadd.f32 %v7859_v36, %v7324_v24  ;;  %v25955_v38 = vadd.f32 %v7912_v57, %v7326_v51  ;;  %v7334_v48 = vadd.f32 %v25886_v42, %v6728_v58  ;;  %v20674_v24 = vld [vmem:[%s27726_s2 + $0x1e4c] ss:$16 sps:$4 sm:$0xff]   ;;  %v20677_v51 = vld [vmem:[%s27726_s2 + $0x1e24] ss:$16 sps:$4 sm:$0xff]   ;;  %v20681_v36 = vld [vmem:[%s27726_s2 + $0x1e00] ss:$16 sps:$4 sm:$0xff]  }
 0x4ba   :  { %v7863_v63 = vpop.f32.mrf.mxu1  ;;  %v7916_v9 = vpop.f32.mrf.mxu0  ;;  %v7332_v52 = vadd.f32 %v25884_v41, %v6726_v4  ;;  %v20684_v57 = vld [vmem:[%s27726_s2 + $0x1e08] ss:$16 sps:$4 sm:$0xff]   ;;  %v20698_v15 = vld [vmem:[%s27726_s2 + $0x1fcc] ss:$16 sps:$4 sm:$0xff]   ;;  %v20693_v54 = vld [vmem:[%s27726_s2 + $0x1fc0] ss:$16 sps:$4 sm:$0xff]  }
 0x4bb   :  { %10170 = vmatpush1.bf16.msra.mxu1 %v20644_v1  ;;  %10223 = vmatpush1.bf16.msra.mxu0 %v20647_v45  ;;  %v25960_v49 = vadd.f32 %v7863_v63, %v25656_v60  ;;  %v25963_v12 = vadd.f32 %v7916_v9, %v25659_v3  ;;  %v20659_v60 = vld [vmem:[%s27726_s2 + $0x1e84] ss:$16 sps:$4 sm:$0xff]   ;;  %v20662_v3 = vld [vmem:[%s27726_s2 + $0x1e8c] ss:$16 sps:$4 sm:$0xff]   ;;  %v20675_v45 = vld [vmem:[%s27726_s2 + $0x1e20] ss:$16 sps:$4 sm:$0xff]  }
 0x4bc   :  { %10171 = vmatprep.subr.bf16.mxu1 %v20652_v8  ;;  %10224 = vmatprep.subr.bf16.mxu0 %v20655_v6  ;;  %v7865_v61 = vpop.f32.mrf.mxu1  ;;  %v7918_v20 = vpop.f32.mrf.mxu0  ;;  %v20680_v1 = vld [vmem:[%s27726_s2 + $0x1e2c] ss:$16 sps:$4 sm:$0xff]   ;;  %v20689_v8 = vld [vmem:[%s27726_s2 + $0x1fe4] ss:$16 sps:$4 sm:$0xff]   ;;  %v20696_v63 = vld [vmem:[%s27726_s2 + $0x1fc8] ss:$16 sps:$4 sm:$0xff]  }
 0x4bd   :  { %9642 = vmatmul.mubr.bf16.gmra.mxu1 %v9213_v23  ;;  %9695 = vmatmul.mubr.bf16.gmra.mxu0 %v9213_v23  ;;  %v25980_v22 = vadd.f32 %v7865_v61, %v25674_v33  ;;  %v25983_v29 = vadd.f32 %v7918_v20, %v25677_v19  ;;  %v20657_v33 = vld [vmem:[%s27726_s2 + $0x1e80] ss:$16 sps:$4 sm:$0xff]   ;;  %v20660_v19 = vld [vmem:[%s27726_s2 + $0x1e88] ss:$16 sps:$4 sm:$0xff]   ;;  %v20692_v6 = vld [vmem:[%s27726_s2 + $0x1fec] ss:$16 sps:$4 sm:$0xff]  }
 0x4be   :  { %10199 = vmatprep.mubr.bf16.mxu1 %v9779_v7  ;;  %10252 = vmatprep.mubr.bf16.mxu0 %v9779_v7  ;;  %v7867_v13 = vpop.f32.mrf.mxu1  ;;  %v7920_v56 = vpop.f32.mrf.mxu0  ;;  %v20701_v9 = vld [vmem:[%s27726_s2 + $0x1fa4] ss:$16 sps:$4 sm:$0xff]   ;;  %v20704_v23 = vld [vmem:[%s27726_s2 + $0x1fac] ss:$16 sps:$4 sm:$0xff]   ;;  %v20699_v39 = vld [vmem:[%s27726_s2 + $0x1fa0] ss:$16 sps:$4 sm:$0xff]  }
 0x4bf   :  { %10172 = vmatpush1.bf16.msra.mxu1 %v20650_v0  ;;  %10225 = vmatpush1.bf16.msra.mxu0 %v20653_v10  ;;  %v25988_v2 = vadd.f32 %v7867_v13, %v25680_v30  ;;  %v25991_v17 = vadd.f32 %v7920_v56, %v25683_v53  ;;  %v20665_v30 = vld [vmem:[%s27726_s2 + $0x1e64] ss:$16 sps:$4 sm:$0xff]   ;;  %v20668_v53 = vld [vmem:[%s27726_s2 + $0x1e6c] ss:$16 sps:$4 sm:$0xff]   ;;  %v20702_v50 = vld [vmem:[%s27726_s2 + $0x1fa8] ss:$16 sps:$4 sm:$0xff]  }
 0x4c0   :  { %10173 = vmatprep.subr.bf16.mxu1 %v20659_v60  ;;  %10226 = vmatprep.subr.bf16.mxu0 %v20662_v3  ;;  %v7869_v41 = vpop.f32.mrf.mxu1  ;;  %v7922_v42 = vpop.f32.mrf.mxu0  ;;  %v20707_v14 = vld [vmem:[%s27726_s2 + $0x1f84] ss:$16 sps:$4 sm:$0xff]   ;;  %v20710_v0 = vld [vmem:[%s27726_s2 + $0x1f8c] ss:$16 sps:$4 sm:$0xff]   ;;  %v20705_v10 = vld [vmem:[%s27726_s2 + $0x1f80] ss:$16 sps:$4 sm:$0xff]  }
 0x4c1   :  { %v26005_v55 = vadd.f32 %v7869_v41, %v7332_v52  ;;  %v26007_v5 = vadd.f32 %v7922_v42, %v7334_v48  ;;  %v20708_v4 = vld [vmem:[%s27726_s2 + $0x1f88] ss:$16 sps:$4 sm:$0xff]   ;;  %v20713_v7 = vld [vmem:[%s27726_s2 + $0x1f64] ss:$16 sps:$4 sm:$0xff]   ;;  %v20716_v61 = vld [vmem:[%s27726_s2 + $0x1f6c] ss:$16 sps:$4 sm:$0xff]  }
 0x4c2   :  { %v20711_v20 = vld [vmem:[%s27726_s2 + $0x1f60] ss:$16 sps:$4 sm:$0xff]   ;;  %v20714_v60 = vld [vmem:[%s27726_s2 + $0x1f68] ss:$16 sps:$4 sm:$0xff]   ;;  %v20719_v3 = vld [vmem:[%s27726_s2 + $0x1f44] ss:$16 sps:$4 sm:$0xff]  }
 0x4c3   :  { %10174 = vmatpush1.bf16.msra.mxu1 %v20657_v33  ;;  %10227 = vmatpush1.bf16.msra.mxu0 %v20660_v19  ;;  %v20722_v34 = vld [vmem:[%s27726_s2 + $0x1f4c] ss:$16 sps:$4 sm:$0xff]   ;;  %v20717_v58 = vld [vmem:[%s27726_s2 + $0x1f40] ss:$16 sps:$4 sm:$0xff]   ;;  %v20720_v52 = vld [vmem:[%s27726_s2 + $0x1f48] ss:$16 sps:$4 sm:$0xff]  }
 0x4c4   :  { %10175 = vmatprep.subr.bf16.mxu1 %v20665_v30  ;;  %10228 = vmatprep.subr.bf16.mxu0 %v20668_v53  ;;  %v20725_v13 = vld [vmem:[%s27726_s2 + $0x1f24] ss:$16 sps:$4 sm:$0xff]   ;;  %v20728_v56 = vld [vmem:[%s27726_s2 + $0x1f2c] ss:$16 sps:$4 sm:$0xff]   ;;  %v20723_v48 = vld [vmem:[%s27726_s2 + $0x1f20] ss:$16 sps:$4 sm:$0xff]  }
 0x4c5   :  { %v20726_v33 = vld [vmem:[%s27726_s2 + $0x1f28] ss:$16 sps:$4 sm:$0xff]   ;;  %v20731_v19 = vld [vmem:[%s27726_s2 + $0x1f04] ss:$16 sps:$4 sm:$0xff]   ;;  %v20734_v41 = vld [vmem:[%s27726_s2 + $0x1f0c] ss:$16 sps:$4 sm:$0xff]  }
 0x4c6   :  { %v9724_v42 = vld [vmem:[#allocation2 + $0x220] sm:$0xf]  ;;  %v20735_v30 = vld [vmem:[#allocation2 + $0x1b8] ss:$16 sps:$4 sm:$0xff]  }
 0x4c7   :  { %10176 = vmatpush1.bf16.msra.mxu1 %v20663_v32  ;;  %10229 = vmatpush1.bf16.msra.mxu0 %v20666_v11  ;;  %v20762_v53 = vld [vmem:[#allocation2 + $0x1b8] ss:$-312 sps:$4 sm:$0xee]   ;;  %v20764_v32 = vld [vmem:[#allocation2 + $0x1bc] ss:$-312 sps:$4 sm:$0x11]  }
 0x4c8   :  { %10177 = vmatprep.subr.bf16.mxu1 %v20671_v47  ;;  %10230 = vmatprep.subr.bf16.mxu0 %v20674_v24  ;;  %v9722_v11 = vld [vmem:[#allocation2] sm:$0xf]  ;;  %v26143_v24 = vld [vmem:[#allocation2 + $0x224] ss:$56 sps:$4 sm:$0x11]  }
 0x4c9   :  { %v26141_v47 = vld [vmem:[#allocation2 + $0x220] ss:$56 sps:$4 sm:$0xee]  }
 0x4cb   :  { %10178 = vmatpush1.bf16.msra.mxu1 %v20669_v21  ;;  %10231 = vmatpush1.bf16.msra.mxu0 %v20672_v16  ;;  %v20765_v21 = vld [vmem:[#allocation2 + $0x1c8] ss:$184 sps:$4 sm:$0xee]   ;;  %v20767_v16 = vld [vmem:[#allocation2 + $0x1cc] ss:$184 sps:$4 sm:$0x11]  }
 0x4cc   :  { %10179 = vmatprep.subr.bf16.mxu1 %v20677_v51  ;;  %10232 = vmatprep.subr.bf16.mxu0 %v20680_v1  ;;  %v20729_v51 = vld [vmem:[%s27726_s2 + $0x1f00] ss:$16 sps:$4 sm:$0xff]   ;;  %v20732_v1 = vld [vmem:[%s27726_s2 + $0x1f08] ss:$16 sps:$4 sm:$0xff]  }
 0x4cf   :  { %10180 = vmatpush1.bf16.msra.mxu1 %v20675_v45  ;;  %10233 = vmatpush1.bf16.msra.mxu0 %v20678_v43  ;;  %v20742_v45 = vld [vmem:[#allocation2 + $0x278] ss:$-296 sps:$4 sm:$0xff]   ;;  %v20738_v43 = vld [vmem:[%s27726_s2 + $0x20e4] ss:$16 sps:$4 sm:$0xff]  }
 0x4d0   :  { %10181 = vmatprep.subr.bf16.mxu1 %v20683_v59  ;;  %10234 = vmatprep.subr.bf16.mxu0 %v20686_v25  ;;  %v20741_v59 = vld [vmem:[%s27726_s2 + $0x20ec] ss:$16 sps:$4 sm:$0xff]   ;;  %v20743_v25 = vld [vmem:[#allocation2 + $0x170] ss:$248 sps:$4 sm:$0xff]  }
 0x4d3   :  { %10182 = vmatpush1.bf16.msra.mxu1 %v20681_v36  ;;  %10235 = vmatpush1.bf16.msra.mxu0 %v20684_v57  ;;  %v18040_v36 = vcombine.low %v9722_v11, %v9724_v42  ;;  %v20756_v57 = vld [vmem:[#allocation2] ss:$584 sps:$4 sm:$0xee]  }
 0x4d4   :  { %10183 = vmatprep.subr.bf16.mxu1 %v20689_v8  ;;  %10236 = vmatprep.subr.bf16.mxu0 %v20692_v6  ;;  %v18178_v8 = vrot.slane %v20762_v53, 9  ;;  %v10347_v6 = vrot.slane %v20764_v32, 5  ;;  %v20744_v53 = vld [vmem:[%s27726_s2 + $0x20c0] ss:$16 sps:$4 sm:$0xff]   ;;  %v20747_v32 = vld [vmem:[%s27726_s2 + $0x20c8] ss:$16 sps:$4 sm:$0xff]  }
 0x4d7   :  { %10184 = vmatpush2.bf16.msra.mxu1 %v20687_v31  ;;  %10237 = vmatpush2.bf16.msra.mxu0 %v20690_v27  ;;  %v26157_v31 = vld [vmem:[#allocation2 + $0xa0] sm:$0xf]  ;;  %v20758_v27 = vld [vmem:[#allocation2 + $0x4] ss:$584 sps:$4 sm:$0x11]  }
 0x4d8   :  { %10185 = vmatprep.subr.bf16.mxu1 %v20695_v62  ;;  %10238 = vmatprep.subr.bf16.mxu0 %v20698_v15  ;;  %v18179_v62 = vrot.slane %v20765_v21, 9  ;;  %v10351_v15 = vrot.slane %v20767_v16, 5 }
 0x4db   :  { %10186 = vmatpush2.bf16.msra.mxu1 %v20693_v54  ;;  %10239 = vmatpush2.bf16.msra.mxu0 %v20696_v63 }
 0x4dc   :  { %10187 = vmatprep.subr.bf16.mxu1 %v20701_v9  ;;  %10240 = vmatprep.subr.bf16.mxu0 %v20704_v23  ;;  %v9778_v9 = vpack.c.bf16 %v20735_v30, %v18040_v36  ;;  %v9732_v23 = vld [vmem:[#allocation2 + $0x1e0] sm:$0xf] }
 0x4dd   :  { %v18044_v42 = vcombine.low %v26157_v31, %v9732_v23 }
 0x4df   :  { %10188 = vmatpush2.bf16.msra.mxu1 %v20699_v39  ;;  %10241 = vmatpush2.bf16.msra.mxu0 %v20702_v50  ;;  %v9734_v39 = vld [vmem:[#allocation2 + $0xc0] sm:$0xf] }
 0x4e0   :  { %10189 = vmatprep.subr.bf16.mxu1 %v20707_v14  ;;  %10242 = vmatprep.subr.bf16.mxu0 %v20710_v0  ;;  %v9736_v50 = vld [vmem:[#allocation2 + $0x260] sm:$0xf] }
 0x4e1   :  { %v18046_v30 = vcombine.low %v9734_v39, %v9736_v50 }
 0x4e3   :  { %10190 = vmatpush2.bf16.msra.mxu1 %v20705_v10  ;;  %10243 = vmatpush2.bf16.msra.mxu0 %v20708_v4  ;;  %v20736_v10 = vld [vmem:[%s27726_s2 + $0x20e0] ss:$16 sps:$4 sm:$0xff]   ;;  %v20739_v4 = vld [vmem:[%s27726_s2 + $0x20e8] ss:$16 sps:$4 sm:$0xff]   ;;  %v9780_v36 = vpack.c.bf16 %v18046_v30, %v18044_v42  ;;  %v20800_v42 = vld [vmem:[%s27726_s2 + $0x21e4] ss:$16 sps:$4 sm:$0xff]  }
 0x4e4   :  { %10191 = vmatprep.subr.bf16.mxu1 %v20713_v7  ;;  %10244 = vmatprep.subr.bf16.mxu0 %v20716_v61  ;;  %v18177_v7 = vrot.slane %v26141_v47, 9  ;;  %v10343_v61 = vrot.slane %v26143_v24, 5  ;;  %v20755_v24 = vld [vmem:[%s27726_s2 + $0x20ac] ss:$16 sps:$4 sm:$0xff]  }
 0x4e5   :  { %v20803_v30 = vld [vmem:[%s27726_s2 + $0x21ec] ss:$16 sps:$4 sm:$0xff]  }
 0x4e6   :  { %v26208_v11 = vsel %vm22240_vm13, %v18177_v7, %v10343_v61  ;;  %v20777_v7 = vld [vmem:[%s27726_s2 + $0x2068] ss:$16 sps:$4 sm:$0xff]   ;;  %v20780_v61 = vld [vmem:[%s27726_s2 + $0x2040] ss:$16 sps:$4 sm:$0xff]  }
 0x4e7   :  { %10192 = vmatpush2.bf16.msra.mxu1 %v20711_v20  ;;  %10245 = vmatpush2.bf16.msra.mxu0 %v20714_v60  ;;  %v9781_v20 = vpack.c.bf16 %v20743_v25, %v20742_v45 }
 0x4e8   :  { %10193 = vmatprep.subr.bf16.mxu1 %v20719_v3  ;;  %10246 = vmatprep.subr.bf16.mxu0 %v20722_v34  ;;  %v20749_v3 = vld [vmem:[%s27726_s2 + $0x20cc] ss:$16 sps:$4 sm:$0xff]   ;;  %v18176_v34 = vrot.slane %v20756_v57, 9  ;;  %v20753_v57 = vld [vmem:[%s27726_s2 + $0x20a8] ss:$16 sps:$4 sm:$0xff]  }
 0x4eb   :  { %10194 = vmatpush2.bf16.msra.mxu1 %v20717_v58  ;;  %10247 = vmatpush2.bf16.msra.mxu0 %v20720_v52  ;;  %v26181_v52 = vsel %vm22240_vm13, %v18178_v8, %v10347_v6 }
 0x4ec   :  { %10195 = vmatprep.subr.bf16.mxu1 %v20725_v13  ;;  %10248 = vmatprep.subr.bf16.mxu0 %v20728_v56 }
 0x4ef   :  { %10196 = vmatpush2.bf16.msra.mxu1 %v20723_v48  ;;  %10249 = vmatpush2.bf16.msra.mxu0 %v20726_v33  ;;  %v10339_v48 = vrot.slane %v20758_v27, 5  ;;  %v26191_v33 = vsel %vm22240_vm13, %v18179_v62, %v10351_v15 }
 0x4f0   :  { %10197 = vmatprep.subr.bf16.mxu1 %v20731_v19  ;;  %10250 = vmatprep.subr.bf16.mxu0 %v20734_v41  ;;  %v10372_v21 = vcombine.high %v26181_v52, %v26191_v33 }
 0x4f3   :  { %10198 = vmatpush2.bf16.msra.mxu1 %v20729_v51  ;;  %10251 = vmatpush2.bf16.msra.mxu0 %v20732_v1  ;;  %v8421_v54 = vpop.f32.mrf.mxu1  ;;  %v8474_v63 = vpop.f32.mrf.mxu0  ;;  %v26226_v1 = vsel %vm22240_vm13, %v18176_v34, %v10339_v48  ;;  %v20794_v34 = vld [vmem:[%s27726_s2 + $0x2004] ss:$16 sps:$4 sm:$0xff]   ;;  %v20797_v48 = vld [vmem:[%s27726_s2 + $0x200c] ss:$16 sps:$4 sm:$0xff]  }
 0x4f4   :  { %v26160_v14 = vadd.f32 %v8421_v54, %v25900_v46  ;;  %v26163_v0 = vadd.f32 %v8474_v63, %v25903_v18  ;;  %10773 = vmatprep.subr.bf16.mxu1 %v20738_v43  ;;  %10826 = vmatprep.subr.bf16.mxu0 %v20741_v59  ;;  %v20746_v18 = vld [vmem:[%s27726_s2 + $0x20c4] ss:$16 sps:$4 sm:$0xff]   ;;  %v10370_v59 = vcombine.high %v26226_v1, %v26208_v11 }
 0x4f5   :  { %v8423_v46 = vpop.f32.mrf.mxu1  ;;  %v8476_v60 = vpop.f32.mrf.mxu0 }
 0x4f6   :  { %10200 = vmatmul.mubr.bf16.vlgmr.msra.gmra.mxu1 %v9778_v9  ;;  %10253 = vmatmul.mubr.bf16.vlgmr.msra.gmra.mxu0 %v9778_v9  ;;  %v26184_v13 = vadd.f32 %v8423_v46, %v25922_v37  ;;  %v26187_v56 = vadd.f32 %v8476_v60, %v25925_v35  ;;  %v10386_v8 = vpack.c.bf16 %v10372_v21, %v10370_v59  ;;  %v20788_v46 = vld [vmem:[%s27726_s2 + $0x2024] ss:$16 sps:$4 sm:$0xff]   ;;  %v20791_v60 = vld [vmem:[%s27726_s2 + $0x202c] ss:$16 sps:$4 sm:$0xff]   ;;  %v20813_v59 = vld [vmem:[%s27726_s2 + $0x21a8] ss:$16 sps:$4 sm:$0xff]  }
 0x4f7   :  { %10209 = vmatprep.mubr.bf16.mxu1 %v9781_v20  ;;  %10262 = vmatprep.mubr.bf16.mxu0 %v9781_v20  ;;  %v8425_v19 = vpop.f32.mrf.mxu1  ;;  %v8478_v41 = vpop.f32.mrf.mxu0  ;;  %v20783_v20 = vld [vmem:[%s27726_s2 + $0x2048] ss:$16 sps:$4 sm:$0xff]   ;;  %v20812_v21 = vld [vmem:[%s27726_s2 + $0x21a4] ss:$16 sps:$4 sm:$0xff]  }
 0x4f8   :  { %10774 = vmatpush1.bf16.msra.mxu1 %v20736_v10  ;;  %10827 = vmatpush1.bf16.msra.mxu0 %v20739_v4  ;;  %v26195_v37 = vadd.f32 %v8425_v19, %v25932_v28  ;;  %v26198_v35 = vadd.f32 %v8478_v41, %v25935_v40  ;;  %v20752_v40 = vld [vmem:[%s27726_s2 + $0x20a4] ss:$16 sps:$4 sm:$0xff]   ;;  %v20774_v4 = vld [vmem:[%s27726_s2 + $0x2060] ss:$16 sps:$4 sm:$0xff]   ;;  %v20795_v41 = vld [vmem:[%s27726_s2 + $0x2008] ss:$16 sps:$4 sm:$0xff]  }
 0x4f9   :  { %10775 = vmatprep.subr.bf16.mxu1 %v20746_v18  ;;  %10828 = vmatprep.subr.bf16.mxu0 %v20749_v3  ;;  %v8427_v47 = vpop.f32.mrf.mxu1  ;;  %v8480_v28 = vpop.f32.mrf.mxu0  ;;  %v20786_v18 = vld [vmem:[%s27726_s2 + $0x2020] ss:$16 sps:$4 sm:$0xff]   ;;  %v20789_v3 = vld [vmem:[%s27726_s2 + $0x2028] ss:$16 sps:$4 sm:$0xff]  }
 0x4fa   :  { %v26219_v16 = vadd.f32 %v8427_v47, %v25953_v44  ;;  %v26222_v51 = vadd.f32 %v8480_v28, %v25955_v38  ;;  %v20750_v38 = vld [vmem:[%s27726_s2 + $0x20a0] ss:$16 sps:$4 sm:$0xff]   ;;  %v20806_v47 = vld [vmem:[%s27726_s2 + $0x21c4] ss:$16 sps:$4 sm:$0xff]   ;;  %v20809_v28 = vld [vmem:[%s27726_s2 + $0x21cc] ss:$16 sps:$4 sm:$0xff]  }
 0x4fb   :  { %v8431_v45 = vpop.f32.mrf.mxu1  ;;  %v8484_v43 = vpop.f32.mrf.mxu0  ;;  %v20792_v19 = vld [vmem:[%s27726_s2 + $0x2000] ss:$16 sps:$4 sm:$0xff]  }
 0x4fc   :  { %10776 = vmatpush1.bf16.msra.mxu1 %v20744_v53  ;;  %10829 = vmatpush1.bf16.msra.mxu0 %v20747_v32  ;;  %v26231_v25 = vadd.f32 %v8431_v45, %v25960_v49  ;;  %v26234_v44 = vadd.f32 %v8484_v43, %v25963_v12  ;;  %v20770_v49 = vld [vmem:[%s27726_s2 + $0x2084] ss:$16 sps:$4 sm:$0xff]   ;;  %v20773_v12 = vld [vmem:[%s27726_s2 + $0x208c] ss:$16 sps:$4 sm:$0xff]   ;;  %v20798_v53 = vld [vmem:[%s27726_s2 + $0x21e0] ss:$16 sps:$4 sm:$0xff]  }
 0x4fd   :  { %10777 = vmatprep.subr.bf16.mxu1 %v20752_v40  ;;  %10830 = vmatprep.subr.bf16.mxu0 %v20755_v24  ;;  %v8433_v6 = vpop.f32.mrf.mxu1  ;;  %v8486_v31 = vpop.f32.mrf.mxu0  ;;  %v20801_v32 = vld [vmem:[%s27726_s2 + $0x21e8] ss:$16 sps:$4 sm:$0xff]   ;;  %v20804_v40 = vld [vmem:[%s27726_s2 + $0x21c0] ss:$16 sps:$4 sm:$0xff]   ;;  %v20815_v45 = vld [vmem:[%s27726_s2 + $0x21ac] ss:$16 sps:$4 sm:$0xff]  }
 0x4fe   :  { %10210 = vmatmul.mubr.bf16.gmra.mxu1 %v9780_v36  ;;  %10263 = vmatmul.mubr.bf16.gmra.mxu0 %v9780_v36  ;;  %v26249_v27 = vadd.f32 %v8433_v6, %v25980_v22  ;;  %v26252_v62 = vadd.f32 %v8486_v31, %v25983_v29  ;;  %v20768_v22 = vld [vmem:[%s27726_s2 + $0x2080] ss:$16 sps:$4 sm:$0xff]   ;;  %v20771_v29 = vld [vmem:[%s27726_s2 + $0x2088] ss:$16 sps:$4 sm:$0xff]   ;;  %v20818_v36 = vld [vmem:[%s27726_s2 + $0x2184] ss:$16 sps:$4 sm:$0xff]  }
 0x4ff   :  { %10805 = vmatprep.mubr.bf16.mxu1 %v10386_v8  ;;  %10858 = vmatprep.mubr.bf16.mxu0 %v10386_v8  ;;  %v8435_v15 = vpop.f32.mrf.mxu1  ;;  %v8488_v54 = vpop.f32.mrf.mxu0  ;;  %v20807_v24 = vld [vmem:[%s27726_s2 + $0x21c8] ss:$16 sps:$4 sm:$0xff]   ;;  %v20810_v43 = vld [vmem:[%s27726_s2 + $0x21a0] ss:$16 sps:$4 sm:$0xff]   ;;  %v20824_v6 = vld [vmem:[%s27726_s2 + $0x2164] ss:$16 sps:$4 sm:$0xff]  }
 0x500   :  { %10778 = vmatpush1.bf16.msra.mxu1 %v20750_v38  ;;  %10831 = vmatpush1.bf16.msra.mxu0 %v20753_v57  ;;  %v26255_v63 = vadd.f32 %v8435_v15, %v25988_v2  ;;  %v26258_v9 = vadd.f32 %v8488_v54, %v25991_v17  ;;  %v20776_v2 = vld [vmem:[%s27726_s2 + $0x2064] ss:$16 sps:$4 sm:$0xff]   ;;  %v20779_v17 = vld [vmem:[%s27726_s2 + $0x206c] ss:$16 sps:$4 sm:$0xff]   ;;  %v20816_v57 = vld [vmem:[%s27726_s2 + $0x2180] ss:$16 sps:$4 sm:$0xff]  }
 0x501   :  { %10779 = vmatprep.subr.bf16.mxu1 %v20770_v49  ;;  %10832 = vmatprep.subr.bf16.mxu0 %v20773_v12  ;;  %v8437_v23 = vpop.f32.mrf.mxu1  ;;  %v8490_v39 = vpop.f32.mrf.mxu0  ;;  %v20821_v38 = vld [vmem:[%s27726_s2 + $0x218c] ss:$16 sps:$4 sm:$0xff]   ;;  %v20819_v8 = vld [vmem:[%s27726_s2 + $0x2188] ss:$16 sps:$4 sm:$0xff]   ;;  %v20822_v49 = vld [vmem:[%s27726_s2 + $0x2160] ss:$16 sps:$4 sm:$0xff]  }
 0x502   :  { %v26273_v50 = vadd.f32 %v8437_v23, %v26005_v55  ;;  %v26276_v10 = vadd.f32 %v8490_v39, %v26007_v5  ;;  %v20782_v55 = vld [vmem:[%s27726_s2 + $0x2044] ss:$16 sps:$4 sm:$0xff]   ;;  %v20785_v5 = vld [vmem:[%s27726_s2 + $0x204c] ss:$16 sps:$4 sm:$0xff]   ;;  %v20825_v12 = vld [vmem:[%s27726_s2 + $0x2168] ss:$16 sps:$4 sm:$0xff]  }
 0x503   :  { %v20827_v31 = vld [vmem:[%s27726_s2 + $0x216c] ss:$16 sps:$4 sm:$0xff]   ;;  %v20852_v15 = vld [vmem:[#allocation2 + $0xa0] ss:$472 sps:$4 sm:$0xee]  }
 0x504   :  { %10780 = vmatpush1.bf16.msra.mxu1 %v20768_v22  ;;  %10833 = vmatpush1.bf16.msra.mxu0 %v20771_v29  ;;  %v20854_v54 = vld [vmem:[#allocation2 + $0xa4] ss:$472 sps:$4 sm:$0x11]   ;;  %v20855_v22 = vld [vmem:[#allocation2 + $0x1e0] ss:$-144 sps:$4 sm:$0xee]  }
 0x505   :  { %10781 = vmatprep.subr.bf16.mxu1 %v20776_v2  ;;  %10834 = vmatprep.subr.bf16.mxu0 %v20779_v17  ;;  %v20857_v29 = vld [vmem:[#allocation2 + $0x1e4] ss:$-144 sps:$4 sm:$0x11]   ;;  %v20833_v39 = vld [vmem:[%s27726_s2 + $0x214c] ss:$16 sps:$4 sm:$0xff]  }
 0x506   :  { %v20830_v23 = vld [vmem:[%s27726_s2 + $0x2144] ss:$16 sps:$4 sm:$0xff]   ;;  %v20858_v2 = vld [vmem:[#allocation2 + $0xc0] ss:$176 sps:$4 sm:$0xee]  }
 0x507   :  { %v20860_v17 = vld [vmem:[#allocation2 + $0xc4] ss:$176 sps:$4 sm:$0x11]  }
 0x508   :  { %10782 = vmatpush1.bf16.msra.mxu1 %v20774_v4  ;;  %10835 = vmatpush1.bf16.msra.mxu0 %v20777_v7  ;;  %v20861_v4 = vld [vmem:[#allocation2 + $0x260] ss:$8 sps:$4 sm:$0xee]   ;;  %v20863_v7 = vld [vmem:[#allocation2 + $0x264] ss:$8 sps:$4 sm:$0x11]  }
 0x509   :  { %10783 = vmatprep.subr.bf16.mxu1 %v20782_v55  ;;  %10836 = vmatprep.subr.bf16.mxu0 %v20785_v5  ;;  %v20828_v55 = vld [vmem:[%s27726_s2 + $0x2140] ss:$16 sps:$4 sm:$0xff]   ;;  %v20831_v5 = vld [vmem:[%s27726_s2 + $0x2148] ss:$16 sps:$4 sm:$0xff]  }
 0x50c   :  { %10784 = vmatpush1.bf16.msra.mxu1 %v20780_v61  ;;  %10837 = vmatpush1.bf16.msra.mxu0 %v20783_v20  ;;  %v20836_v61 = vld [vmem:[%s27726_s2 + $0x2124] ss:$16 sps:$4 sm:$0xff]   ;;  %v20839_v20 = vld [vmem:[%s27726_s2 + $0x212c] ss:$16 sps:$4 sm:$0xff]  }
 0x50d   :  { %10785 = vmatprep.subr.bf16.mxu1 %v20788_v46  ;;  %10838 = vmatprep.subr.bf16.mxu0 %v20791_v60  ;;  %v18180_v46 = vrot.slane %v20852_v15, 9  ;;  %v10355_v60 = vrot.slane %v20854_v54, 5  ;;  %v20876_v15 = vld [vmem:[#allocation2] ss:$584 sps:$4 sm:$0xcc]  }
 0x510   :  { %10786 = vmatpush1.bf16.msra.mxu1 %v20786_v18  ;;  %10839 = vmatpush1.bf16.msra.mxu0 %v20789_v3  ;;  %v18181_v18 = vrot.slane %v20855_v22, 9  ;;  %v10359_v3 = vrot.slane %v20857_v29, 5 }
 0x511   :  { %10787 = vmatprep.subr.bf16.mxu1 %v20794_v34  ;;  %10840 = vmatprep.subr.bf16.mxu0 %v20797_v48  ;;  %v18182_v34 = vrot.slane %v20858_v2, 9  ;;  %v10363_v48 = vrot.slane %v20860_v17, 5 }
 0x514   :  { %10788 = vmatpush1.bf16.msra.mxu1 %v20792_v19  ;;  %10841 = vmatpush1.bf16.msra.mxu0 %v20795_v41  ;;  %v18183_v19 = vrot.slane %v20861_v4, 9  ;;  %v10367_v41 = vrot.slane %v20863_v7, 5  ;;  %v20846_v7 = vld [vmem:[%s27726_s2 + $0x22e0] ss:$16 sps:$4 sm:$0xff]  }
 0x515   :  { %10789 = vmatprep.subr.bf16.mxu1 %v20800_v42  ;;  %10842 = vmatprep.subr.bf16.mxu0 %v20803_v30  ;;  %v20834_v42 = vld [vmem:[%s27726_s2 + $0x2120] ss:$16 sps:$4 sm:$0xff]   ;;  %v20837_v30 = vld [vmem:[%s27726_s2 + $0x2128] ss:$16 sps:$4 sm:$0xff]  }
 0x518   :  { %10790 = vmatpush2.bf16.msra.mxu1 %v20798_v53  ;;  %10843 = vmatpush2.bf16.msra.mxu0 %v20801_v32  ;;  %v20842_v53 = vld [vmem:[%s27726_s2 + $0x2104] ss:$16 sps:$4 sm:$0xff]   ;;  %v20845_v32 = vld [vmem:[%s27726_s2 + $0x210c] ss:$16 sps:$4 sm:$0xff]  }
 0x519   :  { %10791 = vmatprep.subr.bf16.mxu1 %v20806_v47  ;;  %10844 = vmatprep.subr.bf16.mxu0 %v20809_v28  ;;  %v20882_v47 = vld [vmem:[#allocation2 + $0x1b8] ss:$-312 sps:$4 sm:$0xcc]   ;;  %v20884_v28 = vld [vmem:[#allocation2 + $0x1bc] ss:$-312 sps:$4 sm:$0x33]  }
 0x51a   :  { %v18314_v54 = vrot.slane %v20882_v47, 10  ;;  %v10953_v22 = vrot.slane %v20884_v28, 6  ;;  %v20875_v47 = vld [vmem:[%s27726_s2 + $0x22ac] ss:$16 sps:$4 sm:$0xff]  }
 0x51c   :  { %10792 = vmatpush2.bf16.msra.mxu1 %v20804_v40  ;;  %10845 = vmatpush2.bf16.msra.mxu0 %v20807_v24  ;;  %v26412_v40 = vsel %vm22240_vm13, %v18180_v46, %v10355_v60  ;;  %v26416_v24 = vsel %vm22240_vm13, %v18181_v18, %v10359_v3  ;;  %v18312_v18 = vrot.slane %v20876_v15, 10  ;;  %v26466_v3 = vsel %vm22494_vm6, %v18314_v54, %v10953_v22  ;;  %v20900_v15 = vld [vmem:[%s27726_s2 + $0x2240] ss:$16 sps:$4 sm:$0xff]   ;;  %v20903_v54 = vld [vmem:[%s27726_s2 + $0x2248] ss:$16 sps:$4 sm:$0xff]  }
 0x51d   :  { %10793 = vmatprep.subr.bf16.mxu1 %v20812_v21  ;;  %10846 = vmatprep.subr.bf16.mxu0 %v20815_v45  ;;  %v26420_v21 = vsel %vm22240_vm13, %v18182_v34, %v10363_v48  ;;  %v26424_v45 = vsel %vm22240_vm13, %v18183_v19, %v10367_v41  ;;  %v20908_v22 = vld [vmem:[%s27726_s2 + $0x2224] ss:$16 sps:$4 sm:$0xff]  }
 0x520   :  { %10794 = vmatpush2.bf16.msra.mxu1 %v20810_v43  ;;  %10847 = vmatpush2.bf16.msra.mxu0 %v20813_v59  ;;  %v20879_v43 = vld [vmem:[#allocation2 + $0x220] ss:$56 sps:$4 sm:$0xcc]   ;;  %v20881_v59 = vld [vmem:[#allocation2 + $0x224] ss:$56 sps:$4 sm:$0x33]  }
 0x521   :  { %10795 = vmatprep.subr.bf16.mxu1 %v20818_v36  ;;  %10848 = vmatprep.subr.bf16.mxu0 %v20821_v38  ;;  %v20885_v36 = vld [vmem:[#allocation2 + $0x1c8] ss:$184 sps:$4 sm:$0xcc]   ;;  %v20887_v38 = vld [vmem:[#allocation2 + $0x1cc] ss:$184 sps:$4 sm:$0x33]  }
 0x522   :  { %v10957_v29 = vrot.slane %v20887_v38, 6  ;;  %v20893_v38 = vld [vmem:[%s27726_s2 + $0x228c] ss:$16 sps:$4 sm:$0xff]  }
 0x524   :  { %10796 = vmatpush2.bf16.msra.mxu1 %v20816_v57  ;;  %10849 = vmatpush2.bf16.msra.mxu0 %v20819_v8  ;;  %v10371_v57 = vcombine.low %v26181_v52, %v26191_v33  ;;  %v20840_v8 = vld [vmem:[%s27726_s2 + $0x2100] ss:$16 sps:$4 sm:$0xff]   ;;  %v20851_v52 = vld [vmem:[%s27726_s2 + $0x22ec] ss:$16 sps:$4 sm:$0xff]   ;;  %v10374_v33 = vcombine.high %v26412_v40, %v26416_v24 }
 0x525   :  { %10797 = vmatprep.subr.bf16.mxu1 %v20824_v6  ;;  %10850 = vmatprep.subr.bf16.mxu0 %v20827_v31  ;;  %v20843_v6 = vld [vmem:[%s27726_s2 + $0x2108] ss:$16 sps:$4 sm:$0xff]   ;;  %v10369_v31 = vcombine.low %v26226_v1, %v26208_v11  ;;  %v20878_v11 = vld [vmem:[#allocation2 + $0x4] ss:$584 sps:$4 sm:$0x33]   ;;  %v18315_v1 = vrot.slane %v20885_v36, 10 }
 0x526   :  { %v10945_v19 = vrot.slane %v20878_v11, 6  ;;  %v20890_v36 = vld [vmem:[%s27726_s2 + $0x2284] ss:$16 sps:$4 sm:$0xff]   ;;  %v20911_v11 = vld [vmem:[%s27726_s2 + $0x222c] ss:$16 sps:$4 sm:$0xff]  }
 0x527   :  { %v26476_v41 = vsel %vm22494_vm6, %v18315_v1, %v10957_v29  ;;  %v20906_v1 = vld [vmem:[%s27726_s2 + $0x2220] ss:$16 sps:$4 sm:$0xff]   ;;  %v20909_v29 = vld [vmem:[%s27726_s2 + $0x2228] ss:$16 sps:$4 sm:$0xff]  }
 0x528   :  { %10798 = vmatpush2.bf16.msra.mxu1 %v20822_v49  ;;  %10851 = vmatpush2.bf16.msra.mxu0 %v20825_v12  ;;  %v20848_v49 = vld [vmem:[%s27726_s2 + $0x22e4] ss:$16 sps:$4 sm:$0xff]   ;;  %v10376_v12 = vcombine.high %v26420_v21, %v26424_v45  ;;  %v10978_v28 = vcombine.high %v26466_v3, %v26476_v41 }
 0x529   :  { %10799 = vmatprep.subr.bf16.mxu1 %v20830_v23  ;;  %10852 = vmatprep.subr.bf16.mxu0 %v20833_v39  ;;  %v10385_v23 = vpack.c.bf16 %v10371_v57, %v10369_v31  ;;  %v20888_v57 = vld [vmem:[%s27726_s2 + $0x2280] ss:$16 sps:$4 sm:$0xff]   ;;  %v20899_v31 = vld [vmem:[%s27726_s2 + $0x226c] ss:$16 sps:$4 sm:$0xff]  }
 0x52c   :  { %10800 = vmatpush2.bf16.msra.mxu1 %v20828_v55  ;;  %10853 = vmatpush2.bf16.msra.mxu0 %v20831_v5  ;;  %v20849_v55 = vld [vmem:[%s27726_s2 + $0x22e8] ss:$16 sps:$4 sm:$0xff]   ;;  %v18313_v5 = vrot.slane %v20879_v43, 10 }
 0x52d   :  { %10801 = vmatprep.subr.bf16.mxu1 %v20836_v61  ;;  %10854 = vmatprep.subr.bf16.mxu0 %v20839_v20  ;;  %v10949_v61 = vrot.slane %v20881_v59, 6  ;;  %v10388_v20 = vpack.c.bf16 %v10376_v12, %v10374_v33  ;;  %v20873_v43 = vld [vmem:[%s27726_s2 + $0x22a8] ss:$16 sps:$4 sm:$0xff]   ;;  %v20902_v33 = vld [vmem:[%s27726_s2 + $0x2244] ss:$16 sps:$4 sm:$0xff]  }
 0x52e   :  { %v20905_v12 = vld [vmem:[%s27726_s2 + $0x224c] ss:$16 sps:$4 sm:$0xff]  }
 0x530   :  { %10802 = vmatpush2.bf16.msra.mxu1 %v20834_v42  ;;  %10855 = vmatpush2.bf16.msra.mxu0 %v20837_v30  ;;  %v10373_v42 = vcombine.low %v26412_v40, %v26416_v24  ;;  %v10375_v30 = vcombine.low %v26420_v21, %v26424_v45  ;;  %v26502_v40 = vsel %vm22494_vm6, %v18312_v18, %v10945_v19  ;;  %v20870_v45 = vld [vmem:[%s27726_s2 + $0x22a0] ss:$16 sps:$4 sm:$0xff]   ;;  %v20932_v18 = vld [vmem:[%s27726_s2 + $0x23a4] ss:$16 sps:$4 sm:$0xff]   ;;  %v20935_v19 = vld [vmem:[%s27726_s2 + $0x23ac] ss:$16 sps:$4 sm:$0xff]  }
 0x531   :  { %10803 = vmatprep.subr.bf16.mxu1 %v20842_v53  ;;  %10856 = vmatprep.subr.bf16.mxu0 %v20845_v32  ;;  %v26490_v53 = vsel %vm22494_vm6, %v18313_v5, %v10949_v61  ;;  %v20872_v32 = vld [vmem:[%s27726_s2 + $0x22a4] ss:$16 sps:$4 sm:$0xff]   ;;  %v20923_v5 = vld [vmem:[%s27726_s2 + $0x23ec] ss:$16 sps:$4 sm:$0xff]   ;;  %v20918_v61 = vld [vmem:[%s27726_s2 + $0x23e0] ss:$16 sps:$4 sm:$0xff]  }
 0x532   :  { %v10976_v24 = vcombine.high %v26502_v40, %v26490_v53  ;;  %v10387_v21 = vpack.c.bf16 %v10375_v30, %v10373_v42  ;;  %v20930_v42 = vld [vmem:[%s27726_s2 + $0x23a0] ss:$16 sps:$4 sm:$0xff]   ;;  %v20933_v30 = vld [vmem:[%s27726_s2 + $0x23a8] ss:$16 sps:$4 sm:$0xff]  }
 0x534   :  { %10804 = vmatpush2.bf16.msra.mxu1 %v20840_v8  ;;  %10857 = vmatpush2.bf16.msra.mxu0 %v20843_v6  ;;  %v9027_v39 = vpop.f32.mrf.mxu1  ;;  %v9080_v2 = vpop.f32.mrf.mxu0  ;;  %v10992_v59 = vpack.c.bf16 %v10978_v28, %v10976_v24  ;;  %v20891_v8 = vld [vmem:[%s27726_s2 + $0x2288] ss:$16 sps:$4 sm:$0xff]   ;;  %v20896_v6 = vld [vmem:[%s27726_s2 + $0x2264] ss:$16 sps:$4 sm:$0xff]   ;;  %v20947_v24 = vld [vmem:[%s27726_s2 + $0x236c] ss:$16 sps:$4 sm:$0xff]  }
 0x535   :  { %v26447_v17 = vadd.f32 %v9027_v39, %v26160_v14  ;;  %v26450_v4 = vadd.f32 %v9080_v2, %v26163_v0  ;;  %11379 = vmatprep.subr.bf16.mxu1 %v20848_v49  ;;  %11432 = vmatprep.subr.bf16.mxu0 %v20851_v52  ;;  %v20866_v14 = vld [vmem:[%s27726_s2 + $0x22c4] ss:$16 sps:$4 sm:$0xff]   ;;  %v20869_v0 = vld [vmem:[%s27726_s2 + $0x22cc] ss:$16 sps:$4 sm:$0xff]   ;;  %v20894_v49 = vld [vmem:[%s27726_s2 + $0x2260] ss:$16 sps:$4 sm:$0xff]  }
 0x536   :  { %v9029_v46 = vpop.f32.mrf.mxu1  ;;  %v9082_v60 = vpop.f32.mrf.mxu0  ;;  %v20897_v52 = vld [vmem:[%s27726_s2 + $0x2268] ss:$16 sps:$4 sm:$0xff]   ;;  %v20917_v39 = vld [vmem:[%s27726_s2 + $0x220c] ss:$16 sps:$4 sm:$0xff]   ;;  %v20912_v2 = vld [vmem:[%s27726_s2 + $0x2200] ss:$16 sps:$4 sm:$0xff]  }
 0x537   :  { %10806 = vmatmul.mubr.bf16.vlgmr.msra.gmra.mxu1 %v10385_v23  ;;  %10859 = vmatmul.mubr.bf16.vlgmr.msra.gmra.mxu0 %v10385_v23  ;;  %v26469_v34 = vadd.f32 %v9029_v46, %v26184_v13  ;;  %v26472_v48 = vadd.f32 %v9082_v60, %v26187_v56  ;;  %v20864_v13 = vld [vmem:[%s27726_s2 + $0x22c0] ss:$16 sps:$4 sm:$0xff]   ;;  %v20867_v56 = vld [vmem:[%s27726_s2 + $0x22c8] ss:$16 sps:$4 sm:$0xff]   ;;  %v20914_v23 = vld [vmem:[%s27726_s2 + $0x2204] ss:$16 sps:$4 sm:$0xff]  }
 0x538   :  { %10815 = vmatprep.mubr.bf16.mxu1 %v10388_v20  ;;  %10868 = vmatprep.mubr.bf16.mxu0 %v10388_v20  ;;  %v20921_v20 = vld [vmem:[%s27726_s2 + $0x23e8] ss:$16 sps:$4 sm:$0xff]   ;;  %v20926_v46 = vld [vmem:[%s27726_s2 + $0x23c4] ss:$16 sps:$4 sm:$0xff]   ;;  %v20929_v60 = vld [vmem:[%s27726_s2 + $0x23cc] ss:$16 sps:$4 sm:$0xff]  }
 0x539   :  { %11380 = vmatpush1.bf16.msra.mxu1 %v20846_v7  ;;  %11433 = vmatpush1.bf16.msra.mxu0 %v20849_v55  ;;  %v20915_v7 = vld [vmem:[%s27726_s2 + $0x2208] ss:$16 sps:$4 sm:$0xff]   ;;  %v20920_v55 = vld [vmem:[%s27726_s2 + $0x23e4] ss:$16 sps:$4 sm:$0xff]  }
 0x53a   :  { %11381 = vmatprep.subr.bf16.mxu1 %v20866_v14  ;;  %11434 = vmatprep.subr.bf16.mxu0 %v20869_v0  ;;  %v20924_v14 = vld [vmem:[%s27726_s2 + $0x23c0] ss:$16 sps:$4 sm:$0xff]   ;;  %v20927_v0 = vld [vmem:[%s27726_s2 + $0x23c8] ss:$16 sps:$4 sm:$0xff]   ;;  %v20944_v28 = vld [vmem:[%s27726_s2 + $0x2364] ss:$16 sps:$4 sm:$0xff]  }
 0x53d   :  { %11382 = vmatpush1.bf16.msra.mxu1 %v20864_v13  ;;  %11435 = vmatpush1.bf16.msra.mxu0 %v20867_v56  ;;  %v20938_v13 = vld [vmem:[%s27726_s2 + $0x2384] ss:$16 sps:$4 sm:$0xff]   ;;  %v20941_v56 = vld [vmem:[%s27726_s2 + $0x238c] ss:$16 sps:$4 sm:$0xff]  }
 0x53e   :  { %11383 = vmatprep.subr.bf16.mxu1 %v20872_v32  ;;  %11436 = vmatprep.subr.bf16.mxu0 %v20875_v47  ;;  %v20936_v32 = vld [vmem:[%s27726_s2 + $0x2380] ss:$16 sps:$4 sm:$0xff]   ;;  %v20939_v47 = vld [vmem:[%s27726_s2 + $0x2388] ss:$16 sps:$4 sm:$0xff]  }
 0x53f   :  { %10816 = vmatmul.mubr.bf16.gmra.mxu1 %v10387_v21  ;;  %10869 = vmatmul.mubr.bf16.gmra.mxu0 %v10387_v21  ;;  %v20942_v21 = vld [vmem:[%s27726_s2 + $0x2360] ss:$16 sps:$4 sm:$0xff]  }
 0x540   :  { %11411 = vmatprep.mubr.bf16.mxu1 %v10992_v59  ;;  %11464 = vmatprep.mubr.bf16.mxu0 %v10992_v59  ;;  %v20968_v59 = vld [vmem:[#allocation2 + $0xa4] ss:$472 sps:$4 sm:$0x33]  }
 0x541   :  { %11384 = vmatpush1.bf16.msra.mxu1 %v20870_v45  ;;  %11437 = vmatpush1.bf16.msra.mxu0 %v20873_v43  ;;  %v20945_v45 = vld [vmem:[%s27726_s2 + $0x2368] ss:$16 sps:$4 sm:$0xff]  }
 0x542   :  { %11385 = vmatprep.subr.bf16.mxu1 %v20890_v36  ;;  %11438 = vmatprep.subr.bf16.mxu0 %v20893_v38  ;;  %v20966_v43 = vld [vmem:[#allocation2 + $0xa0] ss:$472 sps:$4 sm:$0xcc]   ;;  %v20971_v38 = vld [vmem:[#allocation2 + $0x1e4] ss:$-144 sps:$4 sm:$0x33]  }
 0x543   :  { %v20969_v36 = vld [vmem:[#allocation2 + $0x1e0] ss:$-144 sps:$4 sm:$0xcc]  }
 0x545   :  { %11386 = vmatpush1.bf16.msra.mxu1 %v20888_v57  ;;  %11439 = vmatpush1.bf16.msra.mxu0 %v20891_v8  ;;  %v20950_v57 = vld [vmem:[%s27726_s2 + $0x2344] ss:$16 sps:$4 sm:$0xff]   ;;  %v20953_v8 = vld [vmem:[%s27726_s2 + $0x234c] ss:$16 sps:$4 sm:$0xff]  }
 0x546   :  { %11387 = vmatprep.subr.bf16.mxu1 %v20896_v6  ;;  %11440 = vmatprep.subr.bf16.mxu0 %v20899_v31  ;;  %v20972_v6 = vld [vmem:[#allocation2 + $0xc0] ss:$176 sps:$4 sm:$0xcc]   ;;  %v20974_v31 = vld [vmem:[#allocation2 + $0xc4] ss:$176 sps:$4 sm:$0x33]  }
 0x549   :  { %11388 = vmatpush1.bf16.msra.mxu1 %v20894_v49  ;;  %11441 = vmatpush1.bf16.msra.mxu0 %v20897_v52  ;;  %v20975_v49 = vld [vmem:[#allocation2 + $0x260] ss:$8 sps:$4 sm:$0xcc]   ;;  %v20977_v52 = vld [vmem:[#allocation2 + $0x264] ss:$8 sps:$4 sm:$0x33]  }
 0x54a   :  { %11389 = vmatprep.subr.bf16.mxu1 %v20902_v33  ;;  %11442 = vmatprep.subr.bf16.mxu0 %v20905_v12  ;;  %v20948_v33 = vld [vmem:[%s27726_s2 + $0x2340] ss:$16 sps:$4 sm:$0xff]   ;;  %v20951_v12 = vld [vmem:[%s27726_s2 + $0x2348] ss:$16 sps:$4 sm:$0xff]  }
 0x54d   :  { %11390 = vmatpush1.bf16.msra.mxu1 %v20900_v15  ;;  %11443 = vmatpush1.bf16.msra.mxu0 %v20903_v54  ;;  %v20956_v15 = vld [vmem:[%s27726_s2 + $0x2324] ss:$16 sps:$4 sm:$0xff]   ;;  %v20959_v54 = vld [vmem:[%s27726_s2 + $0x232c] ss:$16 sps:$4 sm:$0xff]  }
 0x54e   :  { %11391 = vmatprep.subr.bf16.mxu1 %v20908_v22  ;;  %11444 = vmatprep.subr.bf16.mxu0 %v20911_v11  ;;  %v18316_v22 = vrot.slane %v20966_v43, 10  ;;  %v10961_v11 = vrot.slane %v20968_v59, 6 }
 0x551   :  { %11392 = vmatpush1.bf16.msra.mxu1 %v20906_v1  ;;  %11445 = vmatpush1.bf16.msra.mxu0 %v20909_v29  ;;  %v18317_v1 = vrot.slane %v20969_v36, 10  ;;  %v10965_v29 = vrot.slane %v20971_v38, 6 }
 0x552   :  { %11393 = vmatprep.subr.bf16.mxu1 %v20914_v23  ;;  %11446 = vmatprep.subr.bf16.mxu0 %v20917_v39  ;;  %v18318_v23 = vrot.slane %v20972_v6, 10  ;;  %v10969_v39 = vrot.slane %v20974_v31, 6 }
 0x555   :  { %11394 = vmatpush1.bf16.msra.mxu1 %v20912_v2  ;;  %11447 = vmatpush1.bf16.msra.mxu0 %v20915_v7  ;;  %v18319_v2 = vrot.slane %v20975_v49, 10  ;;  %v10973_v7 = vrot.slane %v20977_v52, 6 }
 0x556   :  { %11395 = vmatprep.subr.bf16.mxu1 %v20920_v55  ;;  %11448 = vmatprep.subr.bf16.mxu0 %v20923_v5  ;;  %v20954_v55 = vld [vmem:[%s27726_s2 + $0x2320] ss:$16 sps:$4 sm:$0xff]   ;;  %v20957_v5 = vld [vmem:[%s27726_s2 + $0x2328] ss:$16 sps:$4 sm:$0xff]  }
 0x559   :  { %11396 = vmatpush2.bf16.msra.mxu1 %v20918_v61  ;;  %11449 = vmatpush2.bf16.msra.mxu0 %v20921_v20  ;;  %v20962_v61 = vld [vmem:[%s27726_s2 + $0x2304] ss:$16 sps:$4 sm:$0xff]   ;;  %v20965_v20 = vld [vmem:[%s27726_s2 + $0x230c] ss:$16 sps:$4 sm:$0xff]  }
 0x55a   :  { %11397 = vmatprep.subr.bf16.mxu1 %v20926_v46  ;;  %11450 = vmatprep.subr.bf16.mxu0 %v20929_v60  ;;  %v10962_v46 = vsel %vm22494_vm6, %v18316_v22, %v10961_v11  ;;  %v10966_v60 = vsel %vm22494_vm6, %v18317_v1, %v10965_v29 }
 0x55d   :  { %11398 = vmatpush2.bf16.msra.mxu1 %v20924_v14  ;;  %11451 = vmatpush2.bf16.msra.mxu0 %v20927_v0  ;;  %v10970_v14 = vsel %vm22494_vm6, %v18318_v23, %v10969_v39  ;;  %v10974_v0 = vsel %vm22494_vm6, %v18319_v2, %v10973_v7 }
 0x55e   :  { %11399 = vmatprep.subr.bf16.mxu1 %v20932_v18  ;;  %11452 = vmatprep.subr.bf16.mxu0 %v20935_v19  ;;  %v20960_v18 = vld [vmem:[%s27726_s2 + $0x2300] ss:$16 sps:$4 sm:$0xff]   ;;  %v20963_v19 = vld [vmem:[%s27726_s2 + $0x2308] ss:$16 sps:$4 sm:$0xff]  }
 0x561   :  { %11400 = vmatpush2.bf16.msra.mxu1 %v20930_v42  ;;  %11453 = vmatpush2.bf16.msra.mxu0 %v20933_v30  ;;  %v10977_v42 = vcombine.low %v26466_v3, %v26476_v41  ;;  %v10980_v30 = vcombine.high %v10962_v46, %v10966_v60  ;;  %v26680_v3 = vpop.f32.mrf.mxu1  ;;  %v26682_v41 = vpop.f32.mrf.mxu0 }
 0x562   :  { %11401 = vmatprep.subr.bf16.mxu1 %v20938_v13  ;;  %11454 = vmatprep.subr.bf16.mxu0 %v20941_v56  ;;  %v10982_v13 = vcombine.high %v10970_v14, %v10974_v0  ;;  %v10975_v56 = vcombine.low %v26502_v40, %v26490_v53 }
 0x563   :  { %v26686_v53 = vpop.f32.mrf.mxu0 }
 0x565   :  { %11402 = vmatpush2.bf16.msra.mxu1 %v20936_v32  ;;  %11455 = vmatpush2.bf16.msra.mxu0 %v20939_v47  ;;  %v10991_v32 = vpack.c.bf16 %v10977_v42, %v10975_v56  ;;  %v10994_v47 = vpack.c.bf16 %v10982_v13, %v10980_v30  ;;  %v26690_v43 = vpop.f32.mrf.mxu0  ;;  %v20984_v42 = vld [vmem:[#allocation4 + $0x170] ss:$8 sps:$4 sm:$0xff]   ;;  %v20986_v30 = vld [vmem:[#allocation4 + $0x174] ss:$8 sps:$4 sm:$0xff]  }
 0x566   :  { %11403 = vmatprep.subr.bf16.mxu1 %v20944_v28  ;;  %11456 = vmatprep.subr.bf16.mxu0 %v20947_v24  ;;  %v10979_v28 = vcombine.low %v10962_v46, %v10966_v60  ;;  %v10981_v24 = vcombine.low %v10970_v14, %v10974_v0  ;;  %v20978_v0 = vld [vmem:[#allocation4 + $0x70] ss:$8 sps:$4 sm:$0xff]  }
 0x567   :  { %v26694_v36 = vpop.f32.mrf.mxu0 }
 0x569   :  { %11404 = vmatpush2.bf16.msra.mxu1 %v20942_v21  ;;  %11457 = vmatpush2.bf16.msra.mxu0 %v20945_v45  ;;  %v10993_v21 = vpack.c.bf16 %v10981_v24, %v10979_v28  ;;  %v26684_v45 = vpop.f32.mrf.mxu1  ;;  %v20989_v28 = vld [vmem:[#allocation4 + $0x54] ss:$8 sps:$4 sm:$0xff]   ;;  %v20990_v24 = vld [vmem:[#allocation4 + $0x160] ss:$8 sps:$4 sm:$0xff]  }
 0x56a   :  { %11405 = vmatprep.subr.bf16.mxu1 %v20950_v57  ;;  %11458 = vmatprep.subr.bf16.mxu0 %v20953_v8  ;;  %v26698_v57 = vpop.f32.mrf.mxu0 }
 0x56b   :  { %v26688_v40 = vpop.f32.mrf.mxu1 }
 0x56c   :  { %v26702_v6 = vpop.f32.mrf.mxu0 }
 0x56d   :  { %11406 = vmatpush2.bf16.msra.mxu1 %v20948_v33  ;;  %11459 = vmatpush2.bf16.msra.mxu0 %v20951_v12  ;;  %v26692_v59 = vpop.f32.mrf.mxu1 }
 0x56e   :  { %11407 = vmatprep.subr.bf16.mxu1 %v20956_v15  ;;  %11460 = vmatprep.subr.bf16.mxu0 %v20959_v54 }
 0x56f   :  { %v26696_v38 = vpop.f32.mrf.mxu1 }
 0x571   :  { %11408 = vmatpush2.bf16.msra.mxu1 %v20954_v55  ;;  %11461 = vmatpush2.bf16.msra.mxu0 %v20957_v5  ;;  %v26700_v8 = vpop.f32.mrf.mxu1 }
 0x572   :  { %11409 = vmatprep.subr.bf16.mxu1 %v20962_v61  ;;  %11462 = vmatprep.subr.bf16.mxu0 %v20965_v20 }
 0x575   :  { %11410 = vmatpush2.bf16.msra.mxu1 %v20960_v18  ;;  %11463 = vmatpush2.bf16.msra.mxu0 %v20963_v19  ;;  %v26704_v31 = vpop.f32.mrf.mxu1  ;;  %v26706_v49 = vpop.f32.mrf.mxu0  ;;  %v20980_v18 = vld [vmem:[#allocation4 + $0x74] ss:$8 sps:$4 sm:$0xff]   ;;  %v20983_v19 = vld [vmem:[#allocation4 + $0x64] ss:$8 sps:$4 sm:$0xff]  }
 0x576   :  { %12439 = vmatprep.subr.bf16.mxu0 %v20980_v18  ;;  %12226 = vmatprep.subr.bf16.mxu1 %v20986_v30  ;;  %v20987_v18 = vld [vmem:[#allocation4 + $0x50] ss:$8 sps:$4 sm:$0xff]  }
 0x577   :  { %v26708_v52 = vpop.f32.mrf.mxu1  ;;  %v26710_v33 = vpop.f32.mrf.mxu0 }
 0x578   :  { %11412 = vmatmul.mubr.bf16.vlgmr.msra.gmra.mxu1 %v10991_v32  ;;  %11465 = vmatmul.mubr.bf16.vlgmr.msra.gmra.mxu0 %v10991_v32  ;;  %v20981_v32 = vld [vmem:[#allocation4 + $0x60] ss:$8 sps:$4 sm:$0xff]  }
 0x579   :  { %11421 = vmatprep.mubr.bf16.mxu1 %v10994_v47  ;;  %11474 = vmatprep.mubr.bf16.mxu0 %v10994_v47  ;;  %v26712_v12 = vpop.f32.mrf.mxu1  ;;  %v26714_v15 = vpop.f32.mrf.mxu0  ;;  %v20992_v47 = vld [vmem:[#allocation4 + $0x164] ss:$8 sps:$4 sm:$0xff]  }
 0x57a   :  { %12440 = vmatpush1.bf16.msra.mxu0 %v20978_v0  ;;  %12227 = vmatpush1.bf16.msra.mxu1 %v20984_v42  ;;  %v21004_v0 = vld [vmem:[#allocation4 + $0x144] ss:$8 sps:$4 sm:$0xff]   ;;  %v20993_v42 = vld [vmem:[#allocation4 + $0x40] ss:$8 sps:$4 sm:$0xff]  }
 0x57b   :  { %v26716_v54 = vpop.f32.mrf.mxu1  ;;  %v26718_v22 = vpop.f32.mrf.mxu0  ;;  %12441 = vmatprep.subr.bf16.mxu0 %v20983_v19  ;;  %12228 = vmatprep.subr.bf16.mxu1 %v20992_v47  ;;  %v21001_v47 = vld [vmem:[#allocation4 + $0x34] ss:$8 sps:$4 sm:$0xff]  }
 0x57d   :  { %v26720_v11 = vpop.f32.mrf.mxu1  ;;  %v26722_v1 = vpop.f32.mrf.mxu0 }
 0x57e   :  { %12442 = vmatpush1.bf16.msra.mxu0 %v20981_v32  ;;  %12229 = vmatpush1.bf16.msra.mxu1 %v20990_v24  ;;  %v20999_v24 = vld [vmem:[#allocation4 + $0x30] ss:$8 sps:$4 sm:$0xff]  }
 0x57f   :  { %v26724_v29 = vpop.f32.mrf.mxu1  ;;  %v26726_v23 = vpop.f32.mrf.mxu0  ;;  %12443 = vmatprep.subr.bf16.mxu0 %v20989_v28 }
 0x580   :  { %11422 = vmatmul.mubr.bf16.gmra.mxu1 %v10993_v21  ;;  %11475 = vmatmul.mubr.bf16.gmra.mxu0 %v10993_v21  ;;  %v20998_v21 = vld [vmem:[#allocation4 + $0x154] ss:$8 sps:$4 sm:$0xff]  }
 0x581   :  { %v26728_v39 = vpop.f32.mrf.mxu1  ;;  %v26730_v2 = vpop.f32.mrf.mxu0  ;;  %12230 = vmatprep.subr.bf16.mxu1 %v20998_v21  ;;  %v21007_v21 = vld [vmem:[#allocation4 + $0x24] ss:$8 sps:$4 sm:$0xff]  }
 0x582   :  { %12444 = vmatpush1.bf16.msra.mxu0 %v20987_v18 }
 0x583   :  { %v26732_v7 = vpop.f32.mrf.mxu1  ;;  %v26734_v55 = vpop.f32.mrf.mxu0 }
 0x5b6   :  { %v26736_v5 = vpop.f32.mrf.mxu1  ;;  %v26738_v61 = vpop.f32.mrf.mxu0 }
 0x5b8   :  { %v26740_v20 = vpop.f32.mrf.mxu1  ;;  %v26742_v46 = vpop.f32.mrf.mxu0 }
 0x5ba   :  { %v26744_v60 = vpop.f32.mrf.mxu1  ;;  %v26746_v14 = vpop.f32.mrf.mxu0 }
 0x5bb   :  { %27787 = vst [vmem:[#allocation12_spill] sm:$0xff] %v26746_v14 }
 0x5bc   :  { %v26748_v13 = vpop.f32.mrf.mxu1  ;;  %v26750_v56 = vpop.f32.mrf.mxu0 }
 0x5bd   :  { %27788 = vst [vmem:[#allocation13_spill] sm:$0xff] %v26748_v13  ;;  %27789 = vst [vmem:[#allocation9_spill] sm:$0xff] %v26750_v56  ;;  %v20995_v13 = vld [vmem:[#allocation4 + $0x44] ss:$8 sps:$4 sm:$0xff]   ;;  %v20996_v56 = vld [vmem:[#allocation4 + $0x150] ss:$8 sps:$4 sm:$0xff]  }
 0x5be   :  { %v26752_v26 = vpop.f32.mrf.mxu1  ;;  %v26754_v58 = vpop.f32.mrf.mxu0  ;;  %12445 = vmatprep.subr.bf16.mxu0 %v20995_v13  ;;  %12231 = vmatpush1.bf16.msra.mxu1 %v20996_v56  ;;  %v21005_v56 = vld [vmem:[#allocation4 + $0x20] ss:$8 sps:$4 sm:$0xff]  }
 0x5bf   :  { %27790 = vst [vmem:[#allocation16_spill] sm:$0xff] %v26752_v26  ;;  %27791 = vst [vmem:[#allocation17_spill] sm:$0xff] %v26754_v58  ;;  %v21002_v26 = vld [vmem:[#allocation4 + $0x140] ss:$8 sps:$4 sm:$0xff]   ;;  %12232 = vmatprep.subr.bf16.mxu1 %v21004_v0  ;;  %v21010_v58 = vld [vmem:[#allocation4 + $0x134] ss:$8 sps:$4 sm:$0xff]   ;;  %12446 = vmatpush1.bf16.msra.mxu0 %v20993_v42 }
 0x5c0   :  { %v26756_v30 = vpop.f32.mrf.mxu1  ;;  %v26758_v19 = vpop.f32.mrf.mxu0  ;;  %12447 = vmatprep.subr.bf16.mxu0 %v21001_v47  ;;  %v21013_v0 = vld [vmem:[#allocation4 + $0x14] ss:$8 sps:$4 sm:$0xff]   ;;  %v21011_v47 = vld [vmem:[#allocation4 + $0x10] ss:$8 sps:$4 sm:$0xff]  }
 0x5c1   :  { %27792 = vst [vmem:[#allocation10_spill] sm:$0xff] %v26756_v30  ;;  %27793 = vst [vmem:[#allocation11_spill] sm:$0xff] %v26758_v19  ;;  %v21008_v30 = vld [vmem:[#allocation4 + $0x130] ss:$8 sps:$4 sm:$0xff]   ;;  %v21016_v19 = vld [vmem:[#allocation4 + $0x124] ss:$8 sps:$4 sm:$0xff]  }
 0x5c2   :  { %v26760_v32 = vpop.f32.mrf.mxu1  ;;  %v26762_v28 = vpop.f32.mrf.mxu0  ;;  %12233 = vmatpush1.bf16.msra.mxu1 %v21002_v26  ;;  %v21022_v26 = vld [vmem:[#allocation4 + $0x114] ss:$8 sps:$4 sm:$0xff]  }
 0x5c3   :  { %27794 = vst [vmem:[#allocation22_spill] sm:$0xff] %v26760_v32  ;;  %27795 = vst [vmem:[#allocation14_spill] sm:$0xff] %v26762_v28  ;;  %12234 = vmatprep.subr.bf16.mxu1 %v21010_v58  ;;  %12448 = vmatpush1.bf16.msra.mxu0 %v20999_v24  ;;  %v21014_v32 = vld [vmem:[#allocation4 + $0x120] ss:$8 sps:$4 sm:$0xff]   ;;  %v21019_v58 = vld [vmem:[#allocation4 + $0x4] ss:$8 sps:$4 sm:$0xff]  }
 0x5c4   :  { %v26764_v18 = vpop.f32.mrf.mxu1  ;;  %v26766_v13 = vpop.f32.mrf.mxu0  ;;  %12449 = vmatprep.subr.bf16.mxu0 %v21007_v21  ;;  %v21017_v21 = vld [vmem:[#allocation4] ss:$8 sps:$4 sm:$0xff]  }
 0x5c5   :  { %27796 = vst [vmem:[#allocation15_spill] sm:$0xff] %v26764_v18  ;;  %27797 = vst [vmem:[#allocation25_spill] sm:$0xff] %v26766_v13  ;;  %v21020_v18 = vld [vmem:[#allocation4 + $0x110] ss:$8 sps:$4 sm:$0xff]   ;;  %v21025_v13 = vld [vmem:[#allocation4 + $0xf4] ss:$8 sps:$4 sm:$0xff]  }
 0x5c6   :  { %12235 = vmatpush1.bf16.msra.mxu1 %v21008_v30  ;;  %v21028_v30 = vld [vmem:[#allocation4 + $0x104] ss:$8 sps:$4 sm:$0xff]  }
 0x5c7   :  { %12236 = vmatprep.subr.bf16.mxu1 %v21016_v19  ;;  %12450 = vmatpush1.bf16.msra.mxu0 %v21005_v56 }
 0x5c8   :  { %12451 = vmatprep.subr.bf16.mxu0 %v21013_v0  ;;  %v21023_v0 = vld [vmem:[#allocation4 + $0xf0] ss:$8 sps:$4 sm:$0xff]  }
 0x5ca   :  { %12237 = vmatpush1.bf16.msra.mxu1 %v21014_v32  ;;  %v21034_v32 = vld [vmem:[#allocation4 + $0x1f4] ss:$8 sps:$4 sm:$0xff]  }
 0x5cb   :  { %12238 = vmatprep.subr.bf16.mxu1 %v21022_v26  ;;  %12452 = vmatpush1.bf16.msra.mxu0 %v21011_v47 }
 0x5cc   :  { %12453 = vmatprep.subr.bf16.mxu0 %v21019_v58  ;;  %v21029_v58 = vld [vmem:[#allocation4 + $0xe0] ss:$8 sps:$4 sm:$0xff]  }
 0x5ce   :  { %12239 = vmatpush1.bf16.msra.mxu1 %v21020_v18  ;;  %v21040_v18 = vld [vmem:[#allocation4 + $0x1e4] ss:$8 sps:$4 sm:$0xff]  }
 0x5cf   :  { %12240 = vmatprep.subr.bf16.mxu1 %v21028_v30  ;;  %12454 = vmatpush1.bf16.msra.mxu0 %v21017_v21 }
 0x5d0   :  { %12455 = vmatprep.subr.bf16.mxu0 %v21025_v13  ;;  %v21046_v13 = vld [vmem:[#allocation4 + $0x1d4] ss:$8 sps:$4 sm:$0xff]  }
 0x5d3   :  { %12456 = vmatpush2.bf16.msra.mxu0 %v21023_v0  ;;  %v21044_v0 = vld [vmem:[#allocation4 + $0x1d0] ss:$8 sps:$4 sm:$0xff]  }
 0x5f7   :  { %v26768_v14 = vpop.f32.mrf.mxu1  ;;  %v26770_v42 = vpop.f32.mrf.mxu0 }
 0x5f8   :  { %27798 = vst [vmem:[#allocation18_spill] sm:$0xff] %v26770_v42  ;;  %v21026_v42 = vld [vmem:[#allocation4 + $0x100] ss:$8 sps:$4 sm:$0xff]  }
 0x5f9   :  { %v26772_v28 = vpop.f32.mrf.mxu1  ;;  %v26774_v24 = vpop.f32.mrf.mxu0  ;;  %12241 = vmatpush1.bf16.msra.mxu1 %v21026_v42  ;;  %v21035_v42 = vld [vmem:[#allocation4 + $0xd0] ss:$8 sps:$4 sm:$0xff]  }
 0x5fa   :  { %27799 = vst [vmem:[#allocation19_spill] sm:$0xff] %v26772_v28  ;;  %27800 = vst [vmem:[#allocation20_spill] sm:$0xff] %v26774_v24  ;;  %v21031_v28 = vld [vmem:[#allocation4 + $0xe4] ss:$8 sps:$4 sm:$0xff]   ;;  %v21032_v24 = vld [vmem:[#allocation4 + $0x1f0] ss:$8 sps:$4 sm:$0xff]   ;;  %12242 = vmatprep.subr.bf16.mxu1 %v21034_v32  ;;  %v9105_v32 = vadd.f32 %v26682_v41, %v26198_v35  ;;  %v9110_v41 = vadd.f32 %v26694_v36, %v26252_v62  ;;  %v9706_v62 = vadd.f32 %v26708_v52, %v26469_v34 }
 0x5fb   :  { %v26776_v19 = vpop.f32.mrf.mxu1  ;;  %v26778_v56 = vpop.f32.mrf.mxu0  ;;  %12457 = vmatprep.subr.bf16.mxu0 %v21031_v28  ;;  %v9104_v28 = vadd.f32 %v26684_v45, %v26219_v16  ;;  %v21052_v16 = vld [vmem:[#allocation4 + $0x1c4] ss:$8 sps:$4 sm:$0xff]   ;;  %v9705_v45 = vadd.f32 %v26704_v31, %v26447_v17 }
 0x5fc   :  { %27801 = vst [vmem:[#allocation21_spill] sm:$0xff] %v26776_v19  ;;  %27802 = vst [vmem:[#allocation23_spill] sm:$0xff] %v26778_v56  ;;  %v21037_v19 = vld [vmem:[#allocation4 + $0xd4] ss:$8 sps:$4 sm:$0xff]   ;;  %v21038_v56 = vld [vmem:[#allocation4 + $0x1e0] ss:$8 sps:$4 sm:$0xff]   ;;  %12458 = vmatpush2.bf16.msra.mxu0 %v21029_v58  ;;  %v9109_v58 = vadd.f32 %v26690_v43, %v26234_v44  ;;  %v9112_v44 = vadd.f32 %v26700_v8, %v26273_v50  ;;  %v9711_v50 = vadd.f32 %v26714_v15, %v9105_v32 }
 0x5fd   :  { %v26780_v26 = vpop.f32.mrf.mxu1  ;;  %v26782_v47 = vpop.f32.mrf.mxu0  ;;  %12243 = vmatpush2.bf16.msra.mxu1 %v21032_v24  ;;  %12459 = vmatprep.subr.bf16.mxu0 %v21037_v19  ;;  %v21043_v24 = vld [vmem:[#allocation4 + $0xc4] ss:$8 sps:$4 sm:$0xff]   ;;  %v21050_v43 = vld [vmem:[#allocation4 + $0x1c0] ss:$8 sps:$4 sm:$0xff]   ;;  %v9710_v17 = vadd.f32 %v26716_v54, %v9104_v28  ;;  %v9716_v8 = vadd.f32 %v26726_v23, %v9110_v41  ;;  %v21047_v15 = vld [vmem:[#allocation4 + $0xb0] ss:$8 sps:$4 sm:$0xff]   ;;  %v10274_v54 = vadd.f32 %v26740_v20, %v9706_v62 }
 0x5fe   :  { %27803 = vst [vmem:[#allocation24_spill] sm:$0xff] %v26780_v26  ;;  %12244 = vmatprep.subr.bf16.mxu1 %v21040_v18  ;;  %v9103_v26 = vadd.f32 %v26680_v3, %v26195_v37  ;;  %v9107_v18 = vadd.f32 %v26688_v40, %v26231_v25  ;;  %v9108_v37 = vadd.f32 %v26692_v59, %v26249_v27  ;;  %v27805_v23 = vld [vmem:[#allocation12_spill] sm:$0xff]  ;;  %v27812_v28 = vld [vmem:[#allocation22_spill] sm:$0xff] }
 0x5ff   :  { %v26784_v30 = vpop.f32.mrf.mxu1  ;;  %v26786_v21 = vpop.f32.mrf.mxu0  ;;  %v9113_v25 = vadd.f32 %v26698_v57, %v26258_v9  ;;  %v9114_v27 = vadd.f32 %v26702_v6, %v26276_v10  ;;  %v9708_v9 = vadd.f32 %v26710_v33, %v26472_v48  ;;  %v21049_v10 = vld [vmem:[#allocation4 + $0xb4] ss:$8 sps:$4 sm:$0xff]   ;;  %v9715_v34 = vadd.f32 %v26722_v1, %v9109_v58  ;;  %v21055_v1 = vld [vmem:[#allocation4 + $0xa4] ss:$8 sps:$4 sm:$0xff]  }
 0x600   :  { %27804 = vst [vmem:[#allocation26_spill] sm:$0xff] %v26786_v21  ;;  %v9106_v21 = vadd.f32 %v26686_v53, %v26222_v51  ;;  %v9111_v51 = vadd.f32 %v26696_v38, %v26255_v63  ;;  %v9707_v53 = vadd.f32 %v26706_v49, %v26450_v4  ;;  %12460 = vmatpush2.bf16.msra.mxu0 %v21035_v42  ;;  %v21041_v63 = vld [vmem:[#allocation4 + $0xc0] ss:$8 sps:$4 sm:$0xff]   ;;  %v21058_v48 = vld [vmem:[#allocation4 + $0x1b4] ss:$8 sps:$4 sm:$0xff]  }
 0x601   :  { %12245 = vmatpush2.bf16.msra.mxu1 %v21038_v56  ;;  %v26802_v35 = vpop.f32.mrf.mxu1  ;;  %v26804_v3 = vpop.f32.mrf.mxu0  ;;  %v9709_v40 = vadd.f32 %v26712_v12, %v9103_v26  ;;  %12461 = vmatprep.subr.bf16.mxu0 %v21043_v24  ;;  %v9713_v59 = vadd.f32 %v26720_v11, %v9107_v18  ;;  %v9714_v57 = vadd.f32 %v26724_v29, %v9108_v37  ;;  %v21056_v29 = vld [vmem:[#allocation4 + $0x1b0] ss:$8 sps:$4 sm:$0xff]   ;;  %v27808_v19 = vld [vmem:[#allocation16_spill] sm:$0xff]  ;;  %v27811_v42 = vld [vmem:[#allocation11_spill] sm:$0xff] }
 0x602   :  { %12246 = vmatprep.subr.bf16.mxu1 %v21046_v13  ;;  %v9712_v4 = vadd.f32 %v26718_v22, %v9106_v21  ;;  %v9717_v6 = vadd.f32 %v26728_v39, %v9111_v51  ;;  %v9719_v31 = vadd.f32 %v26730_v2, %v9113_v25  ;;  %v9718_v49 = vadd.f32 %v26732_v7, %v9112_v44  ;;  %v27806_v2 = vld [vmem:[#allocation13_spill] sm:$0xff]  ;;  %v21064_v20 = vld [vmem:[#allocation4 + $0x1a4] ss:$8 sps:$4 sm:$0xff]   ;;  %v27810_v13 = vld [vmem:[#allocation10_spill] sm:$0xff] }
 0x603   :  { %v26830_v36 = vpop.f32.mrf.mxu1  ;;  %v26832_v38 = vpop.f32.mrf.mxu0  ;;  %v9720_v52 = vadd.f32 %v26734_v55, %v9114_v27  ;;  %v10273_v33 = vadd.f32 %v26736_v5, %v9705_v45  ;;  %v10275_v12 = vadd.f32 %v26738_v61, %v9707_v53  ;;  %v10276_v22 = vadd.f32 %v26742_v46, %v9708_v9  ;;  %v27807_v55 = vld [vmem:[#allocation9_spill] sm:$0xff]  ;;  %v27814_v58 = vld [vmem:[#allocation15_spill] sm:$0xff]  ;;  %v27815_v41 = vld [vmem:[#allocation18_spill] sm:$0xff] }
 0x604   :  { %12462 = vmatpush2.bf16.msra.mxu0 %v21041_v63  ;;  %v10277_v11 = vadd.f32 %v26744_v60, %v9709_v40  ;;  %v10279_v39 = vadd.f32 %v27805_v23, %v9711_v50  ;;  %v10278_v7 = vadd.f32 %v27806_v2, %v9710_v17  ;;  %v10280_v5 = vadd.f32 %v27807_v55, %v9712_v4  ;;  %v27809_v21 = vld [vmem:[#allocation17_spill] sm:$0xff]  ;;  %v21053_v27 = vld [vmem:[#allocation4 + $0xa0] ss:$8 sps:$4 sm:$0xff]  }
 0x605   :  { %12247 = vmatpush2.bf16.msra.mxu1 %v21044_v0  ;;  %12463 = vmatprep.subr.bf16.mxu0 %v21049_v10  ;;  %v10281_v61 = vadd.f32 %v27808_v19, %v9713_v59  ;;  %v10823_v56 = vpop.f32.mrf.mxu1  ;;  %v10876_v26 = vpop.f32.mrf.mxu0  ;;  %v10283_v46 = vadd.f32 %v27809_v21, %v9715_v34  ;;  %v10282_v60 = vadd.f32 %v27810_v13, %v9714_v57  ;;  %v27813_v0 = vld [vmem:[#allocation14_spill] sm:$0xff]  ;;  %v27816_v45 = vld [vmem:[#allocation25_spill] sm:$0xff]  ;;  %v27817_v62 = vld [vmem:[#allocation19_spill] sm:$0xff] }
 0x606   :  { %12248 = vmatprep.subr.bf16.mxu1 %v21052_v16  ;;  %v10284_v32 = vadd.f32 %v27811_v42, %v9716_v8  ;;  %v10285_v24 = vadd.f32 %v27812_v28, %v9717_v6  ;;  %v10287_v18 = vadd.f32 %v27813_v0, %v9719_v31  ;;  %v10286_v37 = vadd.f32 %v27814_v58, %v9718_v49  ;;  %v27818_v9 = vld [vmem:[#allocation20_spill] sm:$0xff]  ;;  %v21061_v50 = vld [vmem:[#allocation4 + $0x94] ss:$8 sps:$4 sm:$0xff]   ;;  %v27820_v17 = vld [vmem:[#allocation23_spill] sm:$0xff] }
 0x607   :  { %v10879_v16 = vadd.f32 %v26768_v14, %v10273_v33  ;;  %v10881_v51 = vadd.f32 %v27815_v41, %v10275_v12  ;;  %v10288_v53 = vadd.f32 %v27816_v45, %v9720_v52  ;;  %v10880_v63 = vadd.f32 %v27817_v62, %v10274_v54  ;;  %v27819_v10 = vld [vmem:[#allocation21_spill] sm:$0xff]  ;;  %v21062_v57 = vld [vmem:[#allocation4 + $0x1a0] ss:$8 sps:$4 sm:$0xff]   ;;  %v27822_v52 = vld [vmem:[#allocation26_spill] sm:$0xff] }
 0x608   :  { %12464 = vmatpush2.bf16.msra.mxu0 %v21047_v15  ;;  %v10882_v40 = vadd.f32 %v27818_v9, %v10276_v22  ;;  %v10885_v4 = vadd.f32 %v27820_v17, %v10279_v39  ;;  %v27821_v8 = vld [vmem:[#allocation24_spill] sm:$0xff]  ;;  %v10886_v31 = vadd.f32 %v26782_v47, %v10280_v5  ;;  %v10887_v49 = vadd.f32 %v26784_v30, %v10281_v61  ;;  %v21070_v12 = vld [vmem:[#allocation4 + $0x194] ss:$8 sps:$4 sm:$0xff]   ;;  %v21059_v23 = vld [vmem:[#allocation4 + $0x90] ss:$8 sps:$4 sm:$0xff]  }
 0x609   :  { %12249 = vmatpush2.bf16.msra.mxu1 %v21050_v43  ;;  %12465 = vmatprep.subr.bf16.mxu0 %v21055_v1  ;;  %v10883_v43 = vadd.f32 %v27819_v10, %v10277_v11  ;;  %v10884_v6 = vadd.f32 %v27821_v8, %v10278_v7  ;;  %v10889_v33 = vadd.f32 %v27822_v52, %v10283_v46  ;;  %v21078_v21 = vld [vmem:[#allocation4 + $0x184] ss:$8 sps:$4 sm:$0xff]  }
 0x60a   :  { %12250 = vmatprep.subr.bf16.mxu1 %v21058_v48  ;;  %v10888_v15 = vadd.f32 %v26802_v35, %v10282_v60  ;;  %v10890_v54 = vadd.f32 %v26804_v3, %v10284_v32  ;;  %v10891_v39 = vadd.f32 %v26830_v36, %v10285_v24  ;;  %v10893_v47 = vadd.f32 %v26832_v38, %v10287_v18  ;;  %v21067_v35 = vld [vmem:[#allocation4 + $0x84] ss:$8 sps:$4 sm:$0xff]   ;;  %v21068_v38 = vld [vmem:[#allocation4 + $0x190] ss:$8 sps:$4 sm:$0xff]   ;;  %v21065_v24 = vld [vmem:[#allocation4 + $0x80] ss:$8 sps:$4 sm:$0xff]  }
 0x60b   :  { %v26882_v7 = vadd.f32 %v10823_v56, %v10286_v37  ;;  %v26884_v3 = vadd.f32 %v10876_v26, %v10288_v53  ;;  %v21076_v53 = vld [vmem:[#allocation4 + $0x180] ss:$8 sps:$4 sm:$0xff]  }
 0x60c   :  { %12466 = vmatpush2.bf16.msra.mxu0 %v21053_v27 }
 0x60d   :  { %12251 = vmatpush2.bf16.msra.mxu1 %v21056_v29  ;;  %12467 = vmatprep.subr.bf16.mxu0 %v21061_v50  ;;  %v21098_v50 = vld [vmem:[#allocation4 + $0x274] ss:$8 sps:$4 sm:$0xff]  }
 0x60e   :  { %12252 = vmatprep.subr.bf16.mxu1 %v21064_v20 }
 0x610   :  { %12468 = vmatpush2.bf16.msra.mxu0 %v21059_v23 }
 0x611   :  { %12253 = vmatpush2.bf16.msra.mxu1 %v21062_v57  ;;  %12469 = vmatprep.subr.bf16.mxu0 %v21067_v35 }
 0x612   :  { %12254 = vmatprep.subr.bf16.mxu1 %v21070_v12 }
 0x614   :  { %12470 = vmatpush2.bf16.msra.mxu0 %v21065_v24 }
 0x615   :  { %12255 = vmatpush2.bf16.msra.mxu1 %v21068_v38 }
 0x616   :  { %12256 = vmatprep.subr.bf16.mxu1 %v21078_v21 }
 0x619   :  { %12257 = vmatpush2.bf16.msra.mxu1 %v21076_v53 }
 0x61a   :  { %12784 = vmatprep.subr.bf16.mxu1 %v21098_v50 }
 0x638   :  { %v11413_v25 = vpop.f32.mrf.mxu1  ;;  %v11466_v44 = vpop.f32.mrf.mxu0 }
 0x639   :  { %v26862_v14 = vadd.f32 %v11413_v25, %v10879_v16  ;;  %v26864_v59 = vadd.f32 %v11466_v44, %v10881_v51  ;;  %v21075_v16 = vld [vmem:[#allocation4 + $0x374] ss:$8 sps:$4 sm:$0xff]  }
 0x63a   :  { %v11415_v34 = vpop.f32.mrf.mxu1  ;;  %v11468_v48 = vpop.f32.mrf.mxu0  ;;  %13098 = vmatprep.subr.bf16.mxu0 %v21075_v16 }
 0x63b   :  { %v26872_v22 = vadd.f32 %v11415_v34, %v10880_v63  ;;  %v26874_v11 = vadd.f32 %v11468_v48, %v10882_v40  ;;  %v11537_v55 = vmul.f32 %v26862_v14, %v26862_v14  ;;  %v11539_v5 = vmul.f32 %v26864_v59, %v26864_v59 }
 0x63c   :  { %v11417_v1 = vpop.f32.mrf.mxu1  ;;  %v11470_v29 = vpop.f32.mrf.mxu0 }
 0x63d   :  { %v26878_v30 = vadd.f32 %v11417_v1, %v10883_v43  ;;  %v26880_v2 = vadd.f32 %v11470_v29, %v10885_v4  ;;  %v11538_v46 = vmul.f32 %v26872_v22, %v26872_v22  ;;  %v11540_v13 = vmul.f32 %v26874_v11, %v26874_v11 }
 0x63e   :  { %v11419_v19 = vpop.f32.mrf.mxu1  ;;  %v11472_v36 = vpop.f32.mrf.mxu0 }
 0x63f   :  { %v11501_v61 = vadd.f32 %v26878_v30, %v26862_v14  ;;  %v11541_v20 = vmul.f32 %v26878_v30, %v26878_v30  ;;  %v11519_v56 = vadd.f32 %v26880_v2, %v26864_v59  ;;  %v11543_v26 = vmul.f32 %v26880_v2, %v26880_v2 }
 0x640   :  { %v26902_v60 = vadd.f32 %v11419_v19, %v10884_v6  ;;  %v26904_v42 = vadd.f32 %v11472_v36, %v10886_v31  ;;  %v11423_v32 = vpop.f32.mrf.mxu1  ;;  %v11476_v28 = vpop.f32.mrf.mxu0 }
 0x641   :  { %v11553_v0 = vadd.f32 %v11541_v20, %v11537_v55  ;;  %v11571_v18 = vadd.f32 %v11543_v26, %v11539_v5  ;;  %v26906_v58 = vadd.f32 %v11423_v32, %v10887_v49  ;;  %v26908_v37 = vadd.f32 %v11476_v28, %v10889_v33 }
 0x642   :  { %v11510_v41 = vadd.f32 %v26902_v60, %v26872_v22  ;;  %v11542_v51 = vmul.f32 %v26902_v60, %v26902_v60  ;;  %v11528_v25 = vadd.f32 %v26904_v42, %v26874_v11  ;;  %v11544_v44 = vmul.f32 %v26904_v42, %v26904_v42  ;;  %v11425_v27 = vpop.f32.mrf.mxu1  ;;  %v11478_v45 = vpop.f32.mrf.mxu0 }
 0x643   :  { %v11502_v62 = vadd.f32 %v11501_v61, %v26906_v58  ;;  %v11545_v63 = vmul.f32 %v26906_v58, %v26906_v58  ;;  %v11520_v9 = vadd.f32 %v11519_v56, %v26908_v37  ;;  %v11547_v40 = vmul.f32 %v26908_v37, %v26908_v37 }
 0x644   :  { %v11562_v10 = vadd.f32 %v11542_v51, %v11538_v46  ;;  %v11580_v43 = vadd.f32 %v11544_v44, %v11540_v13  ;;  %v26924_v17 = vadd.f32 %v11425_v27, %v10888_v15  ;;  %v26926_v4 = vadd.f32 %v11478_v45, %v10890_v54  ;;  %v11427_v34 = vpop.f32.mrf.mxu1  ;;  %v11480_v48 = vpop.f32.mrf.mxu0 }
 0x645   :  { %v11554_v57 = vadd.f32 %v11553_v0, %v11545_v63  ;;  %v11572_v8 = vadd.f32 %v11571_v18, %v11547_v40  ;;  %v26928_v6 = vadd.f32 %v11427_v34, %v10891_v39  ;;  %v26930_v31 = vadd.f32 %v11480_v48, %v10893_v47 }
 0x646   :  { %v11511_v49 = vadd.f32 %v11510_v41, %v26924_v17  ;;  %v11546_v52 = vmul.f32 %v26924_v17, %v26924_v17  ;;  %v11529_v33 = vadd.f32 %v11528_v25, %v26926_v4  ;;  %v11548_v12 = vmul.f32 %v26926_v4, %v26926_v4  ;;  %v11429_v15 = vpop.f32.mrf.mxu1  ;;  %v11482_v54 = vpop.f32.mrf.mxu0 }
 0x647   :  { %v11503_v1 = vadd.f32 %v11502_v62, %v26928_v6  ;;  %v11549_v29 = vmul.f32 %v26928_v6, %v26928_v6  ;;  %v11521_v23 = vadd.f32 %v11520_v9, %v26930_v31  ;;  %v11551_v39 = vmul.f32 %v26930_v31, %v26930_v31 }
 0x648   :  { %v11563_v47 = vadd.f32 %v11562_v10, %v11546_v52  ;;  %v11581_v35 = vadd.f32 %v11580_v43, %v11548_v12  ;;  %v26945_v55 = vadd.f32 %v11429_v15, %v26882_v7  ;;  %v26948_v5 = vadd.f32 %v11482_v54, %v26884_v3 }
 0x649   :  { %v11504_v19 = vrot.slane %v11503_v1, 4  ;;  %v11555_v36 = vadd.f32 %v11554_v57, %v11549_v29  ;;  %v11522_v38 = vrot.slane %v11521_v23, 4  ;;  %v11573_v61 = vadd.f32 %v11572_v8, %v11551_v39 }
 0x64a   :  { %v11512_v20 = vadd.f32 %v11511_v49, %v26945_v55  ;;  %v11550_v56 = vmul.f32 %v26945_v55, %v26945_v55  ;;  %v11530_v26 = vadd.f32 %v11529_v33, %v26948_v5  ;;  %v11552_v21 = vmul.f32 %v26948_v5, %v26948_v5 }
 0x64b   :  { %v11505_v46 = vadd.f32 %v11504_v19, %v11503_v1  ;;  %v11556_v7 = vrot.slane %v11555_v36, 4  ;;  %v11523_v13 = vadd.f32 %v11522_v38, %v11521_v23  ;;  %v11574_v32 = vrot.slane %v11573_v61, 4 }
 0x64c   :  { %v11513_v3 = vrot.slane %v11512_v20, 4  ;;  %v11564_v28 = vadd.f32 %v11563_v47, %v11550_v56  ;;  %v11531_v24 = vrot.slane %v11530_v26, 4  ;;  %v11582_v0 = vadd.f32 %v11581_v35, %v11552_v21 }
 0x64d   :  { %v11506_v18 = vrot.slane %v11505_v46, 2  ;;  %v11557_v16 = vadd.f32 %v11556_v7, %v11555_v36  ;;  %v11524_v41 = vrot.slane %v11523_v13, 2  ;;  %v11575_v51 = vadd.f32 %v11574_v32, %v11573_v61 }
 0x64e   :  { %v11514_v25 = vadd.f32 %v11513_v3, %v11512_v20  ;;  %v11565_v44 = vrot.slane %v11564_v28, 4  ;;  %v11532_v27 = vadd.f32 %v11531_v24, %v11530_v26  ;;  %v11583_v45 = vrot.slane %v11582_v0, 4 }
 0x64f   :  { %v11507_v53 = vadd.f32 %v11506_v18, %v11505_v46  ;;  %v11558_v62 = vrot.slane %v11557_v16, 2  ;;  %v11525_v63 = vadd.f32 %v11524_v41, %v11523_v13  ;;  %v11576_v9 = vrot.slane %v11575_v51, 2 }
 0x650   :  { %v11515_v40 = vrot.slane %v11514_v25, 2  ;;  %v11566_v50 = vadd.f32 %v11565_v44, %v11564_v28  ;;  %v11533_v10 = vrot.slane %v11532_v27, 2  ;;  %v11584_v43 = vadd.f32 %v11583_v45, %v11582_v0  ;;  %v11600_v44 = vld [vmem:[%s27729_s5] sm:$0x1] }
 0x651   :  { %v11508_v34 = vrot.slane %v11507_v53, 1  ;;  %v11559_v48 = vadd.f32 %v11558_v62, %v11557_v16  ;;  %v11577_v57 = vadd.f32 %v11576_v9, %v11575_v51  ;;  %v11526_v12 = vrot.slane %v11525_v63, 1  ;;  %v26967_v62 = vld [vmem:[#allocation3 + $0x24] ss:$-24 sps:$4 sm:$0x11]  }
 0x652   :  { %v11516_v8 = vadd.f32 %v11515_v40, %v11514_v25  ;;  %v11567_v49 = vrot.slane %v11566_v50, 2  ;;  %v11534_v52 = vadd.f32 %v11533_v10, %v11532_v27  ;;  %v11585_v33 = vrot.slane %v11584_v43, 2  ;;  %v26969_v9 = vld [vmem:[#allocation3 + $0xe8] sm:$0x1e] }
 0x653   :  { %v11560_v15 = vrot.slane %v11559_v48, 1  ;;  %v11509_v23 = vadd.f32 %v11508_v34, %v11507_v53  ;;  %v11578_v39 = vrot.slane %v11577_v57, 1  ;;  %v11527_v36 = vadd.f32 %v11526_v12, %v11525_v63  ;;  %v26965_v53 = vld [vmem:[#allocation3 + $0x20] ss:$-24 sps:$4 sm:$0xee]  }
 0x654   :  { %v11517_v54 = vrot.slane %v11516_v8, 1  ;;  %v11568_v1 = vadd.f32 %v11567_v49, %v11566_v50  ;;  %v11586_v29 = vadd.f32 %v11585_v33, %v11584_v43  ;;  %v11535_v19 = vrot.slane %v11534_v52, 1  ;;  %v26971_v40 = vld [vmem:[#allocation3 + $0x28] sm:$0x1e]  ;;  %v11604_v50 = vld [vmem:[%s27730_s6] sm:$0x1] }
 0x655   :  { %v11561_v38 = vadd.f32 %v11560_v15, %v11559_v48  ;;  %v11579_v26 = vadd.f32 %v11578_v39, %v11577_v57  ;;  %v27739_v51 = vlaneseq  ;;  %v18472_v34 = vrot.slane %v26965_v53, 9 }
 0x656   :  { %v11518_v47 = vadd.f32 %v11517_v54, %v11516_v8  ;;  %v11569_v35 = vrot.slane %v11568_v1, 1  ;;  %v11587_v56 = vrot.slane %v11586_v29, 1  ;;  %v11536_v46 = vadd.f32 %v11535_v19, %v11534_v52 }
 0x657   :  { %v26957_v25 = vshrl.u32 %v27739_v51, 7  ;;  %v11984_v48 = vrot.slane %v26967_v62, 5  ;;  %v11974_v57 = vcombine.low %v26969_v9, %v26971_v40  ;;  %v11975_v8 = vcombine.high %v26969_v9, %v26971_v40 }
 0x658   :  { %v11570_v61 = vadd.f32 %v11569_v35, %v11568_v1  ;;  %v11589_v20 = vadd.f32 %v11518_v47, %v11509_v23  ;;  %v11588_v13 = vadd.f32 %v11587_v56, %v11586_v29 }
 0x659   :  { %27823 = vst [vmem:[#allocation12_spill] sm:$0xff] %v26957_v25  ;;  %v26963_v27 = vsub.s32 0, %v26957_v25 }
 0x65a   :  { %v11592_v21 = vadd.f32 %v11570_v61, %v11561_v38  ;;  %v11590_v7 = vadd.f32 %v11589_v20, %v11527_v36 }
 0x65b   :  { %27824 = vst [vmem:[#allocation13_spill] sm:$0xff] %v26963_v27 }
 0x65c   :  { %v11591_v32 = vadd.f32 %v11590_v7, %v11536_v46  ;;  %v11593_v3 = vadd.f32 %v11592_v21, %v11579_v26 }
 0x65e   :  { %v11594_v28 = vadd.f32 %v11593_v3, %v11588_v13  ;;  %v11596_v24 = vmul.f32 0.0078125, %v11591_v32 }
 0x660   :  { %v11597_v0 = vmul.f32 0.0078125, %v11594_v28  ;;  %v11598_v18 = vmul.f32 %v11596_v24, %v11596_v24 }
 0x662   :  { %v11599_v16 = vsub.f32 %v11597_v0, %v11598_v18 }
 0x664   :  { %v11601_v41 = vadd.f32 1e-05, %v11599_v16 }
 0x666   :  { %21750 = vrsqrt.f32 %v11601_v41 }
 0x673   :  { %v21751_v45 = vpop.eup %21750 }
 0x674   :  { %v11603_v63 = vmul.f32 %v21751_v45, %v11600_v44 }
 0x676   :  { %v11605_v10 = vmul.f32 %v11603_v63, %v11596_v24  ;;  %v26977_v43 = vrot.slane %v11603_v63, %v26963_v27 }
 0x678   :  { %v11606_v49 = vsub.f32 %v11604_v50, %v11605_v10  ;;  %v11625_v52 = vmul.f32 %v26977_v43, %v26930_v31  ;;  %v11626_v33 = vmul.f32 %v26977_v43, %v26948_v5  ;;  %v11613_v12 = vmul.f32 %v26977_v43, %v26864_v59 }
 0x679   :  { %v11614_v15 = vmul.f32 %v26977_v43, %v26874_v11  ;;  %v11617_v54 = vmul.f32 %v26977_v43, %v26880_v2  ;;  %v11618_v1 = vmul.f32 %v26977_v43, %v26904_v42  ;;  %v11622_v29 = vmul.f32 %v26977_v43, %v26926_v4 }
 0x67a   :  { %v27000_v31 = vrot.slane %v11606_v49, %v26963_v27  ;;  %v11621_v5 = vmul.f32 %v26977_v43, %v26908_v37  ;;  %v27006_v59 = vmul.f32 %v26977_v43, %v26862_v14  ;;  %v27010_v11 = vmul.f32 %v26977_v43, %v26872_v22 }
 0x67b   :  { %v27014_v2 = vmul.f32 %v26977_v43, %v26878_v30  ;;  %v27018_v42 = vmul.f32 %v26977_v43, %v26902_v60  ;;  %v27022_v4 = vmul.f32 %v26977_v43, %v26924_v17  ;;  %v27026_v14 = vmul.f32 %v26977_v43, %v26945_v55 }
 0x67c   :  { %v11645_v37 = vadd.f32 %v27000_v31, %v11625_v52  ;;  %v11646_v22 = vadd.f32 %v27000_v31, %v11626_v33  ;;  %v11633_v23 = vadd.f32 %v27000_v31, %v11613_v12  ;;  %v11634_v30 = vadd.f32 %v27000_v31, %v11614_v15 }
 0x67d   :  { %v11637_v39 = vadd.f32 %v27000_v31, %v11617_v54  ;;  %v11638_v60 = vadd.f32 %v27000_v31, %v11618_v1  ;;  %v11642_v47 = vadd.f32 %v27000_v31, %v11622_v29  ;;  %v11641_v17 = vadd.f32 %v27000_v31, %v11621_v5 }
 0x67e   :  { %vm11661_vm7 = vcmp.gt.f32.partialorder %v11645_v37, 0.0  ;;  %vm11662_vm8 = vcmp.gt.f32.partialorder %v11646_v22, 0.0  ;;  %v11677_v55 = vmul.f32 0.2, %v11645_v37  ;;  %v11678_v35 = vmul.f32 0.2, %v11646_v22 }
 0x67f   :  { %vm11649_vm9 = vcmp.gt.f32.partialorder %v11633_v23, 0.0  ;;  %vm11650_vm10 = vcmp.gt.f32.partialorder %v11634_v30, 0.0  ;;  %vm11653_vm11 = vcmp.gt.f32.partialorder %v11637_v39, 0.0  ;;  %vm11654_vm12 = vcmp.gt.f32.partialorder %v11638_v60, 0.0 }
 0x680   :  { %v11693_v19 = vsel %vm11661_vm7, %v11645_v37, %v11677_v55  ;;  %v11694_v36 = vsel %vm11662_vm8, %v11646_v22, %v11678_v35  ;;  %v11665_v38 = vmul.f32 0.2, %v11633_v23  ;;  %v11666_v61 = vmul.f32 0.2, %v11634_v30 }
 0x681   :  { %v11725_v20 = vcombine.low %v11693_v19, %v11694_v36  ;;  %v11726_v56 = vcombine.high %v11693_v19, %v11694_v36  ;;  %v18462_v26 = vcombine.low %v11694_v36, %v11694_v36  ;;  %v18463_v21 = vcombine.high %v11694_v36, %v11694_v36  ;;  %v27060_v35 = vld [vmem:[#allocation3 + $0x24] ss:$-24 sps:$4 sm:$0x33]  }
 0x682   :  { %v11669_v46 = vmul.f32 0.2, %v11637_v39  ;;  %v11670_v7 = vmul.f32 0.2, %v11638_v60  ;;  %v11681_v13 = vsel %vm11649_vm9, %v11633_v23, %v11665_v38  ;;  %v11682_v32 = vsel %vm11650_vm10, %v11634_v30, %v11666_v61 }
 0x683   :  { %v11804_v3 = vrot.slane %v11725_v20, 7  ;;  %v11805_v28 = vrot.slane %v18462_v26, 7  ;;  %v11806_v24 = vrot.slane %v11726_v56, 7  ;;  %v11807_v0 = vrot.slane %v18463_v21, 7 }
 0x684   :  { %v27037_v18 = vsel %vm11653_vm11, %v11637_v39, %v11669_v46  ;;  %v27040_v16 = vsel %vm11654_vm12, %v11638_v60, %v11670_v7  ;;  %v11713_v41 = vcombine.low %v11681_v13, %v11682_v32  ;;  %v11714_v44 = vcombine.high %v11681_v13, %v11682_v32  ;;  %v27054_v60 = vld [vmem:[#allocation3 + $0x20] ss:$-24 sps:$4 sm:$0xcc]  }
 0x685   :  { %11837 = vst [vmem:[#allocation3 + $0x30] sm:$0x1e] %v11804_v3  ;;  %11838 = vst [vmem:[#allocation3 + $0x50] sm:$0x1e] %v11805_v28  ;;  %v11717_v45 = vcombine.low %v27037_v18, %v27040_v16  ;;  %v18456_v63 = vcombine.low %v11682_v32, %v11682_v32  ;;  %v18457_v50 = vcombine.high %v11682_v32, %v11682_v32  ;;  %vm11658_vm14 = vcmp.gt.f32.partialorder %v11642_v47, 0.0 }
 0x686   :  { %11839 = vst [vmem:[#allocation3 + $0x148] sm:$0x1e] %v11806_v24  ;;  %11840 = vst [vmem:[#allocation3 + $0xb8] sm:$0x1e] %v11807_v0  ;;  %v18458_v10 = vcombine.low %v27040_v16, %v27040_v16  ;;  %v11792_v49 = vrot.slane %v11713_v41, 7  ;;  %v11794_v52 = vrot.slane %v11714_v44, 7  ;;  %v11631_v37 = vadd.f32 %v27000_v31, %v27006_v59 }
 0x687   :  { %v11674_v33 = vmul.f32 0.2, %v11642_v47  ;;  %v11793_v12 = vrot.slane %v18456_v63, 7  ;;  %v11795_v15 = vrot.slane %v18457_v50, 7  ;;  %v11796_v54 = vrot.slane %v11717_v45, 7 }
 0x688   :  { %v11797_v1 = vrot.slane %v18458_v10, 7  ;;  %11825 = vst [vmem:[#allocation3 + $0xd8] sm:$0x1e] %v11792_v49  ;;  %11827 = vst [vmem:[#allocation3 + $0xa0] sm:$0x1e] %v11794_v52  ;;  %vm11657_vm15 = vcmp.gt.f32.partialorder %v11641_v17, 0.0  ;;  %v11632_v30 = vadd.f32 %v27000_v31, %v27010_v11  ;;  %v27052_v39 = vadd.f32 %v27000_v31, %v27014_v2 }
 0x689   :  { %v11690_v29 = vsel %vm11658_vm14, %v11642_v47, %v11674_v33  ;;  %v11673_v5 = vmul.f32 0.2, %v11641_v17  ;;  %11826 = vst [vmem:[#allocation3 + $0x80] sm:$0x1e] %v11793_v12  ;;  %11828 = vst [vmem:[#allocation3 + $0xf0] sm:$0x1e] %v11795_v15  ;;  %v27058_v55 = vadd.f32 %v27000_v31, %v27018_v42  ;;  %v27074_v42 = vadd.f32 %v27000_v31, %v27022_v4 }
 0x68a   :  { %11830 = vst [vmem:[#allocation3 + $0x128] sm:$0x1e] %v11797_v1  ;;  %11829 = vst [vmem:[#allocation3 + $0x60] sm:$0x1e] %v11796_v54  ;;  %v18460_v22 = vcombine.low %v11690_v29, %v11690_v29  ;;  %v18461_v23 = vcombine.high %v11690_v29, %v11690_v29  ;;  %vm11647_vm0 = vcmp.gt.f32.partialorder %v11631_v37, 0.0  ;;  %v27065_v11 = vrot.slane %v11974_v57, 9 }
 0x68b   :  { %v11689_v47 = vsel %vm11657_vm15, %v11641_v17, %v11673_v5  ;;  %v11663_v59 = vmul.f32 0.2, %v11631_v37  ;;  %v27070_v2 = vrot.slane %v11975_v8, 5  ;;  %v27078_v17 = vadd.f32 %v27000_v31, %v27026_v14  ;;  %v21073_v3 = vld [vmem:[#allocation4 + $0x370] ss:$8 sps:$4 sm:$0xff]  }
 0x68c   :  { %v11801_v19 = vrot.slane %v18460_v22, 7  ;;  %v11803_v36 = vrot.slane %v18461_v23, 7  ;;  %v11721_v38 = vcombine.low %v11689_v47, %v11690_v29  ;;  %v11722_v61 = vcombine.high %v11689_v47, %v11690_v29  ;;  %v11857_v46 = vld [vmem:[#allocation3 + $0x50] sm:$0xf]  ;;  %v21083_v63 = vld [vmem:[#allocation4 + $0x364] ss:$8 sps:$4 sm:$0xff]  }
 0x68d   :  { %v18544_v57 = vrot.slane %v27054_v60, 10  ;;  %v11619_v26 = vmul.f32 %v26977_v43, %v26906_v58  ;;  %vm11648_vm1 = vcmp.gt.f32.partialorder %v11632_v30, 0.0  ;;  %v11664_v9 = vmul.f32 0.2, %v11632_v30  ;;  %v11948_v24 = vld [vmem:[#allocation3 + $0x30] sm:$0x1e] }
 0x68e   :  { %11834 = vst [vmem:[#allocation3 + $0x90] sm:$0x1e] %v11801_v19  ;;  %11836 = vst [vmem:[#allocation3 + $0xd0] sm:$0x1e] %v11803_v36  ;;  %v11800_v20 = vrot.slane %v11721_v38, 7  ;;  %v11802_v56 = vrot.slane %v11722_v61, 7  ;;  %v27084_v40 = vsel %vm11647_vm0, %v11631_v37, %v11663_v59  ;;  %v11623_v58 = vmul.f32 %v26977_v43, %v26928_v6 }
 0x68f   :  { %v12542_v8 = vrot.slane %v27060_v35, 6  ;;  %v11846_v4 = vld [vmem:[#allocation3 + $0xa0] sm:$0xf]  ;;  %v27088_v14 = vadd.f32 %v27000_v31, %v11619_v26  ;;  %v27090_v7 = vsel %vm11648_vm1, %v11632_v30, %v11664_v9  ;;  %v11949_v0 = vld [vmem:[#allocation3 + $0x50] sm:$0x1e]  ;;  %vm11651_vm2 = vcmp.gt.f32.partialorder %v27052_v39, 0.0 }
 0x690   :  { %v21079_v21 = vld [vmem:[#allocation3 + $0x20] ss:$184 sps:$4 sm:$0xff]   ;;  %11833 = vst [vmem:[#allocation3 + $0xe0] sm:$0x1e] %v11800_v20  ;;  %11835 = vst [vmem:[#allocation3 + $0x78] sm:$0x1e] %v11802_v56  ;;  %v11711_v41 = vcombine.low %v27084_v40, %v27090_v7  ;;  %v11712_v44 = vcombine.high %v27084_v40, %v27090_v7  ;;  %v27099_v50 = vadd.f32 %v27000_v31, %v11623_v58 }
 0x691   :  { %v21071_v13 = vld [vmem:[#allocation3 + $0x8] ss:$120 sps:$4 sm:$0xff]   ;;  %v21089_v15 = vld [vmem:[#allocation3 + $0xdc] ss:$-88 sps:$4 sm:$0x11]   ;;  %v11980_v29 = vcombine.low %v11948_v24, %v11949_v0  ;;  %vm11652_vm3 = vcmp.gt.f32.partialorder %v27058_v55, 0.0  ;;  %v11985_v30 = vsel %vm22240_vm13, %v18472_v34, %v11984_v48  ;;  %v11981_v47 = vcombine.high %v11948_v24, %v11949_v0 }
 0x692   :  { %v21072_v32 = vld [vmem:[#allocation3 + $0xf0] ss:$56 sps:$4 sm:$0xff]   ;;  %v11848_v28 = vld [vmem:[#allocation3 + $0x60] sm:$0xf]  ;;  %v21107_v5 = vld [vmem:[#allocation4 + $0x354] ss:$8 sps:$4 sm:$0xff]   ;;  %v27119_v58 = vsel %vm22240_vm13, %v27065_v11, %v27070_v2 }
 0x693   :  { %v18466_v45 = vcombine.low %v11846_v4, %v11848_v28  ;;  %v11899_v10 = vpack.c.bf16 %v21072_v32, %v21071_v13  ;;  %v21081_v33 = vld [vmem:[#allocation4 + $0x360] ss:$8 sps:$4 sm:$0xff]   ;;  %v21092_v1 = vld [vmem:[#allocation3 + $0xa4] ss:$80 sps:$4 sm:$0x11]   ;;  %v11988_v19 = vrot.slane %v21089_v15, 5 }
 0x694   :  { %v21087_v12 = vld [vmem:[#allocation3 + $0xd8] ss:$-88 sps:$4 sm:$0xee]   ;;  %v21095_v22 = vld [vmem:[#allocation3 + $0x64] ss:$200 sps:$4 sm:$0x11]  }
 0x695   :  { %v11898_v49 = vpack.c.bf16 %v18466_v45, %v21079_v21  ;;  %v11855_v6 = vld [vmem:[#allocation3 + $0xd0] sm:$0xf]  ;;  %12471 = vmatprep.mubr.bf16.mxu0 %v11899_v10  ;;  %v21093_v37 = vld [vmem:[#allocation3 + $0x60] ss:$200 sps:$4 sm:$0xee]   ;;  %v18473_v59 = vrot.slane %v21087_v12, 9 }
 0x696   :  { %v21080_v43 = vld [vmem:[#allocation3 + $0x28] ss:$104 sps:$4 sm:$0xff]   ;;  %v18471_v52 = vcombine.low %v11855_v6, %v11857_v46  ;;  %v11992_v38 = vrot.slane %v21092_v1, 5  ;;  %v18475_v61 = vrot.slane %v21093_v37, 9  ;;  %v11996_v20 = vrot.slane %v21095_v22, 5 }
 0x697   :  { %12472 = vmatmul.mubr.bf16.vlgmr.msra.gmra.mxu0 %v11898_v49  ;;  %v21090_v54 = vld [vmem:[#allocation3 + $0xa0] ss:$80 sps:$4 sm:$0xee]   ;;  %v11989_v26 = vsel %vm22240_vm13, %v18473_v59, %v11988_v19  ;;  %v18479_v9 = vrot.slane %v11980_v29, 9  ;;  %v12012_v0 = vrot.slane %v11981_v47, 5  ;;  %v18448_v49 = vcombine.low %v27090_v7, %v27090_v7 }
 0x698   :  { %13099 = vmatpush1.bf16.msra.mxu0 %v21073_v3  ;;  %v11901_v31 = vpack.c.bf16 %v18471_v52, %v21080_v43  ;;  %v18474_v36 = vrot.slane %v21090_v54, 9  ;;  %v21105_v56 = vld [vmem:[#allocation4 + $0x350] ss:$8 sps:$4 sm:$0xff]   ;;  %v11997_v34 = vsel %vm22240_vm13, %v18475_v61, %v11996_v20  ;;  %v12014_v48 = vcombine.low %v11985_v30, %v11989_v26  ;;  %v21101_v21 = vld [vmem:[#allocation3 + $0xe4] ss:$-80 sps:$4 sm:$0x11]  }
 0x699   :  { %13100 = vmatprep.subr.bf16.mxu0 %v21083_v63  ;;  %v21099_v53 = vld [vmem:[#allocation3 + $0xe0] ss:$-80 sps:$4 sm:$0xee]   ;;  %v12015_v4 = vcombine.high %v11985_v30, %v11989_v26  ;;  %v21104_v28 = vld [vmem:[#allocation3 + $0x7c] ss:$88 sps:$4 sm:$0x11]   ;;  %v18449_v6 = vcombine.high %v27090_v7, %v27090_v7 }
 0x69a   :  { %12481 = vmatprep.mubr.bf16.mxu0 %v11901_v31  ;;  %v11993_v62 = vsel %vm22240_vm13, %v18474_v36, %v11992_v38  ;;  %v21102_v46 = vld [vmem:[#allocation3 + $0x78] ss:$88 sps:$4 sm:$0xee]   ;;  %v18477_v24 = vrot.slane %v21099_v53, 9  ;;  %v12004_v45 = vrot.slane %v21101_v21, 5  ;;  %v12008_v2 = vrot.slane %v21104_v28, 5 }
 0x69b   :  { %v12016_v13 = vcombine.low %v11993_v62, %v11997_v34  ;;  %v12017_v32 = vcombine.high %v11993_v62, %v11997_v34  ;;  %v21096_v3 = vld [vmem:[#allocation4 + $0x270] ss:$8 sps:$4 sm:$0xff]   ;;  %v18478_v63 = vrot.slane %v21102_v46, 9  ;;  %v21112_v10 = vld [vmem:[#allocation4 + $0x264] ss:$8 sps:$4 sm:$0xff]   ;;  %v11735_v31 = vrot.slane %v11711_v41, 7 }
 0x69c   :  { %13101 = vmatpush1.bf16.msra.mxu0 %v21081_v33  ;;  %v21116_v43 = vld [vmem:[#allocation4 + $0x344] ss:$8 sps:$4 sm:$0xff]   ;;  %v27127_v33 = vsel %vm22240_vm13, %v18479_v9, %v12012_v0  ;;  %v21108_v12 = vld [vmem:[#allocation3 + $0xe8] ss:$-8 sps:$4 sm:$0xff]   ;;  %v21109_v15 = vld [vmem:[#allocation3 + $0x78] ss:$-72 sps:$4 sm:$0xff]   ;;  %v27131_v1 = vsel %vm22240_vm13, %v18477_v24, %v12004_v45  ;;  %v27161_v0 = vsel %vm22494_vm6, %v18544_v57, %v12542_v8 }
 0x69d   :  { %13102 = vmatprep.subr.bf16.mxu0 %v21107_v5  ;;  %v12030_v52 = vpack.c.bf16 %v12016_v13, %v12014_v48  ;;  %v12031_v11 = vpack.c.bf16 %v12017_v32, %v12015_v4  ;;  %v21114_v54 = vld [vmem:[#allocation4 + $0x340] ss:$8 sps:$4 sm:$0xff]   ;;  %v11667_v29 = vmul.f32 0.2, %v27052_v39  ;;  %v11668_v5 = vmul.f32 0.2, %v27058_v55 }
 0x69e   :  { %v21134_v37 = vld [vmem:[#allocation4 + $0x334] ss:$8 sps:$4 sm:$0xff]   ;;  %v12009_v22 = vsel %vm22240_vm13, %v18478_v63, %v12008_v2  ;;  %v12018_v30 = vcombine.low %v27119_v58, %v27131_v1  ;;  %v12019_v47 = vcombine.high %v27119_v58, %v27131_v1  ;;  %v11900_v59 = vpack.c.bf16 %v21109_v15, %v21108_v12  ;;  %v21110_v19 = vld [vmem:[#allocation4 + $0x260] ss:$8 sps:$4 sm:$0xff]   ;;  %11768 = vst [vmem:[#allocation3 + $0x10] sm:$0x1e] %v11735_v31 }
 0x69f   :  { %12258 = vmatprep.mubr.bf16.mxu1 %v12031_v11  ;;  %v12020_v36 = vcombine.low %v12009_v22, %v27127_v33  ;;  %v12021_v38 = vcombine.high %v12009_v22, %v27127_v33  ;;  %v11683_v41 = vsel %vm11651_vm2, %v27052_v39, %v11667_v29  ;;  %v11684_v61 = vsel %vm11652_vm3, %v27058_v55, %v11668_v5  ;;  %v21119_v20 = vld [vmem:[#allocation4 + $0x254] ss:$8 sps:$4 sm:$0xff]   ;;  %v21123_v9 = vld [vmem:[#allocation3 + $0xd8] ss:$-88 sps:$4 sm:$0xcc]  }
 0x6a0   :  { %13103 = vmatpush1.bf16.msra.mxu0 %v21105_v56  ;;  %12259 = vmatmul.mubr.bf16.vlgmr.msra.gmra.mxu1 %v12030_v52  ;;  %v11715_v56 = vcombine.low %v11683_v41, %v11684_v61  ;;  %v11716_v26 = vcombine.high %v11683_v41, %v11684_v61  ;;  %v18450_v62 = vcombine.low %v11684_v61, %v11684_v61  ;;  %v11736_v53 = vrot.slane %v18448_v49, 7  ;;  %v21132_v34 = vld [vmem:[#allocation4 + $0x330] ss:$8 sps:$4 sm:$0xff]   ;;  %v21125_v55 = vld [vmem:[#allocation3 + $0xdc] ss:$-88 sps:$4 sm:$0x33]  }
 0x6a1   :  { %12785 = vmatpush1.bf16.msra.mxu1 %v21096_v3  ;;  %12482 = vmatmul.mubr.bf16.gmra.mxu0 %v11900_v59  ;;  %v12033_v48 = vpack.c.bf16 %v12021_v38, %v12019_v47  ;;  %v18451_v4 = vcombine.high %v11684_v61, %v11684_v61  ;;  %v11737_v39 = vrot.slane %v11712_v44, 7  ;;  %v11738_v21 = vrot.slane %v18449_v6, 7  ;;  %v21140_v46 = vld [vmem:[#allocation4 + $0x324] ss:$8 sps:$4 sm:$0xff]   ;;  %v21117_v3 = vld [vmem:[#allocation4 + $0x250] ss:$8 sps:$4 sm:$0xff]  }
 0x6a2   :  { %12786 = vmatprep.subr.bf16.mxu1 %v21112_v10  ;;  %13104 = vmatprep.subr.bf16.mxu0 %v21116_v43  ;;  %v11739_v58 = vrot.slane %v11715_v56, 7  ;;  %v11740_v13 = vrot.slane %v18450_v62, 7  ;;  %v11741_v32 = vrot.slane %v11716_v26, 7  ;;  %11769 = vst [vmem:[#allocation3 + $0x160] sm:$0x1e] %v11736_v53  ;;  %v18545_v44 = vrot.slane %v21123_v9, 10 }
 0x6a3   :  { %v21126_v28 = vld [vmem:[#allocation3 + $0xa0] ss:$80 sps:$4 sm:$0xcc]   ;;  %12268 = vmatprep.mubr.bf16.mxu1 %v12033_v48  ;;  %v11742_v40 = vrot.slane %v18451_v4, 7  ;;  %11771 = vst [vmem:[#allocation3] sm:$0x1e] %v11738_v21  ;;  %v11718_v10 = vcombine.high %v27037_v18, %v27040_v16  ;;  %v12032_v8 = vpack.c.bf16 %v12020_v36, %v12018_v30 }
 0x6a4   :  { %13105 = vmatpush1.bf16.msra.mxu0 %v21114_v54  ;;  %11770 = vst [vmem:[#allocation3 + $0x150] sm:$0x1e] %v11737_v39  ;;  %v21128_v7 = vld [vmem:[#allocation3 + $0xa4] ss:$80 sps:$4 sm:$0x33]   ;;  %v12546_v45 = vrot.slane %v21125_v55, 6 }
 0x6a5   :  { %13106 = vmatprep.subr.bf16.mxu0 %v21134_v37  ;;  %v21137_v63 = vld [vmem:[#allocation4 + $0x244] ss:$8 sps:$4 sm:$0xff]   ;;  %12787 = vmatpush1.bf16.msra.mxu1 %v21110_v19  ;;  %11773 = vst [vmem:[#allocation3 + $0x118] sm:$0x1e] %v11740_v13  ;;  %11772 = vst [vmem:[#allocation3 + $0x120] sm:$0x1e] %v11739_v58 }
 0x6a6   :  { %11774 = vst [vmem:[#allocation3 + $0x140] sm:$0x1e] %v11741_v32  ;;  %v21129_v60 = vld [vmem:[#allocation3 + $0x60] ss:$200 sps:$4 sm:$0xcc]   ;;  %12788 = vmatprep.subr.bf16.mxu1 %v21119_v20  ;;  %v27167_v49 = vsel %vm22494_vm6, %v18545_v44, %v12546_v45  ;;  %v18546_v6 = vrot.slane %v21126_v28, 10 }
 0x6a7   :  { %v21131_v35 = vld [vmem:[#allocation3 + $0x64] ss:$200 sps:$4 sm:$0x33]   ;;  %v21138_v57 = vld [vmem:[#allocation4 + $0x320] ss:$8 sps:$4 sm:$0xff]   ;;  %v12550_v43 = vrot.slane %v21128_v7, 6  ;;  %v12573_v33 = vcombine.high %v27161_v0, %v27167_v49 }
 0x6a8   :  { %11775 = vst [vmem:[#allocation3 + $0x110] sm:$0x1e] %v11742_v40  ;;  %v21146_v52 = vld [vmem:[#allocation4 + $0x314] ss:$8 sps:$4 sm:$0xff]   ;;  %v18547_v11 = vrot.slane %v21129_v60, 10  ;;  %v12554_v2 = vrot.slane %v21131_v35, 6  ;;  %13107 = vmatpush1.bf16.msra.mxu0 %v21132_v34  ;;  %12269 = vmatmul.mubr.bf16.gmra.mxu1 %v12032_v8 }
 0x6a9   :  { %vm11656_vm4 = vcmp.gt.f32.partialorder %v27074_v42, 0.0  ;;  %v27174_v12 = vsel %vm22494_vm6, %v18546_v6, %v12550_v43  ;;  %13108 = vmatprep.subr.bf16.mxu0 %v21140_v46  ;;  %vm11660_vm5 = vcmp.gt.f32.partialorder %v27078_v17, 0.0  ;;  %v11672_v15 = vmul.f32 0.2, %v27074_v42  ;;  %12789 = vmatpush1.bf16.msra.mxu1 %v21117_v3  ;;  %v21135_v29 = vld [vmem:[#allocation4 + $0x240] ss:$8 sps:$4 sm:$0xff]  }
 0x6aa   :  { %v11676_v54 = vmul.f32 0.2, %v27078_v17  ;;  %v27181_v1 = vsel %vm22494_vm6, %v18547_v11, %v12554_v2  ;;  %v12846_v5 = vld [vmem:[#allocation3 + $0x160] sm:$0xf]  ;;  %12790 = vmatprep.subr.bf16.mxu1 %v21137_v63  ;;  %v21143_v37 = vld [vmem:[#allocation4 + $0x234] ss:$8 sps:$4 sm:$0xff]  }
 0x6ab   :  { %v12575_v31 = vcombine.high %v27174_v12, %v27181_v1  ;;  %v11688_v22 = vsel %vm11656_vm4, %v27074_v42, %v11672_v15  ;;  %v12848_v47 = vld [vmem:[#allocation3] sm:$0xf]  ;;  %v21144_v59 = vld [vmem:[#allocation4 + $0x310] ss:$8 sps:$4 sm:$0xff]   ;;  %v21152_v26 = vld [vmem:[#allocation4 + $0x304] ss:$8 sps:$4 sm:$0xff]  }
 0x6ac   :  { %v11692_v30 = vsel %vm11660_vm5, %v27078_v17, %v11676_v54  ;;  %13109 = vmatpush1.bf16.msra.mxu0 %v21138_v57  ;;  %v18452_v19 = vcombine.low %v11688_v22, %v11688_v22  ;;  %v18453_v36 = vcombine.high %v11688_v22, %v11688_v22  ;;  %v18585_v61 = vcombine.low %v12846_v5, %v12848_v47  ;;  %v21141_v56 = vld [vmem:[#allocation4 + $0x230] ss:$8 sps:$4 sm:$0xff]   ;;  %v21149_v42 = vld [vmem:[#allocation4 + $0x224] ss:$8 sps:$4 sm:$0xff]   ;;  %v21147_v4 = vld [vmem:[#allocation4 + $0x220] ss:$8 sps:$4 sm:$0xff]  }
 0x6ad   :  { %v18454_v38 = vcombine.low %v11692_v30, %v11692_v30  ;;  %v18455_v41 = vcombine.high %v11692_v30, %v11692_v30  ;;  %v12589_v20 = vpack.c.bf16 %v12575_v31, %v12573_v33  ;;  %13110 = vmatprep.subr.bf16.mxu0 %v21146_v52  ;;  %12791 = vmatpush1.bf16.msra.mxu1 %v21135_v29  ;;  %v21150_v39 = vld [vmem:[#allocation4 + $0x300] ss:$8 sps:$4 sm:$0xff]   ;;  %vm11655_vm7 = vcmp.gt.f32.partialorder %v27088_v14, 0.0  ;;  %v21155_v21 = vld [vmem:[#allocation4 + $0x214] ss:$8 sps:$4 sm:$0xff]  }
 0x6ae   :  { %v11744_v53 = vrot.slane %v18452_v19, 7  ;;  %v11746_v9 = vrot.slane %v18453_v36, 7  ;;  %12792 = vmatprep.subr.bf16.mxu1 %v21143_v37  ;;  %v21158_v55 = vld [vmem:[#allocation4 + $0x3f4] ss:$8 sps:$4 sm:$0xff]   ;;  %vm11659_vm8 = vcmp.gt.f32.partialorder %v27099_v50, 0.0  ;;  %vm16106_vm0 = vcmask 130112  }
 0x6af   :  { %v21113_v62 = vld [vmem:[#allocation3 + $0x118] ss:$-8 sps:$4 sm:$0xff]   ;;  %12816 = vmatprep.mubr.bf16.mxu1 %v12589_v20  ;;  %v11748_v17 = vrot.slane %v18454_v38, 7  ;;  %v11750_v34 = vrot.slane %v18455_v41, 7  ;;  %v11671_v46 = vmul.f32 0.2, %v27088_v14 }
 0x6b0   :  { %v12902_v48 = vpack.c.bf16 %v21113_v62, %v18585_v61  ;;  %13111 = vmatpush1.bf16.msra.mxu0 %v21144_v59  ;;  %11777 = vst [vmem:[#allocation3 + $0x58] sm:$0x1e] %v11744_v53  ;;  %11779 = vst [vmem:[#allocation3 + $0x68] sm:$0x1e] %v11746_v9  ;;  %v21156_v58 = vld [vmem:[#allocation4 + $0x3f0] ss:$8 sps:$4 sm:$0xff]  }
 0x6b1   :  { %13112 = vmatprep.subr.bf16.mxu0 %v21152_v26  ;;  %11781 = vst [vmem:[#allocation3 + $0x88] sm:$0x1e] %v11748_v17  ;;  %11783 = vst [vmem:[#allocation3 + $0x178] sm:$0x1e] %v11750_v34  ;;  %12793 = vmatpush1.bf16.msra.mxu1 %v21141_v56  ;;  %v11675_v13 = vmul.f32 0.2, %v27099_v50  ;;  %v11687_v32 = vsel %vm11655_vm7, %v27088_v14, %v11671_v46 }
 0x6b2   :  { %13130 = vmatprep.mubr.bf16.mxu0 %v12902_v48  ;;  %12794 = vmatprep.subr.bf16.mxu1 %v21149_v42  ;;  %v21164_v28 = vld [vmem:[#allocation4 + $0x3e4] ss:$8 sps:$4 sm:$0xff]   ;;  %v11719_v40 = vcombine.low %v11687_v32, %v11688_v22  ;;  %v11720_v7 = vcombine.high %v11687_v32, %v11688_v22  ;;  %v21153_v44 = vld [vmem:[#allocation4 + $0x210] ss:$8 sps:$4 sm:$0xff]   ;;  %v21162_v35 = vld [vmem:[#allocation4 + $0x3e0] ss:$8 sps:$4 sm:$0xff]  }
 0x6b3   :  { %v11691_v3 = vsel %vm11659_vm8, %v27099_v50, %v11675_v13  ;;  %v21161_v45 = vld [vmem:[#allocation4 + $0x204] ss:$8 sps:$4 sm:$0xff]   ;;  %v21170_v57 = vld [vmem:[#allocation4 + $0x3d4] ss:$8 sps:$4 sm:$0xff]   ;;  %v21159_v50 = vld [vmem:[#allocation4 + $0x200] ss:$8 sps:$4 sm:$0xff]  }
 0x6b4   :  { %13113 = vmatpush1.bf16.msra.mxu0 %v21150_v39  ;;  %v11723_v63 = vcombine.low %v11691_v3, %v11692_v30  ;;  %v11724_v60 = vcombine.high %v11691_v3, %v11692_v30  ;;  %v11743_v8 = vrot.slane %v11719_v40, 7  ;;  %v11745_v6 = vrot.slane %v11720_v7, 7  ;;  %v21167_v52 = vld [vmem:[#allocation4 + $0x2f4] ss:$8 sps:$4 sm:$0xff]   ;;  %v21168_v11 = vld [vmem:[#allocation4 + $0x3d0] ss:$8 sps:$4 sm:$0xff]  }
 0x6b5   :  { %13114 = vmatprep.subr.bf16.mxu0 %v21158_v55  ;;  %12795 = vmatpush1.bf16.msra.mxu1 %v21147_v4  ;;  %v21165_v2 = vld [vmem:[#allocation4 + $0x2f0] ss:$8 sps:$4 sm:$0xff]   ;;  %v21176_v33 = vld [vmem:[#allocation4 + $0x3c4] ss:$8 sps:$4 sm:$0xff]   ;;  %v21174_v54 = vld [vmem:[#allocation4 + $0x3c0] ss:$8 sps:$4 sm:$0xff]  }
 0x6b6   :  { %12796 = vmatprep.subr.bf16.mxu1 %v21155_v21  ;;  %v11747_v14 = vrot.slane %v11723_v63, 7  ;;  %v11749_v43 = vrot.slane %v11724_v60, 7  ;;  %11776 = vst [vmem:[#allocation3 + $0x170] sm:$0x1e] %v11743_v8  ;;  %11778 = vst [vmem:[#allocation3 + $0x138] sm:$0x1e] %v11745_v6 }
 0x6b7   :  { %v21173_v15 = vld [vmem:[#allocation4 + $0x2e4] ss:$8 sps:$4 sm:$0xff]   ;;  %v21171_v29 = vld [vmem:[#allocation4 + $0x2e0] ss:$8 sps:$4 sm:$0xff]   ;;  %v21179_v5 = vld [vmem:[#allocation4 + $0x2d4] ss:$8 sps:$4 sm:$0xff]  }
 0x6b8   :  { %13115 = vmatpush2.bf16.msra.mxu0 %v21156_v58  ;;  %11780 = vst [vmem:[#allocation3 + $0xf8] sm:$0x1e] %v11747_v14  ;;  %11782 = vst [vmem:[#allocation3 + $0x168] sm:$0x1e] %v11749_v43  ;;  %v21182_v31 = vld [vmem:[#allocation4 + $0x3b4] ss:$8 sps:$4 sm:$0xff]   ;;  %v18459_v43 = vcombine.high %v27040_v16, %v27040_v16 }
 0x6b9   :  { %13116 = vmatprep.subr.bf16.mxu0 %v21164_v28  ;;  %12797 = vmatpush1.bf16.msra.mxu1 %v21153_v44  ;;  %v12500_v37 = vld [vmem:[#allocation3 + $0xe8] sm:$0x3c]  ;;  %v21180_v30 = vld [vmem:[#allocation4 + $0x3b0] ss:$8 sps:$4 sm:$0xff]   ;;  %v21194_v20 = vld [vmem:[#allocation4 + $0x394] ss:$8 sps:$4 sm:$0xff]  }
 0x6ba   :  { %12798 = vmatprep.subr.bf16.mxu1 %v21161_v45  ;;  %v12501_v22 = vld [vmem:[#allocation3 + $0x28] sm:$0x3c]  ;;  %v21177_v59 = vld [vmem:[#allocation4 + $0x2d0] ss:$8 sps:$4 sm:$0xff]   ;;  %v21191_v56 = vld [vmem:[#allocation4 + $0x2b4] ss:$8 sps:$4 sm:$0xff]  }
 0x6bb   :  { %v21188_v47 = vld [vmem:[#allocation4 + $0x3a4] ss:$8 sps:$4 sm:$0xff]   ;;  %v12532_v19 = vcombine.low %v12500_v37, %v12501_v22  ;;  %v21186_v38 = vld [vmem:[#allocation4 + $0x3a0] ss:$8 sps:$4 sm:$0xff]   ;;  %v12533_v41 = vcombine.high %v12500_v37, %v12501_v22  ;;  %v21192_v26 = vld [vmem:[#allocation4 + $0x390] ss:$8 sps:$4 sm:$0xff]  }
 0x6bc   :  { %13117 = vmatpush2.bf16.msra.mxu0 %v21162_v35  ;;  %v21185_v36 = vld [vmem:[#allocation4 + $0x2c4] ss:$8 sps:$4 sm:$0xff]   ;;  %v21183_v61 = vld [vmem:[#allocation4 + $0x2c0] ss:$8 sps:$4 sm:$0xff]   ;;  %v12506_v9 = vld [vmem:[#allocation3 + $0x30] sm:$0x3c] }
 0x6bd   :  { %13118 = vmatprep.subr.bf16.mxu0 %v21170_v57  ;;  %12799 = vmatpush1.bf16.msra.mxu1 %v21159_v50  ;;  %v27193_v62 = vrot.slane %v12532_v19, 10  ;;  %v21200_v53 = vld [vmem:[#allocation4 + $0x384] ss:$8 sps:$4 sm:$0xff]   ;;  %v12507_v42 = vld [vmem:[#allocation3 + $0x50] sm:$0x3c]  ;;  %v12558_v46 = vrot.slane %v12533_v41, 6 }
 0x6be   :  { %12800 = vmatprep.subr.bf16.mxu1 %v21167_v52  ;;  %v27195_v17 = vld [vmem:[#allocation3 + $0xe0] ss:$-80 sps:$4 sm:$0xcc]   ;;  %v27197_v34 = vld [vmem:[#allocation3 + $0xe4] ss:$-80 sps:$4 sm:$0x33]   ;;  %v12538_v6 = vcombine.low %v12506_v9, %v12507_v42  ;;  %v12539_v14 = vcombine.high %v12506_v9, %v12507_v42 }
 0x6bf   :  { %v21189_v48 = vld [vmem:[#allocation4 + $0x2b0] ss:$8 sps:$4 sm:$0xff]   ;;  %v12849_v21 = vld [vmem:[#allocation3 + $0x120] sm:$0xf]  ;;  %v21197_v28 = vld [vmem:[#allocation4 + $0x2a4] ss:$8 sps:$4 sm:$0xff]  }
 0x6c0   :  { %13119 = vmatpush2.bf16.msra.mxu0 %v21168_v11  ;;  %v12845_v4 = vld [vmem:[#allocation3 + $0x10] sm:$0xf]  ;;  %v12851_v55 = vld [vmem:[#allocation3 + $0x140] sm:$0xf]  ;;  %v11798_v60 = vrot.slane %v11718_v10, 7  ;;  %v12570_v41 = vrot.slane %v12539_v14, 6 }
 0x6c1   :  { %13120 = vmatprep.subr.bf16.mxu0 %v21176_v33  ;;  %12801 = vmatpush2.bf16.msra.mxu1 %v21165_v2  ;;  %v12847_v39 = vld [vmem:[#allocation3 + $0x150] sm:$0xf]  ;;  %v21234_v13 = vld [vmem:[#allocation3 + $0x14] ss:$336 sps:$4 sm:$0x33]   ;;  %v18586_v52 = vcombine.low %v12849_v21, %v12851_v55  ;;  %v18549_v33 = vrot.slane %v27195_v17, 10  ;;  %v27224_v17 = vsel %vm22494_vm6, %v27193_v62, %v12558_v46 }
 0x6c2   :  { %12802 = vmatprep.subr.bf16.mxu1 %v21173_v15  ;;  %v21232_v58 = vld [vmem:[#allocation3 + $0x10] ss:$336 sps:$4 sm:$0xcc]   ;;  %v27201_v3 = vld [vmem:[#allocation3 + $0x154] ss:$-336 sps:$4 sm:$0x33]   ;;  %v18584_v50 = vcombine.low %v12845_v4, %v12847_v39 }
 0x6c3   :  { %v27199_v32 = vld [vmem:[#allocation3 + $0x150] ss:$-336 sps:$4 sm:$0xcc]   ;;  %v27205_v7 = vld [vmem:[#allocation3 + $0x124] ss:$-8 sps:$4 sm:$0x33]  }
 0x6c4   :  { %13121 = vmatpush2.bf16.msra.mxu0 %v21174_v54  ;;  %v27203_v40 = vld [vmem:[#allocation3 + $0x120] ss:$-8 sps:$4 sm:$0xcc]   ;;  %v21243_v63 = vld [vmem:[#allocation3 + $0x144] ss:$-48 sps:$4 sm:$0x33]  }
 0x6c5   :  { %13122 = vmatprep.subr.bf16.mxu0 %v21182_v31  ;;  %12803 = vmatpush2.bf16.msra.mxu1 %v21171_v29  ;;  %v27207_v44 = vld [vmem:[#allocation3 + $0x140] ss:$-48 sps:$4 sm:$0xcc]   ;;  %v21223_v8 = vld [vmem:[#allocation3 + $0x7c] ss:$88 sps:$4 sm:$0x33]  }
 0x6c6   :  { %12804 = vmatprep.subr.bf16.mxu1 %v21179_v5  ;;  %v21198_v45 = vld [vmem:[#allocation4 + $0x380] ss:$8 sps:$4 sm:$0xff]   ;;  %v21221_v57 = vld [vmem:[#allocation3 + $0x78] ss:$88 sps:$4 sm:$0xcc]   ;;  %v12562_v15 = vrot.slane %v27197_v34, 6 }
 0x6c7   :  { %v21195_v35 = vld [vmem:[#allocation4 + $0x2a0] ss:$8 sps:$4 sm:$0xff]   ;;  %v21206_v11 = vld [vmem:[#allocation4 + $0x574] ss:$8 sps:$4 sm:$0xff]   ;;  %11831 = vst [vmem:[#allocation3 + $0xb0] sm:$0x1e] %v11798_v60 }
 0x6c8   :  { %13123 = vmatpush2.bf16.msra.mxu0 %v21180_v30  ;;  %v21210_v2 = vld [vmem:[#allocation3 + $0x58] ss:$16 sps:$4 sm:$0xff]   ;;  %v18664_v10 = vrot.slane %v21232_v58, 10  ;;  %v13562_v54 = vrot.slane %v21234_v13, 6  ;;  %v18665_v29 = vrot.slane %v27199_v32, 10  ;;  %v13566_v5 = vrot.slane %v27201_v3, 6 }
 0x6c9   :  { %13124 = vmatprep.subr.bf16.mxu0 %v21188_v47  ;;  %12805 = vmatpush2.bf16.msra.mxu1 %v21177_v59  ;;  %v21211_v18 = vld [vmem:[#allocation3 + $0x88] ss:$240 sps:$4 sm:$0xff]   ;;  %v21203_v16 = vld [vmem:[#allocation4 + $0x294] ss:$8 sps:$4 sm:$0xff]   ;;  %v18666_v31 = vrot.slane %v27203_v40, 10  ;;  %v13570_v37 = vrot.slane %v27205_v7, 6 }
 0x6ca   :  { %12806 = vmatprep.subr.bf16.mxu1 %v21185_v36  ;;  %v18667_v22 = vrot.slane %v27207_v44, 10  ;;  %v13574_v30 = vrot.slane %v21243_v63, 6  ;;  %v21201_v47 = vld [vmem:[#allocation4 + $0x290] ss:$8 sps:$4 sm:$0xff]   ;;  %v18550_v19 = vrot.slane %v21221_v57, 10  ;;  %v12566_v36 = vrot.slane %v21223_v8, 6 }
 0x6cb   :  { %v21204_v59 = vld [vmem:[#allocation4 + $0x570] ss:$8 sps:$4 sm:$0xff]   ;;  %v12904_v9 = vpack.c.bf16 %v21211_v18, %v21210_v2  ;;  %v21212_v42 = vld [vmem:[#allocation4 + $0x560] ss:$8 sps:$4 sm:$0xff]   ;;  %v21228_v58 = vld [vmem:[#allocation4 + $0x554] ss:$8 sps:$4 sm:$0xff]   ;;  %v27232_v13 = vsel %vm22494_vm6, %v18665_v29, %v13566_v5  ;;  %v27236_v62 = vsel %vm22494_vm6, %v18666_v31, %v13570_v37  ;;  %v12572_v63 = vcombine.low %v27161_v0, %v27167_v49 }
 0x6cc   :  { %13125 = vmatpush2.bf16.msra.mxu0 %v21186_v38  ;;  %v18551_v38 = vrot.slane %v12538_v6, 10  ;;  %v21225_v34 = vld [vmem:[#allocation3 + $0xf8] ss:$112 sps:$4 sm:$0xff]   ;;  %v21250_v4 = vld [vmem:[#allocation3 + $0x10] ss:$336 sps:$4 sm:$0xee]   ;;  %v27240_v46 = vsel %vm22494_vm6, %v18667_v22, %v13574_v30  ;;  %v12567_v40 = vsel %vm22494_vm6, %v18550_v19, %v12566_v36  ;;  %v12574_v8 = vcombine.low %v27174_v12, %v27181_v1 }
 0x6cd   :  { %13126 = vmatprep.subr.bf16.mxu0 %v21194_v20  ;;  %12807 = vmatpush2.bf16.msra.mxu1 %v21183_v61  ;;  %v12901_v61 = vpack.c.bf16 %v18586_v52, %v18584_v50  ;;  %v21209_v20 = vld [vmem:[#allocation4 + $0x284] ss:$8 sps:$4 sm:$0xff]   ;;  %v21253_v21 = vld [vmem:[#allocation3 + $0x150] ss:$-336 sps:$4 sm:$0xee]   ;;  %v13595_v57 = vcombine.high %v27236_v62, %v27240_v46  ;;  %v18624_v49 = vrot.slane %v21250_v4, 9 }
 0x6ce   :  { %12808 = vmatprep.subr.bf16.mxu1 %v21191_v56  ;;  %v21214_v56 = vld [vmem:[#allocation4 + $0x564] ss:$8 sps:$4 sm:$0xff]   ;;  %v21256_v32 = vld [vmem:[#allocation3 + $0x120] ss:$-8 sps:$4 sm:$0xee]   ;;  %v12571_v7 = vsel %vm22494_vm6, %v18551_v38, %v12570_v41  ;;  %v12588_v5 = vpack.c.bf16 %v12574_v8, %v12572_v63  ;;  %vm16117_vm1 = vcmask 1041409  }
 0x6cf   :  { %v21252_v39 = vld [vmem:[#allocation3 + $0x14] ss:$336 sps:$4 sm:$0x11]   ;;  %v21259_v44 = vld [vmem:[#allocation3 + $0x140] ss:$-48 sps:$4 sm:$0xee]   ;;  %v12578_v38 = vcombine.low %v12567_v40, %v12571_v7 }
 0x6d0   :  { %13127 = vmatpush2.bf16.msra.mxu0 %v21192_v26  ;;  %v21224_v26 = vld [vmem:[#allocation3 + $0x170] ss:$-56 sps:$4 sm:$0xff]   ;;  %v21255_v55 = vld [vmem:[#allocation3 + $0x154] ss:$-336 sps:$4 sm:$0x11]   ;;  %v13209_v52 = vrot.slane %v21252_v39, 5 }
 0x6d1   :  { %13128 = vmatprep.subr.bf16.mxu0 %v21200_v53  ;;  %12809 = vmatpush2.bf16.msra.mxu1 %v21189_v48  ;;  %v11799_v53 = vrot.slane %v18459_v43, 7  ;;  %v27228_v48 = vsel %vm22494_vm6, %v18664_v10, %v13562_v54  ;;  %v21258_v3 = vld [vmem:[#allocation3 + $0x124] ss:$-8 sps:$4 sm:$0x11]   ;;  %v21207_v60 = vld [vmem:[#allocation4 + $0x280] ss:$8 sps:$4 sm:$0xff]   ;;  %v12579_v43 = vcombine.high %v12567_v40, %v12571_v7  ;;  %v12903_v50 = vpack.c.bf16 %v21225_v34, %v21224_v26 }
 0x6d2   :  { %12810 = vmatprep.subr.bf16.mxu1 %v21197_v28  ;;  %v27244_v28 = vsel %vm22494_vm6, %v18549_v33, %v12562_v15  ;;  %v21217_v6 = vld [vmem:[#allocation4 + $0x474] ss:$8 sps:$4 sm:$0xff]   ;;  %v21226_v0 = vld [vmem:[#allocation4 + $0x550] ss:$8 sps:$4 sm:$0xff]   ;;  %v13213_v2 = vrot.slane %v21255_v55, 5  ;;  %v18626_v15 = vrot.slane %v21256_v32, 9  ;;  %v27262_v22 = vsel %vm22240_vm13, %v18624_v49, %v13209_v52 }
 0x6d3   :  { %11832 = vst [vmem:[#allocation3 + $0xa8] sm:$0x1e] %v11799_v53  ;;  %v12577_v14 = vcombine.high %v27224_v17, %v27244_v28  ;;  %v21246_v33 = vld [vmem:[#allocation4 + $0x544] ss:$8 sps:$4 sm:$0xff]   ;;  %v13217_v18 = vrot.slane %v21258_v3, 5  ;;  %v18627_v10 = vrot.slane %v21259_v44, 9  ;;  %v12576_v36 = vcombine.low %v27224_v17, %v27244_v28 }
 0x6d4   :  { %13129 = vmatpush2.bf16.msra.mxu0 %v21198_v45  ;;  %v21261_v45 = vld [vmem:[#allocation3 + $0x144] ss:$-48 sps:$4 sm:$0x11]   ;;  %v21215_v12 = vld [vmem:[#allocation4 + $0x470] ss:$8 sps:$4 sm:$0xff]   ;;  %vm16120_vm2 = vcmask 123904  }
 0x6d5   :  { %13804 = vmatprep.subr.bf16.mxu0 %v21206_v11  ;;  %12811 = vmatpush2.bf16.msra.mxu1 %v21195_v35  ;;  %v13593_v35 = vcombine.high %v27228_v48, %v27232_v13  ;;  %v18625_v11 = vrot.slane %v21253_v21, 9  ;;  %v13221_v54 = vrot.slane %v21261_v45, 5  ;;  %v21231_v1 = vld [vmem:[#allocation4 + $0x464] ss:$8 sps:$4 sm:$0xff]   ;;  %v21264_v31 = vld [vmem:[#allocation4 + $0x534] ss:$8 sps:$4 sm:$0xff]   ;;  %v12591_v37 = vpack.c.bf16 %v12579_v43, %v12577_v14 }
 0x6d6   :  { %12812 = vmatprep.subr.bf16.mxu1 %v21203_v16  ;;  %v21244_v16 = vld [vmem:[#allocation4 + $0x540] ss:$8 sps:$4 sm:$0xff]   ;;  %v21249_v41 = vld [vmem:[#allocation4 + $0x454] ss:$8 sps:$4 sm:$0xff]   ;;  %v21270_v26 = vld [vmem:[#allocation4 + $0x524] ss:$8 sps:$4 sm:$0xff]  }
 0x6d7   :  { %13131 = vmatmul.mubr.bf16.vlgmr.msra.gmra.mxu0 %v12901_v61  ;;  %v13609_v29 = vpack.c.bf16 %v13595_v57, %v13593_v35  ;;  %v27266_v30 = vsel %vm22240_vm13, %v18625_v11, %v13213_v2  ;;  %v21229_v19 = vld [vmem:[#allocation4 + $0x460] ss:$8 sps:$4 sm:$0xff]   ;;  %v21247_v53 = vld [vmem:[#allocation4 + $0x450] ss:$8 sps:$4 sm:$0xff]   ;;  %v21276_v4 = vld [vmem:[#allocation4 + $0x514] ss:$8 sps:$4 sm:$0xff]  }
 0x6d8   :  { %13140 = vmatprep.mubr.bf16.mxu0 %v12904_v9  ;;  %13805 = vmatpush1.bf16.msra.mxu0 %v21204_v59  ;;  %v27274_v59 = vsel %vm22240_vm13, %v18627_v10, %v13221_v54  ;;  %v13240_v61 = vcombine.high %v27262_v22, %v27266_v30  ;;  %v12590_v9 = vpack.c.bf16 %v12578_v38, %v12576_v36  ;;  %v21268_v17 = vld [vmem:[#allocation4 + $0x520] ss:$8 sps:$4 sm:$0xff]   ;;  %v21273_v21 = vld [vmem:[#allocation4 + $0x434] ss:$8 sps:$4 sm:$0xff]   ;;  %v21274_v55 = vld [vmem:[#allocation4 + $0x510] ss:$8 sps:$4 sm:$0xff]  }
 0x6d9   :  { %13806 = vmatprep.subr.bf16.mxu0 %v21214_v56  ;;  %12813 = vmatpush2.bf16.msra.mxu1 %v21201_v47  ;;  %v27270_v47 = vsel %vm22240_vm13, %v18626_v15, %v13217_v18  ;;  %v21262_v56 = vld [vmem:[#allocation4 + $0x530] ss:$8 sps:$4 sm:$0xff]   ;;  %v21265_v39 = vld [vmem:[#allocation4 + $0x440] ss:$8 sps:$4 sm:$0xff]   ;;  %v21279_v3 = vld [vmem:[#allocation4 + $0x424] ss:$8 sps:$4 sm:$0xff]  }
 0x6da   :  { %12814 = vmatprep.subr.bf16.mxu1 %v21209_v20  ;;  %v13242_v20 = vcombine.high %v27270_v47, %v27274_v59  ;;  %v21271_v32 = vld [vmem:[#allocation4 + $0x430] ss:$8 sps:$4 sm:$0xff]   ;;  %v21280_v28 = vld [vmem:[#allocation4 + $0x500] ss:$8 sps:$4 sm:$0xff]   ;;  %v21288_v40 = vld [vmem:[#allocation4 + $0x5f4] ss:$8 sps:$4 sm:$0xff]  }
 0x6db   :  { %v21277_v7 = vld [vmem:[#allocation4 + $0x420] ss:$8 sps:$4 sm:$0xff]   ;;  %v21285_v44 = vld [vmem:[#allocation4 + $0x414] ss:$8 sps:$4 sm:$0xff]   ;;  %v21286_v45 = vld [vmem:[#allocation4 + $0x5f0] ss:$8 sps:$4 sm:$0xff]  }
 0x6dc   :  { %13807 = vmatpush1.bf16.msra.mxu0 %v21212_v42  ;;  %v21267_v42 = vld [vmem:[#allocation4 + $0x444] ss:$8 sps:$4 sm:$0xff]   ;;  %v13256_v34 = vpack.c.bf16 %v13242_v20, %v13240_v61  ;;  %v21292_v57 = vld [vmem:[#allocation4 + $0x5e0] ss:$8 sps:$4 sm:$0xff]   ;;  %v21300_v8 = vld [vmem:[#allocation4 + $0x5d4] ss:$8 sps:$4 sm:$0xff]  }
 0x6dd   :  { %13808 = vmatprep.subr.bf16.mxu0 %v21228_v58  ;;  %12815 = vmatpush2.bf16.msra.mxu1 %v21207_v60  ;;  %v21282_v58 = vld [vmem:[#allocation4 + $0x504] ss:$8 sps:$4 sm:$0xff]   ;;  %v21283_v60 = vld [vmem:[#allocation4 + $0x410] ss:$8 sps:$4 sm:$0xff]   ;;  %v21297_v14 = vld [vmem:[#allocation4 + $0x4f4] ss:$8 sps:$4 sm:$0xff]  }
 0x6de   :  { %13451 = vmatprep.subr.bf16.mxu1 %v21217_v6  ;;  %v21294_v63 = vld [vmem:[#allocation4 + $0x5e4] ss:$8 sps:$4 sm:$0xff]   ;;  %v21289_v6 = vld [vmem:[#allocation4 + $0x400] ss:$8 sps:$4 sm:$0xff]   ;;  %v21298_v43 = vld [vmem:[#allocation4 + $0x5d0] ss:$8 sps:$4 sm:$0xff]  }
 0x6df   :  { %13141 = vmatmul.mubr.bf16.gmra.mxu0 %v12903_v50  ;;  %v21291_v35 = vld [vmem:[#allocation4 + $0x404] ss:$8 sps:$4 sm:$0xff]   ;;  %v21304_v52 = vld [vmem:[#allocation4 + $0x5c0] ss:$8 sps:$4 sm:$0xff]   ;;  %v21309_v2 = vld [vmem:[#allocation4 + $0x4d4] ss:$8 sps:$4 sm:$0xff]  }
 0x6e0   :  { %13809 = vmatpush1.bf16.msra.mxu0 %v21226_v0  ;;  %13836 = vmatprep.mubr.bf16.mxu0 %v13609_v29  ;;  %v21306_v50 = vld [vmem:[#allocation4 + $0x5c4] ss:$8 sps:$4 sm:$0xff]   ;;  %v21295_v0 = vld [vmem:[#allocation4 + $0x4f0] ss:$8 sps:$4 sm:$0xff]   ;;  %v21301_v11 = vld [vmem:[#allocation4 + $0x4e0] ss:$8 sps:$4 sm:$0xff]  }
 0x6e1   :  { %12817 = vmatmul.mubr.bf16.vlgmr.msra.gmra.mxu1 %v12588_v5  ;;  %13810 = vmatprep.subr.bf16.mxu0 %v21246_v33  ;;  %v21303_v49 = vld [vmem:[#allocation4 + $0x4e4] ss:$8 sps:$4 sm:$0xff]   ;;  %v21312_v33 = vld [vmem:[#allocation4 + $0x5b4] ss:$8 sps:$4 sm:$0xff]   ;;  %v21310_v15 = vld [vmem:[#allocation4 + $0x5b0] ss:$8 sps:$4 sm:$0xff]  }
 0x6e2   :  { %12826 = vmatprep.mubr.bf16.mxu1 %v12591_v37  ;;  %13452 = vmatpush1.bf16.msra.mxu1 %v21215_v12  ;;  %v21340_v18 = vld [vmem:[#allocation3 + $0x170] ss:$-280 sps:$4 sm:$0xcc]   ;;  %v21342_v10 = vld [vmem:[#allocation3 + $0x174] ss:$-280 sps:$4 sm:$0x33]  }
 0x6e3   :  { %13453 = vmatprep.subr.bf16.mxu1 %v21231_v1  ;;  %v21318_v54 = vld [vmem:[#allocation4 + $0x5a4] ss:$8 sps:$4 sm:$0xff]   ;;  %v21343_v12 = vld [vmem:[#allocation3 + $0x138] ss:$-208 sps:$4 sm:$0xcc]   ;;  %v18668_v61 = vrot.slane %v21340_v18, 10 }
 0x6e4   :  { %13811 = vmatpush1.bf16.msra.mxu0 %v21244_v16  ;;  %v21345_v1 = vld [vmem:[#allocation3 + $0x13c] ss:$-208 sps:$4 sm:$0x33]   ;;  %v21346_v29 = vld [vmem:[#allocation3 + $0xf8] ss:$-112 sps:$4 sm:$0xcc]  }
 0x6e5   :  { %13812 = vmatprep.subr.bf16.mxu0 %v21264_v31  ;;  %v21307_v5 = vld [vmem:[#allocation4 + $0x4d0] ss:$8 sps:$4 sm:$0xff]   ;;  %v21348_v16 = vld [vmem:[#allocation3 + $0xfc] ss:$-112 sps:$4 sm:$0x33]   ;;  %v13578_v20 = vrot.slane %v21342_v10, 6 }
 0x6e6   :  { %13454 = vmatpush1.bf16.msra.mxu1 %v21229_v19  ;;  %v21349_v31 = vld [vmem:[#allocation3 + $0x168] ss:$16 sps:$4 sm:$0xcc]   ;;  %v21351_v37 = vld [vmem:[#allocation3 + $0x16c] ss:$16 sps:$4 sm:$0x33]  }
 0x6e7   :  { %13455 = vmatprep.subr.bf16.mxu1 %v21249_v41  ;;  %v21315_v19 = vld [vmem:[#allocation4 + $0x4c4] ss:$8 sps:$4 sm:$0xff]   ;;  %v21313_v36 = vld [vmem:[#allocation4 + $0x4c0] ss:$8 sps:$4 sm:$0xff]   ;;  %v21324_v41 = vld [vmem:[#allocation4 + $0x594] ss:$8 sps:$4 sm:$0xff]  }
 0x6e8   :  { %13813 = vmatpush1.bf16.msra.mxu0 %v21262_v56  ;;  %v21316_v38 = vld [vmem:[#allocation4 + $0x5a0] ss:$8 sps:$4 sm:$0xff]   ;;  %v18669_v56 = vrot.slane %v21343_v12, 10 }
 0x6e9   :  { %12827 = vmatmul.mubr.bf16.gmra.mxu1 %v12590_v9  ;;  %13814 = vmatprep.subr.bf16.mxu0 %v21270_v26  ;;  %v13582_v26 = vrot.slane %v21345_v1, 6  ;;  %v13586_v9 = vrot.slane %v21348_v16, 6  ;;  %v21333_v1 = vld [vmem:[#allocation4 + $0x494] ss:$8 sps:$4 sm:$0xff]  }
 0x6ea   :  { %13456 = vmatpush1.bf16.msra.mxu1 %v21247_v53  ;;  %13483 = vmatprep.mubr.bf16.mxu1 %v13256_v34  ;;  %v18670_v53 = vrot.slane %v21346_v29, 10  ;;  %v13590_v34 = vrot.slane %v21351_v37, 6  ;;  %v21334_v37 = vld [vmem:[#allocation4 + $0x770] ss:$8 sps:$4 sm:$0xff]  }
 0x6eb   :  { %13457 = vmatprep.subr.bf16.mxu1 %v21267_v42  ;;  %v18671_v42 = vrot.slane %v21349_v31, 10 }
 0x6ec   :  { %13815 = vmatpush1.bf16.msra.mxu0 %v21268_v17  ;;  %v21321_v17 = vld [vmem:[#allocation4 + $0x4b4] ss:$8 sps:$4 sm:$0xff]  }
 0x6ed   :  { %13816 = vmatprep.subr.bf16.mxu0 %v21276_v4  ;;  %v21322_v4 = vld [vmem:[#allocation4 + $0x590] ss:$8 sps:$4 sm:$0xff]  }
 0x6ee   :  { %13458 = vmatpush1.bf16.msra.mxu1 %v21265_v39  ;;  %v21330_v39 = vld [vmem:[#allocation4 + $0x584] ss:$8 sps:$4 sm:$0xff]  }
 0x6ef   :  { %13459 = vmatprep.subr.bf16.mxu1 %v21273_v21  ;;  %v21319_v21 = vld [vmem:[#allocation4 + $0x4b0] ss:$8 sps:$4 sm:$0xff]  }
 0x6f0   :  { %13817 = vmatpush1.bf16.msra.mxu0 %v21274_v55  ;;  %v21376_v55 = vld [vmem:[#allocation3 + $0xd8] ss:$-88 sps:$4 sm:$0xee]  }
 0x6f1   :  { %13818 = vmatprep.subr.bf16.mxu0 %v21282_v58  ;;  %v21378_v58 = vld [vmem:[#allocation3 + $0xdc] ss:$-88 sps:$4 sm:$0x11]   ;;  %v18744_v18 = vrot.slane %v21376_v55, 9 }
 0x6f2   :  { %13460 = vmatpush1.bf16.msra.mxu1 %v21271_v32  ;;  %v27282_v32 = vld [vmem:[#allocation3 + $0xa0] ss:$80 sps:$4 sm:$0xee]   ;;  %v14229_v10 = vrot.slane %v21378_v58, 5 }
 0x6f3   :  { %13461 = vmatprep.subr.bf16.mxu1 %v21279_v3  ;;  %v27284_v3 = vld [vmem:[#allocation3 + $0xa4] ss:$80 sps:$4 sm:$0x11]  }
 0x6f4   :  { %13819 = vmatpush1.bf16.msra.mxu0 %v21280_v28  ;;  %v13592_v28 = vcombine.low %v27228_v48, %v27232_v13  ;;  %v27300_v48 = vsel %vm22494_vm6, %v18670_v53, %v13586_v9  ;;  %v27304_v13 = vsel %vm22494_vm6, %v18671_v42, %v13590_v34  ;;  %v14233_v12 = vrot.slane %v27284_v3, 5  ;;  %v21331_v9 = vld [vmem:[#allocation4 + $0x490] ss:$8 sps:$4 sm:$0xff]  }
 0x6f5   :  { %13820 = vmatprep.subr.bf16.mxu0 %v21288_v40  ;;  %v13594_v40 = vcombine.low %v27236_v62, %v27240_v46  ;;  %v21358_v62 = vld [vmem:[#allocation3 + $0x170] ss:$-280 sps:$4 sm:$0xee]   ;;  %v21360_v46 = vld [vmem:[#allocation3 + $0x174] ss:$-280 sps:$4 sm:$0x11]   ;;  %v27314_v34 = vsel %vm22240_vm13, %v18744_v18, %v14229_v10  ;;  %v13598_v58 = vcombine.low %v27300_v48, %v27304_v13 }
 0x6f6   :  { %13462 = vmatpush1.bf16.msra.mxu1 %v21277_v7  ;;  %v21327_v7 = vld [vmem:[#allocation4 + $0x4a4] ss:$8 sps:$4 sm:$0xff]   ;;  %v21395_v10 = vld [vmem:[#allocation4 + $0x730] ss:$8 sps:$4 sm:$0xff]  }
 0x6f7   :  { %13463 = vmatprep.subr.bf16.mxu1 %v21285_v44  ;;  %v21382_v44 = vld [vmem:[#allocation3 + $0x60] ss:$200 sps:$4 sm:$0xee]  }
 0x6f8   :  { %13821 = vmatpush2.bf16.msra.mxu0 %v21286_v45  ;;  %v21384_v45 = vld [vmem:[#allocation3 + $0x64] ss:$200 sps:$4 sm:$0x11]   ;;  %v18746_v29 = vrot.slane %v21382_v44, 9  ;;  %v21372_v44 = vld [vmem:[#allocation4 + $0x754] ss:$8 sps:$4 sm:$0xff]  }
 0x6f9   :  { %13822 = vmatprep.subr.bf16.mxu0 %v21294_v63  ;;  %v21385_v63 = vld [vmem:[#allocation3 + $0xb0] ss:$-8 sps:$4 sm:$0xee]  }
 0x6fa   :  { %13464 = vmatpush1.bf16.msra.mxu1 %v21283_v60  ;;  %v21328_v60 = vld [vmem:[#allocation4 + $0x580] ss:$8 sps:$4 sm:$0xff]   ;;  %v18747_v16 = vrot.slane %v21385_v63, 9 }
 0x6fb   :  { %13465 = vmatprep.subr.bf16.mxu1 %v21291_v35  ;;  %v27292_v35 = vsel %vm22494_vm6, %v18668_v61, %v13578_v20  ;;  %v21354_v61 = vld [vmem:[#allocation4 + $0x764] ss:$8 sps:$4 sm:$0xff]  }
 0x6fc   :  { %13823 = vmatpush2.bf16.msra.mxu0 %v21292_v57  ;;  %v27296_v57 = vsel %vm22494_vm6, %v18669_v56, %v13582_v26 }
 0x6fd   :  { %13824 = vmatprep.subr.bf16.mxu0 %v21300_v8  ;;  %v21361_v8 = vld [vmem:[#allocation3 + $0x138] ss:$-208 sps:$4 sm:$0xee]   ;;  %v13596_v55 = vcombine.low %v27292_v35, %v27296_v57 }
 0x6fe   :  { %13466 = vmatpush1.bf16.msra.mxu1 %v21289_v6  ;;  %v21363_v6 = vld [vmem:[#allocation3 + $0x13c] ss:$-208 sps:$4 sm:$0x11]  }
 0x6ff   :  { %13467 = vmatprep.subr.bf16.mxu1 %v21297_v14  ;;  %v21387_v14 = vld [vmem:[#allocation3 + $0xb4] ss:$-8 sps:$4 sm:$0x11]  }
 0x700   :  { %13825 = vmatpush2.bf16.msra.mxu0 %v21298_v43  ;;  %v21336_v43 = vld [vmem:[#allocation4 + $0x774] ss:$8 sps:$4 sm:$0xff]   ;;  %v14241_v31 = vrot.slane %v21387_v14, 5  ;;  %v21355_v14 = vld [vmem:[#allocation4 + $0x670] ss:$8 sps:$4 sm:$0xff]  }
 0x701   :  { %13826 = vmatprep.subr.bf16.mxu0 %v21306_v50  ;;  %v21364_v50 = vld [vmem:[#allocation3 + $0xf8] ss:$-112 sps:$4 sm:$0xee]  }
 0x702   :  { %13468 = vmatpush2.bf16.msra.mxu1 %v21295_v0  ;;  %v21366_v0 = vld [vmem:[#allocation3 + $0xfc] ss:$-112 sps:$4 sm:$0x11]   ;;  %v18630_v20 = vrot.slane %v21364_v50, 9 }
 0x703   :  { %13469 = vmatprep.subr.bf16.mxu1 %v21303_v49  ;;  %v21367_v49 = vld [vmem:[#allocation3 + $0x168] ss:$16 sps:$4 sm:$0xee]   ;;  %v13233_v56 = vrot.slane %v21366_v0, 5  ;;  %v21375_v0 = vld [vmem:[#allocation4 + $0x664] ss:$8 sps:$4 sm:$0xff]  }
 0x704   :  { %13827 = vmatpush2.bf16.msra.mxu0 %v21304_v52  ;;  %v13608_v52 = vpack.c.bf16 %v13594_v40, %v13592_v28  ;;  %v18631_v26 = vrot.slane %v21367_v49, 9  ;;  %v21397_v49 = vld [vmem:[#allocation4 + $0x734] ss:$8 sps:$4 sm:$0xff]  }
 0x705   :  { %13828 = vmatprep.subr.bf16.mxu0 %v21312_v33  ;;  %v21369_v33 = vld [vmem:[#allocation3 + $0x16c] ss:$16 sps:$4 sm:$0x11]   ;;  %v13234_v40 = vsel %vm22240_vm13, %v18630_v20, %v13233_v56  ;;  %v21413_v20 = vld [vmem:[#allocation4 + $0x700] ss:$8 sps:$4 sm:$0xff]  }
 0x706   :  { %13470 = vmatpush2.bf16.msra.mxu1 %v21301_v11  ;;  %v13597_v11 = vcombine.high %v27292_v35, %v27296_v57  ;;  %v13237_v53 = vrot.slane %v21369_v33, 5  ;;  %v13239_v35 = vcombine.low %v27262_v22, %v27266_v30  ;;  %v13241_v57 = vcombine.low %v27270_v47, %v27274_v59  ;;  %v21388_v30 = vld [vmem:[#allocation4 + $0x740] ss:$8 sps:$4 sm:$0xff]   ;;  %v21393_v33 = vld [vmem:[#allocation4 + $0x654] ss:$8 sps:$4 sm:$0xff]  }
 0x707   :  { %13471 = vmatprep.subr.bf16.mxu1 %v21309_v2  ;;  %v13599_v2 = vcombine.high %v27300_v48, %v27304_v13  ;;  %v21357_v48 = vld [vmem:[#allocation4 + $0x674] ss:$8 sps:$4 sm:$0xff]   ;;  %v13870_v47 = vld [vmem:[#allocation3 + $0x128] sm:$0xf] }
 0x708   :  { %13829 = vmatpush2.bf16.msra.mxu0 %v21310_v15  ;;  %v21325_v15 = vld [vmem:[#allocation4 + $0x4a0] ss:$8 sps:$4 sm:$0xff]   ;;  %v13255_v50 = vpack.c.bf16 %v13241_v57, %v13239_v35  ;;  %v21421_v56 = vld [vmem:[#allocation4 + $0x7f4] ss:$8 sps:$4 sm:$0xff]  }
 0x709   :  { %13830 = vmatprep.subr.bf16.mxu0 %v21318_v54  ;;  %v18745_v54 = vrot.slane %v27282_v32, 9  ;;  %v13611_v42 = vpack.c.bf16 %v13599_v2, %v13597_v11  ;;  %v21352_v32 = vld [vmem:[#allocation4 + $0x760] ss:$8 sps:$4 sm:$0xff]   ;;  %v21442_v57 = vld [vmem:[#allocation4 + $0x6d4] ss:$8 sps:$4 sm:$0xff]  }
 0x70a   :  { %13472 = vmatpush2.bf16.msra.mxu1 %v21307_v5  ;;  %v14237_v5 = vrot.slane %v21384_v45, 5  ;;  %v21337_v45 = vld [vmem:[#allocation4 + $0x480] ss:$8 sps:$4 sm:$0xff]  }
 0x70b   :  { %13473 = vmatprep.subr.bf16.mxu1 %v21315_v19  ;;  %v18628_v19 = vrot.slane %v21358_v62, 9  ;;  %v13872_v59 = vld [vmem:[#allocation3 + $0xa8] sm:$0xf] }
 0x70c   :  { %13831 = vmatpush2.bf16.msra.mxu0 %v21316_v38  ;;  %v18629_v38 = vrot.slane %v21361_v8, 9  ;;  %v13610_v8 = vpack.c.bf16 %v13598_v58, %v13596_v55  ;;  %v18707_v18 = vcombine.low %v13870_v47, %v13872_v59  ;;  %v21424_v55 = vld [vmem:[#allocation4 + $0x604] ss:$8 sps:$4 sm:$0xff]   ;;  %v21425_v58 = vld [vmem:[#allocation4 + $0x7e0] ss:$8 sps:$4 sm:$0xff]  }
 0x70d   :  { %13832 = vmatprep.subr.bf16.mxu0 %v21324_v41  ;;  %v13229_v41 = vrot.slane %v21363_v6, 5  ;;  %v21390_v6 = vld [vmem:[#allocation4 + $0x744] ss:$8 sps:$4 sm:$0xff]   ;;  %v21434_v35 = vld [vmem:[#allocation4 + $0x6e0] ss:$8 sps:$4 sm:$0xff]  }
 0x70e   :  { %13474 = vmatpush2.bf16.msra.mxu1 %v21313_v36  ;;  %v13225_v36 = vrot.slane %v21360_v46, 5  ;;  %v21370_v46 = vld [vmem:[#allocation4 + $0x750] ss:$8 sps:$4 sm:$0xff]   ;;  %v21481_v59 = vld [vmem:[#allocation3 + $0x14c] ss:$-144 sps:$4 sm:$0x11]  }
 0x70f   :  { %13475 = vmatprep.subr.bf16.mxu1 %v21321_v17  ;;  %v21339_v17 = vld [vmem:[#allocation4 + $0x484] ss:$8 sps:$4 sm:$0xff]   ;;  %v13230_v28 = vsel %vm22240_vm13, %v18629_v38, %v13229_v41  ;;  %v21404_v41 = vld [vmem:[#allocation4 + $0x630] ss:$8 sps:$4 sm:$0xff]  }
 0x710   :  { %13833 = vmatpush2.bf16.msra.mxu0 %v21322_v4  ;;  %v27318_v4 = vsel %vm22240_vm13, %v18745_v54, %v14233_v12  ;;  %v13226_v3 = vsel %vm22240_vm13, %v18628_v19, %v13225_v36  ;;  %v21403_v54 = vld [vmem:[#allocation4 + $0x724] ss:$8 sps:$4 sm:$0xff]   ;;  %v21391_v12 = vld [vmem:[#allocation4 + $0x650] ss:$8 sps:$4 sm:$0xff]   ;;  %v21406_v19 = vld [vmem:[#allocation4 + $0x634] ss:$8 sps:$4 sm:$0xff]  }
 0x711   :  { %13834 = vmatprep.subr.bf16.mxu0 %v21330_v39  ;;  %v27322_v39 = vsel %vm22240_vm13, %v18746_v29, %v14237_v5  ;;  %v14260_v63 = vcombine.high %v27314_v34, %v27318_v4  ;;  %v13244_v13 = vcombine.high %v13226_v3, %v13230_v28  ;;  %v13243_v11 = vcombine.low %v13226_v3, %v13230_v28  ;;  %v21407_v36 = vld [vmem:[#allocation4 + $0x710] ss:$8 sps:$4 sm:$0xff]   ;;  %v21415_v38 = vld [vmem:[#allocation4 + $0x704] ss:$8 sps:$4 sm:$0xff]   ;;  %v21422_v3 = vld [vmem:[#allocation4 + $0x600] ss:$8 sps:$4 sm:$0xff]  }
 0x712   :  { %13476 = vmatpush2.bf16.msra.mxu1 %v21319_v21  ;;  %v27326_v21 = vsel %vm22240_vm13, %v18747_v16, %v14241_v31  ;;  %v21401_v16 = vld [vmem:[#allocation4 + $0x720] ss:$8 sps:$4 sm:$0xff]   ;;  %v21409_v31 = vld [vmem:[#allocation4 + $0x714] ss:$8 sps:$4 sm:$0xff]  }
 0x713   :  { %13477 = vmatprep.subr.bf16.mxu1 %v21327_v7  ;;  %v13238_v7 = vsel %vm22240_vm13, %v18631_v26, %v13237_v53  ;;  %v21410_v26 = vld [vmem:[#allocation4 + $0x620] ss:$8 sps:$4 sm:$0xff]   ;;  %v21418_v53 = vld [vmem:[#allocation4 + $0x614] ss:$8 sps:$4 sm:$0xff]  }
 0x714   :  { %13835 = vmatpush2.bf16.msra.mxu0 %v21328_v60  ;;  %v14262_v60 = vcombine.high %v27322_v39, %v27326_v21  ;;  %v13246_v62 = vcombine.high %v13234_v40, %v13238_v7  ;;  %v13245_v2 = vcombine.low %v13234_v40, %v13238_v7  ;;  %v21430_v28 = vld [vmem:[#allocation4 + $0x6f4] ss:$8 sps:$4 sm:$0xff]   ;;  %v21431_v40 = vld [vmem:[#allocation4 + $0x7d0] ss:$8 sps:$4 sm:$0xff]   ;;  %v21439_v7 = vld [vmem:[#allocation4 + $0x7c4] ss:$8 sps:$4 sm:$0xff]  }
 0x715   :  { %14471 = vmatprep.subr.bf16.mxu0 %v21336_v43  ;;  %v21479_v47 = vld [vmem:[#allocation3 + $0x148] ss:$-144 sps:$4 sm:$0xee]  }
 0x716   :  { %13478 = vmatpush2.bf16.msra.mxu1 %v21325_v15  ;;  %v14276_v43 = vpack.c.bf16 %v14262_v60, %v14260_v63  ;;  %v13258_v22 = vpack.c.bf16 %v13246_v62, %v13244_v13  ;;  %v21394_v15 = vld [vmem:[#allocation3 + $0x80] ss:$112 sps:$4 sm:$0xff]   ;;  %v13257_v29 = vpack.c.bf16 %v13245_v2, %v13243_v11  ;;  %v21445_v60 = vld [vmem:[#allocation4 + $0x7b4] ss:$8 sps:$4 sm:$0xff]   ;;  %v21451_v62 = vld [vmem:[#allocation4 + $0x7a4] ss:$8 sps:$4 sm:$0xff]  }
 0x717   :  { %13479 = vmatprep.subr.bf16.mxu1 %v21333_v1  ;;  %13837 = vmatmul.mubr.bf16.vlgmr.msra.gmra.mxu0 %v13608_v52  ;;  %v21373_v52 = vld [vmem:[#allocation4 + $0x660] ss:$8 sps:$4 sm:$0xff]   ;;  %v21400_v1 = vld [vmem:[#allocation4 + $0x644] ss:$8 sps:$4 sm:$0xff]   ;;  %v13922_v5 = vpack.c.bf16 %v18707_v18, %v21394_v15  ;;  %v21440_v13 = vld [vmem:[#allocation4 + $0x6d0] ss:$8 sps:$4 sm:$0xff]  }
 0x718   :  { %13846 = vmatprep.mubr.bf16.mxu0 %v13611_v42  ;;  %14472 = vmatpush1.bf16.msra.mxu0 %v21334_v37  ;;  %v21398_v37 = vld [vmem:[#allocation4 + $0x640] ss:$8 sps:$4 sm:$0xff]   ;;  %v21427_v42 = vld [vmem:[#allocation4 + $0x7e4] ss:$8 sps:$4 sm:$0xff]  }
 0x719   :  { %14473 = vmatprep.subr.bf16.mxu0 %v21354_v61  ;;  %v21412_v61 = vld [vmem:[#allocation4 + $0x624] ss:$8 sps:$4 sm:$0xff]   ;;  %v21437_v63 = vld [vmem:[#allocation4 + $0x7c0] ss:$8 sps:$4 sm:$0xff]  }
 0x71a   :  { %13480 = vmatpush2.bf16.msra.mxu1 %v21331_v9  ;;  %v21419_v9 = vld [vmem:[#allocation4 + $0x7f0] ss:$8 sps:$4 sm:$0xff]   ;;  %v21446_v11 = vld [vmem:[#allocation4 + $0x6c0] ss:$8 sps:$4 sm:$0xff]  }
 0x71b   :  { %13481 = vmatprep.subr.bf16.mxu1 %v21339_v17  ;;  %v21416_v17 = vld [vmem:[#allocation4 + $0x610] ss:$8 sps:$4 sm:$0xff]  }
 0x71c   :  { %14474 = vmatpush1.bf16.msra.mxu0 %v21352_v32  ;;  %v21433_v32 = vld [vmem:[#allocation4 + $0x7d4] ss:$8 sps:$4 sm:$0xff]  }
 0x71d   :  { %14475 = vmatprep.subr.bf16.mxu0 %v21372_v44  ;;  %v21428_v44 = vld [vmem:[#allocation4 + $0x6f0] ss:$8 sps:$4 sm:$0xff]  }
 0x71e   :  { %13482 = vmatpush2.bf16.msra.mxu1 %v21337_v45  ;;  %v21436_v45 = vld [vmem:[#allocation4 + $0x6e4] ss:$8 sps:$4 sm:$0xff]  }
 0x71f   :  { %14118 = vmatprep.subr.bf16.mxu1 %v21357_v48  ;;  %13847 = vmatmul.mubr.bf16.gmra.mxu0 %v13610_v8  ;;  %v21443_v48 = vld [vmem:[#allocation4 + $0x7b0] ss:$8 sps:$4 sm:$0xff]  }
 0x720   :  { %14476 = vmatpush1.bf16.msra.mxu0 %v21370_v46  ;;  %14503 = vmatprep.mubr.bf16.mxu0 %v14276_v43  ;;  %v14191_v46 = vld [vmem:[#allocation3 + $0x30] sm:$0x1e] }
 0x721   :  { %13484 = vmatmul.mubr.bf16.vlgmr.msra.gmra.mxu1 %v13255_v50  ;;  %14477 = vmatprep.subr.bf16.mxu0 %v21390_v6  ;;  %v14192_v8 = vld [vmem:[#allocation3 + $0x50] sm:$0x1e]  ;;  %v21448_v6 = vld [vmem:[#allocation4 + $0x6c4] ss:$8 sps:$4 sm:$0xff]  }
 0x722   :  { %13493 = vmatprep.mubr.bf16.mxu1 %v13258_v22  ;;  %14119 = vmatpush1.bf16.msra.mxu1 %v21355_v14  ;;  %v21473_v14 = vld [vmem:[#allocation3 + $0xe0] ss:$-80 sps:$4 sm:$0xee]   ;;  %v21475_v43 = vld [vmem:[#allocation3 + $0xe4] ss:$-80 sps:$4 sm:$0x11]   ;;  %v14223_v22 = vcombine.low %v14191_v46, %v14192_v8 }
 0x723   :  { %14120 = vmatprep.subr.bf16.mxu1 %v21375_v0  ;;  %v21476_v50 = vld [vmem:[#allocation3 + $0x78] ss:$88 sps:$4 sm:$0xee]   ;;  %v21478_v0 = vld [vmem:[#allocation3 + $0x7c] ss:$88 sps:$4 sm:$0x11]  }
 0x724   :  { %14478 = vmatpush1.bf16.msra.mxu0 %v21388_v30  ;;  %v14224_v30 = vcombine.high %v14191_v46, %v14192_v8  ;;  %v18748_v2 = vrot.slane %v21473_v14, 9  ;;  %v18749_v15 = vrot.slane %v21476_v50, 9  ;;  %v14249_v18 = vrot.slane %v21478_v0, 5  ;;  %v21470_v46 = vld [vmem:[#allocation4 + $0x680] ss:$8 sps:$4 sm:$0xff]  }
 0x725   :  { %14479 = vmatprep.subr.bf16.mxu0 %v21397_v49  ;;  %v21449_v49 = vld [vmem:[#allocation4 + $0x7a0] ss:$8 sps:$4 sm:$0xff]   ;;  %v21489_v0 = vld [vmem:[#allocation4 + $0x874] ss:$8 sps:$4 sm:$0xff]  }
 0x726   :  { %14121 = vmatpush1.bf16.msra.mxu1 %v21373_v52  ;;  %v21457_v52 = vld [vmem:[#allocation4 + $0x794] ss:$8 sps:$4 sm:$0xff]   ;;  %v21497_v14 = vld [vmem:[#allocation3] ss:$280 sps:$4 sm:$0xff]  }
 0x727   :  { %14122 = vmatprep.subr.bf16.mxu1 %v21393_v33  ;;  %v14245_v33 = vrot.slane %v21475_v43, 5  ;;  %v21498_v43 = vld [vmem:[#allocation3 + $0x110] ss:$-200 sps:$4 sm:$0xff]  }
 0x728   :  { %14480 = vmatpush1.bf16.msra.mxu0 %v21395_v10  ;;  %v21454_v10 = vld [vmem:[#allocation4 + $0x6b4] ss:$8 sps:$4 sm:$0xff]   ;;  %v21486_v50 = vld [vmem:[#allocation3 + $0x60] ss:$80 sps:$4 sm:$0xff]  }
 0x729   :  { %13494 = vmatmul.mubr.bf16.gmra.mxu1 %v13257_v29  ;;  %14481 = vmatprep.subr.bf16.mxu0 %v21403_v54  ;;  %v18750_v54 = vrot.slane %v14223_v22, 9  ;;  %v14257_v29 = vrot.slane %v21481_v59, 5  ;;  %v21491_v59 = vld [vmem:[#allocation4 + $0x950] ss:$8 sps:$4 sm:$0xff]  }
 0x72a   :  { %14123 = vmatpush1.bf16.msra.mxu1 %v21391_v12  ;;  %14150 = vmatprep.mubr.bf16.mxu1 %v13922_v5  ;;  %v14253_v12 = vrot.slane %v14224_v30, 5  ;;  %v21455_v5 = vld [vmem:[#allocation4 + $0x790] ss:$8 sps:$4 sm:$0xff]  }
 0x72b   :  { %14124 = vmatprep.subr.bf16.mxu1 %v21400_v1  ;;  %v18751_v1 = vrot.slane %v21479_v47, 9  ;;  %v21490_v30 = vld [vmem:[#allocation3 + $0x50] ss:$104 sps:$4 sm:$0xff]  }
 0x72c   :  { %14482 = vmatpush1.bf16.msra.mxu0 %v21401_v16  ;;  %v21463_v16 = vld [vmem:[#allocation4 + $0x784] ss:$8 sps:$4 sm:$0xff]  }
 0x72d   :  { %14483 = vmatprep.subr.bf16.mxu0 %v21409_v31  ;;  %v21452_v31 = vld [vmem:[#allocation4 + $0x6b0] ss:$8 sps:$4 sm:$0xff]  }
 0x72e   :  { %14125 = vmatpush1.bf16.msra.mxu1 %v21398_v37  ;;  %v21460_v37 = vld [vmem:[#allocation4 + $0x6a4] ss:$8 sps:$4 sm:$0xff]  }
 0x72f   :  { %14126 = vmatprep.subr.bf16.mxu1 %v21406_v19  ;;  %v14246_v19 = vsel %vm22240_vm13, %v18748_v2, %v14245_v33 }
 0x730   :  { %14484 = vmatpush1.bf16.msra.mxu0 %v21407_v36  ;;  %v14250_v36 = vsel %vm22240_vm13, %v18749_v15, %v14249_v18  ;;  %v21501_v15 = vld [vmem:[#allocation4 + $0x944] ss:$8 sps:$4 sm:$0xff]  }
 0x731   :  { %14485 = vmatprep.subr.bf16.mxu0 %v21415_v38  ;;  %v14254_v38 = vsel %vm22240_vm13, %v18750_v54, %v14253_v12 }
 0x732   :  { %14127 = vmatpush1.bf16.msra.mxu1 %v21404_v41  ;;  %v14258_v41 = vsel %vm22240_vm13, %v18751_v1, %v14257_v29  ;;  %v21487_v1 = vld [vmem:[#allocation4 + $0x870] ss:$8 sps:$4 sm:$0xff]   ;;  %v14943_v29 = vpack.c.bf16 %v21498_v43, %v21497_v14  ;;  %v21539_v14 = vld [vmem:[#allocation4 + $0x904] ss:$8 sps:$4 sm:$0xff]  }
 0x733   :  { %14128 = vmatprep.subr.bf16.mxu1 %v21412_v61  ;;  %v21461_v61 = vld [vmem:[#allocation4 + $0x780] ss:$8 sps:$4 sm:$0xff]   ;;  %v21528_v43 = vld [vmem:[#allocation4 + $0x830] ss:$8 sps:$4 sm:$0xff]  }
 0x734   :  { %14486 = vmatpush1.bf16.msra.mxu0 %v21413_v20  ;;  %v14259_v20 = vcombine.low %v27314_v34, %v27318_v4  ;;  %v21482_v4 = vld [vmem:[#allocation4 + $0x960] ss:$8 sps:$4 sm:$0xff]  }
 0x735   :  { %14487 = vmatprep.subr.bf16.mxu0 %v21421_v56  ;;  %v14261_v56 = vcombine.low %v27322_v39, %v27326_v21  ;;  %v13876_v39 = vld [vmem:[#allocation3 + $0xd0] sm:$0xf]  ;;  %v21507_v21 = vld [vmem:[#allocation3 + $0xd8] ss:$-88 sps:$4 sm:$0xcc]  }
 0x736   :  { %14129 = vmatpush1.bf16.msra.mxu1 %v21410_v26  ;;  %v21469_v26 = vld [vmem:[#allocation4 + $0x974] ss:$8 sps:$4 sm:$0xff]  }
 0x737   :  { %14130 = vmatprep.subr.bf16.mxu1 %v21418_v53  ;;  %v21458_v53 = vld [vmem:[#allocation4 + $0x6a0] ss:$8 sps:$4 sm:$0xff]  }
 0x738   :  { %14488 = vmatpush2.bf16.msra.mxu0 %v21419_v9  ;;  %v14264_v9 = vcombine.high %v14246_v19, %v14250_v36 }
 0x739   :  { %14489 = vmatprep.subr.bf16.mxu0 %v21427_v42  ;;  %v14266_v42 = vcombine.high %v14254_v38, %v14258_v41 }
 0x73a   :  { %14131 = vmatpush1.bf16.msra.mxu1 %v21416_v17  ;;  %v21466_v17 = vld [vmem:[#allocation4 + $0x694] ss:$8 sps:$4 sm:$0xff]  }
 0x73b   :  { %14132 = vmatprep.subr.bf16.mxu1 %v21424_v55  ;;  %v21464_v55 = vld [vmem:[#allocation4 + $0x690] ss:$8 sps:$4 sm:$0xff]   ;;  %v14278_v34 = vpack.c.bf16 %v14266_v42, %v14264_v9 }
 0x73c   :  { %14490 = vmatpush2.bf16.msra.mxu0 %v21425_v58  ;;  %v21467_v58 = vld [vmem:[#allocation4 + $0x970] ss:$8 sps:$4 sm:$0xff]  }
 0x73d   :  { %14491 = vmatprep.subr.bf16.mxu0 %v21433_v32  ;;  %v14275_v32 = vpack.c.bf16 %v14261_v56, %v14259_v20  ;;  %v21521_v56 = vld [vmem:[#allocation4 + $0x934] ss:$8 sps:$4 sm:$0xff]   ;;  %v21502_v42 = vld [vmem:[#allocation3 + $0xe0] ss:$-104 sps:$4 sm:$0xff]  }
 0x73e   :  { %14133 = vmatpush1.bf16.msra.mxu1 %v21422_v3  ;;  %v21472_v3 = vld [vmem:[#allocation4 + $0x684] ss:$8 sps:$4 sm:$0xff]  }
 0x73f   :  { %14134 = vmatprep.subr.bf16.mxu1 %v21430_v28  ;;  %v21484_v28 = vld [vmem:[#allocation4 + $0x964] ss:$8 sps:$4 sm:$0xff]  }
 0x740   :  { %14492 = vmatpush2.bf16.msra.mxu0 %v21431_v40  ;;  %v13874_v40 = vld [vmem:[#allocation3 + $0x90] sm:$0xf] }
 0x741   :  { %14493 = vmatprep.subr.bf16.mxu0 %v21439_v7  ;;  %v21509_v7 = vld [vmem:[#allocation3 + $0xdc] ss:$-88 sps:$4 sm:$0x33]   ;;  %v18709_v22 = vcombine.low %v13874_v40, %v13876_v39 }
 0x742   :  { %14135 = vmatpush2.bf16.msra.mxu1 %v21428_v44  ;;  %v21510_v44 = vld [vmem:[#allocation3 + $0xa0] ss:$80 sps:$4 sm:$0xcc]   ;;  %v21527_v40 = vld [vmem:[#allocation4 + $0x924] ss:$8 sps:$4 sm:$0xff]  }
 0x743   :  { %14136 = vmatprep.subr.bf16.mxu1 %v21436_v45  ;;  %v21512_v45 = vld [vmem:[#allocation3 + $0xa4] ss:$80 sps:$4 sm:$0x33]  }
 0x744   :  { %14494 = vmatpush2.bf16.msra.mxu0 %v21437_v63  ;;  %v14263_v63 = vcombine.low %v14246_v19, %v14250_v36  ;;  %v14586_v2 = vrot.slane %v21512_v45, 6  ;;  %v21524_v45 = vld [vmem:[#allocation4 + $0x844] ss:$8 sps:$4 sm:$0xff]  }
 0x745   :  { %14495 = vmatprep.subr.bf16.mxu0 %v21445_v60  ;;  %v14265_v60 = vcombine.low %v14254_v38, %v14258_v41 }
 0x746   :  { %14137 = vmatpush2.bf16.msra.mxu1 %v21434_v35  ;;  %v21493_v35 = vld [vmem:[#allocation4 + $0x954] ss:$8 sps:$4 sm:$0xff]  }
 0x747   :  { %14138 = vmatprep.subr.bf16.mxu1 %v21442_v57  ;;  %v21513_v57 = vld [vmem:[#allocation3 + $0x60] ss:$200 sps:$4 sm:$0xcc]   ;;  %v14277_v47 = vpack.c.bf16 %v14265_v60, %v14263_v63 }
 0x748   :  { %14496 = vmatpush2.bf16.msra.mxu0 %v21443_v48  ;;  %v21515_v48 = vld [vmem:[#allocation3 + $0x64] ss:$200 sps:$4 sm:$0x33]   ;;  %v18786_v18 = vrot.slane %v21513_v57, 10 }
 0x749   :  { %14497 = vmatprep.subr.bf16.mxu0 %v21451_v62  ;;  %v21518_v62 = vld [vmem:[#allocation3 + $0xb4] ss:$-8 sps:$4 sm:$0x33]  }
 0x74a   :  { %14139 = vmatpush2.bf16.msra.mxu1 %v21440_v13  ;;  %v21516_v13 = vld [vmem:[#allocation3 + $0xb0] ss:$-8 sps:$4 sm:$0xcc]   ;;  %v14594_v12 = vrot.slane %v21518_v62, 6 }
 0x74b   :  { %14140 = vmatprep.subr.bf16.mxu1 %v21448_v6  ;;  %v21485_v6 = vld [vmem:[#allocation3 + $0xd8] ss:$-56 sps:$4 sm:$0xff]   ;;  %v18787_v54 = vrot.slane %v21516_v13, 10  ;;  %v21533_v13 = vld [vmem:[#allocation4 + $0x914] ss:$8 sps:$4 sm:$0xff]  }
 0x74c   :  { %14498 = vmatpush2.bf16.msra.mxu0 %v21449_v49  ;;  %v18784_v49 = vrot.slane %v21507_v21, 10  ;;  %v21504_v21 = vld [vmem:[#allocation4 + $0x850] ss:$8 sps:$4 sm:$0xff]  }
 0x74d   :  { %14499 = vmatprep.subr.bf16.mxu0 %v21457_v52  ;;  %v14582_v52 = vrot.slane %v21509_v7, 6  ;;  %v27374_v20 = vsel %vm22494_vm6, %v18787_v54, %v14594_v12  ;;  %v21563_v54 = vld [vmem:[#allocation4 + $0x9c4] ss:$8 sps:$4 sm:$0xff]   ;;  %v21552_v12 = vld [vmem:[#allocation4 + $0x8f0] ss:$8 sps:$4 sm:$0xff]  }
 0x74e   :  { %14141 = vmatpush2.bf16.msra.mxu1 %v21446_v11  ;;  %v18785_v11 = vrot.slane %v21510_v44, 10 }
 0x74f   :  { %14142 = vmatprep.subr.bf16.mxu1 %v21454_v10  ;;  %v14590_v10 = vrot.slane %v21515_v48, 6  ;;  %v27362_v19 = vsel %vm22494_vm6, %v18784_v49, %v14582_v52  ;;  %v21551_v49 = vld [vmem:[#allocation4 + $0x9e4] ss:$8 sps:$4 sm:$0xff]   ;;  %v21540_v52 = vld [vmem:[#allocation4 + $0x810] ss:$8 sps:$4 sm:$0xff]  }
 0x750   :  { %14500 = vmatpush2.bf16.msra.mxu0 %v21455_v5  ;;  %v13921_v5 = vpack.c.bf16 %v21486_v50, %v21485_v6  ;;  %v27366_v41 = vsel %vm22494_vm6, %v18785_v11, %v14586_v2  ;;  %v21531_v6 = vld [vmem:[#allocation4 + $0x910] ss:$8 sps:$4 sm:$0xff]   ;;  %v21536_v50 = vld [vmem:[#allocation4 + $0x824] ss:$8 sps:$4 sm:$0xff]   ;;  %v21549_v2 = vld [vmem:[#allocation4 + $0x9e0] ss:$8 sps:$4 sm:$0xff]  }
 0x751   :  { %14501 = vmatprep.subr.bf16.mxu0 %v21463_v16  ;;  %v21496_v16 = vld [vmem:[#allocation4 + $0x864] ss:$8 sps:$4 sm:$0xff]  }
 0x752   :  { %14143 = vmatpush2.bf16.msra.mxu1 %v21452_v31  ;;  %v13924_v31 = vpack.c.bf16 %v21490_v30, %v18709_v22  ;;  %v21545_v22 = vld [vmem:[#allocation4 + $0x9f4] ss:$8 sps:$4 sm:$0xff]   ;;  %v21534_v30 = vld [vmem:[#allocation4 + $0x820] ss:$8 sps:$4 sm:$0xff]   ;;  %v21548_v11 = vld [vmem:[#allocation4 + $0x804] ss:$8 sps:$4 sm:$0xff]  }
 0x753   :  { %14144 = vmatprep.subr.bf16.mxu1 %v21460_v37  ;;  %v21499_v37 = vld [vmem:[#allocation4 + $0x940] ss:$8 sps:$4 sm:$0xff]  }
 0x754   :  { %14502 = vmatpush2.bf16.msra.mxu0 %v21461_v61  ;;  %v27370_v61 = vsel %vm22494_vm6, %v18786_v18, %v14590_v10  ;;  %v21554_v18 = vld [vmem:[#allocation4 + $0x8f4] ss:$8 sps:$4 sm:$0xff]   ;;  %v21555_v10 = vld [vmem:[#allocation4 + $0x9d0] ss:$8 sps:$4 sm:$0xff]  }
 0x755   :  { %15139 = vmatprep.subr.bf16.mxu0 %v21469_v26 }
 0x756   :  { %14145 = vmatpush2.bf16.msra.mxu1 %v21458_v53  ;;  %v21494_v53 = vld [vmem:[#allocation4 + $0x860] ss:$8 sps:$4 sm:$0xff]  }
 0x757   :  { %14146 = vmatprep.subr.bf16.mxu1 %v21466_v17  ;;  %14504 = vmatmul.mubr.bf16.vlgmr.msra.gmra.mxu0 %v14275_v32  ;;  %v12473_v8 = vpop.f32.mrf.mxu0  ;;  %v21503_v17 = vld [vmem:[#allocation3 + $0x30] ss:$280 sps:$4 sm:$0xff]   ;;  %v14613_v32 = vcombine.high %v27362_v19, %v27366_v41 }
 0x758   :  { %14513 = vmatprep.mubr.bf16.mxu0 %v14278_v34  ;;  %15140 = vmatpush1.bf16.msra.mxu0 %v21467_v58  ;;  %v13923_v44 = vpack.c.bf16 %v21503_v17, %v21502_v42  ;;  %v21570_v42 = vld [vmem:[#allocation4 + $0x8c0] ss:$8 sps:$4 sm:$0xff]   ;;  %v21578_v17 = vld [vmem:[#allocation4 + $0x8b4] ss:$8 sps:$4 sm:$0xff]  }
 0x759   :  { %15141 = vmatprep.subr.bf16.mxu0 %v21484_v28  ;;  %v12475_v33 = vpop.f32.mrf.mxu0  ;;  %v21519_v28 = vld [vmem:[#allocation4 + $0x930] ss:$8 sps:$4 sm:$0xff]  }
 0x75a   :  { %14147 = vmatpush2.bf16.msra.mxu1 %v21464_v55  ;;  %v21506_v55 = vld [vmem:[#allocation4 + $0x854] ss:$8 sps:$4 sm:$0xff]  }
 0x75b   :  { %14148 = vmatprep.subr.bf16.mxu1 %v21472_v3  ;;  %v12477_v36 = vpop.f32.mrf.mxu0  ;;  %v14615_v3 = vcombine.high %v27370_v61, %v27374_v20 }
 0x75c   :  { %15142 = vmatpush1.bf16.msra.mxu0 %v21482_v4 }
 0x75d   :  { %15143 = vmatprep.subr.bf16.mxu0 %v21493_v35  ;;  %v12479_v34 = vpop.f32.mrf.mxu0  ;;  %v14629_v60 = vpack.c.bf16 %v14615_v3, %v14613_v32  ;;  %v21525_v35 = vld [vmem:[#allocation4 + $0x920] ss:$8 sps:$4 sm:$0xff]   ;;  %v21587_v32 = vld [vmem:[#allocation4 + $0x984] ss:$8 sps:$4 sm:$0xff]  }
 0x75e   :  { %14149 = vmatpush2.bf16.msra.mxu1 %v21470_v46  ;;  %v21522_v46 = vld [vmem:[#allocation4 + $0x840] ss:$8 sps:$4 sm:$0xff]  }
 0x75f   :  { %14824 = vmatprep.subr.bf16.mxu1 %v21489_v0  ;;  %14514 = vmatmul.mubr.bf16.gmra.mxu0 %v14277_v47  ;;  %v21537_v0 = vld [vmem:[#allocation4 + $0x900] ss:$8 sps:$4 sm:$0xff]   ;;  %v21542_v47 = vld [vmem:[#allocation4 + $0x814] ss:$8 sps:$4 sm:$0xff]  }
 0x760   :  { %15144 = vmatpush1.bf16.msra.mxu0 %v21491_v59  ;;  %15171 = vmatprep.mubr.bf16.mxu0 %v14943_v29  ;;  %v12260_v38 = vpop.f32.mrf.mxu1  ;;  %v21543_v59 = vld [vmem:[#allocation4 + $0x9f0] ss:$8 sps:$4 sm:$0xff]   ;;  %v21561_v29 = vld [vmem:[#allocation4 + $0x9c0] ss:$8 sps:$4 sm:$0xff]  }
 0x761   :  { %14151 = vmatmul.mubr.bf16.vlgmr.msra.gmra.mxu1 %v13921_v5  ;;  %15145 = vmatprep.subr.bf16.mxu0 %v21501_v15  ;;  %v27376_v26 = vadd.f32 %v12473_v8, %v12260_v38  ;;  %v12483_v57 = vpop.f32.mrf.mxu0  ;;  %v21530_v8 = vld [vmem:[#allocation4 + $0x834] ss:$8 sps:$4 sm:$0xff]   ;;  %v21546_v15 = vld [vmem:[#allocation4 + $0x800] ss:$8 sps:$4 sm:$0xff]   ;;  %v21564_v38 = vld [vmem:[#allocation4 + $0x8d0] ss:$8 sps:$4 sm:$0xff]  }
 0x762   :  { %14160 = vmatprep.mubr.bf16.mxu1 %v13924_v31  ;;  %14825 = vmatpush1.bf16.msra.mxu1 %v21487_v1  ;;  %v12262_v9 = vpop.f32.mrf.mxu1  ;;  %v21560_v1 = vld [vmem:[#allocation4 + $0x8e4] ss:$8 sps:$4 sm:$0xff]   ;;  %v21569_v5 = vld [vmem:[#allocation4 + $0x9b4] ss:$8 sps:$4 sm:$0xff]   ;;  %v27390_v3 = vld [vmem:[#allocation3 + $0x68] sm:$0xf] }
 0x763   :  { %14826 = vmatprep.subr.bf16.mxu1 %v21496_v16  ;;  %v27378_v58 = vadd.f32 %v12475_v33, %v12262_v9  ;;  %v21557_v33 = vld [vmem:[#allocation4 + $0x9d4] ss:$8 sps:$4 sm:$0xff]   ;;  %v21558_v16 = vld [vmem:[#allocation4 + $0x8e0] ss:$8 sps:$4 sm:$0xff]  }
 0x764   :  { %15146 = vmatpush1.bf16.msra.mxu0 %v21499_v37  ;;  %v12264_v4 = vpop.f32.mrf.mxu1  ;;  %v21566_v31 = vld [vmem:[#allocation4 + $0x8d4] ss:$8 sps:$4 sm:$0xff]   ;;  %v21567_v37 = vld [vmem:[#allocation4 + $0x9b0] ss:$8 sps:$4 sm:$0xff]  }
 0x765   :  { %15147 = vmatprep.subr.bf16.mxu0 %v21521_v56  ;;  %v27384_v39 = vadd.f32 %v12477_v36, %v12264_v4  ;;  %v21575_v36 = vld [vmem:[#allocation4 + $0x9a4] ss:$8 sps:$4 sm:$0xff]   ;;  %v21581_v9 = vld [vmem:[#allocation4 + $0x994] ss:$8 sps:$4 sm:$0xff]   ;;  %v27396_v4 = vld [vmem:[#allocation3 + $0x38] sm:$0xf] }
 0x766   :  { %14827 = vmatpush1.bf16.msra.mxu1 %v21494_v53  ;;  %v12266_v7 = vpop.f32.mrf.mxu1  ;;  %v21572_v56 = vld [vmem:[#allocation4 + $0x8c4] ss:$8 sps:$4 sm:$0xff]   ;;  %v21573_v53 = vld [vmem:[#allocation4 + $0x9a0] ss:$8 sps:$4 sm:$0xff]  }
 0x767   :  { %14828 = vmatprep.subr.bf16.mxu1 %v21506_v55  ;;  %v27386_v63 = vadd.f32 %v12479_v34, %v12266_v7  ;;  %v21579_v55 = vld [vmem:[#allocation4 + $0x990] ss:$8 sps:$4 sm:$0xff]  }
 0x768   :  { %15148 = vmatpush1.bf16.msra.mxu0 %v21519_v28  ;;  %v12270_v48 = vpop.f32.mrf.mxu1  ;;  %v27392_v28 = vld [vmem:[#allocation3 + $0x88] sm:$0xf]  ;;  %v27394_v34 = vld [vmem:[#allocation3 + $0x178] sm:$0xf] }
 0x769   :  { %14161 = vmatmul.mubr.bf16.gmra.mxu1 %v13923_v44  ;;  %15149 = vmatprep.subr.bf16.mxu0 %v21527_v40  ;;  %v27388_v62 = vadd.f32 %v12483_v57, %v12270_v48  ;;  %v14544_v40 = vld [vmem:[#allocation3 + $0x30] sm:$0x3c] }
 0x76a   :  { %14829 = vmatpush1.bf16.msra.mxu1 %v21504_v21  ;;  %14856 = vmatprep.mubr.bf16.mxu1 %v14629_v60  ;;  %v14545_v21 = vld [vmem:[#allocation3 + $0x50] sm:$0x3c] }
 0x76b   :  { %14830 = vmatprep.subr.bf16.mxu1 %v21524_v45  ;;  %v27398_v7 = vld [vmem:[#allocation3 + $0xe0] ss:$-80 sps:$4 sm:$0xcc]   ;;  %v27400_v44 = vld [vmem:[#allocation3 + $0xe4] ss:$-80 sps:$4 sm:$0x33]  }
 0x76c   :  { %15150 = vmatpush1.bf16.msra.mxu0 %v21525_v35  ;;  %v27402_v45 = vld [vmem:[#allocation3 + $0x78] ss:$88 sps:$4 sm:$0xcc]   ;;  %v27404_v60 = vld [vmem:[#allocation3 + $0x7c] ss:$88 sps:$4 sm:$0x33]  }
 0x76d   :  { %15151 = vmatprep.subr.bf16.mxu0 %v21533_v13  ;;  %v21576_v35 = vld [vmem:[#allocation4 + $0x8b0] ss:$8 sps:$4 sm:$0xff]   ;;  %v21623_v48 = vld [vmem:[#allocation3 + $0x154] ss:$-336 sps:$4 sm:$0x33]  }
 0x76e   :  { %14831 = vmatpush1.bf16.msra.mxu1 %v21522_v46  ;;  %v21621_v57 = vld [vmem:[#allocation3 + $0x150] ss:$-336 sps:$4 sm:$0xcc]   ;;  %v21584_v13 = vld [vmem:[#allocation4 + $0x8a4] ss:$8 sps:$4 sm:$0xff]  }
 0x76f   :  { %14832 = vmatprep.subr.bf16.mxu1 %v21530_v8  ;;  %v27406_v46 = vld [vmem:[#allocation3 + $0x120] ss:$-8 sps:$4 sm:$0xcc]   ;;  %v21626_v8 = vld [vmem:[#allocation3 + $0x124] ss:$-8 sps:$4 sm:$0x33]  }
 0x770   :  { %15152 = vmatpush1.bf16.msra.mxu0 %v21531_v6  ;;  %v21585_v6 = vld [vmem:[#allocation4 + $0x980] ss:$8 sps:$4 sm:$0xff]  }
 0x771   :  { %15153 = vmatprep.subr.bf16.mxu0 %v21539_v14  ;;  %v21627_v14 = vld [vmem:[#allocation3 + $0x140] ss:$-48 sps:$4 sm:$0xcc]  }
 0x772   :  { %14833 = vmatpush1.bf16.msra.mxu1 %v21528_v43  ;;  %v21629_v43 = vld [vmem:[#allocation3 + $0x144] ss:$-48 sps:$4 sm:$0x33]  }
 0x773   :  { %14834 = vmatprep.subr.bf16.mxu1 %v21536_v50  ;;  %v21591_v50 = vld [vmem:[#allocation3 + $0x150] ss:$-48 sps:$4 sm:$0xff]  }
 0x774   :  { %15154 = vmatpush1.bf16.msra.mxu0 %v21537_v0  ;;  %v21592_v0 = vld [vmem:[#allocation3 + $0x140] ss:$-296 sps:$4 sm:$0xff]  }
 0x775   :  { %15155 = vmatprep.subr.bf16.mxu0 %v21545_v22  ;;  %v21630_v22 = vld [vmem:[#allocation3 + $0x18] ss:$48 sps:$4 sm:$0xcc]  }
 0x776   :  { %14835 = vmatpush1.bf16.msra.mxu1 %v21534_v30  ;;  %v21632_v30 = vld [vmem:[#allocation3 + $0x1c] ss:$48 sps:$4 sm:$0x33]  }
 0x777   :  { %14836 = vmatprep.subr.bf16.mxu1 %v21542_v47  ;;  %v21582_v47 = vld [vmem:[#allocation4 + $0x8a0] ss:$8 sps:$4 sm:$0xff]  }
 0x778   :  { %15156 = vmatpush2.bf16.msra.mxu0 %v21543_v59  ;;  %v18829_v59 = vcombine.low %v27390_v3, %v27392_v28 }
 0x779   :  { %15157 = vmatprep.subr.bf16.mxu0 %v21551_v49  ;;  %v18831_v49 = vcombine.low %v27394_v34, %v27396_v4  ;;  %v14942_v34 = vpack.c.bf16 %v21592_v0, %v21591_v50  ;;  %v21598_v4 = vld [vmem:[#allocation4 + $0x884] ss:$8 sps:$4 sm:$0xff]  }
 0x77a   :  { %14837 = vmatpush1.bf16.msra.mxu1 %v21540_v52  ;;  %v14576_v52 = vcombine.low %v14544_v40, %v14545_v21 }
 0x77b   :  { %14838 = vmatprep.subr.bf16.mxu1 %v21548_v11  ;;  %v14577_v11 = vcombine.high %v14544_v40, %v14545_v21  ;;  %v21601_v40 = vld [vmem:[#allocation4 + $0xb64] ss:$8 sps:$4 sm:$0xff]   ;;  %v21614_v21 = vld [vmem:[#allocation3 + $0x168] ss:$-56 sps:$4 sm:$0xff]  }
 0x77c   :  { %15158 = vmatpush2.bf16.msra.mxu0 %v21549_v2  ;;  %v21611_v2 = vld [vmem:[#allocation3 + $0x148] ss:$-144 sps:$4 sm:$0xcc]  }
 0x77d   :  { %15159 = vmatprep.subr.bf16.mxu0 %v21557_v33  ;;  %v21613_v33 = vld [vmem:[#allocation3 + $0x14c] ss:$-144 sps:$4 sm:$0x33]   ;;  %v18791_v3 = vrot.slane %v21611_v2, 10 }
 0x77e   :  { %14839 = vmatpush1.bf16.msra.mxu1 %v21546_v15  ;;  %v21590_v15 = vld [vmem:[#allocation4 + $0x894] ss:$8 sps:$4 sm:$0xff]   ;;  %v14610_v28 = vrot.slane %v21613_v33, 6 }
 0x77f   :  { %14840 = vmatprep.subr.bf16.mxu1 %v21554_v18  ;;  %v21595_v18 = vld [vmem:[#allocation4 + $0xb74] ss:$8 sps:$4 sm:$0xff]  }
 0x780   :  { %15160 = vmatpush2.bf16.msra.mxu0 %v21555_v10  ;;  %v18788_v10 = vrot.slane %v27398_v7, 10  ;;  %v14945_v7 = vpack.c.bf16 %v18831_v49, %v18829_v59  ;;  %v21648_v59 = vld [vmem:[#allocation3 + $0x18] ss:$48 sps:$4 sm:$0xee]  }
 0x781   :  { %15161 = vmatprep.subr.bf16.mxu0 %v21563_v54  ;;  %v14598_v54 = vrot.slane %v27400_v44, 6  ;;  %v21599_v44 = vld [vmem:[#allocation4 + $0xb60] ss:$8 sps:$4 sm:$0xff]   ;;  %v21650_v49 = vld [vmem:[#allocation3 + $0x1c] ss:$48 sps:$4 sm:$0x11]  }
 0x782   :  { %14841 = vmatpush2.bf16.msra.mxu1 %v21552_v12  ;;  %v18789_v12 = vrot.slane %v27402_v45, 10 }
 0x783   :  { %14842 = vmatprep.subr.bf16.mxu1 %v21560_v1  ;;  %v14602_v1 = vrot.slane %v27404_v60, 6  ;;  %v27419_v45 = vsel %vm22494_vm6, %v18788_v10, %v14598_v54 }
 0x784   :  { %15162 = vmatpush2.bf16.msra.mxu0 %v21561_v29  ;;  %v14894_v29 = vld [vmem:[#allocation3 + $0x138] sm:$0xf] }
 0x785   :  { %15163 = vmatprep.subr.bf16.mxu0 %v21569_v5  ;;  %v18904_v5 = vrot.slane %v21621_v57, 10  ;;  %v21639_v57 = vld [vmem:[#allocation3 + $0x150] ss:$-336 sps:$4 sm:$0xee]   ;;  %v27439_v50 = vsel %vm22494_vm6, %v18789_v12, %v14602_v1 }
 0x786   :  { %14843 = vmatpush2.bf16.msra.mxu1 %v21558_v16  ;;  %v15603_v16 = vrot.slane %v21623_v48, 6  ;;  %v21641_v48 = vld [vmem:[#allocation3 + $0x154] ss:$-336 sps:$4 sm:$0x11]   ;;  %v14617_v10 = vcombine.high %v27419_v45, %v27439_v50  ;;  %v18864_v12 = vrot.slane %v21639_v57, 9 }
 0x787   :  { %14844 = vmatprep.subr.bf16.mxu1 %v21566_v31  ;;  %v18905_v31 = vrot.slane %v27406_v46, 10  ;;  %v15250_v1 = vrot.slane %v21641_v48, 5  ;;  %v21659_v57 = vld [vmem:[#allocation4 + $0xb24] ss:$8 sps:$4 sm:$0xff]   ;;  %v21636_v48 = vld [vmem:[#allocation4 + $0xa50] ss:$8 sps:$4 sm:$0xff]  }
 0x788   :  { %15164 = vmatpush2.bf16.msra.mxu0 %v21567_v37  ;;  %v15607_v37 = vrot.slane %v21626_v8, 6 }
 0x789   :  { %15165 = vmatprep.subr.bf16.mxu0 %v21575_v36  ;;  %v14896_v36 = vld [vmem:[#allocation3 + $0xf8] sm:$0xf] }
 0x78a   :  { %14845 = vmatpush2.bf16.msra.mxu1 %v21564_v38  ;;  %v18906_v38 = vrot.slane %v21627_v14, 10  ;;  %v18828_v60 = vcombine.low %v14894_v29, %v14896_v36  ;;  %v27427_v46 = vsel %vm22494_vm6, %v18905_v31, %v15607_v37  ;;  %v21642_v14 = vld [vmem:[#allocation3 + $0x120] ss:$-8 sps:$4 sm:$0xee]  }
 0x78b   :  { %14846 = vmatprep.subr.bf16.mxu1 %v21572_v56  ;;  %v15611_v56 = vrot.slane %v21629_v43, 6  ;;  %v21644_v43 = vld [vmem:[#allocation3 + $0x124] ss:$-8 sps:$4 sm:$0x11]   ;;  %v18865_v29 = vrot.slane %v21642_v14, 9 }
 0x78c   :  { %15166 = vmatpush2.bf16.msra.mxu0 %v21573_v53  ;;  %v18907_v53 = vrot.slane %v21630_v22, 10  ;;  %v27447_v22 = vsel %vm22494_vm6, %v18791_v3, %v14610_v28  ;;  %v21602_v36 = vld [vmem:[#allocation4 + $0xa70] ss:$8 sps:$4 sm:$0xff]   ;;  %v21653_v28 = vld [vmem:[#allocation4 + $0xb34] ss:$8 sps:$4 sm:$0xff]  }
 0x78d   :  { %15167 = vmatprep.subr.bf16.mxu0 %v21581_v9  ;;  %v15615_v9 = vrot.slane %v21632_v30, 6  ;;  %v27431_v8 = vsel %vm22494_vm6, %v18906_v38, %v15611_v56  ;;  %v21645_v30 = vld [vmem:[#allocation3 + $0x140] ss:$-48 sps:$4 sm:$0xee]  }
 0x78e   :  { %14847 = vmatpush2.bf16.msra.mxu1 %v21570_v42  ;;  %v21588_v42 = vld [vmem:[#allocation4 + $0x890] ss:$8 sps:$4 sm:$0xff]   ;;  %v18866_v31 = vrot.slane %v21645_v30, 9 }
 0x78f   :  { %14848 = vmatprep.subr.bf16.mxu1 %v21578_v17  ;;  %v21593_v17 = vld [vmem:[#allocation4 + $0xb70] ss:$8 sps:$4 sm:$0xff]  }
 0x790   :  { %15168 = vmatpush2.bf16.msra.mxu0 %v21579_v55  ;;  %v18790_v55 = vrot.slane %v14576_v52, 10  ;;  %v14612_v52 = vcombine.low %v27362_v19, %v27366_v41  ;;  %v14944_v19 = vpack.c.bf16 %v21614_v21, %v18828_v60  ;;  %v21615_v41 = vld [vmem:[#allocation4 + $0xb50] ss:$8 sps:$4 sm:$0xff]   ;;  %v21638_v21 = vld [vmem:[#allocation4 + $0xa54] ss:$8 sps:$4 sm:$0xff]  }
 0x791   :  { %15169 = vmatprep.subr.bf16.mxu0 %v21587_v32  ;;  %v14606_v32 = vrot.slane %v14577_v11, 6  ;;  %v21596_v11 = vld [vmem:[#allocation4 + $0x880] ss:$8 sps:$4 sm:$0xff]   ;;  %v21651_v60 = vld [vmem:[#allocation4 + $0xb30] ss:$8 sps:$4 sm:$0xff]  }
 0x792   :  { %14849 = vmatpush2.bf16.msra.mxu1 %v21576_v35  ;;  %v27423_v35 = vsel %vm22494_vm6, %v18904_v5, %v15603_v16  ;;  %v15254_v5 = vrot.slane %v21644_v43, 5  ;;  %v21635_v16 = vld [vmem:[#allocation4 + $0xb44] ss:$8 sps:$4 sm:$0xff]   ;;  %v21657_v43 = vld [vmem:[#allocation4 + $0xb20] ss:$8 sps:$4 sm:$0xff]  }
 0x793   :  { %14850 = vmatprep.subr.bf16.mxu1 %v21584_v13  ;;  %v21617_v13 = vld [vmem:[#allocation4 + $0xb54] ss:$8 sps:$4 sm:$0xff]   ;;  %v27443_v0 = vsel %vm22494_vm6, %v18790_v55, %v14606_v32  ;;  %v15634_v2 = vcombine.high %v27423_v35, %v27427_v46  ;;  %v21663_v30 = vld [vmem:[#allocation4 + $0xb10] ss:$8 sps:$4 sm:$0xff]  }
 0x794   :  { %15170 = vmatpush2.bf16.msra.mxu0 %v21585_v6  ;;  %v27435_v6 = vsel %vm22494_vm6, %v18907_v53, %v15615_v9  ;;  %v14619_v54 = vcombine.high %v27443_v0, %v27447_v22  ;;  %v21620_v53 = vld [vmem:[#allocation4 + $0xa64] ss:$8 sps:$4 sm:$0xff]   ;;  %v27467_v55 = vsel %vm22240_vm13, %v18865_v29, %v15254_v5  ;;  %v21687_v29 = vld [vmem:[#allocation4 + $0xbd0] ss:$8 sps:$4 sm:$0xff]  }
 0x795   :  { %15845 = vmatprep.subr.bf16.mxu0 %v21595_v18  ;;  %v15636_v33 = vcombine.high %v27431_v8, %v27435_v6  ;;  %v21604_v18 = vld [vmem:[#allocation4 + $0xa74] ss:$8 sps:$4 sm:$0xff]   ;;  %v21695_v5 = vld [vmem:[#allocation4 + $0xbc4] ss:$8 sps:$4 sm:$0xff]  }
 0x796   :  { %14851 = vmatpush2.bf16.msra.mxu1 %v21582_v47  ;;  %v21647_v47 = vld [vmem:[#allocation3 + $0x144] ss:$-48 sps:$4 sm:$0x11]   ;;  %v14631_v9 = vpack.c.bf16 %v14619_v54, %v14617_v10  ;;  %v21672_v10 = vld [vmem:[#allocation4 + $0xa10] ss:$8 sps:$4 sm:$0xff]  }
 0x797   :  { %14852 = vmatprep.subr.bf16.mxu1 %v21590_v15  ;;  %15172 = vmatmul.mubr.bf16.vlgmr.msra.gmra.mxu0 %v14942_v34  ;;  %v14614_v15 = vcombine.low %v27370_v61, %v27374_v20  ;;  %v15258_v37 = vrot.slane %v21647_v47, 5  ;;  %v18867_v61 = vrot.slane %v21648_v59, 9  ;;  %v15262_v20 = vrot.slane %v21650_v49, 5  ;;  %v21618_v34 = vld [vmem:[#allocation4 + $0xa60] ss:$8 sps:$4 sm:$0xff]  }
 0x798   :  { %15181 = vmatprep.mubr.bf16.mxu0 %v14945_v7  ;;  %15846 = vmatpush1.bf16.msra.mxu0 %v21593_v17  ;;  %v15650_v38 = vpack.c.bf16 %v15636_v33, %v15634_v2  ;;  %v27463_v17 = vsel %vm22240_vm13, %v18864_v12, %v15250_v1  ;;  %v21671_v47 = vld [vmem:[#allocation4 + $0xb04] ss:$8 sps:$4 sm:$0xff]   ;;  %v21660_v59 = vld [vmem:[#allocation4 + $0xa30] ss:$8 sps:$4 sm:$0xff]   ;;  %v21666_v2 = vld [vmem:[#allocation4 + $0xa20] ss:$8 sps:$4 sm:$0xff]  }
 0x799   :  { %15847 = vmatprep.subr.bf16.mxu0 %v21601_v40  ;;  %v14628_v56 = vpack.c.bf16 %v14614_v15, %v14612_v52  ;;  %v27471_v32 = vsel %vm22240_vm13, %v18866_v31, %v15258_v37  ;;  %v27475_v3 = vsel %vm22240_vm13, %v18867_v61, %v15262_v20  ;;  %v14618_v40 = vcombine.low %v27443_v0, %v27447_v22  ;;  %v21654_v0 = vld [vmem:[#allocation4 + $0xa40] ss:$8 sps:$4 sm:$0xff]   ;;  %v21662_v22 = vld [vmem:[#allocation4 + $0xa34] ss:$8 sps:$4 sm:$0xff]   ;;  %v21668_v49 = vld [vmem:[#allocation4 + $0xa24] ss:$8 sps:$4 sm:$0xff]  }
 0x79a   :  { %14853 = vmatpush2.bf16.msra.mxu1 %v21588_v42  ;;  %v21633_v42 = vld [vmem:[#allocation4 + $0xb40] ss:$8 sps:$4 sm:$0xff]   ;;  %v15281_v7 = vcombine.high %v27463_v17, %v27467_v55  ;;  %v21674_v33 = vld [vmem:[#allocation4 + $0xa14] ss:$8 sps:$4 sm:$0xff]   ;;  %v21675_v15 = vld [vmem:[#allocation4 + $0xbf0] ss:$8 sps:$4 sm:$0xff]  }
 0x79b   :  { %14854 = vmatprep.subr.bf16.mxu1 %v21598_v4  ;;  %v14616_v4 = vcombine.low %v27419_v45, %v27439_v50  ;;  %v21656_v45 = vld [vmem:[#allocation4 + $0xa44] ss:$8 sps:$4 sm:$0xff]   ;;  %v21665_v50 = vld [vmem:[#allocation4 + $0xb14] ss:$8 sps:$4 sm:$0xff]   ;;  %v21669_v52 = vld [vmem:[#allocation4 + $0xb00] ss:$8 sps:$4 sm:$0xff]  }
 0x79c   :  { %15848 = vmatpush1.bf16.msra.mxu0 %v21599_v44  ;;  %v15283_v44 = vcombine.high %v27471_v32, %v27475_v3  ;;  %v21680_v54 = vld [vmem:[#allocation4 + $0xa04] ss:$8 sps:$4 sm:$0xff]   ;;  %v21678_v12 = vld [vmem:[#allocation4 + $0xa00] ss:$8 sps:$4 sm:$0xff]   ;;  %v21686_v1 = vld [vmem:[#allocation4 + $0xaf4] ss:$8 sps:$4 sm:$0xff]  }
 0x79d   :  { %15849 = vmatprep.subr.bf16.mxu0 %v21617_v13  ;;  %v14630_v13 = vpack.c.bf16 %v14618_v40, %v14616_v4  ;;  %v21692_v31 = vld [vmem:[#allocation4 + $0xae4] ss:$8 sps:$4 sm:$0xff]   ;;  %v21693_v37 = vld [vmem:[#allocation4 + $0xbc0] ss:$8 sps:$4 sm:$0xff]   ;;  %v21701_v61 = vld [vmem:[#allocation4 + $0xbb4] ss:$8 sps:$4 sm:$0xff]  }
 0x79e   :  { %14855 = vmatpush2.bf16.msra.mxu1 %v21596_v11  ;;  %v15297_v14 = vpack.c.bf16 %v15283_v44, %v15281_v7  ;;  %v21677_v11 = vld [vmem:[#allocation4 + $0xbf4] ss:$8 sps:$4 sm:$0xff]   ;;  %v21690_v20 = vld [vmem:[#allocation4 + $0xae0] ss:$8 sps:$4 sm:$0xff]  }
 0x79f   :  { %15492 = vmatprep.subr.bf16.mxu1 %v21604_v18  ;;  %15182 = vmatmul.mubr.bf16.gmra.mxu0 %v14944_v19  ;;  %v21683_v18 = vld [vmem:[#allocation4 + $0xbe4] ss:$8 sps:$4 sm:$0xff]   ;;  %v21681_v19 = vld [vmem:[#allocation4 + $0xbe0] ss:$8 sps:$4 sm:$0xff]  }
 0x7a0   :  { %15850 = vmatpush1.bf16.msra.mxu0 %v21615_v41  ;;  %15877 = vmatprep.mubr.bf16.mxu0 %v15650_v38  ;;  %v21689_v41 = vld [vmem:[#allocation4 + $0xbd4] ss:$8 sps:$4 sm:$0xff]   ;;  %v21699_v38 = vld [vmem:[#allocation4 + $0xbb0] ss:$8 sps:$4 sm:$0xff]  }
 0x7a1   :  { %14857 = vmatmul.mubr.bf16.vlgmr.msra.gmra.mxu1 %v14628_v56  ;;  %15851 = vmatprep.subr.bf16.mxu0 %v21635_v16  ;;  %v21684_v16 = vld [vmem:[#allocation4 + $0xaf0] ss:$8 sps:$4 sm:$0xff]   ;;  %v21707_v56 = vld [vmem:[#allocation4 + $0xba4] ss:$8 sps:$4 sm:$0xff]  }
 0x7a2   :  { %14866 = vmatprep.mubr.bf16.mxu1 %v14631_v9  ;;  %15493 = vmatpush1.bf16.msra.mxu1 %v21602_v36  ;;  %v21698_v36 = vld [vmem:[#allocation4 + $0xad4] ss:$8 sps:$4 sm:$0xff]   ;;  %v21726_v9 = vld [vmem:[#allocation3 + $0x138] ss:$-208 sps:$4 sm:$0xcc]  }
 0x7a3   :  { %15494 = vmatprep.subr.bf16.mxu1 %v21620_v53  ;;  %v21696_v53 = vld [vmem:[#allocation4 + $0xad0] ss:$8 sps:$4 sm:$0xff]   ;;  %v21731_v4 = vld [vmem:[#allocation3 + $0xfc] ss:$-112 sps:$4 sm:$0x33]  }
 0x7a4   :  { %15852 = vmatpush1.bf16.msra.mxu0 %v21633_v42  ;;  %v21728_v42 = vld [vmem:[#allocation3 + $0x13c] ss:$-208 sps:$4 sm:$0x33]   ;;  %v21732_v40 = vld [vmem:[#allocation3 + $0x168] ss:$16 sps:$4 sm:$0xcc]  }
 0x7a5   :  { %15853 = vmatprep.subr.bf16.mxu0 %v21653_v28  ;;  %v21704_v28 = vld [vmem:[#allocation4 + $0xac4] ss:$8 sps:$4 sm:$0xff]   ;;  %v21735_v7 = vld [vmem:[#allocation3 + $0x130] ss:$-248 sps:$4 sm:$0xcc]  }
 0x7a6   :  { %15495 = vmatpush1.bf16.msra.mxu1 %v21618_v34  ;;  %v21729_v34 = vld [vmem:[#allocation3 + $0xf8] ss:$-112 sps:$4 sm:$0xcc]   ;;  %v21737_v44 = vld [vmem:[#allocation3 + $0x134] ss:$-248 sps:$4 sm:$0x33]  }
 0x7a7   :  { %15496 = vmatprep.subr.bf16.mxu1 %v21638_v21  ;;  %v21734_v21 = vld [vmem:[#allocation3 + $0x16c] ss:$16 sps:$4 sm:$0x33]  }
 0x7a8   :  { %15854 = vmatpush1.bf16.msra.mxu0 %v21651_v60  ;;  %v21705_v60 = vld [vmem:[#allocation4 + $0xba0] ss:$8 sps:$4 sm:$0xff]  }
 0x7a9   :  { %14867 = vmatmul.mubr.bf16.gmra.mxu1 %v14630_v13  ;;  %15855 = vmatprep.subr.bf16.mxu0 %v21659_v57  ;;  %v21713_v57 = vld [vmem:[#allocation4 + $0xb94] ss:$8 sps:$4 sm:$0xff]   ;;  %v18908_v13 = vrot.slane %v21726_v9, 10 }
 0x7aa   :  { %15497 = vmatpush1.bf16.msra.mxu1 %v21636_v48  ;;  %15524 = vmatprep.mubr.bf16.mxu1 %v15297_v14  ;;  %v21702_v48 = vld [vmem:[#allocation4 + $0xac0] ss:$8 sps:$4 sm:$0xff]   ;;  %v18909_v14 = vrot.slane %v21729_v34, 10 }
 0x7ab   :  { %15498 = vmatprep.subr.bf16.mxu1 %v21656_v45  ;;  %v15619_v45 = vrot.slane %v21728_v42, 6 }
 0x7ac   :  { %15856 = vmatpush1.bf16.msra.mxu0 %v21657_v43  ;;  %v15623_v43 = vrot.slane %v21731_v4, 6  ;;  %v21725_v4 = vld [vmem:[#allocation4 + $0xa84] ss:$8 sps:$4 sm:$0xff]  }
 0x7ad   :  { %15857 = vmatprep.subr.bf16.mxu0 %v21665_v50  ;;  %v21710_v50 = vld [vmem:[#allocation4 + $0xab4] ss:$8 sps:$4 sm:$0xff]  }
 0x7ae   :  { %15499 = vmatpush1.bf16.msra.mxu1 %v21654_v0  ;;  %v18910_v0 = vrot.slane %v21732_v40, 10 }
 0x7af   :  { %15500 = vmatprep.subr.bf16.mxu1 %v21662_v22  ;;  %v15627_v22 = vrot.slane %v21734_v21, 6 }
 0x7b0   :  { %15858 = vmatpush1.bf16.msra.mxu0 %v21663_v30  ;;  %v18911_v30 = vrot.slane %v21735_v7, 10 }
 0x7b1   :  { %15859 = vmatprep.subr.bf16.mxu0 %v21671_v47  ;;  %v15631_v47 = vrot.slane %v21737_v44, 6 }
 0x7b2   :  { %15501 = vmatpush1.bf16.msra.mxu1 %v21660_v59  ;;  %v21711_v59 = vld [vmem:[#allocation4 + $0xb90] ss:$8 sps:$4 sm:$0xff]  }
 0x7b3   :  { %15502 = vmatprep.subr.bf16.mxu1 %v21668_v49  ;;  %v21708_v49 = vld [vmem:[#allocation4 + $0xab0] ss:$8 sps:$4 sm:$0xff]  }
 0x7b4   :  { %15860 = vmatpush1.bf16.msra.mxu0 %v21669_v52  ;;  %v21716_v52 = vld [vmem:[#allocation4 + $0xaa4] ss:$8 sps:$4 sm:$0xff]  }
 0x7b5   :  { %15861 = vmatprep.subr.bf16.mxu0 %v21677_v11  ;;  %v21719_v11 = vld [vmem:[#allocation4 + $0xb84] ss:$8 sps:$4 sm:$0xff]  }
 0x7b6   :  { %15503 = vmatpush1.bf16.msra.mxu1 %v21666_v2  ;;  %v15633_v2 = vcombine.low %v27423_v35, %v27427_v46  ;;  %v15632_v35 = vsel %vm22494_vm6, %v18911_v30, %v15631_v47  ;;  %v21741_v46 = vld [vmem:[#allocation3 + $0xf8] ss:$-112 sps:$4 sm:$0xee]  }
 0x7b7   :  { %15504 = vmatprep.subr.bf16.mxu1 %v21674_v33  ;;  %v15635_v33 = vcombine.low %v27431_v8, %v27435_v6  ;;  %v21744_v8 = vld [vmem:[#allocation3 + $0x168] ss:$16 sps:$4 sm:$0xee]   ;;  %v21746_v6 = vld [vmem:[#allocation3 + $0x16c] ss:$16 sps:$4 sm:$0x11]  }
 0x7b8   :  { %15862 = vmatpush2.bf16.msra.mxu0 %v21675_v15  ;;  %v21717_v15 = vld [vmem:[#allocation4 + $0xb80] ss:$8 sps:$4 sm:$0xff]   ;;  %v18869_v24 = vrot.slane %v21741_v46, 9 }
 0x7b9   :  { %15863 = vmatprep.subr.bf16.mxu0 %v21683_v18  ;;  %v21738_v18 = vld [vmem:[#allocation3 + $0x138] ss:$-208 sps:$4 sm:$0xee]  }
 0x7ba   :  { %15505 = vmatpush1.bf16.msra.mxu1 %v21672_v10  ;;  %v21740_v10 = vld [vmem:[#allocation3 + $0x13c] ss:$-208 sps:$4 sm:$0x11]  }
 0x7bb   :  { %15506 = vmatprep.subr.bf16.mxu1 %v21680_v54  ;;  %v15620_v54 = vsel %vm22494_vm6, %v18908_v13, %v15619_v45  ;;  %v15280_v13 = vcombine.low %v27463_v17, %v27467_v55  ;;  %v15282_v45 = vcombine.low %v27471_v32, %v27475_v3  ;;  %v27515_v32 = vpop.f32.mrf.mxu1 }
 0x7bc   :  { %15864 = vmatpush2.bf16.msra.mxu0 %v21681_v19  ;;  %v15624_v19 = vsel %vm22494_vm6, %v18909_v14, %v15623_v43 }
 0x7bd   :  { %15865 = vmatprep.subr.bf16.mxu0 %v21689_v41  ;;  %v15628_v41 = vsel %vm22494_vm6, %v18910_v0, %v15627_v22  ;;  %v15637_v40 = vcombine.low %v15620_v54, %v15624_v19  ;;  %v15296_v0 = vpack.c.bf16 %v15282_v45, %v15280_v13 }
 0x7be   :  { %15507 = vmatpush1.bf16.msra.mxu1 %v21678_v12  ;;  %v21743_v12 = vld [vmem:[#allocation3 + $0xfc] ss:$-112 sps:$4 sm:$0x11]   ;;  %v15639_v21 = vcombine.low %v15628_v41, %v15632_v35 }
 0x7bf   :  { %15508 = vmatprep.subr.bf16.mxu1 %v21686_v1  ;;  %v21747_v1 = vld [vmem:[#allocation3 + $0x130] ss:$-248 sps:$4 sm:$0xee]  }
 0x7c0   :  { %15866 = vmatpush2.bf16.msra.mxu0 %v21687_v29  ;;  %v21749_v29 = vld [vmem:[#allocation3 + $0x134] ss:$-248 sps:$4 sm:$0x11]   ;;  %v18871_v9 = vrot.slane %v21747_v1, 9 }
 0x7c1   :  { %15867 = vmatprep.subr.bf16.mxu0 %v21695_v5  ;;  %v21714_v5 = vld [vmem:[#allocation4 + $0xaa0] ss:$8 sps:$4 sm:$0xff]   ;;  %v15278_v42 = vrot.slane %v21749_v29, 5 }
 0x7c2   :  { %15509 = vmatpush2.bf16.msra.mxu1 %v21684_v16  ;;  %v15638_v16 = vcombine.high %v15620_v54, %v15624_v19 }
 0x7c3   :  { %15510 = vmatprep.subr.bf16.mxu1 %v21692_v31  ;;  %v15640_v31 = vcombine.high %v15628_v41, %v15632_v35 }
 0x7c4   :  { %15868 = vmatpush2.bf16.msra.mxu0 %v21693_v37  ;;  %v15649_v37 = vpack.c.bf16 %v15635_v33, %v15633_v2 }
 0x7c5   :  { %15869 = vmatprep.subr.bf16.mxu0 %v21701_v61  ;;  %v21722_v61 = vld [vmem:[#allocation4 + $0xa94] ss:$8 sps:$4 sm:$0xff]   ;;  %v15652_v34 = vpack.c.bf16 %v15640_v31, %v15638_v16 }
 0x7c6   :  { %15511 = vmatpush2.bf16.msra.mxu1 %v21690_v20  ;;  %v18868_v20 = vrot.slane %v21738_v18, 9 }
 0x7c7   :  { %15512 = vmatprep.subr.bf16.mxu1 %v21698_v36  ;;  %v15266_v36 = vrot.slane %v21740_v10, 5 }
 0x7c8   :  { %15870 = vmatpush2.bf16.msra.mxu0 %v21699_v38  ;;  %v15270_v38 = vrot.slane %v21743_v12, 5 }
 0x7c9   :  { %15871 = vmatprep.subr.bf16.mxu0 %v21707_v56  ;;  %v18870_v56 = vrot.slane %v21744_v8, 9  ;;  %v15267_v7 = vsel %vm22240_vm13, %v18868_v20, %v15266_v36 }
 0x7ca   :  { %15513 = vmatpush2.bf16.msra.mxu1 %v21696_v53  ;;  %v15274_v53 = vrot.slane %v21746_v6, 5  ;;  %v15271_v44 = vsel %vm22240_vm13, %v18869_v24, %v15270_v38 }
 0x7cb   :  { %15514 = vmatprep.subr.bf16.mxu1 %v21704_v28  ;;  %v21720_v28 = vld [vmem:[#allocation4 + $0xa90] ss:$8 sps:$4 sm:$0xff]   ;;  %v15285_v14 = vcombine.high %v15267_v7, %v15271_v44  ;;  %v15284_v23 = vcombine.low %v15267_v7, %v15271_v44 }
 0x7cc   :  { %15872 = vmatpush2.bf16.msra.mxu0 %v21705_v60  ;;  %v15275_v60 = vsel %vm22240_vm13, %v18870_v56, %v15274_v53 }
 0x7cd   :  { %15873 = vmatprep.subr.bf16.mxu0 %v21713_v57  ;;  %v15279_v57 = vsel %vm22240_vm13, %v18871_v9, %v15278_v42 }
 0x7ce   :  { %15515 = vmatpush2.bf16.msra.mxu1 %v21702_v48  ;;  %v21723_v48 = vld [vmem:[#allocation4 + $0xa80] ss:$8 sps:$4 sm:$0xff]   ;;  %v15287_v43 = vcombine.high %v15275_v60, %v15279_v57  ;;  %v15286_v30 = vcombine.low %v15275_v60, %v15279_v57 }
 0x7cf   :  { %15516 = vmatprep.subr.bf16.mxu1 %v21710_v50  ;;  %v15651_v50 = vpack.c.bf16 %v15639_v21, %v15637_v40 }
 0x7d0   :  { %15874 = vmatpush2.bf16.msra.mxu0 %v21711_v59  ;;  %v15299_v22 = vpack.c.bf16 %v15287_v43, %v15285_v14  ;;  %v15298_v47 = vpack.c.bf16 %v15286_v30, %v15284_v23  ;;  %v27509_v59 = vpop.f32.mrf.mxu0 }
 0x7d1   :  { %15875 = vmatprep.subr.bf16.mxu0 %v21719_v11 }
 0x7d2   :  { %15517 = vmatpush2.bf16.msra.mxu1 %v21708_v49  ;;  %v27511_v17 = vpop.f32.mrf.mxu0  ;;  %v27517_v49 = vpop.f32.mrf.mxu1 }
 0x7d3   :  { %15518 = vmatprep.subr.bf16.mxu1 %v21716_v52 }
 0x7d4   :  { %15876 = vmatpush2.bf16.msra.mxu0 %v21717_v15  ;;  %v27513_v55 = vpop.f32.mrf.mxu0  ;;  %v27521_v11 = vpop.f32.mrf.mxu1 }
 0x7d6   :  { %15519 = vmatpush2.bf16.msra.mxu1 %v21714_v5  ;;  %v13132_v3 = vpop.f32.mrf.mxu0  ;;  %v12818_v33 = vpop.f32.mrf.mxu1 }
 0x7d7   :  { %15520 = vmatprep.subr.bf16.mxu1 %v21722_v61  ;;  %15878 = vmatmul.mubr.bf16.vlgmr.msra.gmra.mxu0 %v15649_v37 }
 0x7d8   :  { %15887 = vmatprep.mubr.bf16.mxu0 %v15652_v34  ;;  %v27519_v52 = vpop.f32.mrf.mxu0  ;;  %v12820_v18 = vpop.f32.mrf.mxu1 }
 0x7da   :  { %15521 = vmatpush2.bf16.msra.mxu1 %v21720_v28  ;;  %v27523_v2 = vpop.f32.mrf.mxu0  ;;  %v12822_v54 = vpop.f32.mrf.mxu1 }
 0x7db   :  { %15522 = vmatprep.subr.bf16.mxu1 %v21725_v4 }
 0x7dc   :  { %v27525_v15 = vpop.f32.mrf.mxu0  ;;  %v12824_v41 = vpop.f32.mrf.mxu1 }
 0x7de   :  { %15523 = vmatpush2.bf16.msra.mxu1 %v21723_v48  ;;  %v27527_v10 = vpop.f32.mrf.mxu0  ;;  %v12828_v46 = vpop.f32.mrf.mxu1 }
 0x7df   :  { %15888 = vmatmul.mubr.bf16.gmra.mxu0 %v15651_v50 }
 0x7e0   :  { %v27529_v19 = vpop.f32.mrf.mxu0  ;;  %v27535_v8 = vpop.f32.mrf.mxu1 }
 0x7e1   :  { %15525 = vmatmul.mubr.bf16.vlgmr.msra.gmra.mxu1 %v15296_v0 }
 0x7e2   :  { %15534 = vmatprep.mubr.bf16.mxu1 %v15299_v22  ;;  %v27531_v35 = vpop.f32.mrf.mxu0  ;;  %v12832_v1 = vpop.f32.mrf.mxu1 }
 0x7e4   :  { %v27533_v12 = vpop.f32.mrf.mxu0  ;;  %v27539_v5 = vpop.f32.mrf.mxu1 }
 0x7e6   :  { %v13838_v6 = vpop.f32.mrf.mxu0  ;;  %v13485_v31 = vpop.f32.mrf.mxu1 }
 0x7e8   :  { %v27537_v29 = vpop.f32.mrf.mxu0  ;;  %v13487_v61 = vpop.f32.mrf.mxu1 }
 0x7e9   :  { %15535 = vmatmul.mubr.bf16.gmra.mxu1 %v15298_v47 }
 0x7ea   :  { %v27541_v16 = vpop.f32.mrf.mxu0  ;;  %v13489_v36 = vpop.f32.mrf.mxu1 }
 0x7ec   :  { %v27543_v37 = vpop.f32.mrf.mxu0  ;;  %v13491_v38 = vpop.f32.mrf.mxu1 }
 0x7ee   :  { %v27545_v20 = vpop.f32.mrf.mxu0  ;;  %v13495_v53 = vpop.f32.mrf.mxu1 }
 0x7f0   :  { %v27547_v24 = vpop.f32.mrf.mxu0  ;;  %v27553_v42 = vpop.f32.mrf.mxu1 }
 0x7f2   :  { %v27549_v56 = vpop.f32.mrf.mxu0  ;;  %v27557_v34 = vpop.f32.mrf.mxu1 }
 0x7f3   :  { %27827 = vst [vmem:[#allocation9_spill] sm:$0xff] %v27549_v56 }
 0x7f4   :  { %v27551_v9 = vpop.f32.mrf.mxu0  ;;  %v27561_v40 = vpop.f32.mrf.mxu1 }
 0x7f5   :  { %27828 = vst [vmem:[#allocation16_spill] sm:$0xff] %v27551_v9  ;;  %v12838_v9 = vadd.f32 %v12820_v18, %v27378_v58  ;;  %v12486_v58 = vadd.f32 %v27509_v59, %v27515_v32 }
 0x817   :  { %v27555_v28 = vpop.f32.mrf.mxu0 }
 0x819   :  { %v27559_v4 = vpop.f32.mrf.mxu0 }
 0x81b   :  { %v27563_v21 = vpop.f32.mrf.mxu0 }
 0x81d   :  { %v27565_v44 = vpop.f32.mrf.mxu0 }
 0x81e   :  { %27829 = vst [vmem:[#allocation17_spill] sm:$0xff] %v27565_v44  ;;  %v13152_v44 = vadd.f32 %v27519_v52, %v12838_v9  ;;  %v12490_v52 = vadd.f32 %v27513_v55, %v27521_v11 }
 0x81f   :  { %v27567_v57 = vpop.f32.mrf.mxu0 }
 0x820   :  { %27830 = vst [vmem:[#allocation10_spill] sm:$0xff] %v27567_v57  ;;  %v13505_v56 = vadd.f32 %v13487_v61, %v13152_v44  ;;  %v27842_v44 = vld [vmem:[#allocation9_spill] sm:$0xff] }
 0x821   :  { %v14152_v7 = vpop.f32.mrf.mxu1  ;;  %v27569_v13 = vpop.f32.mrf.mxu0 }
 0x822   :  { %27831 = vst [vmem:[#allocation11_spill] sm:$0xff] %v27569_v13  ;;  %v13858_v32 = vadd.f32 %v27537_v29, %v13505_v56 }
 0x823   :  { %v14154_v60 = vpop.f32.mrf.mxu1  ;;  %v27571_v14 = vpop.f32.mrf.mxu0 }
 0x824   :  { %27832 = vst [vmem:[#allocation22_spill] sm:$0xff] %v27571_v14 }
 0x825   :  { %v14156_v48 = vpop.f32.mrf.mxu1  ;;  %v27573_v50 = vpop.f32.mrf.mxu0 }
 0x826   :  { %27833 = vst [vmem:[#allocation14_spill] sm:$0xff] %v27573_v50  ;;  %v12837_v50 = vadd.f32 %v12818_v33, %v27376_v26 }
 0x827   :  { %v14158_v45 = vpop.f32.mrf.mxu1 }
 0x829   :  { %v14162_v43 = vpop.f32.mrf.mxu1 }
 0x82b   :  { %v27575_v0 = vpop.f32.mrf.mxu1 }
 0x82c   :  { %27834 = vst [vmem:[#allocation15_spill] sm:$0xff] %v27575_v0 }
 0x82d   :  { %v27579_v23 = vpop.f32.mrf.mxu1 }
 0x82e   :  { %27836 = vst [vmem:[#allocation25_spill] sm:$0xff] %v27579_v23  ;;  %v12839_v23 = vadd.f32 %v12822_v54, %v27384_v39  ;;  %v12488_v39 = vadd.f32 %v27511_v17, %v27517_v49  ;;  %v12842_v54 = vadd.f32 %v27535_v8, %v12486_v58  ;;  %v12844_v17 = vadd.f32 %v27539_v5, %v12490_v52 }
 0x82f   :  { %v27583_v47 = vpop.f32.mrf.mxu1 }
 0x830   :  { %27838 = vst [vmem:[#allocation20_spill] sm:$0xff] %v27583_v47  ;;  %v12840_v47 = vadd.f32 %v12824_v41, %v27386_v63  ;;  %v13153_v26 = vadd.f32 %v27523_v2, %v12839_v23  ;;  %v13156_v55 = vadd.f32 %v27529_v19, %v12842_v54 }
 0x832   :  { %v13506_v33 = vadd.f32 %v13489_v36, %v13153_v26  ;;  %v13154_v63 = vadd.f32 %v27525_v15, %v12840_v47  ;;  %v13509_v29 = vadd.f32 %v27553_v42, %v13156_v55  ;;  %v13158_v36 = vadd.f32 %v27533_v12, %v12844_v17 }
 0x834   :  { %v13507_v2 = vadd.f32 %v13491_v38, %v13154_v63  ;;  %v13862_v42 = vadd.f32 %v27547_v24, %v13509_v29 }
 0x836   :  { %v13860_v61 = vadd.f32 %v27543_v37, %v13507_v2  ;;  %v27852_v2 = vld [vmem:[#allocation11_spill] sm:$0xff] }
 0x838   :  { %v14174_v56 = vadd.f32 %v14158_v45, %v13860_v61  ;;  %v27855_v61 = vld [vmem:[#allocation14_spill] sm:$0xff] }
 0x857   :  { %v27577_v22 = vpop.f32.mrf.mxu0 }
 0x858   :  { %27835 = vst [vmem:[#allocation18_spill] sm:$0xff] %v27577_v22 }
 0x859   :  { %v27581_v30 = vpop.f32.mrf.mxu0 }
 0x85a   :  { %27837 = vst [vmem:[#allocation19_spill] sm:$0xff] %v27581_v30  ;;  %v13151_v30 = vadd.f32 %v13132_v3, %v12837_v50 }
 0x85b   :  { %v27585_v51 = vpop.f32.mrf.mxu0 }
 0x85c   :  { %27839 = vst [vmem:[#allocation21_spill] sm:$0xff] %v27585_v51  ;;  %v13504_v51 = vadd.f32 %v13485_v31, %v13151_v30 }
 0x85d   :  { %v27587_v25 = vpop.f32.mrf.mxu0 }
 0x85e   :  { %27840 = vst [vmem:[#allocation23_spill] sm:$0xff] %v27587_v25  ;;  %v13857_v18 = vadd.f32 %v13838_v6, %v13504_v51  ;;  %v14172_v51 = vadd.f32 %v14154_v60, %v13858_v32  ;;  %v13859_v6 = vadd.f32 %v27541_v16, %v13506_v33  ;;  %v27850_v33 = vld [vmem:[#allocation20_spill] sm:$0xff] }
 0x85f   :  { %v27589_v14 = vpop.f32.mrf.mxu0 }
 0x860   :  { %27841 = vst [vmem:[#allocation24_spill] sm:$0xff] %v27589_v14  ;;  %v12841_v14 = vadd.f32 %v12828_v46, %v27388_v62  ;;  %v12843_v62 = vadd.f32 %v12832_v1, %v12488_v39  ;;  %v14171_v59 = vadd.f32 %v14152_v7, %v13857_v18  ;;  %v14173_v1 = vadd.f32 %v14156_v48, %v13859_v6  ;;  %v27843_v48 = vld [vmem:[#allocation17_spill] sm:$0xff] }
 0x861   :  { %v14858_v27 = vpop.f32.mrf.mxu1  ;;  %v27593_v0 = vpop.f32.mrf.mxu0  ;;  %v14525_v19 = vadd.f32 %v27559_v4, %v14172_v51  ;;  %v14527_v45 = vadd.f32 %v27843_v48, %v14174_v56  ;;  %v27846_v4 = vld [vmem:[#allocation25_spill] sm:$0xff]  ;;  %v27849_v58 = vld [vmem:[#allocation19_spill] sm:$0xff] }
 0x862   :  { %v13155_v46 = vadd.f32 %v27527_v10, %v12841_v14  ;;  %v13157_v11 = vadd.f32 %v27531_v35, %v12843_v62  ;;  %v14524_v10 = vadd.f32 %v27555_v28, %v14171_v59  ;;  %v13511_v35 = vadd.f32 %v27561_v40, %v13158_v36  ;;  %v27844_v14 = vld [vmem:[#allocation18_spill] sm:$0xff]  ;;  %v27847_v40 = vld [vmem:[#allocation16_spill] sm:$0xff] }
 0x863   :  { %v14860_v13 = vpop.f32.mrf.mxu1  ;;  %v27598_v25 = vpop.f32.mrf.mxu0  ;;  %v14526_v28 = vadd.f32 %v27563_v21, %v14173_v1  ;;  %v27848_v21 = vld [vmem:[#allocation10_spill] sm:$0xff]  ;;  %v27851_v54 = vld [vmem:[#allocation21_spill] sm:$0xff] }
 0x864   :  { %v13508_v15 = vadd.f32 %v13495_v53, %v13155_v46  ;;  %v13510_v5 = vadd.f32 %v27557_v34, %v13157_v11  ;;  %v14877_v53 = vadd.f32 %v14858_v27, %v14524_v10  ;;  %v14878_v37 = vadd.f32 %v14860_v13, %v14525_v19  ;;  %v27845_v27 = vld [vmem:[#allocation15_spill] sm:$0xff]  ;;  %v27853_v59 = vld [vmem:[#allocation22_spill] sm:$0xff] }
 0x865   :  { %v14862_v57 = vpop.f32.mrf.mxu1  ;;  %v27610_v41 = vpop.f32.mrf.mxu0  ;;  %v14176_v50 = vadd.f32 %v27845_v27, %v13862_v42  ;;  %v13864_v30 = vadd.f32 %v27847_v40, %v13511_v35  ;;  %v27854_v6 = vld [vmem:[#allocation23_spill] sm:$0xff] }
 0x866   :  { %v13861_v16 = vadd.f32 %v27545_v20, %v13508_v15  ;;  %v13863_v34 = vadd.f32 %v27842_v44, %v13510_v5  ;;  %v14879_v12 = vadd.f32 %v14862_v57, %v14526_v28  ;;  %v15192_v20 = vadd.f32 %v27844_v14, %v14877_v53 }
 0x867   :  { %v14864_v22 = vpop.f32.mrf.mxu1  ;;  %v15193_v39 = vadd.f32 %v27849_v58, %v14878_v37  ;;  %v14178_v57 = vadd.f32 %v27850_v33, %v13864_v30  ;;  %v14529_v46 = vadd.f32 %v27852_v2, %v14176_v50  ;;  %v27856_v56 = vld [vmem:[#allocation24_spill] sm:$0xff] }
 0x868   :  { %v14175_v7 = vadd.f32 %v14162_v43, %v13861_v16  ;;  %v14177_v23 = vadd.f32 %v27846_v4, %v13863_v34  ;;  %v14880_v47 = vadd.f32 %v14864_v22, %v14527_v45  ;;  %v15194_v62 = vadd.f32 %v27851_v54, %v14879_v12 }
 0x869   :  { %v14868_v3 = vpop.f32.mrf.mxu1  ;;  %v14531_v10 = vadd.f32 %v27855_v61, %v14178_v57 }
 0x86a   :  { %v14528_v26 = vadd.f32 %v27848_v21, %v14175_v7  ;;  %v14530_v32 = vadd.f32 %v27853_v59, %v14177_v23  ;;  %v15195_v55 = vadd.f32 %v27854_v6, %v14880_v47 }
 0x86b   :  { %v14870_v49 = vpop.f32.mrf.mxu1 }
 0x86c   :  { %v14881_v18 = vadd.f32 %v14868_v3, %v14528_v26  ;;  %v14882_v11 = vadd.f32 %v14870_v49, %v14529_v46 }
 0x86d   :  { %v14872_v38 = vpop.f32.mrf.mxu1 }
 0x86e   :  { %v14883_v1 = vadd.f32 %v14872_v38, %v14530_v32  ;;  %v15196_v16 = vadd.f32 %v27856_v56, %v14881_v18  ;;  %v15197_v37 = vadd.f32 %v27593_v0, %v14882_v11 }
 0x86f   :  { %v14874_v60 = vpop.f32.mrf.mxu1 }
 0x870   :  { %v14884_v53 = vadd.f32 %v14874_v60, %v14531_v10  ;;  %v15198_v42 = vadd.f32 %v27598_v25, %v14883_v1 }
 0x897   :  { %v15879_v31 = vpop.f32.mrf.mxu0 }
 0x899   :  { %v15881_v8 = vpop.f32.mrf.mxu0 }
 0x89b   :  { %v15883_v9 = vpop.f32.mrf.mxu0 }
 0x89d   :  { %v15885_v13 = vpop.f32.mrf.mxu0 }
 0x89f   :  { %v15889_v15 = vpop.f32.mrf.mxu0 }
 0x8a1   :  { %v15526_v43 = vpop.f32.mrf.mxu1  ;;  %v15891_v19 = vpop.f32.mrf.mxu0 }
 0x8a2   :  { %v15545_v24 = vadd.f32 %v15526_v43, %v15192_v20  ;;  %v15199_v20 = vadd.f32 %v27610_v41, %v14884_v53 }
 0x8a3   :  { %v15528_v63 = vpop.f32.mrf.mxu1  ;;  %v15893_v48 = vpop.f32.mrf.mxu0 }
 0x8a4   :  { %v15546_v52 = vadd.f32 %v15528_v63, %v15193_v39  ;;  %v27640_v17 = vadd.f32 %v15879_v31, %v15545_v24 }
 0x8a5   :  { %v15530_v22 = vpop.f32.mrf.mxu1 }
 0x8a6   :  { %v15547_v51 = vadd.f32 %v15530_v22, %v15194_v62  ;;  %v27644_v29 = vadd.f32 %v15881_v8, %v15546_v52  ;;  %v15924_v31 = vmul.f32 %v27640_v17, %v27640_v17 }
 0x8a7   :  { %v15532_v3 = vpop.f32.mrf.mxu1 }
 0x8a8   :  { %v27646_v5 = vadd.f32 %v15883_v9, %v15547_v51  ;;  %v15548_v36 = vadd.f32 %v15532_v3, %v15195_v55  ;;  %v15925_v9 = vmul.f32 %v27644_v29, %v27644_v29 }
 0x8a9   :  { %v15536_v35 = vpop.f32.mrf.mxu1 }
 0x8aa   :  { %v15906_v49 = vadd.f32 %v27646_v5, %v27640_v17  ;;  %v15926_v38 = vmul.f32 %v27646_v5, %v27646_v5  ;;  %v27655_v8 = vadd.f32 %v15885_v13, %v15548_v36  ;;  %v15549_v7 = vadd.f32 %v15536_v35, %v15196_v16  ;;  %v15895_v13 = vpop.f32.mrf.mxu0 }
 0x8ab   :  { %v15538_v28 = vpop.f32.mrf.mxu1 }
 0x8ac   :  { %v15932_v44 = vadd.f32 %v15926_v38, %v15924_v31  ;;  %v15915_v34 = vadd.f32 %v27655_v8, %v27644_v29  ;;  %v15927_v60 = vmul.f32 %v27655_v8, %v27655_v8  ;;  %v27665_v12 = vadd.f32 %v15889_v15, %v15549_v7 }
 0x8ad   :  { %v15550_v45 = vadd.f32 %v15538_v28, %v15197_v37  ;;  %v15540_v14 = vpop.f32.mrf.mxu1 }
 0x8ae   :  { %v15941_v27 = vadd.f32 %v15927_v60, %v15925_v9  ;;  %v15907_v0 = vadd.f32 %v15906_v49, %v27665_v12  ;;  %v15928_v25 = vmul.f32 %v27665_v12, %v27665_v12  ;;  %v15551_v50 = vadd.f32 %v15540_v14, %v15198_v42 }
 0x8af   :  { %v27671_v4 = vadd.f32 %v15891_v19, %v15550_v45  ;;  %v15542_v23 = vpop.f32.mrf.mxu1  ;;  %v21787_v60 = vmov 1966171168  }
 0x8b0   :  { %v15933_v40 = vadd.f32 %v15932_v44, %v15928_v25  ;;  %v27673_v30 = vadd.f32 %v15893_v48, %v15551_v50  ;;  %v15552_v43 = vadd.f32 %v15542_v23, %v15199_v20  ;;  %v15968_v48 = vunpack.c.l.s4 %v21787_v60  ;;  %v27857_v20 = vld [vmem:[#allocation12_spill] sm:$0xff]  ;;  %v15959_v23 = vld [vmem:[%s27731_s7] sm:$0x3] }
 0x8b1   :  { %v15916_v47 = vadd.f32 %v15915_v34, %v27671_v4  ;;  %v15929_v41 = vmul.f32 %v27671_v4, %v27671_v4 }
 0x8b2   :  { %v15908_v21 = vadd.f32 %v15907_v0, %v27673_v30  ;;  %v15930_v26 = vmul.f32 %v27673_v30, %v27673_v30  ;;  %v27681_v24 = vadd.f32 %v15895_v13, %v15552_v43  ;;  %v15969_v45 = vunpack.c.0.s8 %v15968_v48 }
 0x8b3   :  { %v15942_v58 = vadd.f32 %v15941_v27, %v15929_v41  ;;  %v15991_v43 = vsub.s32 1, %v27857_v20 }
 0x8b4   :  { %v15909_v39 = vrot.slane %v15908_v21, 4  ;;  %v15934_v33 = vadd.f32 %v15933_v40, %v15930_v26  ;;  %v15917_v57 = vadd.f32 %v15916_v47, %v27681_v24  ;;  %v15931_v63 = vmul.f32 %v27681_v24, %v27681_v24  ;;  %v27858_v47 = vld [vmem:[#allocation13_spill] sm:$0xff] }
 0x8b5   :  { %v15972_v27 = vsub.s32 %v15969_v45, %v27857_v20 }
 0x8b6   :  { %v15910_v18 = vadd.f32 %v15909_v39, %v15908_v21  ;;  %v15935_v52 = vrot.slane %v15934_v33, 4  ;;  %v15918_v54 = vrot.slane %v15917_v57, 4  ;;  %v15943_v62 = vadd.f32 %v15942_v58, %v15931_v63 }
 0x8b8   :  { %v15911_v2 = vrot.slane %v15910_v18, 2  ;;  %v15936_v46 = vadd.f32 %v15935_v52, %v15934_v33  ;;  %v15919_v59 = vadd.f32 %v15918_v54, %v15917_v57  ;;  %v15944_v32 = vrot.slane %v15943_v62, 4 }
 0x8ba   :  { %v15912_v15 = vadd.f32 %v15911_v2, %v15910_v18  ;;  %v15937_v22 = vrot.slane %v15936_v46, 2  ;;  %v15920_v51 = vrot.slane %v15919_v59, 2  ;;  %v15945_v6 = vadd.f32 %v15944_v32, %v15943_v62 }
 0x8bc   :  { %v15913_v55 = vrot.slane %v15912_v15, 1  ;;  %v15938_v11 = vadd.f32 %v15937_v22, %v15936_v46  ;;  %v15921_v1 = vadd.f32 %v15920_v51, %v15919_v59  ;;  %v15946_v61 = vrot.slane %v15945_v6, 2  ;;  %v15983_v46 = vld [vmem:[%s27732_s8] sm:$0x3] }
 0x8be   :  { %v15914_v10 = vadd.f32 %v15913_v55, %v15912_v15  ;;  %v15939_v3 = vrot.slane %v15938_v11, 1  ;;  %v15922_v36 = vrot.slane %v15921_v1, 1  ;;  %v15947_v56 = vadd.f32 %v15946_v61, %v15945_v6 }
 0x8c0   :  { %v15940_v16 = vadd.f32 %v15939_v3, %v15938_v11  ;;  %v15951_v53 = vmul.f32 0.03125, %v15914_v10  ;;  %v15923_v31 = vadd.f32 %v15922_v36, %v15921_v1  ;;  %v15948_v19 = vrot.slane %v15947_v56, 1 }
 0x8c2   :  { %v15953_v35 = vmul.f32 0.03125, %v15940_v16  ;;  %v15955_v49 = vmul.f32 %v15951_v53, %v15951_v53  ;;  %v15949_v38 = vadd.f32 %v15948_v19, %v15947_v56  ;;  %v15952_v7 = vmul.f32 0.03125, %v15923_v31 }
 0x8c4   :  { %v15957_v9 = vsub.f32 %v15953_v35, %v15955_v49  ;;  %v15954_v37 = vmul.f32 0.03125, %v15949_v38  ;;  %v15956_v28 = vmul.f32 %v15952_v7, %v15952_v7 }
 0x8c6   :  { %v15960_v42 = vadd.f32 1e-05, %v15957_v9  ;;  %v15958_v44 = vsub.f32 %v15954_v37, %v15956_v28  ;;  %v16070_v9 = vld [vmem:[%s27728_s4 + $0x18] sm:$0xff] }
 0x8c8   :  { %v15961_v34 = vadd.f32 1e-05, %v15958_v44  ;;  %21752 = vrsqrt.f32 %v15960_v42 }
 0x8ca   :  { %21754 = vrsqrt.f32 %v15961_v34 }
 0x8d5   :  { %v21753_v14 = vpop.eup %21752 }
 0x8d7   :  { %v21755_v0 = vpop.eup %21754 }
 0x8d8   :  { %v15966_v25 = vcombine.low %v21753_v14, %v21755_v0 }
 0x8da   :  { %v15973_v50 = vrot.slane %v15966_v25, %v15972_v27 }
 0x8dc   :  { %v15980_v40 = vrot.slane %v15973_v50, %v15972_v27 }
 0x8de   :  { %v15982_v13 = vmul.f32 %v15980_v40, %v15959_v23  ;;  %v27859_v40 = vlaneseq }
 0x8e0   :  { %v15988_v41 = vrot.slane %v15982_v13, %v27858_v47  ;;  %v15992_v21 = vrot.slane %v15982_v13, %v15991_v43 }
 0x8e2   :  { %v15995_v26 = vmul.f32 %v15988_v41, %v15951_v53  ;;  %v15996_v58 = vmul.f32 %v15992_v21, %v15952_v7  ;;  %v16020_v39 = vmul.f32 %v15988_v41, %v27665_v12  ;;  %v16021_v33 = vmul.f32 %v15992_v21, %v27671_v4  ;;  %v16069_v7 = vld [vmem:[%s27728_s4 + $0x10] sm:$0xff] }
 0x8e3   :  { %v16016_v57 = vmul.f32 %v15988_v41, %v27640_v17  ;;  %v16017_v63 = vmul.f32 %v15992_v21, %v27644_v29  ;;  %v16022_v18 = vmul.f32 %v15988_v41, %v27673_v30  ;;  %v16018_v54 = vmul.f32 %v15988_v41, %v27646_v5  ;;  %v16067_v5 = vld [vmem:[%s27728_s4] sm:$0xff] }
 0x8e4   :  { %v15999_v52 = vcombine.low %v15995_v26, %v15996_v58  ;;  %v16019_v62 = vmul.f32 %v15992_v21, %v27655_v8  ;;  %v16023_v17 = vmul.f32 %v15992_v21, %v27681_v24  ;;  %v16068_v8 = vld [vmem:[%s27728_s4 + $0x8] sm:$0xff] }
 0x8e6   :  { %v16006_v2 = vrot.slane %v15999_v52, %v15972_v27 }
 0x8e8   :  { %v16013_v59 = vrot.slane %v16006_v2, %v15972_v27 }
 0x8ea   :  { %v16015_v12 = vsub.f32 %v15983_v46, %v16013_v59 }
 0x8ec   :  { %v16028_v4 = vrot.slane %v16015_v12, %v27858_v47  ;;  %v16032_v32 = vrot.slane %v16015_v12, %v15991_v43  ;;  %v16096_v43 = vand.u32 127, %v27859_v40 }
 0x8ee   :  { %v16039_v29 = vadd.f32 %v16028_v4, %v16020_v39  ;;  %v16040_v15 = vadd.f32 %v16032_v32, %v16021_v33  ;;  %v16035_v30 = vadd.f32 %v16028_v4, %v16016_v57  ;;  %v16036_v22 = vadd.f32 %v16032_v32, %v16017_v63 }
 0x8ef   :  { %v16041_v51 = vadd.f32 %v16028_v4, %v16022_v18  ;;  %v16042_v6 = vadd.f32 %v16032_v32, %v16023_v17  ;;  %v16037_v55 = vadd.f32 %v16028_v4, %v16018_v54  ;;  %v16038_v11 = vadd.f32 %v16032_v32, %v16019_v62 }
 0x8f0   :  { %vm16047_vm13 = vcmp.gt.f32.partialorder %v16039_v29, 0.0  ;;  %vm16048_vm6 = vcmp.gt.f32.partialorder %v16040_v15, 0.0  ;;  %v16055_v1 = vmul.f32 0.2, %v16039_v29  ;;  %v16056_v24 = vmul.f32 0.2, %v16040_v15 }
 0x8f1   :  { %vm16043_vm9 = vcmp.gt.f32.partialorder %v16035_v30, 0.0  ;;  %vm16044_vm10 = vcmp.gt.f32.partialorder %v16036_v22, 0.0  ;;  %v16051_v61 = vmul.f32 0.2, %v16035_v30  ;;  %v16052_v10 = vmul.f32 0.2, %v16036_v22 }
 0x8f2   :  { %v16063_v3 = vsel %vm16047_vm13, %v16039_v29, %v16055_v1  ;;  %v16064_v36 = vsel %vm16048_vm6, %v16040_v15, %v16056_v24  ;;  %vm16049_vm11 = vcmp.gt.f32.partialorder %v16041_v51, 0.0  ;;  %vm16050_vm12 = vcmp.gt.f32.partialorder %v16042_v6, 0.0 }
 0x8f3   :  { %v16075_v56 = vmul.f32 %v16067_v5, %v16063_v3  ;;  %v16076_v16 = vmul.f32 %v16068_v8, %v16064_v36  ;;  %v16059_v53 = vsel %vm16043_vm9, %v16035_v30, %v16051_v61  ;;  %v16060_v31 = vsel %vm16044_vm10, %v16036_v22, %v16052_v10 }
 0x8f4   :  { %v16071_v19 = vmul.f32 %v16067_v5, %v16059_v53  ;;  %v16072_v35 = vmul.f32 %v16068_v8, %v16060_v31  ;;  %v16057_v49 = vmul.f32 0.2, %v16041_v51  ;;  %v16058_v38 = vmul.f32 0.2, %v16042_v6 }
 0x8f5   :  { %v16085_v37 = vadd.f32 %v16076_v16, %v16075_v56  ;;  %vm16045_vm14 = vcmp.gt.f32.partialorder %v16037_v55, 0.0  ;;  %vm16046_vm15 = vcmp.gt.f32.partialorder %v16038_v11, 0.0  ;;  %v16053_v28 = vmul.f32 0.2, %v16037_v55 }
 0x8f6   :  { %v16079_v42 = vadd.f32 %v16072_v35, %v16071_v19  ;;  %v16065_v44 = vsel %vm16049_vm11, %v16041_v51, %v16057_v49  ;;  %v16066_v34 = vsel %vm16050_vm12, %v16042_v6, %v16058_v38  ;;  %v16054_v60 = vmul.f32 0.2, %v16038_v11 }
 0x8f7   :  { %16086 = vadd.xlane.f32.xlu1 %v16085_v37  ;;  %v16077_v48 = vmul.f32 %v16069_v7, %v16065_v44  ;;  %v16078_v45 = vmul.f32 %v16070_v9, %v16066_v34  ;;  %v16061_v14 = vsel %vm16045_vm14, %v16037_v55, %v16053_v28  ;;  %v16101_v13 = vadd.s32 4294967288, %v16096_v43 }
 0x8f8   :  { %16080 = vadd.xlane.f32.xlu0 %v16079_v42  ;;  %v16062_v27 = vsel %vm16046_vm15, %v16038_v11, %v16054_v60  ;;  %v16073_v0 = vmul.f32 %v16069_v7, %v16061_v14  ;;  %v16099_v41 = vsub.s32 %v16096_v43, %v27857_v20 }
 0x8f9   :  { %v16088_v25 = vadd.f32 %v16078_v45, %v16077_v48  ;;  %v16074_v50 = vmul.f32 %v16070_v9, %v16062_v27  ;;  %v16104_v26 = vsub.s32 %v16101_v13, %v27857_v20 }
 0x8fb   :  { %16089 = vadd.xlane.f32.xlu1 %v16088_v25  ;;  %v16082_v23 = vadd.f32 %v16074_v50, %v16073_v0 }
 0x8fd   :  { %16083 = vadd.xlane.f32.xlu0 %v16082_v23 }
 0x980   :  { %v16087_v47 = vpop.xlane.xlu1 %16086 }
 0x981   :  { %v16081_v21 = vpop.xlane.xlu0 %16080  ;;  %v16111_v39 = vrot.slane %v16087_v47, %v16099_v41 }
 0x982   :  { %v16100_v63 = vrot.slane %v16081_v21, %v16099_v41 }
 0x984   :  { %v16090_v58 = vpop.xlane.xlu1 %16089 }
 0x985   :  { %v16115_v33 = vrot.slane %v16090_v58, %v16104_v26 }
 0x986   :  { %v16084_v57 = vpop.xlane.xlu0 %16083 }
 0x987   :  { %v16105_v18 = vrot.slane %v16084_v57, %v16104_v26  ;;  %v16116_v52 = vsel %vm16106_vm0, %v16115_v33, %v16111_v39 }
 0x989   :  { %v16107_v54 = vsel %vm16106_vm0, %v16105_v18, %v16100_v63 }
 0x98a   :  { %v16118_v62 = vsel %vm16117_vm1, %v16116_v52, %v16107_v54 }
 0x98b   :  { %v16121_v2 = vsel %vm16120_vm2, %v16118_v62, 0.0 }
 0x98c   :  { %16122 = vadd.xlane.f32.xlu0 %v16121_v2 }
 0xa15   :  { %v16123_v46 = vpop.xlane.xlu0 %16122 }
 0xa16   :  { %v18944_v59 = vmul.f32 -1.442695, %v16123_v46 }
 0xa18   :  { %21756 = vpow2.f32 %v18944_v59 }
 0xa25   :  { %v21757_v12 = vpop.eup %21756 }
 0xa26   :  { %v16127_v4 = vadd.f32 1.0, %v21757_v12 }
 0xa28   :  { %21758 = vrcp.f32 %v16127_v4 }
 0xa35   :  { %v21759_v20 = vpop.eup %21758 }
 0xa36   :  { %16130 = vst [vmem:[%s27733_s9] sm:$0x3] %v21759_v20 }
 0xa37   :  { %16135 = vsyncpa [#allocation5], 1 }

</bundles_post_ra>
